<compile_context>
chip_gen: v7x
topology: tpu7x:2x2x1
jax: 0.10.0
libtpu: 0.0.40
codegen_flags: <defaults>
</compile_context>

<pallas_src>
import jax
import jax.numpy as jnp
from jax.experimental import pallas as pl
from jax.experimental.pallas import tpu as pltpu


# ------------------------- tiling helper -------------------------

def _pick_tm(m, *, target=1024, split_threshold=512):
    """Row-tile size: full block for small M, otherwise a multiple-of-8 tile
    (capped at `target`) chosen so there are always >=2 grid steps (lets the
    "parallel" grid axis shard across v7x's two TensorCores)."""
    if m <= split_threshold:
        return m
    half = -(-m // 2)                       # cdiv(m, 2) -> guarantees >=2 steps
    return min(target, ((half + 7) // 8) * 8)


# ------------------------- Pallas kernels -------------------------

def _conv_pool_kernel(a_ref, w_ref, shift_ref, o_ref):
    # Fused conv (as im2col matmul) + folded-BN shift + ReLU + 2x2 max-pool.
    #   a:     (4, TM, K) bf16  -- the 4 pool-window offsets of each output row
    #   w:     (K, N)     bf16  -- conv weight with BN scale folded in
    #   shift: (1, N)     f32   -- folded BN shift
    #   o:     (TM, N)    bf16  -- pooled activation rows
    # relu(max_i(acc_i) + shift) == max_i(relu(acc_i + shift)) since shift is
    # per-column and relu is monotonic, so pooling happens on the raw f32
    # accumulators (pure VPU max between MXU passes).
    w = w_ref[...]
    acc = jnp.dot(a_ref[0], w, preferred_element_type=jnp.float32)
    acc = jnp.maximum(acc, jnp.dot(a_ref[1], w, preferred_element_type=jnp.float32))
    acc = jnp.maximum(acc, jnp.dot(a_ref[2], w, preferred_element_type=jnp.float32))
    acc = jnp.maximum(acc, jnp.dot(a_ref[3], w, preferred_element_type=jnp.float32))
    o_ref[...] = jnp.maximum(acc + shift_ref[...], 0.0).astype(o_ref.dtype)


def conv_bn_relu_pool_matmul(a, w, shift):
    """a: (4, M, K) bf16, w: (K, N) bf16, shift: (1, N) f32 -> (M, N) bf16."""
    _, M, K = a.shape
    _, N = w.shape
    TM = _pick_tm(M)
    return pl.pallas_call(
        _conv_pool_kernel,
        out_shape=jax.ShapeDtypeStruct((M, N), jnp.bfloat16),
        grid=(pl.cdiv(M, TM),),
        in_specs=[
            pl.BlockSpec((4, TM, K), lambda i: (0, i, 0)),   # streamed row tiles
            pl.BlockSpec((K, N), lambda i: (0, 0)),          # weights pinned
            pl.BlockSpec((1, N), lambda i: (0, 0)),          # shift pinned
        ],
        out_specs=pl.BlockSpec((TM, N), lambda i: (i, 0)),
        compiler_params=pltpu.CompilerParams(
            dimension_semantics=("parallel",),               # megacore on v7x
            vmem_limit_bytes=32 * 1024 * 1024),
    )(a, w, shift)


def _head_kernel(x_ref, w_ref, b_ref, o_ref):
    # x: (B, Hf, 2, 256) bf16   w: (2, 256, 176) bf16   b: (1, 176) f32
    # o: (B, 176) f32.  Time-mean (f32) then two bf16 MXU dots (one per final
    # frequency position) with f32 accumulation.
    m = jnp.mean(x_ref[...].astype(jnp.float32), axis=1).astype(jnp.bfloat16)
    acc = jnp.dot(m[:, 0, :], w_ref[0], preferred_element_type=jnp.float32)
    acc = acc + jnp.dot(m[:, 1, :], w_ref[1], preferred_element_type=jnp.float32)
    o_ref[...] = (acc + b_ref[...]).astype(o_ref.dtype)


def head(x, w, b):
    B, Hf, W2, C = x.shape
    KW, KC, O = w.shape
    return pl.pallas_call(
        _head_kernel,
        out_shape=jax.ShapeDtypeStruct((B, O), jnp.float32),
        grid=(1,),
        in_specs=[
            pl.BlockSpec((B, Hf, W2, C), lambda i: (0, 0, 0, 0)),
            pl.BlockSpec((KW, KC, O), lambda i: (0, 0, 0)),
            pl.BlockSpec((1, O), lambda i: (0, 0)),
        ],
        out_specs=pl.BlockSpec((B, O), lambda i: (0, 0)),
        compiler_params=pltpu.CompilerParams(
            dimension_semantics=("arbitrary",)),
    )(x, w, b)


# ------------------------- plain-JAX glue -------------------------

def _replicate_pad(x, p=1):
    # PyTorch padding_mode='replicate', padding = 3 // 2 = 1 for every layer.
    return jnp.pad(x, ((0, 0), (p, p), (p, p), (0, 0)), mode="edge")


def _im2col_pooled(xp, k):
    """Pool-ordered im2col.  Returns A of shape (4, Mo, K) with
    A[2*dy+dx, (b*Hq+hq)*Wq+wq, (i*k+j)*Cin+ci] = xp[b, 2*hq+dy+i, 2*wq+dx+j, ci]
    so each pooled output row only needs an element-wise max over the leading
    dim after the matmul (floor-mode 2x2 pooling is implicit: odd conv rows /
    cols are never gathered)."""
    B, Hp, Wp, Cin = xp.shape
    Ho, Wo = Hp - k + 1, Wp - k + 1
    Hq, Wq = Ho // 2, Wo // 2
    slabs = []
    for dy in range(2):
        for dx in range(2):
            cols = [xp[:, dy + i: dy + i + 2 * Hq: 2,
                       dx + j: dx + j + 2 * Wq: 2, :]
                    for i in range(k) for j in range(k)]
            a = jnp.stack(cols, axis=3)               # (B, Hq, Wq, k*k, Cin)
            slabs.append(a.reshape(B * Hq * Wq, k * k * Cin))
    return jnp.stack(slabs, axis=0), (B, Hq, Wq)


def conv_bn_relu_pool_layer(x, wmat, shift, k, cout):
    # x: (B, H, W, Cin) bf16; wmat: (k*k*Cin, Cout) bf16 (BN scale folded in)
    xp = _replicate_pad(x, 1)
    a, (B, Hq, Wq) = _im2col_pooled(xp, k)
    y = conv_bn_relu_pool_matmul(a, wmat, shift)
    return y.reshape(B, Hq, Wq, cout)


# ------------------------- parameters & forward -------------------------

LAYER_CFG = (
    dict(k=7, cin=1, cout=32),
    dict(k=5, cin=32, cout=64),
    dict(k=3, cin=64, cout=128),
    dict(k=3, cin=128, cout=256),
)


def init_raw_params(key):
    keys = jax.random.split(key, 10)

    def conv_w(k, kh, kw, cin, cout):
        return jax.random.normal(k, (kh, kw, cin, cout), jnp.float32) * (
            1.0 / jnp.sqrt(float(kh * kw * cin)))

    def bn(k, c):
        k1, k2, k3, k4 = jax.random.split(k, 4)
        gamma = 1.0 + 0.1 * jax.random.normal(k1, (c,), jnp.float32)
        beta = 0.1 * jax.random.normal(k2, (c,), jnp.float32)
        rmean = 0.1 * jax.random.normal(k3, (c,), jnp.float32)
        rvar = 1.0 + 0.1 * jnp.abs(jax.random.normal(k4, (c,), jnp.float32))
        return (gamma, beta, rmean, rvar)

    raw = {}
    for n, cfg in enumerate(LAYER_CFG):
        raw[f"conv{n}"] = conv_w(keys[2 * n], cfg["k"], cfg["k"],
                                 cfg["cin"], cfg["cout"])
        raw[f"bn{n}"] = bn(keys[2 * n + 1], cfg["cout"])
    raw["fc_w"] = 0.02 * jax.random.normal(keys[8], (176, 512), jnp.float32)
    raw["fc_b"] = 0.02 * jax.random.normal(keys[9], (176,), jnp.float32)
    return raw


def prepare_params(raw):
    """One-time prep (hoisted off the forward path): fold eval-mode BN into the
    conv weights + per-channel shift, cast all MXU operands to bf16, and bake
    the PyTorch NCHW-flatten order (index = c*2 + w) into the head weight."""
    layers = []
    for n, cfg in enumerate(LAYER_CFG):
        gamma, beta, rmean, rvar = raw[f"bn{n}"]
        scale = gamma / jnp.sqrt(rvar + 1e-5)
        shift = beta - rmean * scale
        k, cin, cout = cfg["k"], cfg["cin"], cfg["cout"]
        w = raw[f"conv{n}"] * scale[None, None, None, :]        # fold BN scale
        layers.append({
            "w": w.reshape(k * k * cin, cout).astype(jnp.bfloat16),
            "shift": shift.reshape(1, cout).astype(jnp.float32),
        })
    # w_head[w, c, o] = W_fc[o, c*2 + w]
    w_head = raw["fc_w"].reshape(176, 256, 2).transpose(2, 1, 0)
    return {
        "layers": layers,
        "w_head": jnp.asarray(w_head, jnp.bfloat16),
        "b_head": raw["fc_b"].reshape(1, 176).astype(jnp.float32),
    }


def asr_forward(params, x):
    # x: (B, T, 40) f32 -- PyTorch does x.unsqueeze(1) -> NCHW (B, 1, T, 40);
    # here activations are NHWC bf16: (B, T, 40, 1).
    y = x.astype(jnp.bfloat16)[..., None]
    for cfg, layer in zip(LAYER_CFG, params["layers"]):
        y = conv_bn_relu_pool_layer(y, layer["w"], layer["shift"],
                                    cfg["k"], cfg["cout"])
    # y: (B, Hf, 2, 256)   [NCHW: (B, 256, Hf, 2)]
    return head(y, params["w_head"], params["b_head"])


if __name__ == "__main__":
    key = jax.random.PRNGKey(0)
    pkey, xkey = jax.random.split(key)
    params = prepare_params(init_raw_params(pkey))

    # T must survive the 4 conv/pool stages (T>=24); 40 mel bins make the final
    # width 2 so fc1 sees 256*2 = 512 features, matching the PyTorch module.
    B, T, F = 2, 32, 40
    x = jax.random.normal(xkey, (B, T, F), jnp.float32)

    fwd = jax.jit(asr_forward)
    out = jax.block_until_ready(fwd(params, x))
    assert out.shape == (B, 176), out.shape
    assert bool(jnp.all(jnp.isfinite(out)))
    print("KERNEL_OK")
</pallas_src>

<mosaic_0001>
module attributes {stable_mosaic.version = 11 : i64} {
  func.func @_conv_pool_kernel(%arg0: i32, %arg1: memref<4x504x49xbf16, #tpu.memory_space<vmem>>, %arg2: memref<49x32xbf16, #tpu.memory_space<vmem>>, %arg3: memref<1x32xf32, #tpu.memory_space<vmem>>, %arg4: memref<504x32xbf16, #tpu.memory_space<vmem>>) attributes {dimension_semantics = [#tpu.dimension_semantics<parallel>], iteration_bounds = array<i64: 1>, scalar_prefetch = 0 : i64, scratch_operands = 0 : i64, tpu.core_type = #tpu.core_type<tc>, window_params = [{transform_indices = @transform_0, window_bounds = array<i64: 4, 504, 49>}, {pipeline_mode = #tpu.pipeline_mode<synchronous>, transform_indices = @transform_1, window_bounds = array<i64: 49, 32>}, {pipeline_mode = #tpu.pipeline_mode<synchronous>, transform_indices = @transform_2, window_bounds = array<i64: 1, 32>}, {transform_indices = @transform_3, window_bounds = array<i64: 504, 32>}]} {
    %c0 = arith.constant 0 : index
    %c0_0 = arith.constant 0 : index
    %0 = vector.load %arg2[%c0, %c0_0] : memref<49x32xbf16, #tpu.memory_space<vmem>>, vector<49x32xbf16>
    %c0_1 = arith.constant 0 : index
    %c0_2 = arith.constant 0 : index
    %c0_3 = arith.constant 0 : index
    %1 = vector.load %arg1[%c0_1, %c0_2, %c0_3] : memref<4x504x49xbf16, #tpu.memory_space<vmem>>, vector<1x504x49xbf16>
    %2 = vector.shape_cast %1 : vector<1x504x49xbf16> to vector<504x49xbf16>
    %cst = arith.constant dense<0.000000e+00> : vector<504x32xf32>
    %3 = tpu.matmul %2, %0, %cst {dimension_numbers = #tpu.dot_dimension_numbers<[1], [0], [0], [1], [0, 0, 1, 1], [], []>} : vector<504x49xbf16>, vector<49x32xbf16>, vector<504x32xf32> -> vector<504x32xf32>
    %c1 = arith.constant 1 : index
    %c0_4 = arith.constant 0 : index
    %c0_5 = arith.constant 0 : index
    %4 = vector.load %arg1[%c1, %c0_4, %c0_5] : memref<4x504x49xbf16, #tpu.memory_space<vmem>>, vector<1x504x49xbf16>
    %5 = vector.shape_cast %4 : vector<1x504x49xbf16> to vector<504x49xbf16>
    %cst_6 = arith.constant dense<0.000000e+00> : vector<504x32xf32>
    %6 = tpu.matmul %5, %0, %cst_6 {dimension_numbers = #tpu.dot_dimension_numbers<[1], [0], [0], [1], [0, 0, 1, 1], [], []>} : vector<504x49xbf16>, vector<49x32xbf16>, vector<504x32xf32> -> vector<504x32xf32>
    %7 = arith.maximumf %3, %6 : vector<504x32xf32>
    %c2 = arith.constant 2 : index
    %c0_7 = arith.constant 0 : index
    %c0_8 = arith.constant 0 : index
    %8 = vector.load %arg1[%c2, %c0_7, %c0_8] : memref<4x504x49xbf16, #tpu.memory_space<vmem>>, vector<1x504x49xbf16>
    %9 = vector.shape_cast %8 : vector<1x504x49xbf16> to vector<504x49xbf16>
    %cst_9 = arith.constant dense<0.000000e+00> : vector<504x32xf32>
    %10 = tpu.matmul %9, %0, %cst_9 {dimension_numbers = #tpu.dot_dimension_numbers<[1], [0], [0], [1], [0, 0, 1, 1], [], []>} : vector<504x49xbf16>, vector<49x32xbf16>, vector<504x32xf32> -> vector<504x32xf32>
    %11 = arith.maximumf %7, %10 : vector<504x32xf32>
    %c3 = arith.constant 3 : index
    %c0_10 = arith.constant 0 : index
    %c0_11 = arith.constant 0 : index
    %12 = vector.load %arg1[%c3, %c0_10, %c0_11] : memref<4x504x49xbf16, #tpu.memory_space<vmem>>, vector<1x504x49xbf16>
    %13 = vector.shape_cast %12 : vector<1x504x49xbf16> to vector<504x49xbf16>
    %cst_12 = arith.constant dense<0.000000e+00> : vector<504x32xf32>
    %14 = tpu.matmul %13, %0, %cst_12 {dimension_numbers = #tpu.dot_dimension_numbers<[1], [0], [0], [1], [0, 0, 1, 1], [], []>} : vector<504x49xbf16>, vector<49x32xbf16>, vector<504x32xf32> -> vector<504x32xf32>
    %15 = arith.maximumf %11, %14 : vector<504x32xf32>
    %c0_13 = arith.constant 0 : index
    %c0_14 = arith.constant 0 : index
    %16 = vector.load %arg3[%c0_13, %c0_14] : memref<1x32xf32, #tpu.memory_space<vmem>>, vector<1x32xf32>
    %17 = vector.broadcast %16 : vector<1x32xf32> to vector<504x32xf32>
    %18 = arith.addf %15, %17 : vector<504x32xf32>
    %cst_15 = arith.constant 0.000000e+00 : f32
    %19 = vector.broadcast %cst_15 : f32 to vector<504x32xf32>
    %20 = arith.maximumf %18, %19 : vector<504x32xf32>
    %21 = arith.truncf %20 : vector<504x32xf32> to vector<504x32xbf16>
    %c0_16 = arith.constant 0 : index
    %c0_17 = arith.constant 0 : index
    %22 = vector.load %arg4[%c0_16, %c0_17] : memref<504x32xbf16, #tpu.memory_space<vmem>>, vector<504x32xbf16>
    tpu.vector_store %arg4[%c0_16, %c0_17], %21 {strides = array<i32>} : memref<504x32xbf16, #tpu.memory_space<vmem>>, vector<504x32xbf16>,
    return
  }
  func.func @transform_0(%arg0: i32) -> (i32, i32, i32) {
    %c0_i32 = arith.constant 0 : i32
    %c0_i32_0 = arith.constant 0 : i32
    %c0_i32_1 = arith.constant 0 : i32
    return %c0_i32, %arg0, %c0_i32_0 : i32, i32, i32
  }
  func.func @transform_1(%arg0: i32) -> (i32, i32) {
    %c0_i32 = arith.constant 0 : i32
    %c0_i32_0 = arith.constant 0 : i32
    %c0_i32_1 = arith.constant 0 : i32
    return %c0_i32, %c0_i32_0 : i32, i32
  }
  func.func @transform_2(%arg0: i32) -> (i32, i32) {
    %c0_i32 = arith.constant 0 : i32
    %c0_i32_0 = arith.constant 0 : i32
    %c0_i32_1 = arith.constant 0 : i32
    return %c0_i32, %c0_i32_0 : i32, i32
  }
  func.func @transform_3(%arg0: i32) -> (i32, i32) {
    %c0_i32 = arith.constant 0 : i32
    %c0_i32_0 = arith.constant 0 : i32
    return %arg0, %c0_i32 : i32, i32
  }
}

module attributes {stable_mosaic.version = 11 : i64} {
  func.func @_conv_pool_kernel(%arg0: i32, %arg1: memref<4x96x800xbf16, #tpu.memory_space<vmem>>, %arg2: memref<800x64xbf16, #tpu.memory_space<vmem>>, %arg3: memref<1x64xf32, #tpu.memory_space<vmem>>, %arg4: memref<96x64xbf16, #tpu.memory_space<vmem>>) attributes {dimension_semantics = [#tpu.dimension_semantics<parallel>], iteration_bounds = array<i64: 1>, scalar_prefetch = 0 : i64, scratch_operands = 0 : i64, tpu.core_type = #tpu.core_type<tc>, window_params = [{transform_indices = @transform_0, window_bounds = array<i64: 4, 96, 800>}, {pipeline_mode = #tpu.pipeline_mode<synchronous>, transform_indices = @transform_1, window_bounds = array<i64: 800, 64>}, {pipeline_mode = #tpu.pipeline_mode<synchronous>, transform_indices = @transform_2, window_bounds = array<i64: 1, 64>}, {transform_indices = @transform_3, window_bounds = array<i64: 96, 64>}]} {
    %c0 = arith.constant 0 : index
    %c0_0 = arith.constant 0 : index
    %0 = vector.load %arg2[%c0, %c0_0] : memref<800x64xbf16, #tpu.memory_space<vmem>>, vector<800x64xbf16>
    %c0_1 = arith.constant 0 : index
    %c0_2 = arith.constant 0 : index
    %c0_3 = arith.constant 0 : index
    %1 = vector.load %arg1[%c0_1, %c0_2, %c0_3] : memref<4x96x800xbf16, #tpu.memory_space<vmem>>, vector<1x96x800xbf16>
    %2 = vector.shape_cast %1 : vector<1x96x800xbf16> to vector<96x800xbf16>
    %cst = arith.constant dense<0.000000e+00> : vector<96x64xf32>
    %3 = tpu.matmul %2, %0, %cst {dimension_numbers = #tpu.dot_dimension_numbers<[1], [0], [0], [1], [0, 0, 1, 1], [], []>} : vector<96x800xbf16>, vector<800x64xbf16>, vector<96x64xf32> -> vector<96x64xf32>
    %c1 = arith.constant 1 : index
    %c0_4 = arith.constant 0 : index
    %c0_5 = arith.constant 0 : index
    %4 = vector.load %arg1[%c1, %c0_4, %c0_5] : memref<4x96x800xbf16, #tpu.memory_space<vmem>>, vector<1x96x800xbf16>
    %5 = vector.shape_cast %4 : vector<1x96x800xbf16> to vector<96x800xbf16>
    %cst_6 = arith.constant dense<0.000000e+00> : vector<96x64xf32>
    %6 = tpu.matmul %5, %0, %cst_6 {dimension_numbers = #tpu.dot_dimension_numbers<[1], [0], [0], [1], [0, 0, 1, 1], [], []>} : vector<96x800xbf16>, vector<800x64xbf16>, vector<96x64xf32> -> vector<96x64xf32>
    %7 = arith.maximumf %3, %6 : vector<96x64xf32>
    %c2 = arith.constant 2 : index
    %c0_7 = arith.constant 0 : index
    %c0_8 = arith.constant 0 : index
    %8 = vector.load %arg1[%c2, %c0_7, %c0_8] : memref<4x96x800xbf16, #tpu.memory_space<vmem>>, vector<1x96x800xbf16>
    %9 = vector.shape_cast %8 : vector<1x96x800xbf16> to vector<96x800xbf16>
    %cst_9 = arith.constant dense<0.000000e+00> : vector<96x64xf32>
    %10 = tpu.matmul %9, %0, %cst_9 {dimension_numbers = #tpu.dot_dimension_numbers<[1], [0], [0], [1], [0, 0, 1, 1], [], []>} : vector<96x800xbf16>, vector<800x64xbf16>, vector<96x64xf32> -> vector<96x64xf32>
    %11 = arith.maximumf %7, %10 : vector<96x64xf32>
    %c3 = arith.constant 3 : index
    %c0_10 = arith.constant 0 : index
    %c0_11 = arith.constant 0 : index
    %12 = vector.load %arg1[%c3, %c0_10, %c0_11] : memref<4x96x800xbf16, #tpu.memory_space<vmem>>, vector<1x96x800xbf16>
    %13 = vector.shape_cast %12 : vector<1x96x800xbf16> to vector<96x800xbf16>
    %cst_12 = arith.constant dense<0.000000e+00> : vector<96x64xf32>
    %14 = tpu.matmul %13, %0, %cst_12 {dimension_numbers = #tpu.dot_dimension_numbers<[1], [0], [0], [1], [0, 0, 1, 1], [], []>} : vector<96x800xbf16>, vector<800x64xbf16>, vector<96x64xf32> -> vector<96x64xf32>
    %15 = arith.maximumf %11, %14 : vector<96x64xf32>
    %c0_13 = arith.constant 0 : index
    %c0_14 = arith.constant 0 : index
    %16 = vector.load %arg3[%c0_13, %c0_14] : memref<1x64xf32, #tpu.memory_space<vmem>>, vector<1x64xf32>
    %17 = vector.broadcast %16 : vector<1x64xf32> to vector<96x64xf32>
    %18 = arith.addf %15, %17 : vector<96x64xf32>
    %cst_15 = arith.constant 0.000000e+00 : f32
    %19 = vector.broadcast %cst_15 : f32 to vector<96x64xf32>
    %20 = arith.maximumf %18, %19 : vector<96x64xf32>
    %21 = arith.truncf %20 : vector<96x64xf32> to vector<96x64xbf16>
    %c0_16 = arith.constant 0 : index
    %c0_17 = arith.constant 0 : index
    %22 = vector.load %arg4[%c0_16, %c0_17] : memref<96x64xbf16, #tpu.memory_space<vmem>>, vector<96x64xbf16>
    tpu.vector_store %arg4[%c0_16, %c0_17], %21 {strides = array<i32>} : memref<96x64xbf16, #tpu.memory_space<vmem>>, vector<96x64xbf16>,
    return
  }
  func.func @transform_0(%arg0: i32) -> (i32, i32, i32) {
    %c0_i32 = arith.constant 0 : i32
    %c0_i32_0 = arith.constant 0 : i32
    %c0_i32_1 = arith.constant 0 : i32
    return %c0_i32, %arg0, %c0_i32_0 : i32, i32, i32
  }
  func.func @transform_1(%arg0: i32) -> (i32, i32) {
    %c0_i32 = arith.constant 0 : i32
    %c0_i32_0 = arith.constant 0 : i32
    %c0_i32_1 = arith.constant 0 : i32
    return %c0_i32, %c0_i32_0 : i32, i32
  }
  func.func @transform_2(%arg0: i32) -> (i32, i32) {
    %c0_i32 = arith.constant 0 : i32
    %c0_i32_0 = arith.constant 0 : i32
    %c0_i32_1 = arith.constant 0 : i32
    return %c0_i32, %c0_i32_0 : i32, i32
  }
  func.func @transform_3(%arg0: i32) -> (i32, i32) {
    %c0_i32 = arith.constant 0 : i32
    %c0_i32_0 = arith.constant 0 : i32
    return %arg0, %c0_i32 : i32, i32
  }
}

module attributes {stable_mosaic.version = 11 : i64} {
  func.func @_conv_pool_kernel(%arg0: i32, %arg1: memref<4x24x576xbf16, #tpu.memory_space<vmem>>, %arg2: memref<576x128xbf16, #tpu.memory_space<vmem>>, %arg3: memref<1x128xf32, #tpu.memory_space<vmem>>, %arg4: memref<24x128xbf16, #tpu.memory_space<vmem>>) attributes {dimension_semantics = [#tpu.dimension_semantics<parallel>], iteration_bounds = array<i64: 1>, scalar_prefetch = 0 : i64, scratch_operands = 0 : i64, tpu.core_type = #tpu.core_type<tc>, window_params = [{transform_indices = @transform_0, window_bounds = array<i64: 4, 24, 576>}, {pipeline_mode = #tpu.pipeline_mode<synchronous>, transform_indices = @transform_1, window_bounds = array<i64: 576, 128>}, {pipeline_mode = #tpu.pipeline_mode<synchronous>, transform_indices = @transform_2, window_bounds = array<i64: 1, 128>}, {transform_indices = @transform_3, window_bounds = array<i64: 24, 128>}]} {
    %c0 = arith.constant 0 : index
    %c0_0 = arith.constant 0 : index
    %0 = vector.load %arg2[%c0, %c0_0] : memref<576x128xbf16, #tpu.memory_space<vmem>>, vector<576x128xbf16>
    %c0_1 = arith.constant 0 : index
    %c0_2 = arith.constant 0 : index
    %c0_3 = arith.constant 0 : index
    %1 = vector.load %arg1[%c0_1, %c0_2, %c0_3] : memref<4x24x576xbf16, #tpu.memory_space<vmem>>, vector<1x24x576xbf16>
    %2 = vector.shape_cast %1 : vector<1x24x576xbf16> to vector<24x576xbf16>
    %cst = arith.constant dense<0.000000e+00> : vector<24x128xf32>
    %3 = tpu.matmul %2, %0, %cst {dimension_numbers = #tpu.dot_dimension_numbers<[1], [0], [0], [1], [0, 0, 1, 1], [], []>} : vector<24x576xbf16>, vector<576x128xbf16>, vector<24x128xf32> -> vector<24x128xf32>
    %c1 = arith.constant 1 : index
    %c0_4 = arith.constant 0 : index
    %c0_5 = arith.constant 0 : index
    %4 = vector.load %arg1[%c1, %c0_4, %c0_5] : memref<4x24x576xbf16, #tpu.memory_space<vmem>>, vector<1x24x576xbf16>
    %5 = vector.shape_cast %4 : vector<1x24x576xbf16> to vector<24x576xbf16>
    %cst_6 = arith.constant dense<0.000000e+00> : vector<24x128xf32>
    %6 = tpu.matmul %5, %0, %cst_6 {dimension_numbers = #tpu.dot_dimension_numbers<[1], [0], [0], [1], [0, 0, 1, 1], [], []>} : vector<24x576xbf16>, vector<576x128xbf16>, vector<24x128xf32> -> vector<24x128xf32>
    %7 = arith.maximumf %3, %6 : vector<24x128xf32>
    %c2 = arith.constant 2 : index
    %c0_7 = arith.constant 0 : index
    %c0_8 = arith.constant 0 : index
    %8 = vector.load %arg1[%c2, %c0_7, %c0_8] : memref<4x24x576xbf16, #tpu.memory_space<vmem>>, vector<1x24x576xbf16>
    %9 = vector.shape_cast %8 : vector<1x24x576xbf16> to vector<24x576xbf16>
    %cst_9 = arith.constant dense<0.000000e+00> : vector<24x128xf32>
    %10 = tpu.matmul %9, %0, %cst_9 {dimension_numbers = #tpu.dot_dimension_numbers<[1], [0], [0], [1], [0, 0, 1, 1], [], []>} : vector<24x576xbf16>, vector<576x128xbf16>, vector<24x128xf32> -> vector<24x128xf32>
    %11 = arith.maximumf %7, %10 : vector<24x128xf32>
    %c3 = arith.constant 3 : index
    %c0_10 = arith.constant 0 : index
    %c0_11 = arith.constant 0 : index
    %12 = vector.load %arg1[%c3, %c0_10, %c0_11] : memref<4x24x576xbf16, #tpu.memory_space<vmem>>, vector<1x24x576xbf16>
    %13 = vector.shape_cast %12 : vector<1x24x576xbf16> to vector<24x576xbf16>
    %cst_12 = arith.constant dense<0.000000e+00> : vector<24x128xf32>
    %14 = tpu.matmul %13, %0, %cst_12 {dimension_numbers = #tpu.dot_dimension_numbers<[1], [0], [0], [1], [0, 0, 1, 1], [], []>} : vector<24x576xbf16>, vector<576x128xbf16>, vector<24x128xf32> -> vector<24x128xf32>
    %15 = arith.maximumf %11, %14 : vector<24x128xf32>
    %c0_13 = arith.constant 0 : index
    %c0_14 = arith.constant 0 : index
    %16 = vector.load %arg3[%c0_13, %c0_14] : memref<1x128xf32, #tpu.memory_space<vmem>>, vector<1x128xf32>
    %17 = vector.broadcast %16 : vector<1x128xf32> to vector<24x128xf32>
    %18 = arith.addf %15, %17 : vector<24x128xf32>
    %cst_15 = arith.constant 0.000000e+00 : f32
    %19 = vector.broadcast %cst_15 : f32 to vector<24x128xf32>
    %20 = arith.maximumf %18, %19 : vector<24x128xf32>
    %21 = arith.truncf %20 : vector<24x128xf32> to vector<24x128xbf16>
    %c0_16 = arith.constant 0 : index
    %c0_17 = arith.constant 0 : index
    %22 = vector.load %arg4[%c0_16, %c0_17] : memref<24x128xbf16, #tpu.memory_space<vmem>>, vector<24x128xbf16>
    tpu.vector_store %arg4[%c0_16, %c0_17], %21 {strides = array<i32>} : memref<24x128xbf16, #tpu.memory_space<vmem>>, vector<24x128xbf16>,
    return
  }
  func.func @transform_0(%arg0: i32) -> (i32, i32, i32) {
    %c0_i32 = arith.constant 0 : i32
    %c0_i32_0 = arith.constant 0 : i32
    %c0_i32_1 = arith.constant 0 : i32
    return %c0_i32, %arg0, %c0_i32_0 : i32, i32, i32
  }
  func.func @transform_1(%arg0: i32) -> (i32, i32) {
    %c0_i32 = arith.constant 0 : i32
    %c0_i32_0 = arith.constant 0 : i32
    %c0_i32_1 = arith.constant 0 : i32
    return %c0_i32, %c0_i32_0 : i32, i32
  }
  func.func @transform_2(%arg0: i32) -> (i32, i32) {
    %c0_i32 = arith.constant 0 : i32
    %c0_i32_0 = arith.constant 0 : i32
    %c0_i32_1 = arith.constant 0 : i32
    return %c0_i32, %c0_i32_0 : i32, i32
  }
  func.func @transform_3(%arg0: i32) -> (i32, i32) {
    %c0_i32 = arith.constant 0 : i32
    %c0_i32_0 = arith.constant 0 : i32
    return %arg0, %c0_i32 : i32, i32
  }
}

module attributes {stable_mosaic.version = 11 : i64} {
  func.func @_conv_pool_kernel(%arg0: i32, %arg1: memref<4x4x1152xbf16, #tpu.memory_space<vmem>>, %arg2: memref<1152x256xbf16, #tpu.memory_space<vmem>>, %arg3: memref<1x256xf32, #tpu.memory_space<vmem>>, %arg4: memref<4x256xbf16, #tpu.memory_space<vmem>>) attributes {dimension_semantics = [#tpu.dimension_semantics<parallel>], iteration_bounds = array<i64: 1>, scalar_prefetch = 0 : i64, scratch_operands = 0 : i64, tpu.core_type = #tpu.core_type<tc>, window_params = [{transform_indices = @transform_0, window_bounds = array<i64: 4, 4, 1152>}, {pipeline_mode = #tpu.pipeline_mode<synchronous>, transform_indices = @transform_1, window_bounds = array<i64: 1152, 256>}, {pipeline_mode = #tpu.pipeline_mode<synchronous>, transform_indices = @transform_2, window_bounds = array<i64: 1, 256>}, {transform_indices = @transform_3, window_bounds = array<i64: 4, 256>}]} {
    %c0 = arith.constant 0 : index
    %c0_0 = arith.constant 0 : index
    %0 = vector.load %arg2[%c0, %c0_0] : memref<1152x256xbf16, #tpu.memory_space<vmem>>, vector<1152x256xbf16>
    %c0_1 = arith.constant 0 : index
    %c0_2 = arith.constant 0 : index
    %c0_3 = arith.constant 0 : index
    %1 = vector.load %arg1[%c0_1, %c0_2, %c0_3] : memref<4x4x1152xbf16, #tpu.memory_space<vmem>>, vector<1x4x1152xbf16>
    %2 = vector.shape_cast %1 : vector<1x4x1152xbf16> to vector<4x1152xbf16>
    %cst = arith.constant dense<0.000000e+00> : vector<4x256xf32>
    %3 = tpu.matmul %2, %0, %cst {dimension_numbers = #tpu.dot_dimension_numbers<[1], [0], [0], [1], [0, 0, 1, 1], [], []>} : vector<4x1152xbf16>, vector<1152x256xbf16>, vector<4x256xf32> -> vector<4x256xf32>
    %c1 = arith.constant 1 : index
    %c0_4 = arith.constant 0 : index
    %c0_5 = arith.constant 0 : index
    %4 = vector.load %arg1[%c1, %c0_4, %c0_5] : memref<4x4x1152xbf16, #tpu.memory_space<vmem>>, vector<1x4x1152xbf16>
    %5 = vector.shape_cast %4 : vector<1x4x1152xbf16> to vector<4x1152xbf16>
    %cst_6 = arith.constant dense<0.000000e+00> : vector<4x256xf32>
    %6 = tpu.matmul %5, %0, %cst_6 {dimension_numbers = #tpu.dot_dimension_numbers<[1], [0], [0], [1], [0, 0, 1, 1], [], []>} : vector<4x1152xbf16>, vector<1152x256xbf16>, vector<4x256xf32> -> vector<4x256xf32>
    %7 = arith.maximumf %3, %6 : vector<4x256xf32>
    %c2 = arith.constant 2 : index
    %c0_7 = arith.constant 0 : index
    %c0_8 = arith.constant 0 : index
    %8 = vector.load %arg1[%c2, %c0_7, %c0_8] : memref<4x4x1152xbf16, #tpu.memory_space<vmem>>, vector<1x4x1152xbf16>
    %9 = vector.shape_cast %8 : vector<1x4x1152xbf16> to vector<4x1152xbf16>
    %cst_9 = arith.constant dense<0.000000e+00> : vector<4x256xf32>
    %10 = tpu.matmul %9, %0, %cst_9 {dimension_numbers = #tpu.dot_dimension_numbers<[1], [0], [0], [1], [0, 0, 1, 1], [], []>} : vector<4x1152xbf16>, vector<1152x256xbf16>, vector<4x256xf32> -> vector<4x256xf32>
    %11 = arith.maximumf %7, %10 : vector<4x256xf32>
    %c3 = arith.constant 3 : index
    %c0_10 = arith.constant 0 : index
    %c0_11 = arith.constant 0 : index
    %12 = vector.load %arg1[%c3, %c0_10, %c0_11] : memref<4x4x1152xbf16, #tpu.memory_space<vmem>>, vector<1x4x1152xbf16>
    %13 = vector.shape_cast %12 : vector<1x4x1152xbf16> to vector<4x1152xbf16>
    %cst_12 = arith.constant dense<0.000000e+00> : vector<4x256xf32>
    %14 = tpu.matmul %13, %0, %cst_12 {dimension_numbers = #tpu.dot_dimension_numbers<[1], [0], [0], [1], [0, 0, 1, 1], [], []>} : vector<4x1152xbf16>, vector<1152x256xbf16>, vector<4x256xf32> -> vector<4x256xf32>
    %15 = arith.maximumf %11, %14 : vector<4x256xf32>
    %c0_13 = arith.constant 0 : index
    %c0_14 = arith.constant 0 : index
    %16 = vector.load %arg3[%c0_13, %c0_14] : memref<1x256xf32, #tpu.memory_space<vmem>>, vector<1x256xf32>
    %17 = vector.broadcast %16 : vector<1x256xf32> to vector<4x256xf32>
    %18 = arith.addf %15, %17 : vector<4x256xf32>
    %cst_15 = arith.constant 0.000000e+00 : f32
    %19 = vector.broadcast %cst_15 : f32 to vector<4x256xf32>
    %20 = arith.maximumf %18, %19 : vector<4x256xf32>
    %21 = arith.truncf %20 : vector<4x256xf32> to vector<4x256xbf16>
    %c0_16 = arith.constant 0 : index
    %c0_17 = arith.constant 0 : index
    %22 = vector.load %arg4[%c0_16, %c0_17] : memref<4x256xbf16, #tpu.memory_space<vmem>>, vector<4x256xbf16>
    tpu.vector_store %arg4[%c0_16, %c0_17], %21 {strides = array<i32>} : memref<4x256xbf16, #tpu.memory_space<vmem>>, vector<4x256xbf16>,
    return
  }
  func.func @transform_0(%arg0: i32) -> (i32, i32, i32) {
    %c0_i32 = arith.constant 0 : i32
    %c0_i32_0 = arith.constant 0 : i32
    %c0_i32_1 = arith.constant 0 : i32
    return %c0_i32, %arg0, %c0_i32_0 : i32, i32, i32
  }
  func.func @transform_1(%arg0: i32) -> (i32, i32) {
    %c0_i32 = arith.constant 0 : i32
    %c0_i32_0 = arith.constant 0 : i32
    %c0_i32_1 = arith.constant 0 : i32
    return %c0_i32, %c0_i32_0 : i32, i32
  }
  func.func @transform_2(%arg0: i32) -> (i32, i32) {
    %c0_i32 = arith.constant 0 : i32
    %c0_i32_0 = arith.constant 0 : i32
    %c0_i32_1 = arith.constant 0 : i32
    return %c0_i32, %c0_i32_0 : i32, i32
  }
  func.func @transform_3(%arg0: i32) -> (i32, i32) {
    %c0_i32 = arith.constant 0 : i32
    %c0_i32_0 = arith.constant 0 : i32
    return %arg0, %c0_i32 : i32, i32
  }
}

module attributes {stable_mosaic.version = 11 : i64} {
  func.func @_head_kernel(%arg0: i32, %arg1: memref<2x1x2x256xbf16, #tpu.memory_space<vmem>>, %arg2: memref<2x256x176xbf16, #tpu.memory_space<vmem>>, %arg3: memref<1x176xf32, #tpu.memory_space<vmem>>, %arg4: memref<2x176xf32, #tpu.memory_space<vmem>>) attributes {dimension_semantics = [#tpu.dimension_semantics<arbitrary>], iteration_bounds = array<i64: 1>, scalar_prefetch = 0 : i64, scratch_operands = 0 : i64, tpu.core_type = #tpu.core_type<tc>, window_params = [{pipeline_mode = #tpu.pipeline_mode<synchronous>, transform_indices = @transform_0, window_bounds = array<i64: 2, 1, 2, 256>}, {pipeline_mode = #tpu.pipeline_mode<synchronous>, transform_indices = @transform_1, window_bounds = array<i64: 2, 256, 176>}, {pipeline_mode = #tpu.pipeline_mode<synchronous>, transform_indices = @transform_2, window_bounds = array<i64: 1, 176>}, {pipeline_mode = #tpu.pipeline_mode<synchronous>, transform_indices = @transform_3, window_bounds = array<i64: 2, 176>}]} {
    %c0 = arith.constant 0 : index
    %c0_0 = arith.constant 0 : index
    %c0_1 = arith.constant 0 : index
    %c0_2 = arith.constant 0 : index
    %0 = vector.load %arg1[%c0, %c0_0, %c0_1, %c0_2] : memref<2x1x2x256xbf16, #tpu.memory_space<vmem>>, vector<2x1x2x256xbf16>
    %1 = arith.extf %0 : vector<2x1x2x256xbf16> to vector<2x1x2x256xf32>
    %cst = arith.constant dense<0.000000e+00> : vector<2x2x256xf32>
    %2 = vector.multi_reduction <add>, %1, %cst [1] : vector<2x1x2x256xf32> to vector<2x2x256xf32>
    %cst_3 = arith.constant 1.000000e+00 : f32
    %3 = vector.broadcast %cst_3 : f32 to vector<2x2x256xf32>
    %4 = arith.divf %2, %3 : vector<2x2x256xf32>
    %5 = arith.truncf %4 : vector<2x2x256xf32> to vector<2x2x256xbf16>
    %6 = vector.extract_strided_slice %5 {offsets = [0, 0, 0], sizes = [2, 1, 256], strides = [1, 1, 1]} : vector<2x2x256xbf16> to vector<2x1x256xbf16>
    %7 = vector.shape_cast %6 : vector<2x1x256xbf16> to vector<2x256xbf16>
    %c0_4 = arith.constant 0 : index
    %c0_5 = arith.constant 0 : index
    %c0_6 = arith.constant 0 : index
    %8 = vector.load %arg2[%c0_4, %c0_5, %c0_6] : memref<2x256x176xbf16, #tpu.memory_space<vmem>>, vector<1x256x176xbf16>
    %9 = vector.shape_cast %8 : vector<1x256x176xbf16> to vector<256x176xbf16>
    %cst_7 = arith.constant dense<0.000000e+00> : vector<2x176xf32>
    %10 = tpu.matmul %7, %9, %cst_7 {dimension_numbers = #tpu.dot_dimension_numbers<[1], [0], [0], [1], [0, 0, 1, 1], [], []>} : vector<2x256xbf16>, vector<256x176xbf16>, vector<2x176xf32> -> vector<2x176xf32>
    %11 = vector.extract_strided_slice %5 {offsets = [0, 1, 0], sizes = [2, 1, 256], strides = [1, 1, 1]} : vector<2x2x256xbf16> to vector<2x1x256xbf16>
    %12 = vector.shape_cast %11 : vector<2x1x256xbf16> to vector<2x256xbf16>
    %c1 = arith.constant 1 : index
    %c0_8 = arith.constant 0 : index
    %c0_9 = arith.constant 0 : index
    %13 = vector.load %arg2[%c1, %c0_8, %c0_9] : memref<2x256x176xbf16, #tpu.memory_space<vmem>>, vector<1x256x176xbf16>
    %14 = vector.shape_cast %13 : vector<1x256x176xbf16> to vector<256x176xbf16>
    %cst_10 = arith.constant dense<0.000000e+00> : vector<2x176xf32>
    %15 = tpu.matmul %12, %14, %cst_10 {dimension_numbers = #tpu.dot_dimension_numbers<[1], [0], [0], [1], [0, 0, 1, 1], [], []>} : vector<2x256xbf16>, vector<256x176xbf16>, vector<2x176xf32> -> vector<2x176xf32>
    %16 = arith.addf %10, %15 : vector<2x176xf32>
    %c0_11 = arith.constant 0 : index
    %c0_12 = arith.constant 0 : index
    %17 = vector.load %arg3[%c0_11, %c0_12] : memref<1x176xf32, #tpu.memory_space<vmem>>, vector<1x176xf32>
    %18 = vector.broadcast %17 : vector<1x176xf32> to vector<2x176xf32>
    %19 = arith.addf %16, %18 : vector<2x176xf32>
    %c0_13 = arith.constant 0 : index
    %c0_14 = arith.constant 0 : index
    %20 = vector.load %arg4[%c0_13, %c0_14] : memref<2x176xf32, #tpu.memory_space<vmem>>, vector<2x176xf32>
    tpu.vector_store %arg4[%c0_13, %c0_14], %19 {strides = array<i32>} : memref<2x176xf32, #tpu.memory_space<vmem>>, vector<2x176xf32>,
    return
  }
  func.func @transform_0(%arg0: i32) -> (i32, i32, i32, i32) {
    %c0_i32 = arith.constant 0 : i32
    %c0_i32_0 = arith.constant 0 : i32
    %c0_i32_1 = arith.constant 0 : i32
    %c0_i32_2 = arith.constant 0 : i32
    %c0_i32_3 = arith.constant 0 : i32
    return %c0_i32, %c0_i32_0, %c0_i32_1, %c0_i32_2 : i32, i32, i32, i32
  }
  func.func @transform_1(%arg0: i32) -> (i32, i32, i32) {
    %c0_i32 = arith.constant 0 : i32
    %c0_i32_0 = arith.constant 0 : i32
    %c0_i32_1 = arith.constant 0 : i32
    %c0_i32_2 = arith.constant 0 : i32
    return %c0_i32, %c0_i32_0, %c0_i32_1 : i32, i32, i32
  }
  func.func @transform_2(%arg0: i32) -> (i32, i32) {
    %c0_i32 = arith.constant 0 : i32
    %c0_i32_0 = arith.constant 0 : i32
    %c0_i32_1 = arith.constant 0 : i32
    return %c0_i32, %c0_i32_0 : i32, i32
  }
  func.func @transform_3(%arg0: i32) -> (i32, i32) {
    %c0_i32 = arith.constant 0 : i32
    %c0_i32_0 = arith.constant 0 : i32
    %c0_i32_1 = arith.constant 0 : i32
    return %c0_i32, %c0_i32_0 : i32, i32
  }
}

</mosaic_0001>

<bundles_post_ra>
// kernel: asr_forward.5
= control target key start
LH: loop header
LB: loop body
LE: loop exit
PB: predicated region body
PF: predicated region fallthrough
CT: control target
= control target key end

     0   :  { %vm361_vm0 = vcmask 1040384   ;;  %vm264_vm1 = vcmask 400384   ;;  %v4257_v5 = vmov 0   ;;  %vm3048_vm2 = vcmask 257024   ;;  %s5689_s1 = inlined_call_operand.vmem [shape: bf16[49,32], index: 1, kind: input, shape index: {}]   ;;  %s5690_s0 = inlined_call_operand.vmem [shape: bf16[4,504,49], index: 0, kind: input, shape index: {}]   ;;  %s5691_s2 = inlined_call_operand.vmem [shape: f32[1,32], index: 2, kind: input, shape index: {}]   ;;  %s5692_s3 = inlined_call_operand.vmem [shape: bf16[504,32], index: 3, kind: output, shape index: {}]  }
   0x1   :  { %v4125_v0 = vld [vmem:[%s5689_s1] sm:$0xff]   ;;  %v4126_v1 = vld [vmem:[%s5689_s1 + $0x8] sm:$0xff]   ;;  %v4127_v2 = vld [vmem:[%s5689_s1 + $0x10] sm:$0xff]   ;;  %v363_v6 = vsel %vm361_vm0, 65535, %v4257_v5 }
   0x2   :  { %3836 = vmatprep.subr.bf16.mxu0 %v4125_v0  ;;  %3908 = vmatprep.subr.bf16.mxu1 %v4125_v0  ;;  %v4128_v3 = vld [vmem:[%s5689_s1 + $0x18] ss:$0 sps:$4 sm:$0x11]   ;;  %v4129_v4 = vld [vmem:[%s5690_s0] sm:$0xff]   ;;  %v4131_v9 = vld [vmem:[%s5690_s0 + $0x8] sm:$0xff]  }
   0x3   :  { %3837 = vmatpush3.bf16.msra.mxu0 %v4125_v0  ;;  %3909 = vmatpush3.bf16.msra.mxu1 %v4125_v0  ;;  %v4130_v7 = vld [vmem:[%s5690_s0 + $0xfc] sm:$0xff]   ;;  %v365_v8 = vand.u32 %v4128_v3, %v363_v6  ;;  %v4132_v10 = vld [vmem:[%s5690_s0 + $0x104] sm:$0xff]   ;;  %v4133_v11 = vld [vmem:[%s5690_s0 + $0x10] sm:$0xff]  }
   0x4   :  { %3838 = vmatprep.subr.bf16.mxu0 %v4126_v1  ;;  %3910 = vmatprep.subr.bf16.mxu1 %v4126_v1  ;;  %v4134_v12 = vld [vmem:[%s5690_s0 + $0x10c] sm:$0xff]   ;;  %v4135_v13 = vld [vmem:[%s5690_s0 + $0x18] sm:$0xff]   ;;  %v4137_v15 = vld [vmem:[%s5690_s0 + $0x20] sm:$0xff]  }
   0x5   :  { %3844 = vmatprep.mubr.msk.bf16.mxu0 %vm264_vm1, %v4129_v4  ;;  %3916 = vmatprep.mubr.msk.bf16.mxu1 %vm264_vm1, %v4130_v7  ;;  %v4136_v14 = vld [vmem:[%s5690_s0 + $0x114] sm:$0xff]   ;;  %v4138_v16 = vld [vmem:[%s5690_s0 + $0x11c] sm:$0xff]   ;;  %v4139_v17 = vld [vmem:[%s5690_s0 + $0x28] sm:$0xff]  }
   0x6   :  { %v4140_v18 = vld [vmem:[%s5690_s0 + $0x124] sm:$0xff]   ;;  %v4141_v19 = vld [vmem:[%s5690_s0 + $0x30] sm:$0xff]   ;;  %v4143_v21 = vld [vmem:[%s5690_s0 + $0x38] sm:$0xff]  }
   0x7   :  { %3839 = vmatpush3.bf16.msra.mxu0 %v4126_v1  ;;  %3911 = vmatpush3.bf16.msra.mxu1 %v4126_v1  ;;  %v4142_v20 = vld [vmem:[%s5690_s0 + $0x12c] sm:$0xff]   ;;  %v4144_v22 = vld [vmem:[%s5690_s0 + $0x134] sm:$0xff]   ;;  %v4145_v23 = vld [vmem:[%s5690_s0 + $0x40] sm:$0xff]  }
   0x8   :  { %3840 = vmatprep.subr.bf16.mxu0 %v4127_v2  ;;  %3912 = vmatprep.subr.bf16.mxu1 %v4127_v2  ;;  %v4146_v24 = vld [vmem:[%s5690_s0 + $0x13c] sm:$0xff]   ;;  %v4147_v25 = vld [vmem:[%s5690_s0 + $0x48] sm:$0xff]   ;;  %v4149_v27 = vld [vmem:[%s5690_s0 + $0x50] sm:$0xff]  }
   0x9   :  { %v4148_v26 = vld [vmem:[%s5690_s0 + $0x144] sm:$0xff]   ;;  %v4150_v28 = vld [vmem:[%s5690_s0 + $0x14c] sm:$0xff]   ;;  %v4151_v29 = vld [vmem:[%s5690_s0 + $0x58] sm:$0xff]  }
   0xa   :  { %v4152_v30 = vld [vmem:[%s5690_s0 + $0x154] sm:$0xff]   ;;  %v4153_v31 = vld [vmem:[%s5690_s0 + $0x60] sm:$0xff]   ;;  %v4155_v33 = vld [vmem:[%s5690_s0 + $0x68] sm:$0xff]  }
   0xb   :  { %3841 = vmatpush3.bf16.msra.mxu0 %v4127_v2  ;;  %3913 = vmatpush3.bf16.msra.mxu1 %v4127_v2  ;;  %v4154_v32 = vld [vmem:[%s5690_s0 + $0x15c] sm:$0xff]   ;;  %v4156_v34 = vld [vmem:[%s5690_s0 + $0x164] sm:$0xff]   ;;  %v4157_v35 = vld [vmem:[%s5690_s0 + $0x70] sm:$0xff]  }
   0xc   :  { %3842 = vmatprep.subr.bf16.mxu0 %v365_v8  ;;  %3914 = vmatprep.subr.bf16.mxu1 %v365_v8  ;;  %v4158_v36 = vld [vmem:[%s5690_s0 + $0x16c] sm:$0xff]   ;;  %v4159_v37 = vld [vmem:[%s5690_s0 + $0x78] sm:$0xff]   ;;  %v4161_v39 = vld [vmem:[%s5690_s0 + $0x80] sm:$0xff]  }
   0xd   :  { %v4160_v38 = vld [vmem:[%s5690_s0 + $0x174] sm:$0xff]   ;;  %v4162_v40 = vld [vmem:[%s5690_s0 + $0x17c] sm:$0xff]   ;;  %v4163_v41 = vld [vmem:[%s5690_s0 + $0x88] sm:$0xff]  }
   0xe   :  { %v4164_v42 = vld [vmem:[%s5690_s0 + $0x184] sm:$0xff]   ;;  %v4165_v43 = vld [vmem:[%s5690_s0 + $0x90] sm:$0xff]   ;;  %v4167_v45 = vld [vmem:[%s5690_s0 + $0x98] sm:$0xff]  }
   0xf   :  { %3843 = vmatpush3.bf16.msra.mxu0 %v365_v8  ;;  %3915 = vmatpush3.bf16.msra.mxu1 %v365_v8  ;;  %v4166_v44 = vld [vmem:[%s5690_s0 + $0x18c] sm:$0xff]   ;;  %v4168_v46 = vld [vmem:[%s5690_s0 + $0x194] sm:$0xff]   ;;  %v4169_v47 = vld [vmem:[%s5690_s0 + $0xa0] sm:$0xff]  }
  0x10   :  { %3980 = vmatprep.subr.bf16.mxu0 %v4125_v0  ;;  %4052 = vmatprep.subr.bf16.mxu1 %v4125_v0  ;;  %v4170_v48 = vld [vmem:[%s5690_s0 + $0x19c] sm:$0xff]   ;;  %v4171_v49 = vld [vmem:[%s5690_s0 + $0xa8] sm:$0xff]   ;;  %v4173_v51 = vld [vmem:[%s5690_s0 + $0xb0] sm:$0xff]  }
  0x11   :  { %v4172_v50 = vld [vmem:[%s5690_s0 + $0x1a4] sm:$0xff]   ;;  %v4174_v52 = vld [vmem:[%s5690_s0 + $0x1ac] sm:$0xff]   ;;  %v4175_v53 = vld [vmem:[%s5690_s0 + $0xb8] sm:$0xff]  }
  0x12   :  { %3845 = vmatmul.mubr.msk.bf16.vlgmr.msra.gmra.mrb[0].mxu0 %vm264_vm1, %v4131_v9  ;;  %3917 = vmatmul.mubr.msk.bf16.vlgmr.msra.gmra.mrb[0].mxu1 %vm264_vm1, %v4132_v10  ;;  %v4176_v54 = vld [vmem:[%s5690_s0 + $0x1b4] sm:$0xff]   ;;  %v4177_v55 = vld [vmem:[%s5690_s0 + $0xc0] sm:$0xff]   ;;  %v4179_v57 = vld [vmem:[%s5690_s0 + $0xc8] sm:$0xff]  }
  0x13   :  { %3981 = vmatpush3.bf16.msra.mxu0 %v4125_v0  ;;  %4053 = vmatpush3.bf16.msra.mxu1 %v4125_v0  ;;  %v4178_v56 = vld [vmem:[%s5690_s0 + $0x1bc] sm:$0xff]   ;;  %v4180_v58 = vld [vmem:[%s5690_s0 + $0x1c4] sm:$0xff]   ;;  %v4181_v59 = vld [vmem:[%s5690_s0 + $0xd0] sm:$0xff]  }
  0x14   :  { %3848 = vmatprep.mubr.msk.bf16.mxu0 %vm264_vm1, %v4133_v11  ;;  %3920 = vmatprep.mubr.msk.bf16.mxu1 %vm264_vm1, %v4134_v12  ;;  %v4182_v60 = vld [vmem:[%s5690_s0 + $0x1cc] sm:$0xff]   ;;  %v4183_v61 = vld [vmem:[%s5690_s0 + $0xd8] sm:$0xff]   ;;  %v4185_v63 = vld [vmem:[%s5690_s0 + $0xe0] sm:$0xff]  }
  0x15   :  { %3982 = vmatprep.subr.bf16.mxu0 %v4126_v1  ;;  %4054 = vmatprep.subr.bf16.mxu1 %v4126_v1  ;;  %v4184_v62 = vld [vmem:[%s5690_s0 + $0x1d4] sm:$0xff]   ;;  %v4186_v0 = vld [vmem:[%s5690_s0 + $0x1dc] sm:$0xff]   ;;  %v4190_v4 = vld [vmem:[%s5690_s0 + $0x1ec] sm:$0xff]  }
  0x16   :  { %v4189_v3 = vld [vmem:[%s5690_s0 + $0xf0] sm:$0xff]   ;;  %v4191_v5 = vld [vmem:[%s5690_s0 + $0xf8] ss:$0 sps:$4 sm:$0xff]   ;;  %v4195_v9 = vld [vmem:[%s5690_s0 + $0x200] sm:$0xff]  }
  0x17   :  { %3983 = vmatpush3.bf16.msra.mxu0 %v4126_v1  ;;  %4055 = vmatpush3.bf16.msra.mxu1 %v4126_v1  ;;  %v4187_v1 = vld [vmem:[%s5690_s0 + $0xe8] sm:$0xff]   ;;  %v4192_v6 = vld [vmem:[%s5690_s0 + $0x1f4] ss:$0 sps:$4 sm:$0xff]   ;;  %v4193_v7 = vld [vmem:[%s5690_s0 + $0x1f8] sm:$0xff]  }
  0x18   :  { %3984 = vmatprep.subr.bf16.mxu0 %v4127_v2  ;;  %4056 = vmatprep.subr.bf16.mxu1 %v4127_v2  ;;  %v4196_v10 = vld [vmem:[%s5690_s0 + $0x2fc] sm:$0xff]   ;;  %v4197_v11 = vld [vmem:[%s5690_s0 + $0x208] sm:$0xff]  }
  0x19   :  { %v4198_v12 = vld [vmem:[%s5690_s0 + $0x304] sm:$0xff]  }
  0x1a   :  { %3849 = vmatmul.mubr.msk.bf16.gmra.mrb[4].mxu0 %vm264_vm1, %v4135_v13  ;;  %3921 = vmatmul.mubr.msk.bf16.gmra.mrb[4].mxu1 %vm264_vm1, %v4136_v14  ;;  %v4199_v13 = vld [vmem:[%s5690_s0 + $0x210] sm:$0xff]  }
  0x1b   :  { %3852 = vmatprep.mubr.msk.bf16.mxu0 %vm264_vm1, %v4137_v15  ;;  %3924 = vmatprep.mubr.msk.bf16.mxu1 %vm264_vm1, %v4138_v16  ;;  %v4200_v14 = vld [vmem:[%s5690_s0 + $0x30c] sm:$0xff]   ;;  %v4201_v15 = vld [vmem:[%s5690_s0 + $0x218] sm:$0xff]  }
  0x1c   :  { %3985 = vmatpush3.bf16.msra.mxu0 %v4127_v2  ;;  %4057 = vmatpush3.bf16.msra.mxu1 %v4127_v2  ;;  %v4188_v2 = vld [vmem:[%s5690_s0 + $0x1e4] sm:$0xff]   ;;  %v4202_v16 = vld [vmem:[%s5690_s0 + $0x314] sm:$0xff]  }
  0x1d   :  { %3986 = vmatprep.subr.bf16.mxu0 %v365_v8  ;;  %4058 = vmatprep.subr.bf16.mxu1 %v365_v8 }
  0x20   :  { %3987 = vmatpush3.bf16.msra.mxu0 %v365_v8  ;;  %4059 = vmatpush3.bf16.msra.mxu1 %v365_v8  ;;  %v4194_v8 = vld [vmem:[%s5690_s0 + $0x2f4] sm:$0xff]  }
  0x22   :  { %3853 = vmatmul.mubr.msk.bf16.gmra.mrb[8].mxu0 %vm264_vm1, %v4139_v17  ;;  %3925 = vmatmul.mubr.msk.bf16.gmra.mrb[8].mxu1 %vm264_vm1, %v4140_v18  ;;  %v4203_v17 = vld [vmem:[%s5690_s0 + $0x220] sm:$0xff]  }
  0x23   :  { %3856 = vmatprep.mubr.msk.bf16.mxu0 %vm264_vm1, %v4141_v19  ;;  %3928 = vmatprep.mubr.msk.bf16.mxu1 %vm264_vm1, %v4142_v20  ;;  %v4204_v18 = vld [vmem:[%s5690_s0 + $0x31c] sm:$0xff]   ;;  %v4205_v19 = vld [vmem:[%s5690_s0 + $0x228] sm:$0xff]  }
  0x24   :  { %v4206_v20 = vld [vmem:[%s5690_s0 + $0x324] sm:$0xff]  }
  0x2a   :  { %3857 = vmatmul.mubr.msk.bf16.gmra.mrb[12].mxu0 %vm264_vm1, %v4143_v21  ;;  %3929 = vmatmul.mubr.msk.bf16.gmra.mrb[12].mxu1 %vm264_vm1, %v4144_v22  ;;  %v4207_v21 = vld [vmem:[%s5690_s0 + $0x230] sm:$0xff]  }
  0x2b   :  { %3860 = vmatprep.mubr.msk.bf16.mxu0 %vm264_vm1, %v4145_v23  ;;  %3932 = vmatprep.mubr.msk.bf16.mxu1 %vm264_vm1, %v4146_v24  ;;  %v4208_v22 = vld [vmem:[%s5690_s0 + $0x32c] sm:$0xff]   ;;  %v4209_v23 = vld [vmem:[%s5690_s0 + $0x238] sm:$0xff]  }
  0x2c   :  { %v4210_v24 = vld [vmem:[%s5690_s0 + $0x334] sm:$0xff]  }
  0x32   :  { %3861 = vmatmul.mubr.msk.bf16.gmra.mrb[16].mxu0 %vm264_vm1, %v4147_v25  ;;  %3933 = vmatmul.mubr.msk.bf16.gmra.mrb[16].mxu1 %vm264_vm1, %v4148_v26  ;;  %v4211_v25 = vld [vmem:[%s5690_s0 + $0x240] sm:$0xff]  }
  0x33   :  { %3864 = vmatprep.mubr.msk.bf16.mxu0 %vm264_vm1, %v4149_v27  ;;  %3936 = vmatprep.mubr.msk.bf16.mxu1 %vm264_vm1, %v4150_v28  ;;  %v4212_v26 = vld [vmem:[%s5690_s0 + $0x33c] sm:$0xff]   ;;  %v4213_v27 = vld [vmem:[%s5690_s0 + $0x248] sm:$0xff]  }
  0x34   :  { %v4214_v28 = vld [vmem:[%s5690_s0 + $0x344] sm:$0xff]  }
  0x3a   :  { %3865 = vmatmul.mubr.msk.bf16.gmra.mrb[20].mxu0 %vm264_vm1, %v4151_v29  ;;  %3937 = vmatmul.mubr.msk.bf16.gmra.mrb[20].mxu1 %vm264_vm1, %v4152_v30  ;;  %v4215_v29 = vld [vmem:[%s5690_s0 + $0x250] sm:$0xff]  }
  0x3b   :  { %3868 = vmatprep.mubr.msk.bf16.mxu0 %vm264_vm1, %v4153_v31  ;;  %3940 = vmatprep.mubr.msk.bf16.mxu1 %vm264_vm1, %v4154_v32  ;;  %v4216_v30 = vld [vmem:[%s5690_s0 + $0x34c] sm:$0xff]   ;;  %v4217_v31 = vld [vmem:[%s5690_s0 + $0x258] sm:$0xff]  }
  0x3c   :  { %v4218_v32 = vld [vmem:[%s5690_s0 + $0x354] sm:$0xff]  }
  0x42   :  { %3869 = vmatmul.mubr.msk.bf16.gmra.mrb[24].mxu0 %vm264_vm1, %v4155_v33  ;;  %3941 = vmatmul.mubr.msk.bf16.gmra.mrb[24].mxu1 %vm264_vm1, %v4156_v34  ;;  %v4219_v33 = vld [vmem:[%s5690_s0 + $0x260] sm:$0xff]  }
  0x43   :  { %3872 = vmatprep.mubr.msk.bf16.mxu0 %vm264_vm1, %v4157_v35  ;;  %3944 = vmatprep.mubr.msk.bf16.mxu1 %vm264_vm1, %v4158_v36  ;;  %v4220_v34 = vld [vmem:[%s5690_s0 + $0x35c] sm:$0xff]   ;;  %v4221_v35 = vld [vmem:[%s5690_s0 + $0x268] sm:$0xff]  }
  0x44   :  { %v4222_v36 = vld [vmem:[%s5690_s0 + $0x364] sm:$0xff]  }
  0x4a   :  { %3873 = vmatmul.mubr.msk.bf16.gmra.mrb[28].mxu0 %vm264_vm1, %v4159_v37  ;;  %3945 = vmatmul.mubr.msk.bf16.gmra.mrb[28].mxu1 %vm264_vm1, %v4160_v38  ;;  %v4223_v37 = vld [vmem:[%s5690_s0 + $0x270] sm:$0xff]  }
  0x4b   :  { %3876 = vmatprep.mubr.msk.bf16.mxu0 %vm264_vm1, %v4161_v39  ;;  %3948 = vmatprep.mubr.msk.bf16.mxu1 %vm264_vm1, %v4162_v40  ;;  %v4224_v38 = vld [vmem:[%s5690_s0 + $0x36c] sm:$0xff]   ;;  %v4225_v39 = vld [vmem:[%s5690_s0 + $0x278] sm:$0xff]  }
  0x4c   :  { %v4226_v40 = vld [vmem:[%s5690_s0 + $0x374] sm:$0xff]  }
  0x52   :  { %3877 = vmatmul.mubr.msk.bf16.gmra.mrb[32].mxu0 %vm264_vm1, %v4163_v41  ;;  %3949 = vmatmul.mubr.msk.bf16.gmra.mrb[32].mxu1 %vm264_vm1, %v4164_v42  ;;  %v4227_v41 = vld [vmem:[%s5690_s0 + $0x280] sm:$0xff]  }
  0x53   :  { %3880 = vmatprep.mubr.msk.bf16.mxu0 %vm264_vm1, %v4165_v43  ;;  %3952 = vmatprep.mubr.msk.bf16.mxu1 %vm264_vm1, %v4166_v44  ;;  %v4228_v42 = vld [vmem:[%s5690_s0 + $0x37c] sm:$0xff]   ;;  %v4229_v43 = vld [vmem:[%s5690_s0 + $0x288] sm:$0xff]  }
  0x54   :  { %v4230_v44 = vld [vmem:[%s5690_s0 + $0x384] sm:$0xff]  }
  0x5a   :  { %3881 = vmatmul.mubr.msk.bf16.gmra.mrb[36].mxu0 %vm264_vm1, %v4167_v45  ;;  %3953 = vmatmul.mubr.msk.bf16.gmra.mrb[36].mxu1 %vm264_vm1, %v4168_v46  ;;  %v4231_v45 = vld [vmem:[%s5690_s0 + $0x290] sm:$0xff]  }
  0x5b   :  { %3884 = vmatprep.mubr.msk.bf16.mxu0 %vm264_vm1, %v4169_v47  ;;  %3956 = vmatprep.mubr.msk.bf16.mxu1 %vm264_vm1, %v4170_v48  ;;  %v4232_v46 = vld [vmem:[%s5690_s0 + $0x38c] sm:$0xff]   ;;  %v4233_v47 = vld [vmem:[%s5690_s0 + $0x298] sm:$0xff]  }
  0x5c   :  { %v4234_v48 = vld [vmem:[%s5690_s0 + $0x394] sm:$0xff]  }
  0x62   :  { %3885 = vmatmul.mubr.msk.bf16.gmra.mrb[40].mxu0 %vm264_vm1, %v4171_v49  ;;  %3957 = vmatmul.mubr.msk.bf16.gmra.mrb[40].mxu1 %vm264_vm1, %v4172_v50  ;;  %v4235_v49 = vld [vmem:[%s5690_s0 + $0x2a0] sm:$0xff]  }
  0x63   :  { %3888 = vmatprep.mubr.msk.bf16.mxu0 %vm264_vm1, %v4173_v51  ;;  %3960 = vmatprep.mubr.msk.bf16.mxu1 %vm264_vm1, %v4174_v52  ;;  %v4236_v50 = vld [vmem:[%s5690_s0 + $0x39c] sm:$0xff]   ;;  %v4237_v51 = vld [vmem:[%s5690_s0 + $0x2a8] sm:$0xff]  }
  0x64   :  { %v4238_v52 = vld [vmem:[%s5690_s0 + $0x3a4] sm:$0xff]  }
  0x6a   :  { %3889 = vmatmul.mubr.msk.bf16.gmra.mrb[44].mxu0 %vm264_vm1, %v4175_v53  ;;  %3961 = vmatmul.mubr.msk.bf16.gmra.mrb[44].mxu1 %vm264_vm1, %v4176_v54 }
  0x6b   :  { %3892 = vmatprep.mubr.msk.bf16.mxu0 %vm264_vm1, %v4177_v55  ;;  %3964 = vmatprep.mubr.msk.bf16.mxu1 %vm264_vm1, %v4178_v56 }
  0x72   :  { %3893 = vmatmul.mubr.msk.bf16.gmra.mrb[48].mxu0 %vm264_vm1, %v4179_v57  ;;  %3965 = vmatmul.mubr.msk.bf16.gmra.mrb[48].mxu1 %vm264_vm1, %v4180_v58  ;;  %v4239_v58 = vld [vmem:[%s5690_s0 + $0x2b0] sm:$0xff]  }
  0x73   :  { %3896 = vmatprep.mubr.msk.bf16.mxu0 %vm264_vm1, %v4181_v59  ;;  %3968 = vmatprep.mubr.msk.bf16.mxu1 %vm264_vm1, %v4182_v60  ;;  %v4240_v59 = vld [vmem:[%s5690_s0 + $0x3ac] sm:$0xff]  }
  0x7a   :  { %3897 = vmatmul.mubr.msk.bf16.gmra.mrb[52].mxu0 %vm264_vm1, %v4183_v61  ;;  %3969 = vmatmul.mubr.msk.bf16.gmra.mrb[52].mxu1 %vm264_vm1, %v4184_v62 }
  0x7b   :  { %3900 = vmatprep.mubr.msk.bf16.mxu0 %vm264_vm1, %v4185_v63  ;;  %3972 = vmatprep.mubr.msk.bf16.mxu1 %vm264_vm1, %v4186_v0  ;;  %v4241_v63 = vld [vmem:[%s5690_s0 + $0x2b8] sm:$0xff]  }
  0x7c   :  { %v4242_v0 = vld [vmem:[%s5690_s0 + $0x3b4] sm:$0xff]  }
  0x82   :  { %3901 = vmatmul.mubr.msk.bf16.gmra.mrb[56].mxu0 %vm264_vm1, %v4187_v1  ;;  %3973 = vmatmul.mubr.msk.bf16.gmra.mrb[56].mxu1 %vm264_vm1, %v4188_v2 }
  0x83   :  { %3904 = vmatprep.mubr.msk.bf16.mxu0 %vm264_vm1, %v4189_v3  ;;  %3976 = vmatprep.mubr.msk.bf16.mxu1 %vm264_vm1, %v4190_v4 }
  0x8a   :  { %3905 = vmatmul.mubr.msk.bf16.gmra.mrb[60].mxu0 %vm264_vm1, %v4191_v5  ;;  %3977 = vmatmul.mubr.msk.bf16.gmra.mrb[60].mxu1 %vm264_vm1, %v4192_v6 }
  0x8b   :  { %3988 = vmatprep.mubr.msk.bf16.mxu0 %vm264_vm1, %v4193_v7  ;;  %4060 = vmatprep.mubr.msk.bf16.mxu1 %vm264_vm1, %v4194_v8 }
  0x92   :  { %3989 = vmatmul.mubr.msk.bf16.vlgmr.msra.gmra.mrb[64].mxu0 %vm264_vm1, %v4195_v9  ;;  %4061 = vmatmul.mubr.msk.bf16.vlgmr.msra.gmra.mrb[64].mxu1 %vm264_vm1, %v4196_v10  ;;  %v4243_v10 = vld [vmem:[%s5690_s0 + $0x2c0] sm:$0xff]  }
  0x93   :  { %3992 = vmatprep.mubr.msk.bf16.mxu0 %vm264_vm1, %v4197_v11  ;;  %4064 = vmatprep.mubr.msk.bf16.mxu1 %vm264_vm1, %v4198_v12  ;;  %v4244_v11 = vld [vmem:[%s5690_s0 + $0x3bc] sm:$0xff]  }
  0x9a   :  { %3993 = vmatmul.mubr.msk.bf16.gmra.mrb[68].mxu0 %vm264_vm1, %v4199_v13  ;;  %4065 = vmatmul.mubr.msk.bf16.gmra.mrb[68].mxu1 %vm264_vm1, %v4200_v14 }
  0x9b   :  { %3996 = vmatprep.mubr.msk.bf16.mxu0 %vm264_vm1, %v4201_v15  ;;  %4068 = vmatprep.mubr.msk.bf16.mxu1 %vm264_vm1, %v4202_v16  ;;  %v4245_v15 = vld [vmem:[%s5690_s0 + $0x2c8] sm:$0xff]  }
  0x9c   :  { %v4246_v16 = vld [vmem:[%s5690_s0 + $0x3c4] sm:$0xff]  }
  0xa2   :  { %3997 = vmatmul.mubr.msk.bf16.gmra.mrb[72].mxu0 %vm264_vm1, %v4203_v17  ;;  %4069 = vmatmul.mubr.msk.bf16.gmra.mrb[72].mxu1 %vm264_vm1, %v4204_v18 }
  0xa3   :  { %4000 = vmatprep.mubr.msk.bf16.mxu0 %vm264_vm1, %v4205_v19  ;;  %4072 = vmatprep.mubr.msk.bf16.mxu1 %vm264_vm1, %v4206_v20 }
  0xaa   :  { %4001 = vmatmul.mubr.msk.bf16.gmra.mrb[76].mxu0 %vm264_vm1, %v4207_v21  ;;  %4073 = vmatmul.mubr.msk.bf16.gmra.mrb[76].mxu1 %vm264_vm1, %v4208_v22 }
  0xab   :  { %4004 = vmatprep.mubr.msk.bf16.mxu0 %vm264_vm1, %v4209_v23  ;;  %4076 = vmatprep.mubr.msk.bf16.mxu1 %vm264_vm1, %v4210_v24 }
  0xb2   :  { %4005 = vmatmul.mubr.msk.bf16.gmra.mrb[80].mxu0 %vm264_vm1, %v4211_v25  ;;  %4077 = vmatmul.mubr.msk.bf16.gmra.mrb[80].mxu1 %vm264_vm1, %v4212_v26  ;;  %v4247_v26 = vld [vmem:[%s5690_s0 + $0x2d0] sm:$0xff]  }
  0xb3   :  { %4008 = vmatprep.mubr.msk.bf16.mxu0 %vm264_vm1, %v4213_v27  ;;  %4080 = vmatprep.mubr.msk.bf16.mxu1 %vm264_vm1, %v4214_v28  ;;  %v4248_v27 = vld [vmem:[%s5690_s0 + $0x3cc] sm:$0xff]  }
  0xba   :  { %4009 = vmatmul.mubr.msk.bf16.gmra.mrb[84].mxu0 %vm264_vm1, %v4215_v29  ;;  %4081 = vmatmul.mubr.msk.bf16.gmra.mrb[84].mxu1 %vm264_vm1, %v4216_v30 }
  0xbb   :  { %4012 = vmatprep.mubr.msk.bf16.mxu0 %vm264_vm1, %v4217_v31  ;;  %4084 = vmatprep.mubr.msk.bf16.mxu1 %vm264_vm1, %v4218_v32  ;;  %v4249_v31 = vld [vmem:[%s5690_s0 + $0x2d8] sm:$0xff]  }
  0xbc   :  { %v4250_v32 = vld [vmem:[%s5690_s0 + $0x3d4] sm:$0xff]  }
  0xc2   :  { %4013 = vmatmul.mubr.msk.bf16.gmra.mrb[88].mxu0 %vm264_vm1, %v4219_v33  ;;  %4085 = vmatmul.mubr.msk.bf16.gmra.mrb[88].mxu1 %vm264_vm1, %v4220_v34 }
  0xc3   :  { %4016 = vmatprep.mubr.msk.bf16.mxu0 %vm264_vm1, %v4221_v35  ;;  %4088 = vmatprep.mubr.msk.bf16.mxu1 %vm264_vm1, %v4222_v36 }
  0xca   :  { %4017 = vmatmul.mubr.msk.bf16.gmra.mrb[92].mxu0 %vm264_vm1, %v4223_v37  ;;  %4089 = vmatmul.mubr.msk.bf16.gmra.mrb[92].mxu1 %vm264_vm1, %v4224_v38 }
  0xcb   :  { %4020 = vmatprep.mubr.msk.bf16.mxu0 %vm264_vm1, %v4225_v39  ;;  %4092 = vmatprep.mubr.msk.bf16.mxu1 %vm264_vm1, %v4226_v40 }
  0xd2   :  { %4021 = vmatmul.mubr.msk.bf16.gmra.mrb[96].mxu0 %vm264_vm1, %v4227_v41  ;;  %4093 = vmatmul.mubr.msk.bf16.gmra.mrb[96].mxu1 %vm264_vm1, %v4228_v42  ;;  %v4251_v42 = vld [vmem:[%s5690_s0 + $0x2e0] sm:$0xff]  }
  0xd3   :  { %4024 = vmatprep.mubr.msk.bf16.mxu0 %vm264_vm1, %v4229_v43  ;;  %4096 = vmatprep.mubr.msk.bf16.mxu1 %vm264_vm1, %v4230_v44  ;;  %v4252_v43 = vld [vmem:[%s5690_s0 + $0x3dc] sm:$0xff]  }
  0xda   :  { %4025 = vmatmul.mubr.msk.bf16.gmra.mrb[100].mxu0 %vm264_vm1, %v4231_v45  ;;  %4097 = vmatmul.mubr.msk.bf16.gmra.mrb[100].mxu1 %vm264_vm1, %v4232_v46 }
  0xdb   :  { %4028 = vmatprep.mubr.msk.bf16.mxu0 %vm264_vm1, %v4233_v47  ;;  %4100 = vmatprep.mubr.msk.bf16.mxu1 %vm264_vm1, %v4234_v48  ;;  %v4253_v47 = vld [vmem:[%s5690_s0 + $0x2e8] sm:$0xff]  }
  0xdc   :  { %v4254_v48 = vld [vmem:[%s5690_s0 + $0x3e4] sm:$0xff]  }
  0xe2   :  { %4029 = vmatmul.mubr.msk.bf16.gmra.mrb[104].mxu0 %vm264_vm1, %v4235_v49  ;;  %4101 = vmatmul.mubr.msk.bf16.gmra.mrb[104].mxu1 %vm264_vm1, %v4236_v50 }
  0xe3   :  { %4032 = vmatprep.mubr.msk.bf16.mxu0 %vm264_vm1, %v4237_v51  ;;  %4104 = vmatprep.mubr.msk.bf16.mxu1 %vm264_vm1, %v4238_v52 }
  0xe5   :  { %v4730_v53 = vpop.f32.mrb[0].mxu0  ;;  %v4732_v54 = vpop.f32.mrb[0].mxu1 }
  0xe6   :  { %v4736_v56 = vpop.f32.mrb[1].mxu0  ;;  %v4738_v57 = vpop.f32.mrb[1].mxu1  ;;  %v5851_v52 = vmax.f32 %v4730_v53, %v4732_v54 }
  0xe7   :  { %v4748_v61 = vpop.f32.mrb[2].mxu0  ;;  %v4750_v62 = vpop.f32.mrb[2].mxu1 }
  0xe8   :  { %v4760_v2 = vpop.f32.mrb[3].mxu0  ;;  %v4762_v3 = vpop.f32.mrb[3].mxu1 }
  0xea   :  { %4033 = vmatmul.mubr.msk.bf16.gmra.mrb[108].mxu0 %vm264_vm1, %v4239_v58  ;;  %4105 = vmatmul.mubr.msk.bf16.gmra.mrb[108].mxu1 %vm264_vm1, %v4240_v59 }
  0xeb   :  { %4036 = vmatprep.mubr.msk.bf16.mxu0 %vm264_vm1, %v4241_v63  ;;  %4108 = vmatprep.mubr.msk.bf16.mxu1 %vm264_vm1, %v4242_v0 }
  0xed   :  { %v4770_v5 = vpop.f32.mrb[4].mxu0  ;;  %v4772_v6 = vpop.f32.mrb[4].mxu1 }
  0xee   :  { %v4776_v8 = vpop.f32.mrb[5].mxu0  ;;  %v4778_v9 = vpop.f32.mrb[5].mxu1 }
  0xef   :  { %v4788_v13 = vpop.f32.mrb[6].mxu0  ;;  %v4790_v14 = vpop.f32.mrb[6].mxu1 }
  0xf0   :  { %v4800_v18 = vpop.f32.mrb[7].mxu0  ;;  %v4802_v19 = vpop.f32.mrb[7].mxu1 }
  0xf2   :  { %4037 = vmatmul.mubr.msk.bf16.gmra.mrb[112].mxu0 %vm264_vm1, %v4243_v10  ;;  %4109 = vmatmul.mubr.msk.bf16.gmra.mrb[112].mxu1 %vm264_vm1, %v4244_v11  ;;  %v4255_v11 = vld [vmem:[%s5690_s0 + $0x2f0] ss:$0 sps:$4 sm:$0xff]  }
  0xf3   :  { %4040 = vmatprep.mubr.msk.bf16.mxu0 %vm264_vm1, %v4245_v15  ;;  %4112 = vmatprep.mubr.msk.bf16.mxu1 %vm264_vm1, %v4246_v16  ;;  %v4256_v15 = vld [vmem:[%s5690_s0 + $0x3ec] ss:$0 sps:$4 sm:$0xff]  }
  0xf5   :  { %v4810_v21 = vpop.f32.mrb[8].mxu0  ;;  %v4812_v22 = vpop.f32.mrb[8].mxu1 }
  0xf6   :  { %v4816_v24 = vpop.f32.mrb[9].mxu0  ;;  %v4818_v25 = vpop.f32.mrb[9].mxu1 }
  0xf7   :  { %v4828_v29 = vpop.f32.mrb[10].mxu0  ;;  %v4830_v30 = vpop.f32.mrb[10].mxu1 }
  0xf8   :  { %v4840_v34 = vpop.f32.mrb[11].mxu0  ;;  %v4842_v35 = vpop.f32.mrb[11].mxu1 }
  0xfa   :  { %4041 = vmatmul.mubr.msk.bf16.gmra.mrb[116].mxu0 %vm264_vm1, %v4247_v26  ;;  %4113 = vmatmul.mubr.msk.bf16.gmra.mrb[116].mxu1 %vm264_vm1, %v4248_v27 }
  0xfb   :  { %4044 = vmatprep.mubr.msk.bf16.mxu0 %vm264_vm1, %v4249_v31  ;;  %4116 = vmatprep.mubr.msk.bf16.mxu1 %vm264_vm1, %v4250_v32 }
  0xfd   :  { %v4850_v37 = vpop.f32.mrb[12].mxu0  ;;  %v4852_v38 = vpop.f32.mrb[12].mxu1 }
  0xfe   :  { %v4856_v40 = vpop.f32.mrb[13].mxu0  ;;  %v4858_v41 = vpop.f32.mrb[13].mxu1 }
  0xff   :  { %v4868_v45 = vpop.f32.mrb[14].mxu0  ;;  %v4870_v46 = vpop.f32.mrb[14].mxu1 }
 0x100   :  { %v4880_v50 = vpop.f32.mrb[15].mxu0  ;;  %v4882_v51 = vpop.f32.mrb[15].mxu1 }
 0x102   :  { %4045 = vmatmul.mubr.msk.bf16.gmra.mrb[120].mxu0 %vm264_vm1, %v4251_v42  ;;  %4117 = vmatmul.mubr.msk.bf16.gmra.mrb[120].mxu1 %vm264_vm1, %v4252_v43 }
 0x103   :  { %4048 = vmatprep.mubr.msk.bf16.mxu0 %vm264_vm1, %v4253_v47  ;;  %4120 = vmatprep.mubr.msk.bf16.mxu1 %vm264_vm1, %v4254_v48 }
 0x105   :  { %v4890_v58 = vpop.f32.mrb[16].mxu0  ;;  %v4892_v59 = vpop.f32.mrb[16].mxu1 }
 0x106   :  { %v4896_v0 = vpop.f32.mrb[17].mxu0  ;;  %v4898_v10 = vpop.f32.mrb[17].mxu1 }
 0x107   :  { %v4908_v26 = vpop.f32.mrb[18].mxu0  ;;  %v4910_v27 = vpop.f32.mrb[18].mxu1 }
 0x108   :  { %v4914_v32 = vpop.f32.mrb[19].mxu0  ;;  %v4916_v42 = vpop.f32.mrb[19].mxu1 }
 0x10a   :  { %4049 = vmatmul.mubr.msk.bf16.gmra.mrb[124].mxu0 %vm264_vm1, %v4255_v11  ;;  %4121 = vmatmul.mubr.msk.bf16.gmra.mrb[124].mxu1 %vm264_vm1, %v4256_v15 }
 0x10d   :  { %v4922_v47 = vpop.f32.mrb[20].mxu0  ;;  %v4924_v48 = vpop.f32.mrb[20].mxu1 }
 0x10e   :  { %v4928_v63 = vpop.f32.mrb[21].mxu0  ;;  %v4930_v31 = vpop.f32.mrb[21].mxu1 }
 0x10f   :  { %v4934_v49 = vpop.f32.mrb[22].mxu0  ;;  %v4936_v43 = vpop.f32.mrb[22].mxu1 }
 0x110   :  { %v4940_v15 = vpop.f32.mrb[23].mxu0  ;;  %v4942_v44 = vpop.f32.mrb[23].mxu1 }
 0x111   :  { %5772 = vst [vmem:[#allocation2_spill] sm:$0xff] %v4942_v44 }
 0x115   :  { %v4946_v39 = vpop.f32.mrb[24].mxu0  ;;  %v4948_v36 = vpop.f32.mrb[24].mxu1 }
 0x116   :  { %5773 = vst [vmem:[#allocation3_spill] sm:$0xff] %v4946_v39  ;;  %5774 = vst [vmem:[#allocation4_spill] sm:$0xff] %v4948_v36  ;;  %v4952_v33 = vpop.f32.mrb[25].mxu0  ;;  %v4954_v28 = vpop.f32.mrb[25].mxu1 }
 0x117   :  { %5775 = vst [vmem:[#allocation5_spill] sm:$0xff] %v4952_v33  ;;  %5776 = vst [vmem:[#allocation6_spill] sm:$0xff] %v4954_v28  ;;  %v4958_v23 = vpop.f32.mrb[26].mxu0  ;;  %v4960_v20 = vpop.f32.mrb[26].mxu1 }
 0x118   :  { %5777 = vst [vmem:[#allocation7_spill] sm:$0xff] %v4958_v23  ;;  %5778 = vst [vmem:[#allocation8_spill] sm:$0xff] %v4960_v20  ;;  %v4964_v17 = vpop.f32.mrb[27].mxu0  ;;  %v4966_v12 = vpop.f32.mrb[27].mxu1 }
 0x119   :  { %5779 = vst [vmem:[#allocation9_spill] sm:$0xff] %v4964_v17  ;;  %5780 = vst [vmem:[#allocation10_spill] sm:$0xff] %v4966_v12 }
 0x11d   :  { %v4970_v7 = vpop.f32.mrb[28].mxu0  ;;  %v4972_v4 = vpop.f32.mrb[28].mxu1 }
 0x11e   :  { %5781 = vst [vmem:[#allocation11_spill] sm:$0xff] %v4970_v7  ;;  %5782 = vst [vmem:[#allocation12_spill] sm:$0xff] %v4972_v4  ;;  %v4976_v1 = vpop.f32.mrb[29].mxu0  ;;  %v4978_v60 = vpop.f32.mrb[29].mxu1 }
 0x11f   :  { %5783 = vst [vmem:[#allocation13_spill] sm:$0xff] %v4976_v1  ;;  %5784 = vst [vmem:[#allocation14_spill] sm:$0xff] %v4978_v60  ;;  %v4982_v55 = vpop.f32.mrb[30].mxu0  ;;  %v4984_v20 = vpop.f32.mrb[30].mxu1 }
 0x120   :  { %5785 = vst [vmem:[#allocation15_spill] sm:$0xff] %v4982_v55  ;;  %5786 = vst [vmem:[#allocation16_spill] sm:$0xff] %v4984_v20  ;;  %v4988_v12 = vpop.f32.mrb[31].mxu0  ;;  %v4990_v17 = vpop.f32.mrb[31].mxu1 }
 0x121   :  { %5787 = vst [vmem:[#allocation17_spill] sm:$0xff] %v4988_v12  ;;  %5788 = vst [vmem:[#allocation18_spill] sm:$0xff] %v4990_v17 }
 0x125   :  { %v4994_v4 = vpop.f32.mrb[32].mxu0  ;;  %v4996_v7 = vpop.f32.mrb[32].mxu1 }
 0x126   :  { %5789 = vst [vmem:[#allocation19_spill] sm:$0xff] %v4994_v4  ;;  %5790 = vst [vmem:[#allocation20_spill] sm:$0xff] %v4996_v7  ;;  %v5000_v60 = vpop.f32.mrb[33].mxu0  ;;  %v5002_v1 = vpop.f32.mrb[33].mxu1 }
 0x127   :  { %5791 = vst [vmem:[#allocation21_spill] sm:$0xff] %v5000_v60  ;;  %5792 = vst [vmem:[#allocation22_spill] sm:$0xff] %v5002_v1  ;;  %v5006_v20 = vpop.f32.mrb[34].mxu0  ;;  %v5008_v55 = vpop.f32.mrb[34].mxu1 }
 0x128   :  { %5793 = vst [vmem:[#allocation23_spill] sm:$0xff] %v5006_v20  ;;  %5794 = vst [vmem:[#allocation24_spill] sm:$0xff] %v5008_v55  ;;  %v5012_v17 = vpop.f32.mrb[35].mxu0  ;;  %v5014_v12 = vpop.f32.mrb[35].mxu1 }
 0x129   :  { %5795 = vst [vmem:[#allocation25_spill] sm:$0xff] %v5012_v17  ;;  %5796 = vst [vmem:[#allocation26_spill] sm:$0xff] %v5014_v12 }
 0x12d   :  { %v5018_v7 = vpop.f32.mrb[36].mxu0  ;;  %v5020_v4 = vpop.f32.mrb[36].mxu1 }
 0x12e   :  { %5797 = vst [vmem:[#allocation27_spill] sm:$0xff] %v5018_v7  ;;  %5798 = vst [vmem:[#allocation28_spill] sm:$0xff] %v5020_v4  ;;  %v5024_v1 = vpop.f32.mrb[37].mxu0  ;;  %v5026_v60 = vpop.f32.mrb[37].mxu1 }
 0x12f   :  { %5799 = vst [vmem:[#allocation29_spill] sm:$0xff] %v5024_v1  ;;  %5800 = vst [vmem:[#allocation30_spill] sm:$0xff] %v5026_v60  ;;  %v5030_v55 = vpop.f32.mrb[38].mxu0  ;;  %v5032_v20 = vpop.f32.mrb[38].mxu1 }
 0x130   :  { %5801 = vst [vmem:[#allocation31_spill] sm:$0xff] %v5030_v55  ;;  %5802 = vst [vmem:[#allocation32_spill] sm:$0xff] %v5032_v20  ;;  %v5036_v12 = vpop.f32.mrb[39].mxu0  ;;  %v5038_v17 = vpop.f32.mrb[39].mxu1 }
 0x131   :  { %5803 = vst [vmem:[#allocation33_spill] sm:$0xff] %v5036_v12  ;;  %5804 = vst [vmem:[#allocation34_spill] sm:$0xff] %v5038_v17 }
 0x135   :  { %v5042_v4 = vpop.f32.mrb[40].mxu0  ;;  %v5044_v7 = vpop.f32.mrb[40].mxu1 }
 0x136   :  { %5805 = vst [vmem:[#allocation35_spill] sm:$0xff] %v5042_v4  ;;  %5806 = vst [vmem:[#allocation36_spill] sm:$0xff] %v5044_v7  ;;  %v5048_v60 = vpop.f32.mrb[41].mxu0  ;;  %v5050_v1 = vpop.f32.mrb[41].mxu1 }
 0x137   :  { %5807 = vst [vmem:[#allocation37_spill] sm:$0xff] %v5048_v60  ;;  %5808 = vst [vmem:[#allocation38_spill] sm:$0xff] %v5050_v1  ;;  %v5054_v20 = vpop.f32.mrb[42].mxu0  ;;  %v5056_v55 = vpop.f32.mrb[42].mxu1 }
 0x138   :  { %5809 = vst [vmem:[#allocation39_spill] sm:$0xff] %v5054_v20  ;;  %5810 = vst [vmem:[#allocation40_spill] sm:$0xff] %v5056_v55  ;;  %v5060_v17 = vpop.f32.mrb[43].mxu0  ;;  %v5062_v12 = vpop.f32.mrb[43].mxu1 }
 0x139   :  { %5811 = vst [vmem:[#allocation41_spill] sm:$0xff] %v5060_v17  ;;  %5812 = vst [vmem:[#allocation42_spill] sm:$0xff] %v5062_v12 }
 0x13d   :  { %v5066_v7 = vpop.f32.mrb[44].mxu0  ;;  %v5068_v4 = vpop.f32.mrb[44].mxu1 }
 0x13e   :  { %5813 = vst [vmem:[#allocation43_spill] sm:$0xff] %v5066_v7  ;;  %5814 = vst [vmem:[#allocation44_spill] sm:$0xff] %v5068_v4  ;;  %v5072_v1 = vpop.f32.mrb[45].mxu0  ;;  %v5074_v60 = vpop.f32.mrb[45].mxu1 }
 0x13f   :  { %5815 = vst [vmem:[#allocation45_spill] sm:$0xff] %v5072_v1  ;;  %5816 = vst [vmem:[#allocation46_spill] sm:$0xff] %v5074_v60  ;;  %v5078_v55 = vpop.f32.mrb[46].mxu0  ;;  %v5080_v20 = vpop.f32.mrb[46].mxu1 }
 0x140   :  { %5817 = vst [vmem:[#allocation47_spill] sm:$0xff] %v5078_v55  ;;  %5818 = vst [vmem:[#allocation48_spill] sm:$0xff] %v5080_v20  ;;  %v5084_v12 = vpop.f32.mrb[47].mxu0  ;;  %v5086_v17 = vpop.f32.mrb[47].mxu1 }
 0x141   :  { %5819 = vst [vmem:[#allocation49_spill] sm:$0xff] %v5084_v12  ;;  %5820 = vst [vmem:[#allocation50_spill] sm:$0xff] %v5086_v17 }
 0x145   :  { %v5090_v4 = vpop.f32.mrb[48].mxu0  ;;  %v5092_v7 = vpop.f32.mrb[48].mxu1 }
 0x146   :  { %5821 = vst [vmem:[#allocation51_spill] sm:$0xff] %v5090_v4  ;;  %5822 = vst [vmem:[#allocation52_spill] sm:$0xff] %v5092_v7  ;;  %v5096_v60 = vpop.f32.mrb[49].mxu0  ;;  %v5098_v1 = vpop.f32.mrb[49].mxu1 }
 0x147   :  { %5823 = vst [vmem:[#allocation53_spill] sm:$0xff] %v5096_v60  ;;  %5824 = vst [vmem:[#allocation54_spill] sm:$0xff] %v5098_v1  ;;  %v5102_v20 = vpop.f32.mrb[50].mxu0  ;;  %v5104_v55 = vpop.f32.mrb[50].mxu1 }
 0x148   :  { %5825 = vst [vmem:[#allocation55_spill] sm:$0xff] %v5102_v20  ;;  %5826 = vst [vmem:[#allocation56_spill] sm:$0xff] %v5104_v55  ;;  %v5108_v17 = vpop.f32.mrb[51].mxu0  ;;  %v5110_v12 = vpop.f32.mrb[51].mxu1 }
 0x149   :  { %5827 = vst [vmem:[#allocation57_spill] sm:$0xff] %v5108_v17  ;;  %5828 = vst [vmem:[#allocation58_spill] sm:$0xff] %v5110_v12 }
 0x14d   :  { %v5114_v7 = vpop.f32.mrb[52].mxu0  ;;  %v5116_v4 = vpop.f32.mrb[52].mxu1 }
 0x14e   :  { %5829 = vst [vmem:[#allocation59_spill] sm:$0xff] %v5114_v7  ;;  %5830 = vst [vmem:[#allocation60_spill] sm:$0xff] %v5116_v4  ;;  %v5120_v1 = vpop.f32.mrb[53].mxu0  ;;  %v5122_v60 = vpop.f32.mrb[53].mxu1 }
 0x14f   :  { %5831 = vst [vmem:[#allocation61_spill] sm:$0xff] %v5120_v1  ;;  %5832 = vst [vmem:[#allocation62_spill] sm:$0xff] %v5122_v60  ;;  %v5126_v55 = vpop.f32.mrb[54].mxu0  ;;  %v5128_v20 = vpop.f32.mrb[54].mxu1 }
 0x150   :  { %5833 = vst [vmem:[#allocation63_spill] sm:$0xff] %v5126_v55  ;;  %5834 = vst [vmem:[#allocation64_spill] sm:$0xff] %v5128_v20  ;;  %v5132_v12 = vpop.f32.mrb[55].mxu0  ;;  %v5134_v17 = vpop.f32.mrb[55].mxu1 }
 0x151   :  { %5835 = vst [vmem:[#allocation65_spill] sm:$0xff] %v5132_v12  ;;  %5836 = vst [vmem:[#allocation66_spill] sm:$0xff] %v5134_v17 }
 0x155   :  { %v5138_v4 = vpop.f32.mrb[56].mxu0  ;;  %v5140_v7 = vpop.f32.mrb[56].mxu1 }
 0x156   :  { %5837 = vst [vmem:[#allocation67_spill] sm:$0xff] %v5138_v4  ;;  %5838 = vst [vmem:[#allocation68_spill] sm:$0xff] %v5140_v7  ;;  %v5144_v60 = vpop.f32.mrb[57].mxu0  ;;  %v5146_v1 = vpop.f32.mrb[57].mxu1 }
 0x157   :  { %5839 = vst [vmem:[#allocation69_spill] sm:$0xff] %v5144_v60  ;;  %5840 = vst [vmem:[#allocation70_spill] sm:$0xff] %v5146_v1  ;;  %v5150_v20 = vpop.f32.mrb[58].mxu0  ;;  %v5152_v55 = vpop.f32.mrb[58].mxu1 }
 0x158   :  { %5841 = vst [vmem:[#allocation71_spill] sm:$0xff] %v5150_v20  ;;  %5842 = vst [vmem:[#allocation72_spill] sm:$0xff] %v5152_v55  ;;  %v5156_v17 = vpop.f32.mrb[59].mxu0  ;;  %v5158_v12 = vpop.f32.mrb[59].mxu1 }
 0x159   :  { %5843 = vst [vmem:[#allocation73_spill] sm:$0xff] %v5156_v17  ;;  %5844 = vst [vmem:[#allocation74_spill] sm:$0xff] %v5158_v12 }
 0x15d   :  { %v5162_v7 = vpop.f32.mrb[60].mxu0  ;;  %v5164_v4 = vpop.f32.mrb[60].mxu1 }
 0x15e   :  { %5845 = vst [vmem:[#allocation75_spill] sm:$0xff] %v5162_v7  ;;  %5846 = vst [vmem:[#allocation76_spill] sm:$0xff] %v5164_v4  ;;  %v5168_v1 = vpop.f32.mrb[61].mxu0  ;;  %v5170_v60 = vpop.f32.mrb[61].mxu1 }
 0x15f   :  { %5847 = vst [vmem:[#allocation77_spill] sm:$0xff] %v5168_v1  ;;  %5848 = vst [vmem:[#allocation78_spill] sm:$0xff] %v5170_v60  ;;  %v3907_v55 = vpop.f32.mrb[62].mxu0  ;;  %v3979_v20 = vpop.f32.mrb[62].mxu1 }
 0x160   :  { %v5174_v23 = vpop.f32.mrb[63].mxu0  ;;  %v5176_v28 = vpop.f32.mrb[63].mxu1  ;;  %v5186_v55 = vld [vmem:[%s5691_s2] ss:$0 sm:$0xff]  ;;  %v5852_v20 = vmax.f32 %v4736_v56, %v4738_v57 }
 0x161   :  { %5849 = vst [vmem:[#allocation79_spill] sm:$0xff] %v5174_v23  ;;  %5850 = vst [vmem:[#allocation80_spill] sm:$0xff] %v5176_v28  ;;  %v5853_v28 = vmax.f32 %v4748_v61, %v4750_v62 }
 0x165   :  { %v3990_v12 = vpop.f32.mrb[64].mxu0  ;;  %v4062_v17 = vpop.f32.mrb[64].mxu1 }
 0x166   :  { %v1932_v4 = vmax.f32 %v5851_v52, %v3990_v12  ;;  %v1676_v7 = vpop.f32.mrb[65].mxu0  ;;  %v2345_v33 = vpop.f32.mrb[65].mxu1  ;;  %v5854_v52 = vmax.f32 %v4760_v2, %v4762_v3  ;;  %v5855_v2 = vmax.f32 %v4770_v5, %v4772_v6  ;;  %v5857_v5 = vmax.f32 %v4788_v13, %v4790_v14 }
 0x167   :  { %v1930_v11 = vmax.f32 %v5852_v20, %v1676_v7  ;;  %v3991_v60 = vpop.f32.mrb[66].mxu0  ;;  %v4063_v1 = vpop.f32.mrb[66].mxu1 }
 0x168   :  { %v2601_v16 = vmax.f32 %v1932_v4, %v4062_v17  ;;  %v1933_v23 = vmax.f32 %v5853_v28, %v3991_v60  ;;  %v1679_v53 = vpop.f32.mrb[67].mxu0  ;;  %v2348_v54 = vpop.f32.mrb[67].mxu1 }
 0x169   :  { %v2599_v12 = vmax.f32 %v1930_v11, %v2345_v33  ;;  %v1931_v36 = vmax.f32 %v5854_v52, %v1679_v53 }
 0x16a   :  { %v2671_v39 = vadd.f32 %v5186_v55, %v2601_v16  ;;  %v2602_v44 = vmax.f32 %v1933_v23, %v4063_v1 }
 0x16b   :  { %v2669_v56 = vadd.f32 %v5186_v55, %v2599_v12  ;;  %v2600_v57 = vmax.f32 %v1931_v36, %v2348_v54  ;;  %v5856_v36 = vmax.f32 %v4776_v8, %v4778_v9 }
 0x16c   :  { %v2734_v7 = vmax.f32 %v2671_v39, 0.0  ;;  %v2672_v4 = vadd.f32 %v5186_v55, %v2602_v44 }
 0x16d   :  { %v2732_v17 = vmax.f32 %v2669_v56, 0.0  ;;  %v2670_v60 = vadd.f32 %v5186_v55, %v2600_v57  ;;  %v3994_v61 = vpop.f32.mrb[68].mxu0  ;;  %v4066_v62 = vpop.f32.mrb[68].mxu1  ;;  %v5858_v56 = vmax.f32 %v4800_v18, %v4802_v19 }
 0x16e   :  { %v3631_v28 = vpack.c.bf16 %v2734_v7, %v2734_v7  ;;  %v2735_v33 = vmax.f32 %v2672_v4, 0.0  ;;  %v1936_v3 = vmax.f32 %v5855_v2, %v3994_v61  ;;  %v1692_v16 = vpop.f32.mrb[69].mxu0  ;;  %v2361_v1 = vpop.f32.mrb[69].mxu1  ;;  %v5859_v2 = vmax.f32 %v4810_v21, %v4812_v22 }
 0x16f   :  { %v3629_v23 = vpack.c.bf16 %v2732_v17, %v2732_v17  ;;  %v2733_v11 = vmax.f32 %v2670_v60, 0.0  ;;  %v1934_v39 = vmax.f32 %v5856_v36, %v1692_v16  ;;  %v3995_v44 = vpop.f32.mrb[70].mxu0  ;;  %v4067_v20 = vpop.f32.mrb[70].mxu1  ;;  %v5860_v36 = vmax.f32 %v4816_v24, %v4818_v25 }
 0x170   :  { %3051 = vst.msk [vmem:[%s5692_s3 + $0x8] sm:$0xf] %vm3048_vm2, %v3631_v28  ;;  %v3632_v53 = vpack.c.bf16 %v2735_v33, %v2735_v33  ;;  %v2605_v54 = vmax.f32 %v1936_v3, %v4066_v62  ;;  %v1937_v6 = vmax.f32 %v5857_v5, %v3995_v44  ;;  %v1695_v12 = vpop.f32.mrb[71].mxu0  ;;  %v2364_v52 = vpop.f32.mrb[71].mxu1  ;;  %v5861_v21 = vmax.f32 %v4828_v29, %v4830_v30 }
 0x171   :  { %3049 = vst.msk [vmem:[%s5692_s3] sm:$0xf] %vm3048_vm2, %v3629_v23  ;;  %v3630_v8 = vpack.c.bf16 %v2733_v11, %v2733_v11  ;;  %v2603_v9 = vmax.f32 %v1934_v39, %v2361_v1  ;;  %v1935_v57 = vmax.f32 %v5858_v56, %v1695_v12  ;;  %v5862_v12 = vmax.f32 %v4840_v34, %v4842_v35 }
 0x172   :  { %3052 = vst.msk [vmem:[%s5692_s3 + $0xc] sm:$0xf] %vm3048_vm2, %v3632_v53  ;;  %v2675_v13 = vadd.f32 %v5186_v55, %v2605_v54  ;;  %v2606_v14 = vmax.f32 %v1937_v6, %v4067_v20 }
 0x173   :  { %3050 = vst.msk [vmem:[%s5692_s3 + $0x4] sm:$0xf] %vm3048_vm2, %v3630_v8  ;;  %v2673_v7 = vadd.f32 %v5186_v55, %v2603_v9  ;;  %v2604_v4 = vmax.f32 %v1935_v57, %v2364_v52 }
 0x174   :  { %v2738_v17 = vmax.f32 %v2675_v13, 0.0  ;;  %v2676_v18 = vadd.f32 %v5186_v55, %v2606_v14 }
 0x175   :  { %v2736_v19 = vmax.f32 %v2673_v7, 0.0  ;;  %v2674_v60 = vadd.f32 %v5186_v55, %v2604_v4  ;;  %v3998_v61 = vpop.f32.mrb[72].mxu0  ;;  %v4070_v62 = vpop.f32.mrb[72].mxu1 }
 0x176   :  { %v3635_v28 = vpack.c.bf16 %v2738_v17, %v2738_v17  ;;  %v2739_v33 = vmax.f32 %v2676_v18, 0.0  ;;  %v1940_v3 = vmax.f32 %v5859_v2, %v3998_v61  ;;  %v1708_v16 = vpop.f32.mrb[73].mxu0  ;;  %v2377_v1 = vpop.f32.mrb[73].mxu1  ;;  %v5863_v17 = vmax.f32 %v4850_v37, %v4852_v38 }
 0x177   :  { %v3633_v23 = vpack.c.bf16 %v2736_v19, %v2736_v19  ;;  %v2737_v11 = vmax.f32 %v2674_v60, 0.0  ;;  %v1938_v39 = vmax.f32 %v5860_v36, %v1708_v16  ;;  %v3999_v44 = vpop.f32.mrb[74].mxu0  ;;  %v4071_v20 = vpop.f32.mrb[74].mxu1  ;;  %v5865_v37 = vmax.f32 %v4868_v45, %v4870_v46 }
 0x178   :  { %3055 = vst.msk [vmem:[%s5692_s3 + $0x18] sm:$0xf] %vm3048_vm2, %v3635_v28  ;;  %v3636_v53 = vpack.c.bf16 %v2739_v33, %v2739_v33  ;;  %v2609_v54 = vmax.f32 %v1940_v3, %v4070_v62  ;;  %v1941_v22 = vmax.f32 %v5861_v21, %v3999_v44  ;;  %v1711_v5 = vpop.f32.mrb[75].mxu0  ;;  %v2380_v6 = vpop.f32.mrb[75].mxu1  ;;  %v5864_v28 = vmax.f32 %v4856_v40, %v4858_v41 }
 0x179   :  { %3053 = vst.msk [vmem:[%s5692_s3 + $0x10] sm:$0xf] %vm3048_vm2, %v3633_v23  ;;  %v3634_v24 = vpack.c.bf16 %v2737_v11, %v2737_v11  ;;  %v2607_v25 = vmax.f32 %v1938_v39, %v2377_v1  ;;  %v1939_v52 = vmax.f32 %v5862_v12, %v1711_v5  ;;  %v5866_v36 = vmax.f32 %v4880_v50, %v4882_v51 }
 0x17a   :  { %3056 = vst.msk [vmem:[%s5692_s3 + $0x1c] sm:$0xf] %vm3048_vm2, %v3636_v53  ;;  %v2679_v29 = vadd.f32 %v5186_v55, %v2609_v54  ;;  %v2610_v30 = vmax.f32 %v1941_v22, %v4071_v20 }
 0x17b   :  { %3054 = vst.msk [vmem:[%s5692_s3 + $0x14] sm:$0xf] %vm3048_vm2, %v3634_v24  ;;  %v2677_v8 = vadd.f32 %v5186_v55, %v2607_v25  ;;  %v2608_v9 = vmax.f32 %v1939_v52, %v2380_v6  ;;  %v5867_v24 = vmax.f32 %v4890_v58, %v4892_v59  ;;  %v5869_v58 = vmax.f32 %v4908_v26, %v4910_v27 }
 0x17c   :  { %v2742_v56 = vmax.f32 %v2679_v29, 0.0  ;;  %v2680_v34 = vadd.f32 %v5186_v55, %v2610_v30 }
 0x17d   :  { %v2740_v35 = vmax.f32 %v2677_v8, 0.0  ;;  %v2678_v57 = vadd.f32 %v5186_v55, %v2608_v9  ;;  %v4002_v13 = vpop.f32.mrb[76].mxu0  ;;  %v4074_v14 = vpop.f32.mrb[76].mxu1  ;;  %v5868_v8 = vmax.f32 %v4896_v0, %v4898_v10 }
 0x17e   :  { %v3639_v7 = vpack.c.bf16 %v2742_v56, %v2742_v56  ;;  %v2743_v4 = vmax.f32 %v2680_v34, 0.0  ;;  %v1944_v18 = vmax.f32 %v5863_v17, %v4002_v13  ;;  %v1724_v19 = vpop.f32.mrb[77].mxu0  ;;  %v2393_v60 = vpop.f32.mrb[77].mxu1 }
 0x17f   :  { %v3637_v61 = vpack.c.bf16 %v2740_v35, %v2740_v35  ;;  %v2741_v62 = vmax.f32 %v2678_v57, 0.0  ;;  %v1942_v33 = vmax.f32 %v5864_v28, %v1724_v19  ;;  %v4003_v2 = vpop.f32.mrb[78].mxu0  ;;  %v4075_v3 = vpop.f32.mrb[78].mxu1 }
 0x180   :  { %3059 = vst.msk [vmem:[%s5692_s3 + $0x28] sm:$0xf] %vm3048_vm2, %v3639_v7  ;;  %v3640_v16 = vpack.c.bf16 %v2743_v4, %v2743_v4  ;;  %v2613_v1 = vmax.f32 %v1944_v18, %v4074_v14  ;;  %v1945_v38 = vmax.f32 %v5865_v37, %v4003_v2  ;;  %v1727_v23 = vpop.f32.mrb[79].mxu0  ;;  %v2396_v11 = vpop.f32.mrb[79].mxu1  ;;  %v5870_v7 = vmax.f32 %v4914_v32, %v4916_v42 }
 0x181   :  { %3057 = vst.msk [vmem:[%s5692_s3 + $0x20] sm:$0xf] %vm3048_vm2, %v3637_v61  ;;  %v3638_v40 = vpack.c.bf16 %v2741_v62, %v2741_v62  ;;  %v2611_v41 = vmax.f32 %v1942_v33, %v2393_v60  ;;  %v1943_v39 = vmax.f32 %v5866_v36, %v1727_v23  ;;  %v5871_v2 = vmax.f32 %v4922_v47, %v4924_v48 }
 0x182   :  { %3060 = vst.msk [vmem:[%s5692_s3 + $0x2c] sm:$0xf] %vm3048_vm2, %v3640_v16  ;;  %v2683_v45 = vadd.f32 %v5186_v55, %v2613_v1  ;;  %v2614_v46 = vmax.f32 %v1945_v38, %v4075_v3  ;;  %v5872_v23 = vmax.f32 %v4928_v63, %v4930_v31  ;;  %v5873_v47 = vmax.f32 %v4934_v49, %v4936_v43 }
 0x183   :  { %3058 = vst.msk [vmem:[%s5692_s3 + $0x24] sm:$0xf] %vm3048_vm2, %v3638_v40  ;;  %v2681_v44 = vadd.f32 %v5186_v55, %v2611_v41  ;;  %v2612_v20 = vmax.f32 %v1943_v39, %v2396_v11 }
 0x184   :  { %v2746_v53 = vmax.f32 %v2683_v45, 0.0  ;;  %v2684_v50 = vadd.f32 %v5186_v55, %v2614_v46 }
 0x185   :  { %v2744_v51 = vmax.f32 %v2681_v44, 0.0  ;;  %v2682_v54 = vadd.f32 %v5186_v55, %v2612_v20  ;;  %v4006_v21 = vpop.f32.mrb[80].mxu0  ;;  %v4078_v22 = vpop.f32.mrb[80].mxu1  ;;  %v5874_v44 = vld [vmem:[#allocation2_spill] sm:$0xff] }
 0x186   :  { %v3643_v5 = vpack.c.bf16 %v2746_v53, %v2746_v53  ;;  %v2747_v6 = vmax.f32 %v2684_v50, 0.0  ;;  %v1948_v25 = vmax.f32 %v5867_v24, %v4006_v21  ;;  %v1740_v12 = vpop.f32.mrb[81].mxu0  ;;  %v2409_v52 = vpop.f32.mrb[81].mxu1  ;;  %v5875_v20 = vmax.f32 %v4940_v15, %v5874_v44  ;;  %v5891_v44 = vld [vmem:[#allocation13_spill] sm:$0xff] }
 0x187   :  { %v3641_v29 = vpack.c.bf16 %v2744_v51, %v2744_v51  ;;  %v2745_v30 = vmax.f32 %v2682_v54, 0.0  ;;  %v1946_v9 = vmax.f32 %v5868_v8, %v1740_v12  ;;  %v4007_v56 = vpop.f32.mrb[82].mxu0  ;;  %v4079_v34 = vpop.f32.mrb[82].mxu1  ;;  %v5876_v12 = vld [vmem:[#allocation3_spill] sm:$0xff] }
 0x188   :  { %3063 = vst.msk [vmem:[%s5692_s3 + $0x38] sm:$0xf] %vm3048_vm2, %v3643_v5  ;;  %v3644_v35 = vpack.c.bf16 %v2747_v6, %v2747_v6  ;;  %v2617_v57 = vmax.f32 %v1948_v25, %v4078_v22  ;;  %v1949_v59 = vmax.f32 %v5869_v58, %v4007_v56  ;;  %v1743_v13 = vpop.f32.mrb[83].mxu0  ;;  %v2412_v14 = vpop.f32.mrb[83].mxu1 }
 0x189   :  { %3061 = vst.msk [vmem:[%s5692_s3 + $0x30] sm:$0xf] %vm3048_vm2, %v3641_v29  ;;  %v3642_v0 = vpack.c.bf16 %v2745_v30, %v2745_v30  ;;  %v2615_v10 = vmax.f32 %v1946_v9, %v2409_v52  ;;  %v1947_v4 = vmax.f32 %v5870_v7, %v1743_v13  ;;  %v5877_v52 = vld [vmem:[#allocation4_spill] sm:$0xff]  ;;  %v5882_v7 = vld [vmem:[#allocation7_spill] sm:$0xff] }
 0x18a   :  { %3064 = vst.msk [vmem:[%s5692_s3 + $0x3c] sm:$0xf] %vm3048_vm2, %v3644_v35  ;;  %v2687_v26 = vadd.f32 %v5186_v55, %v2617_v57  ;;  %v2618_v27 = vmax.f32 %v1949_v59, %v4079_v34  ;;  %v5878_v29 = vmax.f32 %v5876_v12, %v5877_v52  ;;  %v5879_v35 = vld [vmem:[#allocation5_spill] sm:$0xff]  ;;  %v5880_v57 = vld [vmem:[#allocation6_spill] sm:$0xff] }
 0x18b   :  { %3062 = vst.msk [vmem:[%s5692_s3 + $0x34] sm:$0xf] %vm3048_vm2, %v3642_v0  ;;  %v2685_v17 = vadd.f32 %v5186_v55, %v2615_v10  ;;  %v2616_v18 = vmax.f32 %v1947_v4, %v2412_v14  ;;  %v5881_v58 = vmax.f32 %v5879_v35, %v5880_v57  ;;  %v5883_v4 = vld [vmem:[#allocation8_spill] sm:$0xff]  ;;  %v5897_v52 = vld [vmem:[#allocation17_spill] sm:$0xff] }
 0x18c   :  { %v2750_v19 = vmax.f32 %v2687_v26, 0.0  ;;  %v2688_v32 = vadd.f32 %v5186_v55, %v2618_v27  ;;  %v5884_v26 = vmax.f32 %v5882_v7, %v5883_v4  ;;  %v5900_v4 = vld [vmem:[#allocation19_spill] sm:$0xff] }
 0x18d   :  { %v2748_v42 = vmax.f32 %v2685_v17, 0.0  ;;  %v2686_v60 = vadd.f32 %v5186_v55, %v2616_v18  ;;  %v4010_v61 = vpop.f32.mrb[84].mxu0  ;;  %v4082_v62 = vpop.f32.mrb[84].mxu1 }
 0x18e   :  { %v3647_v28 = vpack.c.bf16 %v2750_v19, %v2750_v19  ;;  %v2751_v33 = vmax.f32 %v2688_v32, 0.0  ;;  %v1952_v3 = vmax.f32 %v5871_v2, %v4010_v61  ;;  %v1756_v16 = vpop.f32.mrb[85].mxu0  ;;  %v2425_v1 = vpop.f32.mrb[85].mxu1 }
 0x18f   :  { %v3645_v37 = vpack.c.bf16 %v2748_v42, %v2748_v42  ;;  %v2749_v38 = vmax.f32 %v2686_v60, 0.0  ;;  %v1950_v11 = vmax.f32 %v5872_v23, %v1756_v16  ;;  %v4011_v40 = vpop.f32.mrb[86].mxu0  ;;  %v4083_v41 = vpop.f32.mrb[86].mxu1  ;;  %v5885_v42 = vld [vmem:[#allocation9_spill] sm:$0xff]  ;;  %v5886_v60 = vld [vmem:[#allocation10_spill] sm:$0xff] }
 0x190   :  { %3067 = vst.msk [vmem:[%s5692_s3 + $0x48] sm:$0xf] %vm3048_vm2, %v3647_v28  ;;  %v3648_v36 = vpack.c.bf16 %v2751_v33, %v2751_v33  ;;  %v2621_v39 = vmax.f32 %v1952_v3, %v4082_v62  ;;  %v1953_v48 = vmax.f32 %v5873_v47, %v4011_v40  ;;  %v1759_v45 = vpop.f32.mrb[87].mxu0  ;;  %v2428_v46 = vpop.f32.mrb[87].mxu1  ;;  %v5887_v61 = vmax.f32 %v5885_v42, %v5886_v60  ;;  %v5903_v60 = vld [vmem:[#allocation21_spill] sm:$0xff] }
 0x191   :  { %3065 = vst.msk [vmem:[%s5692_s3 + $0x40] sm:$0xf] %vm3048_vm2, %v3645_v37  ;;  %v3646_v63 = vpack.c.bf16 %v2749_v38, %v2749_v38  ;;  %v2619_v31 = vmax.f32 %v1950_v11, %v2425_v1  ;;  %v1951_v53 = vmax.f32 %v5875_v20, %v1759_v45  ;;  %v5892_v20 = vld [vmem:[#allocation14_spill] sm:$0xff] }
 0x192   :  { %3068 = vst.msk [vmem:[%s5692_s3 + $0x4c] sm:$0xf] %vm3048_vm2, %v3648_v36  ;;  %v2691_v49 = vadd.f32 %v5186_v55, %v2621_v39  ;;  %v2622_v43 = vmax.f32 %v1953_v48, %v4083_v41  ;;  %v5888_v36 = vld [vmem:[#allocation11_spill] sm:$0xff]  ;;  %v5889_v39 = vld [vmem:[#allocation12_spill] sm:$0xff] }
 0x193   :  { %3066 = vst.msk [vmem:[%s5692_s3 + $0x44] sm:$0xf] %vm3048_vm2, %v3646_v63  ;;  %v2689_v50 = vadd.f32 %v5186_v55, %v2619_v31  ;;  %v2620_v51 = vmax.f32 %v1951_v53, %v2428_v46  ;;  %v5890_v47 = vmax.f32 %v5888_v36, %v5889_v39  ;;  %v5893_v53 = vmax.f32 %v5891_v44, %v5892_v20  ;;  %v5909_v39 = vld [vmem:[#allocation25_spill] sm:$0xff] }
 0x194   :  { %v2754_v54 = vmax.f32 %v2691_v49, 0.0  ;;  %v2692_v15 = vadd.f32 %v5186_v55, %v2622_v43 }
 0x195   :  { %v2752_v21 = vmax.f32 %v2689_v50, 0.0  ;;  %v2690_v22 = vadd.f32 %v5186_v55, %v2620_v51  ;;  %v4014_v5 = vpop.f32.mrb[88].mxu0  ;;  %v4086_v6 = vpop.f32.mrb[88].mxu1 }
 0x196   :  { %v3651_v24 = vpack.c.bf16 %v2754_v54, %v2754_v54  ;;  %v2755_v25 = vmax.f32 %v2692_v15, 0.0  ;;  %v1956_v30 = vmax.f32 %v5878_v29, %v4014_v5  ;;  %v1772_v8 = vpop.f32.mrb[89].mxu0  ;;  %v2441_v9 = vpop.f32.mrb[89].mxu1  ;;  %v5894_v15 = vld [vmem:[#allocation15_spill] sm:$0xff]  ;;  %v5898_v29 = vld [vmem:[#allocation18_spill] sm:$0xff] }
 0x197   :  { %v3649_v56 = vpack.c.bf16 %v2752_v21, %v2752_v21  ;;  %v2753_v34 = vmax.f32 %v2690_v22, 0.0  ;;  %v1954_v59 = vmax.f32 %v5881_v58, %v1772_v8  ;;  %v4015_v13 = vpop.f32.mrb[90].mxu0  ;;  %v4087_v14 = vpop.f32.mrb[90].mxu1  ;;  %v5895_v21 = vld [vmem:[#allocation16_spill] sm:$0xff] }
 0x198   :  { %3071 = vst.msk [vmem:[%s5692_s3 + $0x58] sm:$0xf] %vm3048_vm2, %v3651_v24  ;;  %v3652_v0 = vpack.c.bf16 %v2755_v25, %v2755_v25  ;;  %v2625_v10 = vmax.f32 %v1956_v30, %v4086_v6  ;;  %v1957_v27 = vmax.f32 %v5884_v26, %v4015_v13  ;;  %v1775_v17 = vpop.f32.mrb[91].mxu0  ;;  %v2444_v18 = vpop.f32.mrb[91].mxu1  ;;  %v5896_v22 = vmax.f32 %v5894_v15, %v5895_v21  ;;  %v5901_v26 = vld [vmem:[#allocation20_spill] sm:$0xff]  ;;  %v5912_v21 = vld [vmem:[#allocation27_spill] sm:$0xff] }
 0x199   :  { %3069 = vst.msk [vmem:[%s5692_s3 + $0x50] sm:$0xf] %vm3048_vm2, %v3649_v56  ;;  %v3650_v19 = vpack.c.bf16 %v2753_v34, %v2753_v34  ;;  %v2623_v32 = vmax.f32 %v1954_v59, %v2441_v9  ;;  %v1955_v62 = vmax.f32 %v5887_v61, %v1775_v17  ;;  %v5899_v30 = vmax.f32 %v5897_v52, %v5898_v29  ;;  %v5904_v61 = vld [vmem:[#allocation22_spill] sm:$0xff]  ;;  %v5915_v29 = vld [vmem:[#allocation29_spill] sm:$0xff] }
 0x19a   :  { %3072 = vst.msk [vmem:[%s5692_s3 + $0x5c] sm:$0xf] %vm3048_vm2, %v3652_v0  ;;  %v2695_v28 = vadd.f32 %v5186_v55, %v2625_v10  ;;  %v2626_v33 = vmax.f32 %v1957_v27, %v4087_v14  ;;  %v5902_v27 = vmax.f32 %v5900_v4, %v5901_v26  ;;  %v5921_v26 = vld [vmem:[#allocation33_spill] sm:$0xff] }
 0x19b   :  { %3070 = vst.msk [vmem:[%s5692_s3 + $0x54] sm:$0xf] %vm3048_vm2, %v3650_v19  ;;  %v2693_v2 = vadd.f32 %v5186_v55, %v2623_v32  ;;  %v2624_v3 = vmax.f32 %v1955_v62, %v2444_v18  ;;  %v5905_v62 = vmax.f32 %v5903_v60, %v5904_v61 }
 0x19c   :  { %v2758_v16 = vmax.f32 %v2695_v28, 0.0  ;;  %v2696_v1 = vadd.f32 %v5186_v55, %v2626_v33 }
 0x19d   :  { %v2756_v37 = vmax.f32 %v2693_v2, 0.0  ;;  %v2694_v38 = vadd.f32 %v5186_v55, %v2624_v3  ;;  %v4018_v23 = vpop.f32.mrb[92].mxu0  ;;  %v4090_v11 = vpop.f32.mrb[92].mxu1 }
 0x19e   :  { %v3655_v40 = vpack.c.bf16 %v2758_v16, %v2758_v16  ;;  %v2759_v41 = vmax.f32 %v2696_v1, 0.0  ;;  %v1960_v48 = vmax.f32 %v5890_v47, %v4018_v23  ;;  %v1788_v45 = vpop.f32.mrb[93].mxu0  ;;  %v2457_v46 = vpop.f32.mrb[93].mxu1  ;;  %v5906_v1 = vld [vmem:[#allocation23_spill] sm:$0xff]  ;;  %v5910_v47 = vld [vmem:[#allocation26_spill] sm:$0xff] }
 0x19f   :  { %v3653_v63 = vpack.c.bf16 %v2756_v37, %v2756_v37  ;;  %v2757_v31 = vmax.f32 %v2694_v38, 0.0  ;;  %v1958_v49 = vmax.f32 %v5893_v53, %v1788_v45  ;;  %v4019_v43 = vpop.f32.mrb[94].mxu0  ;;  %v4091_v50 = vpop.f32.mrb[94].mxu1  ;;  %v5907_v37 = vld [vmem:[#allocation24_spill] sm:$0xff] }
 0x1a0   :  { %3075 = vst.msk [vmem:[%s5692_s3 + $0x68] sm:$0xf] %vm3048_vm2, %v3655_v40  ;;  %v3656_v51 = vpack.c.bf16 %v2759_v41, %v2759_v41  ;;  %v2629_v54 = vmax.f32 %v1960_v48, %v4090_v11  ;;  %v1961_v5 = vmax.f32 %v5896_v22, %v4019_v43  ;;  %v1791_v6 = vpop.f32.mrb[95].mxu0  ;;  %v2460_v24 = vpop.f32.mrb[95].mxu1  ;;  %v5908_v38 = vmax.f32 %v5906_v1, %v5907_v37  ;;  %v5913_v22 = vld [vmem:[#allocation28_spill] sm:$0xff]  ;;  %v5924_v37 = vld [vmem:[#allocation35_spill] sm:$0xff] }
 0x1a1   :  { %3073 = vst.msk [vmem:[%s5692_s3 + $0x60] sm:$0xf] %vm3048_vm2, %v3653_v63  ;;  %v3654_v25 = vpack.c.bf16 %v2757_v31, %v2757_v31  ;;  %v2627_v12 = vmax.f32 %v1958_v49, %v2457_v46  ;;  %v1959_v8 = vmax.f32 %v5899_v30, %v1791_v6  ;;  %v5911_v48 = vmax.f32 %v5909_v39, %v5910_v47  ;;  %v5916_v30 = vld [vmem:[#allocation30_spill] sm:$0xff]  ;;  %v5927_v47 = vld [vmem:[#allocation37_spill] sm:$0xff] }
 0x1a2   :  { %3076 = vst.msk [vmem:[%s5692_s3 + $0x6c] sm:$0xf] %vm3048_vm2, %v3656_v51  ;;  %v2699_v9 = vadd.f32 %v5186_v55, %v2629_v54  ;;  %v2630_v56 = vmax.f32 %v1961_v5, %v4091_v50  ;;  %v5914_v5 = vmax.f32 %v5912_v21, %v5913_v22  ;;  %v5933_v22 = vld [vmem:[#allocation41_spill] sm:$0xff] }
 0x1a3   :  { %3074 = vst.msk [vmem:[%s5692_s3 + $0x64] sm:$0xf] %vm3048_vm2, %v3654_v25  ;;  %v2697_v34 = vadd.f32 %v5186_v55, %v2627_v12  ;;  %v2628_v35 = vmax.f32 %v1959_v8, %v2460_v24  ;;  %v5917_v8 = vmax.f32 %v5915_v29, %v5916_v30 }
 0x1a4   :  { %v2762_v57 = vmax.f32 %v2699_v9, 0.0  ;;  %v2700_v58 = vadd.f32 %v5186_v55, %v2630_v56 }
 0x1a5   :  { %v2760_v59 = vmax.f32 %v2697_v34, 0.0  ;;  %v2698_v13 = vadd.f32 %v5186_v55, %v2628_v35  ;;  %v4022_v14 = vpop.f32.mrb[96].mxu0  ;;  %v4094_v0 = vpop.f32.mrb[96].mxu1 }
 0x1a6   :  { %v3659_v10 = vpack.c.bf16 %v2762_v57, %v2762_v57  ;;  %v2763_v7 = vmax.f32 %v2700_v58, 0.0  ;;  %v1964_v17 = vmax.f32 %v5902_v27, %v4022_v14  ;;  %v1804_v18 = vpop.f32.mrb[97].mxu0  ;;  %v2473_v19 = vpop.f32.mrb[97].mxu1  ;;  %v5918_v58 = vld [vmem:[#allocation31_spill] sm:$0xff]  ;;  %v5922_v27 = vld [vmem:[#allocation34_spill] sm:$0xff] }
 0x1a7   :  { %v3657_v32 = vpack.c.bf16 %v2760_v59, %v2760_v59  ;;  %v2761_v42 = vmax.f32 %v2698_v13, 0.0  ;;  %v1962_v28 = vmax.f32 %v5905_v62, %v1804_v18  ;;  %v4023_v33 = vpop.f32.mrb[98].mxu0  ;;  %v4095_v2 = vpop.f32.mrb[98].mxu1  ;;  %v5919_v59 = vld [vmem:[#allocation32_spill] sm:$0xff] }
 0x1a8   :  { %3079 = vst.msk [vmem:[%s5692_s3 + $0x78] sm:$0xf] %vm3048_vm2, %v3659_v10  ;;  %v3660_v3 = vpack.c.bf16 %v2763_v7, %v2763_v7  ;;  %v2633_v16 = vmax.f32 %v1964_v17, %v4094_v0  ;;  %v1965_v23 = vmax.f32 %v5908_v38, %v4023_v33  ;;  %v1807_v11 = vpop.f32.mrb[99].mxu0  ;;  %v2476_v40 = vpop.f32.mrb[99].mxu1  ;;  %v5920_v13 = vmax.f32 %v5918_v58, %v5919_v59  ;;  %v5925_v38 = vld [vmem:[#allocation36_spill] sm:$0xff]  ;;  %v5936_v59 = vld [vmem:[#allocation43_spill] sm:$0xff] }
 0x1a9   :  { %3077 = vst.msk [vmem:[%s5692_s3 + $0x70] sm:$0xf] %vm3048_vm2, %v3657_v32  ;;  %v3658_v41 = vpack.c.bf16 %v2761_v42, %v2761_v42  ;;  %v2631_v36 = vmax.f32 %v1962_v28, %v2473_v19  ;;  %v1963_v45 = vmax.f32 %v5911_v48, %v1807_v11  ;;  %v5923_v17 = vmax.f32 %v5921_v26, %v5922_v27  ;;  %v5928_v48 = vld [vmem:[#allocation38_spill] sm:$0xff]  ;;  %v5939_v27 = vld [vmem:[#allocation45_spill] sm:$0xff] }
 0x1aa   :  { %3080 = vst.msk [vmem:[%s5692_s3 + $0x7c] sm:$0xf] %vm3048_vm2, %v3660_v3  ;;  %v2703_v46 = vadd.f32 %v5186_v55, %v2633_v16  ;;  %v2634_v63 = vmax.f32 %v1965_v23, %v4095_v2  ;;  %v5926_v23 = vmax.f32 %v5924_v37, %v5925_v38  ;;  %v5945_v38 = vld [vmem:[#allocation49_spill] sm:$0xff] }
 0x1ab   :  { %3078 = vst.msk [vmem:[%s5692_s3 + $0x74] sm:$0xf] %vm3048_vm2, %v3658_v41  ;;  %v2701_v31 = vadd.f32 %v5186_v55, %v2631_v36  ;;  %v2632_v44 = vmax.f32 %v1963_v45, %v2476_v40  ;;  %v5929_v45 = vmax.f32 %v5927_v47, %v5928_v48 }
 0x1ac   :  { %v2766_v20 = vmax.f32 %v2703_v46, 0.0  ;;  %v2704_v53 = vadd.f32 %v5186_v55, %v2634_v63 }
 0x1ad   :  { %v2764_v49 = vmax.f32 %v2701_v31, 0.0  ;;  %v2702_v43 = vadd.f32 %v5186_v55, %v2632_v44  ;;  %v4026_v50 = vpop.f32.mrb[100].mxu0  ;;  %v4098_v51 = vpop.f32.mrb[100].mxu1 }
 0x1ae   :  { %v3663_v54 = vpack.c.bf16 %v2766_v20, %v2766_v20  ;;  %v2767_v15 = vmax.f32 %v2704_v53, 0.0  ;;  %v1968_v6 = vmax.f32 %v5914_v5, %v4026_v50  ;;  %v1820_v24 = vpop.f32.mrb[101].mxu0  ;;  %v2489_v25 = vpop.f32.mrb[101].mxu1  ;;  %v5930_v53 = vld [vmem:[#allocation39_spill] sm:$0xff]  ;;  %v5934_v5 = vld [vmem:[#allocation42_spill] sm:$0xff] }
 0x1af   :  { %v3661_v12 = vpack.c.bf16 %v2764_v49, %v2764_v49  ;;  %v2765_v52 = vmax.f32 %v2702_v43, 0.0  ;;  %v1966_v9 = vmax.f32 %v5917_v8, %v1820_v24  ;;  %v4027_v56 = vpop.f32.mrb[102].mxu0  ;;  %v4099_v34 = vpop.f32.mrb[102].mxu1  ;;  %v5931_v49 = vld [vmem:[#allocation40_spill] sm:$0xff] }
 0x1b0   :  { %3083 = vst.msk [vmem:[%s5692_s3 + $0x88] sm:$0xf] %vm3048_vm2, %v3663_v54  ;;  %v3664_v35 = vpack.c.bf16 %v2767_v15, %v2767_v15  ;;  %v2637_v57 = vmax.f32 %v1968_v6, %v4098_v51  ;;  %v1969_v14 = vmax.f32 %v5920_v13, %v4027_v56  ;;  %v1823_v0 = vpop.f32.mrb[103].mxu0  ;;  %v2492_v10 = vpop.f32.mrb[103].mxu1  ;;  %v5932_v43 = vmax.f32 %v5930_v53, %v5931_v49  ;;  %v5937_v13 = vld [vmem:[#allocation44_spill] sm:$0xff]  ;;  %v5948_v49 = vld [vmem:[#allocation51_spill] sm:$0xff] }
 0x1b1   :  { %3081 = vst.msk [vmem:[%s5692_s3 + $0x80] sm:$0xf] %vm3048_vm2, %v3661_v12  ;;  %v3662_v7 = vpack.c.bf16 %v2765_v52, %v2765_v52  ;;  %v2635_v4 = vmax.f32 %v1966_v9, %v2489_v25  ;;  %v1967_v18 = vmax.f32 %v5923_v17, %v1823_v0  ;;  %v5935_v6 = vmax.f32 %v5933_v22, %v5934_v5  ;;  %v5940_v17 = vld [vmem:[#allocation46_spill] sm:$0xff]  ;;  %v5951_v5 = vld [vmem:[#allocation53_spill] sm:$0xff] }
 0x1b2   :  { %3084 = vst.msk [vmem:[%s5692_s3 + $0x8c] sm:$0xf] %vm3048_vm2, %v3664_v35  ;;  %v2707_v19 = vadd.f32 %v5186_v55, %v2637_v57  ;;  %v2638_v32 = vmax.f32 %v1969_v14, %v4099_v34  ;;  %v5938_v14 = vmax.f32 %v5936_v59, %v5937_v13  ;;  %v5957_v13 = vld [vmem:[#allocation57_spill] sm:$0xff] }
 0x1b3   :  { %3082 = vst.msk [vmem:[%s5692_s3 + $0x84] sm:$0xf] %vm3048_vm2, %v3662_v7  ;;  %v2705_v42 = vadd.f32 %v5186_v55, %v2635_v4  ;;  %v2636_v60 = vmax.f32 %v1967_v18, %v2492_v10  ;;  %v5941_v18 = vmax.f32 %v5939_v27, %v5940_v17 }
 0x1b4   :  { %v2770_v61 = vmax.f32 %v2707_v19, 0.0  ;;  %v2708_v62 = vadd.f32 %v5186_v55, %v2638_v32 }
 0x1b5   :  { %v2768_v28 = vmax.f32 %v2705_v42, 0.0  ;;  %v2706_v33 = vadd.f32 %v5186_v55, %v2636_v60  ;;  %v4030_v2 = vpop.f32.mrb[104].mxu0  ;;  %v4102_v3 = vpop.f32.mrb[104].mxu1 }
 0x1b6   :  { %v3667_v16 = vpack.c.bf16 %v2770_v61, %v2770_v61  ;;  %v2771_v1 = vmax.f32 %v2708_v62, 0.0  ;;  %v1972_v11 = vmax.f32 %v5926_v23, %v4030_v2  ;;  %v1836_v40 = vpop.f32.mrb[105].mxu0  ;;  %v2505_v41 = vpop.f32.mrb[105].mxu1  ;;  %v5942_v62 = vld [vmem:[#allocation47_spill] sm:$0xff]  ;;  %v5946_v23 = vld [vmem:[#allocation50_spill] sm:$0xff] }
 0x1b7   :  { %v3665_v36 = vpack.c.bf16 %v2768_v28, %v2768_v28  ;;  %v2769_v39 = vmax.f32 %v2706_v33, 0.0  ;;  %v1970_v46 = vmax.f32 %v5929_v45, %v1836_v40  ;;  %v4031_v63 = vpop.f32.mrb[106].mxu0  ;;  %v4103_v31 = vpop.f32.mrb[106].mxu1  ;;  %v5943_v28 = vld [vmem:[#allocation48_spill] sm:$0xff] }
 0x1b8   :  { %3087 = vst.msk [vmem:[%s5692_s3 + $0x98] sm:$0xf] %vm3048_vm2, %v3667_v16  ;;  %v3668_v44 = vpack.c.bf16 %v2771_v1, %v2771_v1  ;;  %v2641_v20 = vmax.f32 %v1972_v11, %v4102_v3  ;;  %v1973_v50 = vmax.f32 %v5932_v43, %v4031_v63  ;;  %v1839_v51 = vpop.f32.mrb[107].mxu0  ;;  %v2508_v54 = vpop.f32.mrb[107].mxu1  ;;  %v5944_v33 = vmax.f32 %v5942_v62, %v5943_v28  ;;  %v5949_v43 = vld [vmem:[#allocation52_spill] sm:$0xff]  ;;  %v5960_v28 = vld [vmem:[#allocation59_spill] sm:$0xff] }
 0x1b9   :  { %3085 = vst.msk [vmem:[%s5692_s3 + $0x90] sm:$0xf] %vm3048_vm2, %v3665_v36  ;;  %v3666_v15 = vpack.c.bf16 %v2769_v39, %v2769_v39  ;;  %v2639_v21 = vmax.f32 %v1970_v46, %v2505_v41  ;;  %v1971_v24 = vmax.f32 %v5935_v6, %v1839_v51  ;;  %v5947_v11 = vmax.f32 %v5945_v38, %v5946_v23  ;;  %v5952_v6 = vld [vmem:[#allocation54_spill] sm:$0xff]  ;;  %v5963_v23 = vld [vmem:[#allocation61_spill] sm:$0xff] }
 0x1ba   :  { %3088 = vst.msk [vmem:[%s5692_s3 + $0x9c] sm:$0xf] %vm3048_vm2, %v3668_v44  ;;  %v2711_v25 = vadd.f32 %v5186_v55, %v2641_v20  ;;  %v2642_v12 = vmax.f32 %v1973_v50, %v4103_v31  ;;  %v5950_v50 = vmax.f32 %v5948_v49, %v5949_v43  ;;  %v5969_v43 = vld [vmem:[#allocation65_spill] sm:$0xff] }
 0x1bb   :  { %3086 = vst.msk [vmem:[%s5692_s3 + $0x94] sm:$0xf] %vm3048_vm2, %v3666_v15  ;;  %v2709_v52 = vadd.f32 %v5186_v55, %v2639_v21  ;;  %v2640_v29 = vmax.f32 %v1971_v24, %v2508_v54  ;;  %v5953_v24 = vmax.f32 %v5951_v5, %v5952_v6 }
 0x1bc   :  { %v2774_v30 = vmax.f32 %v2711_v25, 0.0  ;;  %v2712_v8 = vadd.f32 %v5186_v55, %v2642_v12 }
 0x1bd   :  { %v2772_v9 = vmax.f32 %v2709_v52, 0.0  ;;  %v2710_v56 = vadd.f32 %v5186_v55, %v2640_v29  ;;  %v4034_v34 = vpop.f32.mrb[108].mxu0  ;;  %v4106_v35 = vpop.f32.mrb[108].mxu1 }
 0x1be   :  { %v3671_v57 = vpack.c.bf16 %v2774_v30, %v2774_v30  ;;  %v2775_v58 = vmax.f32 %v2712_v8, 0.0  ;;  %v1976_v0 = vmax.f32 %v5938_v14, %v4034_v34  ;;  %v1852_v10 = vpop.f32.mrb[109].mxu0  ;;  %v2521_v7 = vpop.f32.mrb[109].mxu1  ;;  %v5954_v8 = vld [vmem:[#allocation55_spill] sm:$0xff]  ;;  %v5958_v14 = vld [vmem:[#allocation58_spill] sm:$0xff] }
 0x1bf   :  { %v3669_v4 = vpack.c.bf16 %v2772_v9, %v2772_v9  ;;  %v2773_v26 = vmax.f32 %v2710_v56, 0.0  ;;  %v1974_v19 = vmax.f32 %v5941_v18, %v1852_v10  ;;  %v4035_v32 = vpop.f32.mrb[110].mxu0  ;;  %v4107_v42 = vpop.f32.mrb[110].mxu1  ;;  %v5955_v9 = vld [vmem:[#allocation56_spill] sm:$0xff] }
 0x1c0   :  { %3091 = vst.msk [vmem:[%s5692_s3 + $0xa8] sm:$0xf] %vm3048_vm2, %v3671_v57  ;;  %v3672_v60 = vpack.c.bf16 %v2775_v58, %v2775_v58  ;;  %v2645_v61 = vmax.f32 %v1976_v0, %v4106_v35  ;;  %v1977_v2 = vmax.f32 %v5944_v33, %v4035_v32  ;;  %v1855_v3 = vpop.f32.mrb[111].mxu0  ;;  %v2524_v16 = vpop.f32.mrb[111].mxu1  ;;  %v5956_v56 = vmax.f32 %v5954_v8, %v5955_v9  ;;  %v5961_v33 = vld [vmem:[#allocation60_spill] sm:$0xff]  ;;  %v5972_v9 = vld [vmem:[#allocation67_spill] sm:$0xff] }
 0x1c1   :  { %3089 = vst.msk [vmem:[%s5692_s3 + $0xa0] sm:$0xf] %vm3048_vm2, %v3669_v4  ;;  %v3670_v1 = vpack.c.bf16 %v2773_v26, %v2773_v26  ;;  %v2643_v37 = vmax.f32 %v1974_v19, %v2521_v7  ;;  %v1975_v40 = vmax.f32 %v5947_v11, %v1855_v3  ;;  %v5959_v0 = vmax.f32 %v5957_v13, %v5958_v14  ;;  %v5964_v11 = vld [vmem:[#allocation62_spill] sm:$0xff]  ;;  %v5975_v14 = vld [vmem:[#allocation69_spill] sm:$0xff] }
 0x1c2   :  { %3092 = vst.msk [vmem:[%s5692_s3 + $0xac] sm:$0xf] %vm3048_vm2, %v3672_v60  ;;  %v2715_v41 = vadd.f32 %v5186_v55, %v2645_v61  ;;  %v2646_v36 = vmax.f32 %v1977_v2, %v4107_v42  ;;  %v5962_v2 = vmax.f32 %v5960_v28, %v5961_v33  ;;  %v5981_v33 = vld [vmem:[#allocation73_spill] sm:$0xff] }
 0x1c3   :  { %3090 = vst.msk [vmem:[%s5692_s3 + $0xa4] sm:$0xf] %vm3048_vm2, %v3670_v1  ;;  %v2713_v39 = vadd.f32 %v5186_v55, %v2643_v37  ;;  %v2644_v47 = vmax.f32 %v1975_v40, %v2524_v16  ;;  %v5965_v40 = vmax.f32 %v5963_v23, %v5964_v11 }
 0x1c4   :  { %v2778_v48 = vmax.f32 %v2715_v41, 0.0  ;;  %v2716_v45 = vadd.f32 %v5186_v55, %v2646_v36 }
 0x1c5   :  { %v2776_v46 = vmax.f32 %v2713_v39, 0.0  ;;  %v2714_v63 = vadd.f32 %v5186_v55, %v2644_v47  ;;  %v4038_v31 = vpop.f32.mrb[112].mxu0  ;;  %v4110_v44 = vpop.f32.mrb[112].mxu1 }
 0x1c6   :  { %v3675_v20 = vpack.c.bf16 %v2778_v48, %v2778_v48  ;;  %v2779_v53 = vmax.f32 %v2716_v45, 0.0  ;;  %v1980_v51 = vmax.f32 %v5950_v50, %v4038_v31  ;;  %v1868_v54 = vpop.f32.mrb[113].mxu0  ;;  %v2537_v15 = vpop.f32.mrb[113].mxu1  ;;  %v5966_v45 = vld [vmem:[#allocation63_spill] sm:$0xff]  ;;  %v5970_v50 = vld [vmem:[#allocation66_spill] sm:$0xff] }
 0x1c7   :  { %v3673_v21 = vpack.c.bf16 %v2776_v46, %v2776_v46  ;;  %v2777_v22 = vmax.f32 %v2714_v63, 0.0  ;;  %v1978_v25 = vmax.f32 %v5953_v24, %v1868_v54  ;;  %v4039_v12 = vpop.f32.mrb[114].mxu0  ;;  %v4111_v52 = vpop.f32.mrb[114].mxu1  ;;  %v5967_v46 = vld [vmem:[#allocation64_spill] sm:$0xff] }
 0x1c8   :  { %3095 = vst.msk [vmem:[%s5692_s3 + $0xb8] sm:$0xf] %vm3048_vm2, %v3675_v20  ;;  %v3676_v29 = vpack.c.bf16 %v2779_v53, %v2779_v53  ;;  %v2649_v30 = vmax.f32 %v1980_v51, %v4110_v44  ;;  %v1981_v34 = vmax.f32 %v5956_v56, %v4039_v12  ;;  %v1871_v35 = vpop.f32.mrb[115].mxu0  ;;  %v2540_v57 = vpop.f32.mrb[115].mxu1  ;;  %v5968_v63 = vmax.f32 %v5966_v45, %v5967_v46  ;;  %v5973_v56 = vld [vmem:[#allocation68_spill] sm:$0xff]  ;;  %v5984_v46 = vld [vmem:[#allocation75_spill] sm:$0xff] }
 0x1c9   :  { %3093 = vst.msk [vmem:[%s5692_s3 + $0xb0] sm:$0xf] %vm3048_vm2, %v3673_v21  ;;  %v3674_v58 = vpack.c.bf16 %v2777_v22, %v2777_v22  ;;  %v2647_v59 = vmax.f32 %v1978_v25, %v2537_v15  ;;  %v1979_v10 = vmax.f32 %v5959_v0, %v1871_v35  ;;  %v5971_v51 = vmax.f32 %v5969_v43, %v5970_v50  ;;  %v5976_v0 = vld [vmem:[#allocation70_spill] sm:$0xff]  ;;  %v5987_v50 = vld [vmem:[#allocation77_spill] sm:$0xff] }
 0x1ca   :  { %3096 = vst.msk [vmem:[%s5692_s3 + $0xbc] sm:$0xf] %vm3048_vm2, %v3676_v29  ;;  %v2719_v7 = vadd.f32 %v5186_v55, %v2649_v30  ;;  %v2650_v4 = vmax.f32 %v1981_v34, %v4111_v52  ;;  %v5974_v34 = vmax.f32 %v5972_v9, %v5973_v56 }
 0x1cb   :  { %3094 = vst.msk [vmem:[%s5692_s3 + $0xb4] sm:$0xf] %vm3048_vm2, %v3674_v58  ;;  %v2717_v26 = vadd.f32 %v5186_v55, %v2647_v59  ;;  %v2648_v27 = vmax.f32 %v1979_v10, %v2540_v57  ;;  %v5977_v10 = vmax.f32 %v5975_v14, %v5976_v0 }
 0x1cc   :  { %v2782_v17 = vmax.f32 %v2719_v7, 0.0  ;;  %v2720_v18 = vadd.f32 %v5186_v55, %v2650_v4 }
 0x1cd   :  { %v2780_v19 = vmax.f32 %v2717_v26, 0.0  ;;  %v2718_v32 = vadd.f32 %v5186_v55, %v2648_v27  ;;  %v4042_v42 = vpop.f32.mrb[116].mxu0  ;;  %v4114_v60 = vpop.f32.mrb[116].mxu1 }
 0x1ce   :  { %v3679_v61 = vpack.c.bf16 %v2782_v17, %v2782_v17  ;;  %v2783_v62 = vmax.f32 %v2720_v18, 0.0  ;;  %v1984_v3 = vmax.f32 %v5962_v2, %v4042_v42  ;;  %v1884_v16 = vpop.f32.mrb[117].mxu0  ;;  %v2553_v1 = vpop.f32.mrb[117].mxu1  ;;  %v5978_v18 = vld [vmem:[#allocation71_spill] sm:$0xff]  ;;  %v5982_v2 = vld [vmem:[#allocation74_spill] sm:$0xff] }
 0x1cf   :  { %v3677_v37 = vpack.c.bf16 %v2780_v19, %v2780_v19  ;;  %v2781_v38 = vmax.f32 %v2718_v32, 0.0  ;;  %v1982_v41 = vmax.f32 %v5965_v40, %v1884_v16  ;;  %v4043_v36 = vpop.f32.mrb[118].mxu0  ;;  %v4115_v39 = vpop.f32.mrb[118].mxu1  ;;  %v5979_v19 = vld [vmem:[#allocation72_spill] sm:$0xff] }
 0x1d0   :  { %3099 = vst.msk [vmem:[%s5692_s3 + $0xc8] sm:$0xf] %vm3048_vm2, %v3679_v61  ;;  %v3680_v47 = vpack.c.bf16 %v2783_v62, %v2783_v62  ;;  %v2653_v48 = vmax.f32 %v1984_v3, %v4114_v60  ;;  %v1985_v31 = vmax.f32 %v5968_v63, %v4043_v36  ;;  %v1887_v44 = vpop.f32.mrb[119].mxu0  ;;  %v2556_v20 = vpop.f32.mrb[119].mxu1  ;;  %v5980_v32 = vmax.f32 %v5978_v18, %v5979_v19  ;;  %v5985_v63 = vld [vmem:[#allocation76_spill] sm:$0xff] }
 0x1d1   :  { %3097 = vst.msk [vmem:[%s5692_s3 + $0xc0] sm:$0xf] %vm3048_vm2, %v3677_v37  ;;  %v3678_v53 = vpack.c.bf16 %v2781_v38, %v2781_v38  ;;  %v2651_v49 = vmax.f32 %v1982_v41, %v2553_v1  ;;  %v1983_v54 = vmax.f32 %v5971_v51, %v1887_v44  ;;  %v5983_v3 = vmax.f32 %v5981_v33, %v5982_v2  ;;  %v5988_v51 = vld [vmem:[#allocation78_spill] sm:$0xff] }
 0x1d2   :  { %3100 = vst.msk [vmem:[%s5692_s3 + $0xcc] sm:$0xf] %vm3048_vm2, %v3680_v47  ;;  %v2723_v15 = vadd.f32 %v5186_v55, %v2653_v48  ;;  %v2654_v21 = vmax.f32 %v1985_v31, %v4115_v39  ;;  %v5986_v31 = vmax.f32 %v5984_v46, %v5985_v63 }
 0x1d3   :  { %3098 = vst.msk [vmem:[%s5692_s3 + $0xc4] sm:$0xf] %vm3048_vm2, %v3678_v53  ;;  %v2721_v22 = vadd.f32 %v5186_v55, %v2651_v49  ;;  %v2652_v5 = vmax.f32 %v1983_v54, %v2556_v20  ;;  %v5989_v54 = vmax.f32 %v5987_v50, %v5988_v51 }
 0x1d4   :  { %v2786_v6 = vmax.f32 %v2723_v15, 0.0  ;;  %v2724_v24 = vadd.f32 %v5186_v55, %v2654_v21 }
 0x1d5   :  { %v2784_v25 = vmax.f32 %v2721_v22, 0.0  ;;  %v2722_v12 = vadd.f32 %v5186_v55, %v2652_v5  ;;  %v4046_v52 = vpop.f32.mrb[120].mxu0  ;;  %v4118_v29 = vpop.f32.mrb[120].mxu1 }
 0x1d6   :  { %v3683_v30 = vpack.c.bf16 %v2786_v6, %v2786_v6  ;;  %v2787_v8 = vmax.f32 %v2724_v24, 0.0  ;;  %v1988_v35 = vmax.f32 %v5974_v34, %v4046_v52  ;;  %v1900_v57 = vpop.f32.mrb[121].mxu0  ;;  %v2569_v58 = vpop.f32.mrb[121].mxu1 }
 0x1d7   :  { %v3681_v59 = vpack.c.bf16 %v2784_v25, %v2784_v25  ;;  %v2785_v13 = vmax.f32 %v2722_v12, 0.0  ;;  %v1986_v7 = vmax.f32 %v5977_v10, %v1900_v57  ;;  %v4047_v4 = vpop.f32.mrb[122].mxu0  ;;  %v4119_v26 = vpop.f32.mrb[122].mxu1 }
 0x1d8   :  { %3103 = vst.msk [vmem:[%s5692_s3 + $0xd8] sm:$0xf] %vm3048_vm2, %v3683_v30  ;;  %v3684_v27 = vpack.c.bf16 %v2787_v8, %v2787_v8  ;;  %v2657_v17 = vmax.f32 %v1988_v35, %v4118_v29  ;;  %v1989_v42 = vmax.f32 %v5980_v32, %v4047_v4  ;;  %v1903_v60 = vpop.f32.mrb[123].mxu0  ;;  %v2572_v61 = vpop.f32.mrb[123].mxu1  ;;  %v5990_v29 = vld [vmem:[#allocation79_spill] sm:$0xff]  ;;  %v5991_v30 = vld [vmem:[#allocation80_spill] sm:$0xff] }
 0x1d9   :  { %3101 = vst.msk [vmem:[%s5692_s3 + $0xd0] sm:$0xf] %vm3048_vm2, %v3681_v59  ;;  %v3682_v62 = vpack.c.bf16 %v2785_v13, %v2785_v13  ;;  %v2655_v28 = vmax.f32 %v1986_v7, %v2569_v58  ;;  %v1987_v16 = vmax.f32 %v5983_v3, %v1903_v60  ;;  %v5992_v8 = vmax.f32 %v5990_v29, %v5991_v30 }
 0x1da   :  { %3104 = vst.msk [vmem:[%s5692_s3 + $0xdc] sm:$0xf] %vm3048_vm2, %v3684_v27  ;;  %v2727_v1 = vadd.f32 %v5186_v55, %v2657_v17  ;;  %v2658_v37 = vmax.f32 %v1989_v42, %v4119_v26 }
 0x1db   :  { %3102 = vst.msk [vmem:[%s5692_s3 + $0xd4] sm:$0xf] %vm3048_vm2, %v3682_v62  ;;  %v2725_v38 = vadd.f32 %v5186_v55, %v2655_v28  ;;  %v2656_v23 = vmax.f32 %v1987_v16, %v2572_v61 }
 0x1dc   :  { %v2790_v11 = vmax.f32 %v2727_v1, 0.0  ;;  %v2728_v40 = vadd.f32 %v5186_v55, %v2658_v37 }
 0x1dd   :  { %v2788_v41 = vmax.f32 %v2725_v38, 0.0  ;;  %v2726_v36 = vadd.f32 %v5186_v55, %v2656_v23  ;;  %v4050_v39 = vpop.f32.mrb[124].mxu0  ;;  %v4122_v47 = vpop.f32.mrb[124].mxu1 }
 0x1de   :  { %v3687_v48 = vpack.c.bf16 %v2790_v11, %v2790_v11  ;;  %v2791_v45 = vmax.f32 %v2728_v40, 0.0  ;;  %v1992_v44 = vmax.f32 %v5986_v31, %v4050_v39  ;;  %v1916_v20 = vpop.f32.mrb[125].mxu0  ;;  %v2585_v53 = vpop.f32.mrb[125].mxu1 }
 0x1df   :  { %v3685_v49 = vpack.c.bf16 %v2788_v41, %v2788_v41  ;;  %v2789_v43 = vmax.f32 %v2726_v36, 0.0  ;;  %v1990_v15 = vmax.f32 %v5989_v54, %v1916_v20  ;;  %v4051_v21 = vpop.f32.mrb[126].mxu0  ;;  %v4123_v22 = vpop.f32.mrb[126].mxu1 }
 0x1e0   :  { %3107 = vst.msk [vmem:[%s5692_s3 + $0xe8] sm:$0xf] %vm3048_vm2, %v3687_v48  ;;  %v3688_v5 = vpack.c.bf16 %v2791_v45, %v2791_v45  ;;  %v2661_v6 = vmax.f32 %v1992_v44, %v4122_v47  ;;  %v1919_v24 = vpop.f32.mrb[127].mxu0  ;;  %v2588_v25 = vpop.f32.mrb[127].mxu1 }
 0x1e1   :  { %3105 = vst.msk [vmem:[%s5692_s3 + $0xe0] sm:$0xf] %vm3048_vm2, %v3685_v49  ;;  %v3686_v12 = vpack.c.bf16 %v2789_v43, %v2789_v43  ;;  %v2659_v52 = vmax.f32 %v1990_v15, %v2585_v53  ;;  %v1991_v9 = vmax.f32 %v5992_v8, %v1919_v24 }
 0x1e2   :  { %3108 = vst.msk [vmem:[%s5692_s3 + $0xec] sm:$0xf] %vm3048_vm2, %v3688_v5  ;;  %v2731_v56 = vadd.f32 %v5186_v55, %v2661_v6 }
 0x1e3   :  { %3106 = vst.msk [vmem:[%s5692_s3 + $0xe4] sm:$0xf] %vm3048_vm2, %v3686_v12  ;;  %v2729_v34 = vadd.f32 %v5186_v55, %v2659_v52  ;;  %v2660_v35 = vmax.f32 %v1991_v9, %v2588_v25 }
 0x1e4   :  { %v2794_v57 = vmax.f32 %v2731_v56, 0.0 }
 0x1e5   :  { %v2792_v58 = vmax.f32 %v2729_v34, 0.0  ;;  %v2730_v59 = vadd.f32 %v5186_v55, %v2660_v35 }
 0x1e6   :  { %v3691_v13 = vpack.c.bf16 %v2794_v57, %v2794_v57 }
 0x1e7   :  { %v3689_v14 = vpack.c.bf16 %v2792_v58, %v2792_v58  ;;  %v2793_v0 = vmax.f32 %v2730_v59, 0.0 }
 0x1e8   :  { %3111 = vst.msk [vmem:[%s5692_s3 + $0xf8] sm:$0xf] %vm3048_vm2, %v3691_v13 }
 0x1e9   :  { %3109 = vst.msk [vmem:[%s5692_s3 + $0xf0] sm:$0xf] %vm3048_vm2, %v3689_v14  ;;  %v3690_v10 = vpack.c.bf16 %v2793_v0, %v2793_v0 }
 0x1eb   :  { %3110 = vst.msk [vmem:[%s5692_s3 + $0xf4] sm:$0xf] %vm3048_vm2, %v3690_v10 }

// kernel: asr_forward.6
= control target key start
LH: loop header
LB: loop body
LE: loop exit
PB: predicated region body
PF: predicated region fallthrough
CT: control target
= control target key end

     0   :  { %vm673_vm0 = vcmask 261120   ;;  %vm2934_vm1 = vcmask 519168   ;;  %s5979_s1 = inlined_call_operand.vmem [shape: bf16[800,64], index: 1, kind: input, shape index: {}]   ;;  %s5980_s0 = inlined_call_operand.vmem [shape: bf16[4,96,800], index: 0, kind: input, shape index: {}]   ;;  %s5981_s2 = inlined_call_operand.vmem [shape: f32[1,64], index: 2, kind: input, shape index: {}]   ;;  %s5982_s3 = inlined_call_operand.vmem [shape: bf16[96,64], index: 3, kind: output, shape index: {}]  }
   0x1   :  { %v4445_v0 = vld [vmem:[%s5979_s1 + $0x40] sm:$0xff]   ;;  %v4468_v4 = vld [vmem:[%s5979_s1 + $0x48] sm:$0xff]   ;;  %v4492_v8 = vld [vmem:[%s5979_s1 + $0x50] sm:$0xff]  }
   0x2   :  { %v4450_v1 = vld [vmem:[%s5979_s1 + $0xc0] sm:$0xff]   ;;  %3362 = vmatprep.subr.bf16.mxu0 %v4445_v0  ;;  %v4474_v5 = vld [vmem:[%s5979_s1 + $0xc8] sm:$0xff]   ;;  %v4498_v9 = vld [vmem:[%s5979_s1 + $0xd0] sm:$0xff]  }
   0x3   :  { %v4456_v2 = vld [vmem:[%s5979_s1] sm:$0xff]   ;;  %3414 = vmatprep.subr.bf16.mxu1 %v4450_v1  ;;  %v4480_v6 = vld [vmem:[%s5979_s1 + $0x8] sm:$0xff]   ;;  %v4504_v10 = vld [vmem:[%s5979_s1 + $0x10] sm:$0xff]  }
   0x4   :  { %v4462_v3 = vld [vmem:[%s5979_s1 + $0x80] sm:$0xff]   ;;  %3363 = vmatpush3.bf16.msra.mxu0 %v4456_v2  ;;  %v4486_v7 = vld [vmem:[%s5979_s1 + $0x88] sm:$0xff]   ;;  %v4510_v11 = vld [vmem:[%s5979_s1 + $0x90] sm:$0xff]  }
   0x5   :  { %3415 = vmatpush3.bf16.msra.mxu1 %v4462_v3  ;;  %3364 = vmatprep.subr.bf16.mxu0 %v4468_v4  ;;  %v4516_v12 = vld [vmem:[%s5979_s1 + $0x58] sm:$0xff]   ;;  %v4540_v16 = vld [vmem:[%s5979_s1 + $0x60] sm:$0xff]   ;;  %v4564_v20 = vld [vmem:[%s5979_s1 + $0x68] sm:$0xff]  }
   0x6   :  { %3416 = vmatprep.subr.bf16.mxu1 %v4474_v5  ;;  %v4522_v13 = vld [vmem:[%s5979_s1 + $0xd8] sm:$0xff]   ;;  %v4546_v17 = vld [vmem:[%s5979_s1 + $0xe0] sm:$0xff]   ;;  %v4570_v21 = vld [vmem:[%s5979_s1 + $0xe8] sm:$0xff]  }
   0x7   :  { %v4528_v14 = vld [vmem:[%s5979_s1 + $0x18] sm:$0xff]   ;;  %v4552_v18 = vld [vmem:[%s5979_s1 + $0x20] sm:$0xff]   ;;  %v4576_v22 = vld [vmem:[%s5979_s1 + $0x28] sm:$0xff]  }
   0x8   :  { %3365 = vmatpush3.bf16.msra.mxu0 %v4480_v6  ;;  %v4534_v15 = vld [vmem:[%s5979_s1 + $0x98] sm:$0xff]   ;;  %v4558_v19 = vld [vmem:[%s5979_s1 + $0xa0] sm:$0xff]   ;;  %v4582_v23 = vld [vmem:[%s5979_s1 + $0xa8] sm:$0xff]  }
   0x9   :  { %3417 = vmatpush3.bf16.msra.mxu1 %v4486_v7  ;;  %3366 = vmatprep.subr.bf16.mxu0 %v4492_v8  ;;  %v4588_v24 = vld [vmem:[%s5979_s1 + $0x70] sm:$0xff]   ;;  %v4612_v28 = vld [vmem:[%s5979_s1 + $0x78] sm:$0xff]   ;;  %v4116_v33 = vld [vmem:[%s5980_s0 + $0x4] ss:$28 sps:$4 sm:$0xff]  }
   0xa   :  { %3418 = vmatprep.subr.bf16.mxu1 %v4498_v9  ;;  %v4594_v25 = vld [vmem:[%s5979_s1 + $0xf0] sm:$0xff]   ;;  %v4618_v29 = vld [vmem:[%s5979_s1 + $0xf8] sm:$0xff]   ;;  %v4117_v34 = vld [vmem:[%s5980_s0 + $0x8] ss:$28 sps:$4 sm:$0xff]   ;;  %724 = vmatprep.mubr.bf16.mxu0 %v4116_v33 }
   0xb   :  { %v4600_v26 = vld [vmem:[%s5979_s1 + $0x30] sm:$0xff]   ;;  %v4624_v30 = vld [vmem:[%s5979_s1 + $0x38] sm:$0xff]   ;;  %v4119_v35 = vld [vmem:[%s5980_s0 + $0xc] ss:$28 sps:$4 sm:$0xff]  }
   0xc   :  { %3367 = vmatpush3.bf16.msra.mxu0 %v4504_v10  ;;  %v4606_v27 = vld [vmem:[%s5979_s1 + $0xb0] sm:$0xff]   ;;  %v4630_v31 = vld [vmem:[%s5979_s1 + $0xb8] sm:$0xff]   ;;  %v4649_v36 = vld [vmem:[%s5979_s1 + $0x180] sm:$0xff]   ;;  %805 = vmatprep.mubr.bf16.mxu1 %v4119_v35 }
   0xd   :  { %3419 = vmatpush3.bf16.msra.mxu1 %v4510_v11  ;;  %3368 = vmatprep.subr.bf16.mxu0 %v4516_v12  ;;  %v4114_v32 = vld [vmem:[%s5980_s0] ss:$28 sps:$4 sm:$0xff]   ;;  %v4125_v39 = vld [vmem:[%s5980_s0 + $0x38] ss:$28 sps:$4 sm:$0xff]   ;;  %v4686_v45 = vld [vmem:[%s5979_s1 + $0x148] sm:$0xff]  }
   0xe   :  { %3420 = vmatprep.subr.bf16.mxu1 %v4522_v13  ;;  %v4121_v37 = vld [vmem:[%s5980_s0 + $0x3c] ss:$28 sps:$4 sm:$0xff]   ;;  %v4123_v38 = vld [vmem:[%s5980_s0 + $0x44] ss:$28 sps:$4 sm:$0xff]   ;;  %v4129_v43 = vld [vmem:[%s5980_s0 + $0x74] ss:$28 sps:$4 sm:$0xff]  }
   0xf   :  { %v4126_v40 = vld [vmem:[%s5980_s0 + $0x40] ss:$28 sps:$4 sm:$0xff]   ;;  %v4691_v46 = vld [vmem:[%s5979_s1 + $0x108] sm:$0xff]   ;;  %v4134_v48 = vld [vmem:[%s5980_s0 + $0x78] ss:$28 sps:$4 sm:$0xff]  }
  0x10   :  { %3369 = vmatpush3.bf16.msra.mxu0 %v4528_v14  ;;  %v4668_v41 = vld [vmem:[%s5979_s1 + $0x140] sm:$0xff]   ;;  %v4131_v44 = vld [vmem:[%s5980_s0 + $0x7c] ss:$28 sps:$4 sm:$0xff]   ;;  %v4133_v47 = vld [vmem:[%s5980_s0 + $0x70] ss:$28 sps:$4 sm:$0xff]  }
  0x11   :  { %3421 = vmatpush3.bf16.msra.mxu1 %v4534_v15  ;;  %3370 = vmatprep.subr.bf16.mxu0 %v4540_v16  ;;  %v4673_v42 = vld [vmem:[%s5979_s1 + $0x100] sm:$0xff]   ;;  %v4704_v49 = vld [vmem:[%s5979_s1 + $0x150] sm:$0xff]   ;;  %v4137_v50 = vld [vmem:[%s5980_s0 + $0xac] ss:$28 sps:$4 sm:$0xff]  }
  0x12   :  { %3422 = vmatprep.subr.bf16.mxu1 %v4546_v17  ;;  %v4139_v51 = vld [vmem:[%s5980_s0 + $0xb4] ss:$28 sps:$4 sm:$0xff]   ;;  %v4721_v53 = vld [vmem:[%s5979_s1 + $0x188] sm:$0xff]   ;;  %v4727_v54 = vld [vmem:[%s5979_s1 + $0x158] sm:$0xff]  }
  0x13   :  { %v4716_v52 = vld [vmem:[%s5979_s1 + $0x110] sm:$0xff]   ;;  %v4733_v55 = vld [vmem:[%s5979_s1 + $0x118] sm:$0xff]   ;;  %v4142_v56 = vld [vmem:[%s5980_s0 + $0xa8] ss:$28 sps:$4 sm:$0xff]  }
  0x14   :  { %3371 = vmatpush3.bf16.msra.mxu0 %v4552_v18  ;;  %v4143_v57 = vld [vmem:[%s5980_s0 + $0xb0] ss:$28 sps:$4 sm:$0xff]   ;;  %v4148_v58 = vld [vmem:[%s5980_s0 + $0xe4] ss:$28 sps:$4 sm:$0xff]  }
  0x15   :  { %3423 = vmatpush3.bf16.msra.mxu1 %v4558_v19  ;;  %3372 = vmatprep.subr.bf16.mxu0 %v4564_v20  ;;  %v4751_v59 = vld [vmem:[%s5979_s1 + $0x160] sm:$0xff]   ;;  %v4150_v60 = vld [vmem:[%s5980_s0 + $0xec] ss:$28 sps:$4 sm:$0xff]   ;;  %v4783_v33 = vld [vmem:[%s5979_s1 + $0x170] sm:$0xff]  }
  0x16   :  { %3424 = vmatprep.subr.bf16.mxu1 %v4570_v21  ;;  %v4760_v61 = vld [vmem:[%s5979_s1 + $0x120] sm:$0xff]   ;;  %v4765_v62 = vld [vmem:[%s5979_s1 + $0x168] sm:$0xff]  }
  0x17   :  { %v4152_v63 = vld [vmem:[%s5980_s0 + $0xe0] ss:$28 sps:$4 sm:$0xff]  }
  0x18   :  { %3373 = vmatpush3.bf16.msra.mxu0 %v4576_v22  ;;  %v4160_v35 = vld [vmem:[%s5980_s0 + $0x124] ss:$28 sps:$4 sm:$0xff]  }
  0x19   :  { %3425 = vmatpush3.bf16.msra.mxu1 %v4582_v23  ;;  %3374 = vmatprep.subr.bf16.mxu0 %v4588_v24 }
  0x1a   :  { %3426 = vmatprep.subr.bf16.mxu1 %v4594_v25 }
  0x1c   :  { %3375 = vmatpush3.bf16.msra.mxu0 %v4600_v26 }
  0x1d   :  { %3427 = vmatpush3.bf16.msra.mxu1 %v4606_v27  ;;  %3376 = vmatprep.subr.bf16.mxu0 %v4612_v28 }
  0x1e   :  { %3428 = vmatprep.subr.bf16.mxu1 %v4618_v29 }
  0x20   :  { %3377 = vmatpush3.bf16.msra.mxu0 %v4624_v30 }
  0x21   :  { %3429 = vmatpush3.bf16.msra.mxu1 %v4630_v31  ;;  %3466 = vmatprep.subr.bf16.mxu0 %v4668_v41 }
  0x22   :  { %4018 = vmatprep.subr.bf16.mxu1 %v4649_v36 }
  0x23   :  { %725 = vmatmul.mubr.bf16.vlgmr.msra.gmra.mrb[0].mxu0 %v4114_v32  ;;  %v4153_v32 = vld [vmem:[%s5980_s0 + $0xe8] ss:$28 sps:$4 sm:$0xff]  }
  0x24   :  { %806 = vmatmul.mubr.bf16.vlgmr.msra.gmra.mrb[0].mxu1 %v4117_v34  ;;  %732 = vmatprep.mubr.bf16.mxu0 %v4121_v37  ;;  %v4158_v34 = vld [vmem:[%s5980_s0 + $0x11c] ss:$28 sps:$4 sm:$0xff]   ;;  %v4795_v37 = vld [vmem:[%s5979_s1 + $0x130] sm:$0xff]  }
  0x25   :  { %4019 = vmatpush3.bf16.msra.mxu1 %v4649_v36  ;;  %813 = vmatprep.mubr.bf16.mxu1 %v4123_v38  ;;  %v4801_v38 = vld [vmem:[%s5979_s1 + $0x178] sm:$0xff]  }
  0x26   :  { %3467 = vmatpush3.bf16.msra.mxu0 %v4673_v42  ;;  %4020 = vmatprep.subr.bf16.mxu1 %v4721_v53 }
  0x27   :  { %3468 = vmatprep.subr.bf16.mxu0 %v4686_v45 }
  0x29   :  { %4021 = vmatpush3.bf16.msra.mxu1 %v4721_v53 }
  0x2a   :  { %3469 = vmatpush3.bf16.msra.mxu0 %v4691_v46  ;;  %3526 = vmatprep.subr.bf16.mxu1 %v4445_v0  ;;  %v4774_v0 = vld [vmem:[%s5979_s1 + $0x128] sm:$0xff]  }
  0x2b   :  { %733 = vmatmul.mubr.bf16.gmra.mrb[4].mxu0 %v4125_v39  ;;  %3470 = vmatprep.subr.bf16.mxu0 %v4704_v49  ;;  %v4807_v39 = vld [vmem:[%s5979_s1 + $0x138] sm:$0xff]  }
  0x2c   :  { %814 = vmatmul.mubr.bf16.gmra.mrb[4].mxu1 %v4126_v40  ;;  %740 = vmatprep.mubr.bf16.mxu0 %v4129_v43  ;;  %v4162_v40 = vld [vmem:[%s5980_s0 + $0x118] ss:$28 sps:$4 sm:$0xff]   ;;  %v4163_v43 = vld [vmem:[%s5980_s0 + $0x120] ss:$28 sps:$4 sm:$0xff]  }
  0x2d   :  { %821 = vmatprep.mubr.bf16.mxu1 %v4131_v44  ;;  %v4170_v44 = vld [vmem:[%s5980_s0 + $0x14] ss:$28 sps:$4 sm:$0xff]  }
  0x2e   :  { %3471 = vmatpush3.bf16.msra.mxu0 %v4716_v52 }
  0x2f   :  { %3472 = vmatprep.subr.bf16.mxu0 %v4727_v54 }
  0x32   :  { %3473 = vmatpush3.bf16.msra.mxu0 %v4733_v55 }
  0x33   :  { %741 = vmatmul.mubr.bf16.gmra.mrb[8].mxu0 %v4133_v47  ;;  %3474 = vmatprep.subr.bf16.mxu0 %v4751_v59  ;;  %v4171_v47 = vld [vmem:[%s5980_s0 + $0x18] ss:$28 sps:$4 sm:$0xff]  }
  0x34   :  { %822 = vmatmul.mubr.bf16.gmra.mrb[8].mxu1 %v4134_v48  ;;  %748 = vmatprep.mubr.bf16.mxu0 %v4137_v50  ;;  %v4168_v48 = vld [vmem:[%s5980_s0 + $0x10] ss:$28 sps:$4 sm:$0xff]  }
  0x35   :  { %829 = vmatprep.mubr.bf16.mxu1 %v4139_v51  ;;  %v4172_v50 = vld [vmem:[%s5980_s0 + $0x50] ss:$28 sps:$4 sm:$0xff]  }
  0x36   :  { %3475 = vmatpush3.bf16.msra.mxu0 %v4760_v61  ;;  %v4173_v51 = vld [vmem:[%s5980_s0 + $0x4c] ss:$28 sps:$4 sm:$0xff]  }
  0x37   :  { %3476 = vmatprep.subr.bf16.mxu0 %v4765_v62 }
  0x3a   :  { %3477 = vmatpush3.bf16.msra.mxu0 %v4774_v0 }
  0x3b   :  { %749 = vmatmul.mubr.bf16.gmra.mrb[12].mxu0 %v4142_v56  ;;  %3478 = vmatprep.subr.bf16.mxu0 %v4783_v33  ;;  %v4175_v56 = vld [vmem:[%s5980_s0 + $0x48] ss:$28 sps:$4 sm:$0xff]  }
  0x3c   :  { %830 = vmatmul.mubr.bf16.gmra.mrb[12].mxu1 %v4143_v57  ;;  %756 = vmatprep.mubr.bf16.mxu0 %v4148_v58  ;;  %v4177_v57 = vld [vmem:[%s5980_s0 + $0xc0] ss:$28 sps:$4 sm:$0xff]  }
  0x3d   :  { %837 = vmatprep.mubr.bf16.mxu1 %v4150_v60  ;;  %v4991_v58 = vld [vmem:[%s5979_s1 + $0xc0] sm:$0xff]  }
  0x3e   :  { %3479 = vmatpush3.bf16.msra.mxu0 %v4795_v37  ;;  %v4218_v60 = vld [vmem:[%s5980_s0 + $0x268] ss:$28 sps:$4 sm:$0xff]  }
  0x3f   :  { %3480 = vmatprep.subr.bf16.mxu0 %v4801_v38 }
  0x42   :  { %3481 = vmatpush3.bf16.msra.mxu0 %v4807_v39 }
  0x43   :  { %757 = vmatmul.mubr.bf16.gmra.mrb[16].mxu0 %v4152_v63  ;;  %3578 = vmatprep.subr.bf16.mxu0 %v4450_v1  ;;  %v4176_v1 = vld [vmem:[%s5980_s0 + $0x88] ss:$28 sps:$4 sm:$0xff]   ;;  %v4221_v63 = vld [vmem:[%s5980_s0 + $0x200] ss:$28 sps:$4 sm:$0xff]  }
  0x44   :  { %838 = vmatmul.mubr.bf16.gmra.mrb[16].mxu1 %v4153_v32  ;;  %764 = vmatprep.mubr.bf16.mxu0 %v4158_v34  ;;  %v4225_v32 = vld [vmem:[%s5980_s0 + $0x23c] ss:$28 sps:$4 sm:$0xff]   ;;  %v4224_v34 = vld [vmem:[%s5980_s0 + $0x164] ss:$28 sps:$4 sm:$0xff]  }
  0x45   :  { %845 = vmatprep.mubr.bf16.mxu1 %v4160_v35  ;;  %v4227_v35 = vld [vmem:[%s5980_s0 + $0x238] ss:$28 sps:$4 sm:$0xff]  }
  0x4b   :  { %765 = vmatmul.mubr.bf16.gmra.mrb[20].mxu0 %v4162_v40  ;;  %v4222_v40 = vld [vmem:[%s5980_s0 + $0x160] ss:$28 sps:$4 sm:$0xff]  }
  0x4c   :  { %846 = vmatmul.mubr.bf16.gmra.mrb[20].mxu1 %v4163_v43  ;;  %886 = vmatprep.mubr.bf16.mxu0 %v4170_v44  ;;  %v4230_v43 = vld [vmem:[%s5980_s0 + $0x274] ss:$28 sps:$4 sm:$0xff]   ;;  %v4228_v44 = vld [vmem:[%s5980_s0 + $0x19c] ss:$28 sps:$4 sm:$0xff]  }
  0x4d   :  { %4022 = vmatprep.mubr.msk.bf16.mxu1 %vm673_vm0, %v4171_v47  ;;  %v5021_v47 = vld [vmem:[%s5979_s1 + $0x80] sm:$0xff]  }
  0x53   :  { %887 = vmatmul.mubr.bf16.vlgmr.msra.gmra.mrb[24].mxu0 %v4168_v48  ;;  %v5027_v48 = vld [vmem:[%s5979_s1 + $0xc8] sm:$0xff]  }
  0x54   :  { %4023 = vmatmul.mubr.msk.bf16.vlgmr.msra.gmra.mrb[24].mxu1 %vm673_vm0, %v4172_v50  ;;  %894 = vmatprep.mubr.bf16.mxu0 %v4173_v51  ;;  %v4233_v50 = vld [vmem:[%s5980_s0 + $0x270] ss:$28 sps:$4 sm:$0xff]   ;;  %v4232_v51 = vld [vmem:[%s5980_s0 + $0x198] ss:$28 sps:$4 sm:$0xff]  }
  0x55   :  { %3527 = vmatpush3.bf16.msra.mxu1 %v4456_v2  ;;  %4026 = vmatprep.mubr.msk.bf16.mxu1 %vm673_vm0, %v4176_v1  ;;  %v4178_v2 = vld [vmem:[%s5980_s0 + $0x84] ss:$28 sps:$4 sm:$0xff]  }
  0x56   :  { %3528 = vmatprep.subr.bf16.mxu1 %v4468_v4  ;;  %3579 = vmatpush3.bf16.msra.mxu0 %v4462_v3  ;;  %v4181_v4 = vld [vmem:[%s5980_s0 + $0xf8] ss:$28 sps:$4 sm:$0xff]   ;;  %v4180_v3 = vld [vmem:[%s5980_s0 + $0x80] ss:$28 sps:$4 sm:$0xff]   ;;  %v4237_v1 = vld [vmem:[%s5980_s0 + $0x168] ss:$28 sps:$4 sm:$0xff]  }
  0x57   :  { %3580 = vmatprep.subr.bf16.mxu0 %v4474_v5  ;;  %v4182_v5 = vld [vmem:[%s5980_s0 + $0x130] ss:$28 sps:$4 sm:$0xff]  }
  0x59   :  { %3529 = vmatpush3.bf16.msra.mxu1 %v4480_v6  ;;  %v4183_v6 = vld [vmem:[%s5980_s0 + $0xbc] ss:$28 sps:$4 sm:$0xff]  }
  0x5a   :  { %3530 = vmatprep.subr.bf16.mxu1 %v4492_v8  ;;  %3581 = vmatpush3.bf16.msra.mxu0 %v4486_v7  ;;  %v4188_v7 = vld [vmem:[%s5980_s0 + $0x154] ss:$28 sps:$4 sm:$0xff]  }
  0x5b   :  { %895 = vmatmul.mubr.bf16.gmra.mrb[28].mxu0 %v4175_v56  ;;  %3582 = vmatprep.subr.bf16.mxu0 %v4498_v9  ;;  %v4185_v8 = vld [vmem:[%s5980_s0 + $0xb8] ss:$28 sps:$4 sm:$0xff]   ;;  %v5042_v56 = vld [vmem:[%s5979_s1 + $0x88] sm:$0xff]  }
  0x5c   :  { %4027 = vmatmul.mubr.msk.bf16.gmra.mrb[28].mxu1 %vm673_vm0, %v4177_v57  ;;  %902 = vmatprep.mubr.bf16.mxu0 %v4178_v2  ;;  %v4189_v9 = vld [vmem:[%s5980_s0 + $0xf4] ss:$28 sps:$4 sm:$0xff]  }
  0x5d   :  { %3531 = vmatpush3.bf16.msra.mxu1 %v4504_v10  ;;  %4030 = vmatprep.mubr.msk.bf16.mxu1 %vm673_vm0, %v4181_v4  ;;  %v4186_v10 = vld [vmem:[%s5980_s0 + $0x150] ss:$28 sps:$4 sm:$0xff]  }
  0x5e   :  { %3532 = vmatprep.subr.bf16.mxu1 %v4516_v12  ;;  %3583 = vmatpush3.bf16.msra.mxu0 %v4510_v11  ;;  %v4191_v11 = vld [vmem:[%s5980_s0 + $0xf0] ss:$28 sps:$4 sm:$0xff]  }
  0x5f   :  { %3584 = vmatprep.subr.bf16.mxu0 %v4522_v13  ;;  %v4194_v12 = vld [vmem:[%s5980_s0 + $0x12c] ss:$28 sps:$4 sm:$0xff]   ;;  %v4234_v57 = vld [vmem:[%s5980_s0 + $0x1d4] ss:$28 sps:$4 sm:$0xff]  }
  0x60   :  { %v4192_v13 = vld [vmem:[%s5980_s0 + $0x18c] ss:$28 sps:$4 sm:$0xff]   ;;  %v5051_v2 = vld [vmem:[%s5979_s1 + $0xd0] sm:$0xff]  }
  0x61   :  { %3533 = vmatpush3.bf16.msra.mxu1 %v4528_v14  ;;  %v4196_v14 = vld [vmem:[%s5980_s0 + $0x188] ss:$28 sps:$4 sm:$0xff]   ;;  %v5058_v4 = vld [vmem:[%s5979_s1 + $0x90] sm:$0xff]  }
  0x62   :  { %3534 = vmatprep.subr.bf16.mxu1 %v4540_v16  ;;  %3585 = vmatpush3.bf16.msra.mxu0 %v4534_v15  ;;  %v4197_v15 = vld [vmem:[%s5980_s0 + $0x128] ss:$28 sps:$4 sm:$0xff]   ;;  %v4203_v16 = vld [vmem:[%s5980_s0 + $0x15c] ss:$28 sps:$4 sm:$0xff]  }
  0x63   :  { %903 = vmatmul.mubr.bf16.gmra.mrb[32].mxu0 %v4180_v3  ;;  %3586 = vmatprep.subr.bf16.mxu0 %v4546_v17  ;;  %v4198_v17 = vld [vmem:[%s5980_s0 + $0x1c4] ss:$28 sps:$4 sm:$0xff]   ;;  %v5064_v3 = vld [vmem:[%s5979_s1 + $0xd8] sm:$0xff]  }
  0x64   :  { %4031 = vmatmul.mubr.msk.bf16.gmra.mrb[32].mxu1 %vm673_vm0, %v4182_v5  ;;  %910 = vmatprep.mubr.bf16.mxu0 %v4183_v6  ;;  %v4238_v5 = vld [vmem:[%s5980_s0 + $0x1a0] ss:$28 sps:$4 sm:$0xff]   ;;  %v4236_v6 = vld [vmem:[%s5980_s0 + $0x1d0] ss:$28 sps:$4 sm:$0xff]  }
  0x65   :  { %3535 = vmatpush3.bf16.msra.mxu1 %v4552_v18  ;;  %1325 = vmatprep.mubr.bf16.mxu1 %v4188_v7  ;;  %v4201_v18 = vld [vmem:[%s5980_s0 + $0x158] ss:$28 sps:$4 sm:$0xff]  }
  0x66   :  { %3536 = vmatprep.subr.bf16.mxu1 %v4564_v20  ;;  %3587 = vmatpush3.bf16.msra.mxu0 %v4558_v19  ;;  %v4200_v19 = vld [vmem:[%s5980_s0 + $0x1c0] ss:$28 sps:$4 sm:$0xff]   ;;  %v4207_v20 = vld [vmem:[%s5980_s0 + $0x194] ss:$28 sps:$4 sm:$0xff]  }
  0x67   :  { %3588 = vmatprep.subr.bf16.mxu0 %v4570_v21  ;;  %v4204_v21 = vld [vmem:[%s5980_s0 + $0x1fc] ss:$28 sps:$4 sm:$0xff]  }
  0x68   :  { %v5076_v7 = vld [vmem:[%s5979_s1 + $0x98] sm:$0xff]  }
  0x69   :  { %3537 = vmatpush3.bf16.msra.mxu1 %v4576_v22  ;;  %v4209_v22 = vld [vmem:[%s5980_s0 + $0x190] ss:$28 sps:$4 sm:$0xff]  }
  0x6a   :  { %3538 = vmatprep.subr.bf16.mxu1 %v4588_v24  ;;  %3589 = vmatpush3.bf16.msra.mxu0 %v4582_v23  ;;  %v4206_v23 = vld [vmem:[%s5980_s0 + $0x1f8] ss:$28 sps:$4 sm:$0xff]   ;;  %v4213_v24 = vld [vmem:[%s5980_s0 + $0x1cc] ss:$28 sps:$4 sm:$0xff]  }
  0x6b   :  { %911 = vmatmul.mubr.bf16.gmra.mrb[36].mxu0 %v4185_v8  ;;  %3590 = vmatprep.subr.bf16.mxu0 %v4594_v25  ;;  %v4210_v25 = vld [vmem:[%s5980_s0 + $0x234] ss:$28 sps:$4 sm:$0xff]   ;;  %v4239_v8 = vld [vmem:[%s5980_s0 + $0x20c] ss:$28 sps:$4 sm:$0xff]  }
  0x6c   :  { %918 = vmatprep.mubr.bf16.mxu0 %v4189_v9  ;;  %v4242_v9 = vld [vmem:[%s5980_s0 + $0x1d8] ss:$28 sps:$4 sm:$0xff]  }
  0x6d   :  { %3539 = vmatpush3.bf16.msra.mxu1 %v4600_v26  ;;  %v4970_v26 = vld [vmem:[%s5979_s1 + $0x40] sm:$0xff]  }
  0x6e   :  { %3540 = vmatprep.subr.bf16.mxu1 %v4612_v28  ;;  %3591 = vmatpush3.bf16.msra.mxu0 %v4606_v27  ;;  %v4212_v27 = vld [vmem:[%s5980_s0 + $0x230] ss:$28 sps:$4 sm:$0xff]   ;;  %v4215_v28 = vld [vmem:[%s5980_s0 + $0x1c8] ss:$28 sps:$4 sm:$0xff]  }
  0x6f   :  { %3592 = vmatprep.subr.bf16.mxu0 %v4618_v29  ;;  %v4216_v29 = vld [vmem:[%s5980_s0 + $0x26c] ss:$28 sps:$4 sm:$0xff]  }
  0x71   :  { %3541 = vmatpush3.bf16.msra.mxu1 %v4624_v30  ;;  %v4219_v30 = vld [vmem:[%s5980_s0 + $0x204] ss:$28 sps:$4 sm:$0xff]  }
  0x72   :  { %3630 = vmatprep.subr.bf16.mxu1 %v4668_v41  ;;  %3593 = vmatpush3.bf16.msra.mxu0 %v4630_v31 }
  0x73   :  { %919 = vmatmul.mubr.bf16.gmra.mrb[40].mxu0 %v4191_v11  ;;  %4034 = vmatprep.subr.bf16.mxu0 %v4649_v36  ;;  %v5095_v11 = vld [vmem:[%s5979_s1] sm:$0xff]  }
  0x74   :  { %1326 = vmatmul.mubr.bf16.vlgmr.msra.gmra.mrb[36].mxu1 %v4186_v10  ;;  %926 = vmatprep.mubr.bf16.mxu0 %v4194_v12  ;;  %v5088_v10 = vld [vmem:[%s5979_s1 + $0xe0] sm:$0xff]   ;;  %v5101_v12 = vld [vmem:[%s5979_s1 + $0x48] sm:$0xff]  }
  0x75   :  { %3631 = vmatpush3.bf16.msra.mxu1 %v4673_v42  ;;  %1333 = vmatprep.mubr.bf16.mxu1 %v4192_v13  ;;  %v5108_v13 = vld [vmem:[%s5979_s1 + $0xa0] sm:$0xff]  }
  0x76   :  { %3632 = vmatprep.subr.bf16.mxu1 %v4686_v45 }
  0x79   :  { %3633 = vmatpush3.bf16.msra.mxu1 %v4691_v46 }
  0x7a   :  { %3634 = vmatprep.subr.bf16.mxu1 %v4704_v49 }
  0x7b   :  { %927 = vmatmul.mubr.bf16.gmra.mrb[44].mxu0 %v4197_v15  ;;  %v5117_v15 = vld [vmem:[%s5979_s1 + $0xe8] sm:$0xff]  }
  0x7c   :  { %1334 = vmatmul.mubr.bf16.gmra.mrb[40].mxu1 %v4196_v14  ;;  %1406 = vmatprep.mubr.bf16.mxu0 %v4203_v16  ;;  %v4243_v14 = vld [vmem:[%s5980_s0 + $0x210] ss:$28 sps:$4 sm:$0xff]  }
  0x7d   :  { %3635 = vmatpush3.bf16.msra.mxu1 %v4716_v52  ;;  %1341 = vmatprep.mubr.bf16.mxu1 %v4198_v17  ;;  %v5123_v16 = vld [vmem:[%s5979_s1 + $0x8] sm:$0xff]  }
  0x7e   :  { %3636 = vmatprep.subr.bf16.mxu1 %v4727_v54  ;;  %v4241_v17 = vld [vmem:[%s5980_s0 + $0x208] ss:$28 sps:$4 sm:$0xff]  }
  0x81   :  { %3637 = vmatpush3.bf16.msra.mxu1 %v4733_v55 }
  0x82   :  { %3638 = vmatprep.subr.bf16.mxu1 %v4751_v59 }
  0x83   :  { %1407 = vmatmul.mubr.bf16.vlgmr.msra.gmra.mrb[48].mxu0 %v4201_v18  ;;  %v5132_v18 = vld [vmem:[%s5979_s1 + $0x50] sm:$0xff]  }
  0x84   :  { %1342 = vmatmul.mubr.bf16.gmra.mrb[44].mxu1 %v4200_v19  ;;  %1414 = vmatprep.mubr.bf16.mxu0 %v4207_v20  ;;  %v4244_v19 = vld [vmem:[%s5980_s0 + $0x244] ss:$28 sps:$4 sm:$0xff]   ;;  %v5141_v20 = vld [vmem:[%s5979_s1 + $0xa8] sm:$0xff]  }
  0x85   :  { %1349 = vmatprep.mubr.bf16.mxu1 %v4204_v21  ;;  %3639 = vmatpush3.bf16.msra.mxu1 %v4760_v61  ;;  %v4247_v21 = vld [vmem:[%s5980_s0 + $0x248] ss:$28 sps:$4 sm:$0xff]  }
  0x86   :  { %4035 = vmatpush3.bf16.msra.mxu0 %v4649_v36  ;;  %3640 = vmatprep.subr.bf16.mxu1 %v4765_v62 }
  0x87   :  { %4036 = vmatprep.subr.bf16.mxu0 %v4721_v53 }
  0x89   :  { %3641 = vmatpush3.bf16.msra.mxu1 %v4774_v0 }
  0x8a   :  { %3642 = vmatprep.subr.bf16.mxu1 %v4783_v33  ;;  %4037 = vmatpush3.bf16.msra.mxu0 %v4721_v53 }
  0x8b   :  { %1415 = vmatmul.mubr.bf16.gmra.mrb[52].mxu0 %v4209_v22  ;;  %3690 = vmatprep.subr.bf16.mxu0 %v4970_v26  ;;  %v5151_v22 = vld [vmem:[%s5979_s1 + $0xf0] sm:$0xff]  }
  0x8c   :  { %1350 = vmatmul.mubr.bf16.gmra.mrb[48].mxu1 %v4206_v23  ;;  %1422 = vmatprep.mubr.bf16.mxu0 %v4213_v24  ;;  %v5157_v23 = vld [vmem:[%s5979_s1 + $0x10] sm:$0xff]   ;;  %v5163_v24 = vld [vmem:[%s5979_s1 + $0x58] sm:$0xff]  }
  0x8d   :  { %1357 = vmatprep.mubr.bf16.mxu1 %v4210_v25  ;;  %3643 = vmatpush3.bf16.msra.mxu1 %v4795_v37  ;;  %v5170_v25 = vld [vmem:[%s5979_s1 + $0xb0] sm:$0xff]  }
  0x8e   :  { %3644 = vmatprep.subr.bf16.mxu1 %v4801_v38 }
  0x91   :  { %3645 = vmatpush3.bf16.msra.mxu1 %v4807_v39 }
  0x92   :  { %3742 = vmatprep.subr.bf16.mxu1 %v4991_v58 }
  0x93   :  { %1423 = vmatmul.mubr.bf16.gmra.mrb[56].mxu0 %v4215_v28  ;;  %v5179_v28 = vld [vmem:[%s5979_s1 + $0xf8] sm:$0xff]  }
  0x94   :  { %1358 = vmatmul.mubr.bf16.gmra.mrb[52].mxu1 %v4212_v27  ;;  %1430 = vmatprep.mubr.bf16.mxu0 %v4219_v30  ;;  %v4248_v27 = vld [vmem:[%s5980_s0 + $0x280] ss:$28 sps:$4 sm:$0xff]  }
  0x95   :  { %1365 = vmatprep.mubr.bf16.mxu1 %v4216_v29  ;;  %v5185_v29 = vld [vmem:[%s5979_s1 + $0x18] sm:$0xff]  }
  0x96   :  { %v4246_v30 = vld [vmem:[%s5980_s0 + $0x240] ss:$28 sps:$4 sm:$0xff]  }
  0x9b   :  { %1431 = vmatmul.mubr.bf16.gmra.mrb[60].mxu0 %v4221_v63  ;;  %v4249_v63 = vld [vmem:[%s5980_s0 + $0x27c] ss:$28 sps:$4 sm:$0xff]  }
  0x9c   :  { %1366 = vmatmul.mubr.bf16.gmra.mrb[56].mxu1 %v4218_v60  ;;  %1438 = vmatprep.mubr.bf16.mxu0 %v4225_v32  ;;  %v5194_v60 = vld [vmem:[%s5979_s1 + $0x60] sm:$0xff]  }
  0x9d   :  { %1487 = vmatprep.mubr.bf16.mxu1 %v4224_v34  ;;  %v4254_v32 = vld [vmem:[%s5980_s0 + $0x2a4] ss:$28 sps:$4 sm:$0xff]  }
  0x9e   :  { %v5209_v34 = vld [vmem:[%s5979_s1 + $0x20] sm:$0xff]  }
  0xa3   :  { %1439 = vmatmul.mubr.bf16.gmra.mrb[64].mxu0 %v4227_v35  ;;  %v4251_v35 = vld [vmem:[%s5980_s0 + $0x278] ss:$28 sps:$4 sm:$0xff]  }
  0xa4   :  { %1488 = vmatmul.mubr.bf16.vlgmr.msra.gmra.mrb[60].mxu1 %v4222_v40  ;;  %1446 = vmatprep.mubr.bf16.mxu0 %v4230_v43  ;;  %v5230_v40 = vld [vmem:[%s5979_s1 + $0x70] sm:$0xff]   ;;  %v4257_v43 = vld [vmem:[%s5980_s0 + $0x2ac] ss:$28 sps:$4 sm:$0xff]  }
  0xa5   :  { %3743 = vmatpush3.bf16.msra.mxu1 %v5021_v47  ;;  %1495 = vmatprep.mubr.bf16.mxu1 %v4228_v44  ;;  %v5239_v44 = vld [vmem:[%s5979_s1 + $0x30] sm:$0xff]  }
  0xa6   :  { %3744 = vmatprep.subr.bf16.mxu1 %v5027_v48 }
  0xa9   :  { %3745 = vmatpush3.bf16.msra.mxu1 %v5042_v56 }
  0xaa   :  { %3746 = vmatprep.subr.bf16.mxu1 %v5051_v2 }
  0xab   :  { %1447 = vmatmul.mubr.bf16.gmra.mrb[68].mxu0 %v4233_v50  ;;  %v5245_v50 = vld [vmem:[%s5979_s1 + $0x78] sm:$0xff]  }
  0xac   :  { %1496 = vmatmul.mubr.bf16.gmra.mrb[64].mxu1 %v4232_v51  ;;  %4038 = vmatprep.mubr.msk.bf16.mxu0 %vm673_vm0, %v4237_v1  ;;  %v4252_v51 = vld [vmem:[%s5980_s0 + $0x2a0] ss:$28 sps:$4 sm:$0xff]  }
  0xad   :  { %3747 = vmatpush3.bf16.msra.mxu1 %v5058_v4  ;;  %1503 = vmatprep.mubr.bf16.mxu1 %v4234_v57  ;;  %v5254_v1 = vld [vmem:[%s5979_s1 + $0x38] sm:$0xff]   ;;  %v4255_v57 = vld [vmem:[%s5980_s0 + $0x2a8] ss:$28 sps:$4 sm:$0xff]  }
  0xae   :  { %3748 = vmatprep.subr.bf16.mxu1 %v5064_v3 }
  0xb1   :  { %3749 = vmatpush3.bf16.msra.mxu1 %v5076_v7 }
  0xb2   :  { %3750 = vmatprep.subr.bf16.mxu1 %v5088_v10 }
  0xb3   :  { %4039 = vmatmul.mubr.msk.bf16.vlgmr.msra.gmra.mrb[72].mxu0 %vm673_vm0, %v4238_v5  ;;  %v4258_v5 = vld [vmem:[%s5980_s0 + $0x2dc] ss:$28 sps:$4 sm:$0xff]  }
  0xb4   :  { %1504 = vmatmul.mubr.bf16.gmra.mrb[68].mxu1 %v4236_v6  ;;  %3691 = vmatpush3.bf16.msra.mxu0 %v5095_v11  ;;  %v4260_v6 = vld [vmem:[%s5980_s0 + $0x2e4] ss:$28 sps:$4 sm:$0xff]  }
  0xb5   :  { %3692 = vmatprep.subr.bf16.mxu0 %v5101_v12  ;;  %1511 = vmatprep.mubr.bf16.mxu1 %v4239_v8  ;;  %v5270_v8 = vld [vmem:[%s5979_s1 + $0x180] sm:$0xff]  }
  0xb6   :  { %4042 = vmatprep.mubr.msk.bf16.mxu0 %vm673_vm0, %v4242_v9  ;;  %3751 = vmatpush3.bf16.msra.mxu1 %v5108_v13  ;;  %v4262_v9 = vld [vmem:[%s5980_s0 + $0x2d8] ss:$28 sps:$4 sm:$0xff]  }
  0xb7   :  { %3752 = vmatprep.subr.bf16.mxu1 %v5117_v15 }
  0xb8   :  { %3693 = vmatpush3.bf16.msra.mxu0 %v5123_v16 }
  0xb9   :  { %3694 = vmatprep.subr.bf16.mxu0 %v5132_v18 }
  0xba   :  { %3753 = vmatpush3.bf16.msra.mxu1 %v5141_v20 }
  0xbb   :  { %4043 = vmatmul.mubr.msk.bf16.gmra.mrb[76].mxu0 %vm673_vm0, %v4243_v14  ;;  %3754 = vmatprep.subr.bf16.mxu1 %v5151_v22  ;;  %v4264_v14 = vld [vmem:[%s5980_s0 + $0x314] ss:$28 sps:$4 sm:$0xff]  }
  0xbc   :  { %1512 = vmatmul.mubr.bf16.gmra.mrb[72].mxu1 %v4241_v17  ;;  %3695 = vmatpush3.bf16.msra.mxu0 %v5157_v23  ;;  %v4286_v17 = vld [vmem:[%s5980_s0 + $0x3b8] ss:$28 sps:$4 sm:$0xff]  }
  0xbd   :  { %3696 = vmatprep.subr.bf16.mxu0 %v5163_v24  ;;  %1519 = vmatprep.mubr.bf16.mxu1 %v4244_v19 }
  0xbe   :  { %4046 = vmatprep.mubr.msk.bf16.mxu0 %vm673_vm0, %v4247_v21  ;;  %3755 = vmatpush3.bf16.msra.mxu1 %v5170_v25 }
  0xbf   :  { %3756 = vmatprep.subr.bf16.mxu1 %v5179_v28 }
  0xc0   :  { %3697 = vmatpush3.bf16.msra.mxu0 %v5185_v29 }
  0xc1   :  { %3698 = vmatprep.subr.bf16.mxu0 %v5194_v60 }
  0xc2   :  { %3757 = vmatpush3.bf16.msra.mxu1 %v4630_v31  ;;  %v5215_v31 = vld [vmem:[%s5979_s1 + $0x68] sm:$0xff]  }
  0xc3   :  { %4047 = vmatmul.mubr.msk.bf16.gmra.mrb[80].mxu0 %vm673_vm0, %v4248_v27  ;;  %4050 = vmatprep.subr.bf16.mxu1 %v4649_v36  ;;  %v5221_v36 = vld [vmem:[%s5979_s1 + $0x28] sm:$0xff]  }
  0xc4   :  { %1520 = vmatmul.mubr.bf16.gmra.mrb[76].mxu1 %v4246_v30  ;;  %3699 = vmatpush3.bf16.msra.mxu0 %v5209_v34 }
  0xc5   :  { %3700 = vmatprep.subr.bf16.mxu0 %v5215_v31  ;;  %1527 = vmatprep.mubr.bf16.mxu1 %v4249_v63 }
  0xc6   :  { %1938 = vmatprep.mubr.bf16.mxu0 %v4254_v32 }
  0xc8   :  { %3701 = vmatpush3.bf16.msra.mxu0 %v5221_v36 }
  0xc9   :  { %3702 = vmatprep.subr.bf16.mxu0 %v5230_v40 }
  0xcc   :  { %1528 = vmatmul.mubr.bf16.gmra.mrb[80].mxu1 %v4251_v35  ;;  %3703 = vmatpush3.bf16.msra.mxu0 %v5239_v44  ;;  %v4291_v35 = vld [vmem:[%s5980_s0 + $0x2b8] ss:$28 sps:$4 sm:$0xff]  }
  0xcd   :  { %3704 = vmatprep.subr.bf16.mxu0 %v5245_v50  ;;  %2019 = vmatprep.mubr.bf16.mxu1 %v4257_v43 }
  0xd0   :  { %3705 = vmatpush3.bf16.msra.mxu0 %v5254_v1 }
  0xd1   :  { %3794 = vmatprep.subr.bf16.mxu0 %v4668_v41  ;;  %v4263_v41 = vld [vmem:[%s5980_s0 + $0x2e0] ss:$28 sps:$4 sm:$0xff]  }
  0xd3   :  { %1939 = vmatmul.mubr.bf16.vlgmr.msra.gmra.mrb[84].mxu0 %v4252_v51 }
  0xd4   :  { %2020 = vmatmul.mubr.bf16.vlgmr.msra.gmra.mrb[84].mxu1 %v4255_v57  ;;  %1946 = vmatprep.mubr.bf16.mxu0 %v4258_v5 }
  0xd5   :  { %4051 = vmatpush3.bf16.msra.mxu1 %v5270_v8  ;;  %2027 = vmatprep.mubr.bf16.mxu1 %v4260_v6 }
  0xd6   :  { %3795 = vmatpush3.bf16.msra.mxu0 %v4673_v42  ;;  %4052 = vmatprep.subr.bf16.mxu1 %v4721_v53  ;;  %v4266_v42 = vld [vmem:[%s5980_s0 + $0x31c] ss:$28 sps:$4 sm:$0xff]  }
  0xd7   :  { %3796 = vmatprep.subr.bf16.mxu0 %v4686_v45  ;;  %v4268_v45 = vld [vmem:[%s5980_s0 + $0x310] ss:$28 sps:$4 sm:$0xff]  }
  0xd9   :  { %4053 = vmatpush3.bf16.msra.mxu1 %v4721_v53  ;;  %v4270_v53 = vld [vmem:[%s5980_s0 + $0x34c] ss:$28 sps:$4 sm:$0xff]  }
  0xda   :  { %3797 = vmatpush3.bf16.msra.mxu0 %v4691_v46  ;;  %3854 = vmatprep.subr.bf16.mxu1 %v4970_v26  ;;  %v4269_v46 = vld [vmem:[%s5980_s0 + $0x318] ss:$28 sps:$4 sm:$0xff]  }
  0xdb   :  { %1947 = vmatmul.mubr.bf16.gmra.mrb[88].mxu0 %v4262_v9  ;;  %3798 = vmatprep.subr.bf16.mxu0 %v4704_v49  ;;  %v4272_v49 = vld [vmem:[%s5980_s0 + $0x354] ss:$28 sps:$4 sm:$0xff]  }
  0xdc   :  { %2028 = vmatmul.mubr.bf16.gmra.mrb[88].mxu1 %v4263_v41  ;;  %1954 = vmatprep.mubr.bf16.mxu0 %v4264_v14 }
  0xdd   :  { %2035 = vmatprep.mubr.bf16.mxu1 %v4266_v42  ;;  %v4288_v42 = vld [vmem:[%s5980_s0 + $0x2b0] ss:$28 sps:$4 sm:$0xff]  }
  0xde   :  { %3799 = vmatpush3.bf16.msra.mxu0 %v4716_v52  ;;  %v4274_v52 = vld [vmem:[%s5980_s0 + $0x348] ss:$28 sps:$4 sm:$0xff]  }
  0xdf   :  { %3800 = vmatprep.subr.bf16.mxu0 %v4727_v54  ;;  %v4275_v54 = vld [vmem:[%s5980_s0 + $0x350] ss:$28 sps:$4 sm:$0xff]  }
  0xe2   :  { %3801 = vmatpush3.bf16.msra.mxu0 %v4733_v55  ;;  %v4276_v55 = vld [vmem:[%s5980_s0 + $0x384] ss:$28 sps:$4 sm:$0xff]  }
  0xe3   :  { %1955 = vmatmul.mubr.bf16.gmra.mrb[92].mxu0 %v4268_v45  ;;  %3802 = vmatprep.subr.bf16.mxu0 %v4751_v59  ;;  %v4278_v59 = vld [vmem:[%s5980_s0 + $0x38c] ss:$28 sps:$4 sm:$0xff]  }
  0xe4   :  { %2036 = vmatmul.mubr.bf16.gmra.mrb[92].mxu1 %v4269_v46  ;;  %1962 = vmatprep.mubr.bf16.mxu0 %v4270_v53 }
  0xe5   :  { %2043 = vmatprep.mubr.bf16.mxu1 %v4272_v49  ;;  %v4292_v49 = vld [vmem:[%s5980_s0 + $0x2f0] ss:$28 sps:$4 sm:$0xff]  }
  0xe6   :  { %3803 = vmatpush3.bf16.msra.mxu0 %v4760_v61  ;;  %v4280_v61 = vld [vmem:[%s5980_s0 + $0x380] ss:$28 sps:$4 sm:$0xff]  }
  0xe7   :  { %3804 = vmatprep.subr.bf16.mxu0 %v4765_v62  ;;  %v4281_v62 = vld [vmem:[%s5980_s0 + $0x388] ss:$28 sps:$4 sm:$0xff]  }
  0xea   :  { %3805 = vmatpush3.bf16.msra.mxu0 %v4774_v0  ;;  %v4282_v0 = vld [vmem:[%s5980_s0 + $0x3bc] ss:$28 sps:$4 sm:$0xff]  }
  0xeb   :  { %1963 = vmatmul.mubr.bf16.gmra.mrb[96].mxu0 %v4274_v52  ;;  %3806 = vmatprep.subr.bf16.mxu0 %v4783_v33  ;;  %v4284_v33 = vld [vmem:[%s5980_s0 + $0x3c4] ss:$28 sps:$4 sm:$0xff]   ;;  %v4293_v52 = vld [vmem:[%s5980_s0 + $0x2ec] ss:$28 sps:$4 sm:$0xff]  }
  0xec   :  { %2044 = vmatmul.mubr.bf16.gmra.mrb[96].mxu1 %v4275_v54  ;;  %1970 = vmatprep.mubr.bf16.mxu0 %v4276_v55 }
  0xed   :  { %2051 = vmatprep.mubr.bf16.mxu1 %v4278_v59 }
  0xee   :  { %3807 = vmatpush3.bf16.msra.mxu0 %v4795_v37 }
  0xef   :  { %3808 = vmatprep.subr.bf16.mxu0 %v4801_v38 }
  0xf2   :  { %3809 = vmatpush3.bf16.msra.mxu0 %v4807_v39  ;;  %v4287_v39 = vld [vmem:[%s5980_s0 + $0x3c0] ss:$28 sps:$4 sm:$0xff]  }
  0xf3   :  { %1971 = vmatmul.mubr.bf16.gmra.mrb[100].mxu0 %v4280_v61  ;;  %3906 = vmatprep.subr.bf16.mxu0 %v4991_v58  ;;  %v4290_v58 = vld [vmem:[%s5980_s0 + $0x2b4] ss:$28 sps:$4 sm:$0xff]   ;;  %v4296_v61 = vld [vmem:[%s5980_s0 + $0x328] ss:$28 sps:$4 sm:$0xff]  }
  0xf4   :  { %2052 = vmatmul.mubr.bf16.gmra.mrb[100].mxu1 %v4281_v62  ;;  %1978 = vmatprep.mubr.bf16.mxu0 %v4282_v0 }
  0xf5   :  { %2059 = vmatprep.mubr.bf16.mxu1 %v4284_v33 }
  0xf6   :  { %v3378_v37 = vpop.f32.mrb[0].mxu0 }
  0xf7   :  { %v3430_v38 = vpop.f32.mrb[0].mxu1  ;;  %v3379_v26 = vpop.f32.mrb[1].mxu0 }
  0xf8   :  { %v3380_v19 = vadd.f32 %v3379_v26, %v3378_v37  ;;  %v3431_v21 = vpop.f32.mrb[1].mxu1  ;;  %v3381_v27 = vpop.f32.mrb[2].mxu0 }
  0xf9   :  { %v3432_v30 = vadd.f32 %v3431_v21, %v3430_v38  ;;  %v3433_v63 = vpop.f32.mrb[2].mxu1  ;;  %v3382_v32 = vpop.f32.mrb[3].mxu0  ;;  %v4295_v21 = vld [vmem:[%s5980_s0 + $0x2e8] ss:$28 sps:$4 sm:$0xff]  }
  0xfa   :  { %v3383_v43 = vadd.f32 %v3382_v32, %v3381_v27  ;;  %v3434_v51 = vpop.f32.mrb[3].mxu1 }
  0xfb   :  { %v5352_v57 = vadd.f32 %v3432_v30, %v3380_v19  ;;  %v3435_v5 = vadd.f32 %v3434_v51, %v3433_v63  ;;  %1979 = vmatmul.mubr.bf16.gmra.mrb[104].mxu0 %v4286_v17 }
  0xfc   :  { %2060 = vmatmul.mubr.bf16.gmra.mrb[104].mxu1 %v4287_v39  ;;  %2100 = vmatprep.mubr.bf16.mxu0 %v4290_v58 }
  0xfd   :  { %v5354_v6 = vadd.f32 %v3435_v5, %v3383_v43  ;;  %4054 = vmatprep.mubr.msk.bf16.mxu1 %vm673_vm0, %v4291_v35 }
  0xfe   :  { %v3384_v9 = vpop.f32.mrb[4].mxu0 }
  0xff   :  { %v3436_v41 = vpop.f32.mrb[4].mxu1  ;;  %v3385_v14 = vpop.f32.mrb[5].mxu0 }
 0x100   :  { %v3386_v45 = vadd.f32 %v3385_v14, %v3384_v9  ;;  %v3437_v46 = vpop.f32.mrb[5].mxu1  ;;  %v3387_v53 = vpop.f32.mrb[6].mxu0 }
 0x101   :  { %v3438_v54 = vadd.f32 %v3437_v46, %v3436_v41  ;;  %v3439_v55 = vpop.f32.mrb[6].mxu1  ;;  %v3388_v59 = vpop.f32.mrb[7].mxu0 }
 0x102   :  { %v3389_v62 = vadd.f32 %v3388_v59, %v3387_v53  ;;  %v3440_v0 = vpop.f32.mrb[7].mxu1 }
 0x103   :  { %v5369_v33 = vadd.f32 %v3438_v54, %v3386_v45  ;;  %v3441_v37 = vadd.f32 %v3440_v0, %v3439_v55  ;;  %2101 = vmatmul.mubr.bf16.vlgmr.msra.gmra.mrb[108].mxu0 %v4288_v42  ;;  %v4305_v55 = vld [vmem:[%s5980_s0 + $0x358] ss:$28 sps:$4 sm:$0xff]  }
 0x104   :  { %4055 = vmatmul.mubr.msk.bf16.vlgmr.msra.gmra.mrb[108].mxu1 %vm673_vm0, %v4292_v49  ;;  %2108 = vmatprep.mubr.bf16.mxu0 %v4293_v52 }
 0x105   :  { %v5372_v38 = vadd.f32 %v3441_v37, %v3389_v62  ;;  %3855 = vmatpush3.bf16.msra.mxu1 %v5095_v11  ;;  %4058 = vmatprep.mubr.msk.bf16.mxu1 %vm673_vm0, %v4296_v61  ;;  %v4297_v11 = vld [vmem:[%s5980_s0 + $0x360] ss:$28 sps:$4 sm:$0xff]  }
 0x106   :  { %3856 = vmatprep.subr.bf16.mxu1 %v5101_v12  ;;  %v3390_v26 = vpop.f32.mrb[8].mxu0  ;;  %3907 = vmatpush3.bf16.msra.mxu0 %v5021_v47  ;;  %v4298_v12 = vld [vmem:[%s5980_s0 + $0x324] ss:$28 sps:$4 sm:$0xff]  }
 0x107   :  { %v3442_v17 = vpop.f32.mrb[8].mxu1  ;;  %v3391_v19 = vpop.f32.mrb[9].mxu0  ;;  %3908 = vmatprep.subr.bf16.mxu0 %v5027_v48  ;;  %v4301_v48 = vld [vmem:[%s5980_s0 + $0x398] ss:$28 sps:$4 sm:$0xff]  }
 0x108   :  { %v3392_v27 = vadd.f32 %v3391_v19, %v3390_v26  ;;  %v3443_v39 = vpop.f32.mrb[9].mxu1  ;;  %v3393_v58 = vpop.f32.mrb[10].mxu0 }
 0x109   :  { %3857 = vmatpush3.bf16.msra.mxu1 %v5123_v16  ;;  %v3444_v47 = vadd.f32 %v3443_v39, %v3442_v17  ;;  %v3445_v30 = vpop.f32.mrb[10].mxu1  ;;  %v3394_v63 = vpop.f32.mrb[11].mxu0 }
 0x10a   :  { %v3395_v32 = vadd.f32 %v3394_v63, %v3393_v58  ;;  %v3446_v35 = vpop.f32.mrb[11].mxu1  ;;  %3858 = vmatprep.subr.bf16.mxu1 %v5132_v18  ;;  %3909 = vmatpush3.bf16.msra.mxu0 %v5042_v56 }
 0x10b   :  { %v5394_v43 = vadd.f32 %v3444_v47, %v3392_v27  ;;  %v3447_v51 = vadd.f32 %v3446_v35, %v3445_v30  ;;  %2109 = vmatmul.mubr.bf16.gmra.mrb[112].mxu0 %v4295_v21  ;;  %3910 = vmatprep.subr.bf16.mxu0 %v5051_v2  ;;  %v4300_v2 = vld [vmem:[%s5980_s0 + $0x320] ss:$28 sps:$4 sm:$0xff]  }
 0x10c   :  { %4059 = vmatmul.mubr.msk.bf16.gmra.mrb[112].mxu1 %vm673_vm0, %v4297_v11  ;;  %2116 = vmatprep.mubr.bf16.mxu0 %v4298_v12  ;;  %v4404_v47 = vld [vmem:[%s5979_s1 + $0x140] sm:$0xff]   ;;  %v4405_v30 = vld [vmem:[%s5979_s1 + $0xb8] sm:$0xff]  }
 0x10d   :  { %v5398_v16 = vadd.f32 %v3447_v51, %v3395_v32  ;;  %3859 = vmatpush3.bf16.msra.mxu1 %v5157_v23  ;;  %4062 = vmatprep.mubr.msk.bf16.mxu1 %vm673_vm0, %v4301_v48  ;;  %v4302_v23 = vld [vmem:[%s5980_s0 + $0x3d0] ss:$28 sps:$4 sm:$0xff]   ;;  %v4406_v32 = vld [vmem:[%s5979_s1 + $0x100] sm:$0xff]  }
 0x10e   :  { %3860 = vmatprep.subr.bf16.mxu1 %v5163_v24  ;;  %v3396_v18 = vpop.f32.mrb[12].mxu0  ;;  %3911 = vmatpush3.bf16.msra.mxu0 %v5058_v4  ;;  %v4303_v24 = vld [vmem:[%s5980_s0 + $0x35c] ss:$28 sps:$4 sm:$0xff]   ;;  %v4407_v51 = vld [vmem:[%s5979_s1 + $0x148] sm:$0xff]  }
 0x10f   :  { %v3448_v56 = vpop.f32.mrb[12].mxu1  ;;  %v3397_v5 = vpop.f32.mrb[13].mxu0  ;;  %3912 = vmatprep.subr.bf16.mxu0 %v5064_v3  ;;  %v4308_v3 = vld [vmem:[%s5980_s0 + $0x3f4] ss:$28 sps:$4 sm:$0xff]  }
 0x110   :  { %v3398_v9 = vadd.f32 %v3397_v5, %v3396_v18  ;;  %v3449_v41 = vpop.f32.mrb[13].mxu1  ;;  %v3399_v14 = vpop.f32.mrb[14].mxu0  ;;  %v4317_v5 = vld [vmem:[%s5980_s0 + $0x3c8] ss:$28 sps:$4 sm:$0xff]  }
 0x111   :  { %3861 = vmatpush3.bf16.msra.mxu1 %v5185_v29  ;;  %v3450_v4 = vadd.f32 %v3449_v41, %v3448_v56  ;;  %v3451_v42 = vpop.f32.mrb[14].mxu1  ;;  %v3400_v45 = vpop.f32.mrb[15].mxu0 }
 0x112   :  { %v3401_v46 = vadd.f32 %v3400_v45, %v3399_v14  ;;  %v3452_v53 = vpop.f32.mrb[15].mxu1  ;;  %3862 = vmatprep.subr.bf16.mxu1 %v5194_v60  ;;  %3913 = vmatpush3.bf16.msra.mxu0 %v5076_v7  ;;  %v4316_v14 = vld [vmem:[%s5980_s0 + $0x428] ss:$28 sps:$4 sm:$0xff]  }
 0x113   :  { %v5420_v49 = vadd.f32 %v3450_v4, %v3398_v9  ;;  %v3453_v52 = vadd.f32 %v3452_v53, %v3451_v42  ;;  %2117 = vmatmul.mubr.bf16.gmra.mrb[116].mxu0 %v4300_v2  ;;  %3914 = vmatprep.subr.bf16.mxu0 %v5088_v10  ;;  %v4408_v4 = vld [vmem:[%s5979_s1 + $0x108] sm:$0xff]   ;;  %v4318_v45 = vld [vmem:[%s5980_s0 + $0x464] ss:$28 sps:$4 sm:$0xff]  }
 0x114   :  { %4063 = vmatmul.mubr.msk.bf16.gmra.mrb[116].mxu1 %vm673_vm0, %v4302_v23  ;;  %2124 = vmatprep.mubr.bf16.mxu0 %v4303_v24  ;;  %v4323_v23 = vld [vmem:[%s5980_s0 + $0x3fc] ss:$28 sps:$4 sm:$0xff]  }
 0x115   :  { %v5424_v29 = vadd.f32 %v3453_v52, %v3401_v46  ;;  %3863 = vmatpush3.bf16.msra.mxu1 %v5209_v34  ;;  %2551 = vmatprep.mubr.bf16.mxu1 %v4308_v3  ;;  %v4309_v34 = vld [vmem:[%s5980_s0 + $0x394] ss:$28 sps:$4 sm:$0xff]  }
 0x116   :  { %3864 = vmatprep.subr.bf16.mxu1 %v5215_v31  ;;  %v3402_v54 = vpop.f32.mrb[16].mxu0  ;;  %3915 = vmatpush3.bf16.msra.mxu0 %v5108_v13  ;;  %v4409_v52 = vld [vmem:[%s5979_s1 + $0x150] sm:$0xff]  }
 0x117   :  { %v3454_v7 = vpop.f32.mrb[16].mxu1  ;;  %v3403_v60 = vpop.f32.mrb[17].mxu0  ;;  %3916 = vmatprep.subr.bf16.mxu0 %v5117_v15 }
 0x118   :  { %v3404_v10 = vadd.f32 %v3403_v60, %v3402_v54  ;;  %v3455_v59 = vpop.f32.mrb[17].mxu1  ;;  %v3405_v61 = vpop.f32.mrb[18].mxu0  ;;  %v4410_v60 = vld [vmem:[%s5979_s1 + $0x110] sm:$0xff]  }
 0x119   :  { %3865 = vmatpush3.bf16.msra.mxu1 %v5221_v36  ;;  %v3456_v31 = vadd.f32 %v3455_v59, %v3454_v7  ;;  %v3457_v62 = vpop.f32.mrb[18].mxu1  ;;  %v3406_v13 = vpop.f32.mrb[19].mxu0 }
 0x11a   :  { %v3407_v0 = vadd.f32 %v3406_v13, %v3405_v61  ;;  %v3458_v37 = vpop.f32.mrb[19].mxu1  ;;  %3866 = vmatprep.subr.bf16.mxu1 %v5230_v40  ;;  %3917 = vmatpush3.bf16.msra.mxu0 %v5141_v20  ;;  %v4311_v20 = vld [vmem:[%s5980_s0 + $0x390] ss:$28 sps:$4 sm:$0xff]  }
 0x11b   :  { %v5439_v26 = vadd.f32 %v3456_v31, %v3404_v10  ;;  %v3459_v15 = vadd.f32 %v3458_v37, %v3457_v62  ;;  %2125 = vmatmul.mubr.bf16.gmra.mrb[120].mxu0 %v4305_v55  ;;  %3918 = vmatprep.subr.bf16.mxu0 %v5151_v22  ;;  %v4411_v10 = vld [vmem:[%s5979_s1 + $0x158] sm:$0xff]  }
 0x11c   :  { %2132 = vmatprep.mubr.bf16.mxu0 %v4309_v34  ;;  %v4320_v62 = vld [vmem:[%s5980_s0 + $0x460] ss:$28 sps:$4 sm:$0xff]  }
 0x11d   :  { %v5442_v17 = vadd.f32 %v3459_v15, %v3407_v0  ;;  %3867 = vmatpush3.bf16.msra.mxu1 %v5239_v44  ;;  %v4306_v44 = vld [vmem:[%s5980_s0 + $0x3f0] ss:$28 sps:$4 sm:$0xff]  }
 0x11e   :  { %3868 = vmatprep.subr.bf16.mxu1 %v5245_v50  ;;  %v3408_v36 = vpop.f32.mrb[20].mxu0  ;;  %3919 = vmatpush3.bf16.msra.mxu0 %v5170_v25  ;;  %v4314_v50 = vld [vmem:[%s5980_s0 + $0x3cc] ss:$28 sps:$4 sm:$0xff]   ;;  %v4327_v0 = vld [vmem:[%s5980_s0 + $0x434] ss:$28 sps:$4 sm:$0xff]  }
 0x11f   :  { %v3460_v19 = vpop.f32.mrb[20].mxu1  ;;  %v3409_v40 = vpop.f32.mrb[21].mxu0  ;;  %3920 = vmatprep.subr.bf16.mxu0 %v5179_v28  ;;  %v4312_v28 = vld [vmem:[%s5980_s0 + $0x42c] ss:$28 sps:$4 sm:$0xff]  }
 0x120   :  { %v3410_v21 = vadd.f32 %v3409_v40, %v3408_v36  ;;  %v3461_v22 = vpop.f32.mrb[21].mxu1  ;;  %v3411_v27 = vpop.f32.mrb[22].mxu0  ;;  %v4412_v36 = vld [vmem:[%s5979_s1 + $0x118] sm:$0xff]  }
 0x121   :  { %3869 = vmatpush3.bf16.msra.mxu1 %v5254_v1  ;;  %v3462_v25 = vadd.f32 %v3461_v22, %v3460_v19  ;;  %v3463_v39 = vpop.f32.mrb[22].mxu1  ;;  %v3412_v58 = vpop.f32.mrb[23].mxu0  ;;  %v4324_v19 = vld [vmem:[%s5980_s0 + $0x49c] ss:$28 sps:$4 sm:$0xff]   ;;  %v4413_v22 = vld [vmem:[%s5979_s1 + $0x160] sm:$0xff]  }
 0x122   :  { %v3413_v11 = vadd.f32 %v3412_v58, %v3411_v27  ;;  %v3464_v12 = vpop.f32.mrb[23].mxu1  ;;  %3958 = vmatprep.subr.bf16.mxu1 %v4404_v47  ;;  %3921 = vmatpush3.bf16.msra.mxu0 %v4405_v30  ;;  %v4326_v47 = vld [vmem:[%s5980_s0 + $0x498] ss:$28 sps:$4 sm:$0xff]  }
 0x123   :  { %v5467_v1 = vadd.f32 %v3462_v25, %v3410_v21  ;;  %v3465_v63 = vadd.f32 %v3464_v12, %v3463_v39  ;;  %2133 = vmatmul.mubr.bf16.gmra.mrb[124].mxu0 %v4311_v20  ;;  %4066 = vmatprep.subr.bf16.mxu0 %v5270_v8  ;;  %v4415_v25 = vld [vmem:[%s5979_s1 + $0x168] sm:$0xff]  }
 0x124   :  { %2552 = vmatmul.mubr.bf16.vlgmr.msra.gmra.mrb[120].mxu1 %v4306_v44  ;;  %2140 = vmatprep.mubr.bf16.mxu0 %v4314_v50  ;;  %v4414_v50 = vld [vmem:[%s5979_s1 + $0x120] sm:$0xff]  }
 0x125   :  { %v5470_v48 = vadd.f32 %v3465_v63, %v3413_v11  ;;  %3959 = vmatpush3.bf16.msra.mxu1 %v4406_v32  ;;  %2559 = vmatprep.mubr.bf16.mxu1 %v4312_v28  ;;  %v4329_v28 = vld [vmem:[%s5980_s0 + $0x430] ss:$28 sps:$4 sm:$0xff]  }
 0x126   :  { %v3482_v35 = vpop.f32.mrb[24].mxu0  ;;  %3960 = vmatprep.subr.bf16.mxu1 %v4407_v51  ;;  %v4416_v11 = vld [vmem:[%s5979_s1 + $0x188] sm:$0xff]   ;;  %v4330_v51 = vld [vmem:[%s5980_s0 + $0x4d4] ss:$28 sps:$4 sm:$0xff]  }
 0x127   :  { %v4024_v18 = vpop.f32.mrb[24].mxu1  ;;  %v3483_v56 = vpop.f32.mrb[25].mxu0  ;;  %v4333_v63 = vld [vmem:[%s5980_s0 + $0x46c] ss:$28 sps:$4 sm:$0xff]  }
 0x128   :  { %v3484_v2 = vadd.f32 %v3483_v56, %v3482_v35  ;;  %v969_v9 = vpop.f32.mrb[25].mxu1  ;;  %v3485_v41 = vpop.f32.mrb[26].mxu0 }
 0x129   :  { %v4025_v24 = vpop.f32.mrb[26].mxu1  ;;  %3961 = vmatpush3.bf16.msra.mxu1 %v4408_v4  ;;  %v3486_v42 = vpop.f32.mrb[27].mxu0 }
 0x12a   :  { %v889_v3 = vadd.f32 %v3484_v2, %v5352_v57  ;;  %v3487_v46 = vadd.f32 %v3486_v42, %v3485_v41  ;;  %v972_v53 = vpop.f32.mrb[27].mxu1  ;;  %3962 = vmatprep.subr.bf16.mxu1 %v4409_v52 }
 0x12b   :  { %2141 = vmatmul.mubr.bf16.gmra.mrb[128].mxu0 %v4317_v5 }
 0x12c   :  { %v5497_v54 = vadd.f32 %v969_v9, %v889_v3  ;;  %v892_v7 = vadd.f32 %v3487_v46, %v5354_v6  ;;  %2560 = vmatmul.mubr.bf16.gmra.mrb[124].mxu1 %v4316_v14  ;;  %2632 = vmatprep.mubr.bf16.mxu0 %v4323_v23  ;;  %v4321_v6 = vld [vmem:[%s5980_s0 + $0x3f8] ss:$28 sps:$4 sm:$0xff]   ;;  %v4332_v46 = vld [vmem:[%s5980_s0 + $0x4d0] ss:$28 sps:$4 sm:$0xff]  }
 0x12d   :  { %3963 = vmatpush3.bf16.msra.mxu1 %v4410_v60  ;;  %2567 = vmatprep.mubr.bf16.mxu1 %v4318_v45  ;;  %v4418_v9 = vld [vmem:[%s5979_s1 + $0x170] sm:$0xff]   ;;  %v4421_v60 = vld [vmem:[%s5979_s1 + $0x138] sm:$0xff]  }
 0x12e   :  { %v5503_v57 = vadd.f32 %v972_v53, %v892_v7  ;;  %v3488_v55 = vpop.f32.mrb[28].mxu0  ;;  %3964 = vmatprep.subr.bf16.mxu1 %v4411_v10  ;;  %v4339_v53 = vld [vmem:[%s5980_s0 + $0x4a4] ss:$28 sps:$4 sm:$0xff]   ;;  %v4336_v7 = vld [vmem:[%s5980_s0 + $0x50c] ss:$28 sps:$4 sm:$0xff]  }
 0x12f   :  { %v3489_v59 = vpop.f32.mrb[29].mxu0  ;;  %v5511_v61 = vpop.f32.mrb[28].mxu1 }
 0x130   :  { %v3490_v34 = vadd.f32 %v3489_v59, %v3488_v55  ;;  %v3491_v31 = vpop.f32.mrb[30].mxu0  ;;  %v985_v13 = vpop.f32.mrb[29].mxu1 }
 0x131   :  { %v3492_v37 = vpop.f32.mrb[31].mxu0  ;;  %v5519_v15 = vpop.f32.mrb[30].mxu1  ;;  %3965 = vmatpush3.bf16.msra.mxu1 %v4412_v36 }
 0x132   :  { %v897_v40 = vadd.f32 %v3490_v34, %v5369_v33  ;;  %v3493_v20 = vadd.f32 %v3492_v37, %v3491_v31  ;;  %v988_v21 = vpop.f32.mrb[31].mxu1  ;;  %3966 = vmatprep.subr.bf16.mxu1 %v4413_v22 }
 0x133   :  { %2633 = vmatmul.mubr.bf16.vlgmr.msra.gmra.mrb[132].mxu0 %v4321_v6 }
 0x134   :  { %v900_v27 = vadd.f32 %v3493_v20, %v5372_v38  ;;  %2568 = vmatmul.mubr.bf16.gmra.mrb[128].mxu1 %v4320_v62  ;;  %2640 = vmatprep.mubr.bf16.mxu0 %v4327_v0  ;;  %v5532_v44 = vadd.f32 %v4024_v18, %v897_v40  ;;  %v4417_v18 = vld [vmem:[%s5979_s1 + $0x128] sm:$0xff]   ;;  %v4344_v20 = vld [vmem:[%s5980_s0 + $0x404] ss:$28 sps:$4 sm:$0xff]  }
 0x135   :  { %2575 = vmatprep.mubr.bf16.mxu1 %v4324_v19  ;;  %3967 = vmatpush3.bf16.msra.mxu1 %v4414_v50 }
 0x136   :  { %v3494_v33 = vpop.f32.mrb[32].mxu0  ;;  %4067 = vmatpush3.bf16.msra.mxu0 %v5270_v8  ;;  %3968 = vmatprep.subr.bf16.mxu1 %v4415_v25  ;;  %v5541_v39 = vadd.f32 %v4025_v24, %v900_v27  ;;  %v4420_v24 = vld [vmem:[%s5979_s1 + $0x178] sm:$0xff]  }
 0x137   :  { %v3495_v38 = vpop.f32.mrb[33].mxu0  ;;  %v5543_v58 = vpop.f32.mrb[32].mxu1  ;;  %4068 = vmatprep.subr.bf16.mxu0 %v4416_v11 }
 0x138   :  { %v3496_v8 = vadd.f32 %v3495_v38, %v3494_v33  ;;  %v3497_v12 = vpop.f32.mrb[34].mxu0  ;;  %v5554_v30 = vpop.f32.mrb[33].mxu1 }
 0x139   :  { %v3498_v32 = vpop.f32.mrb[35].mxu0  ;;  %v5559_v35 = vpop.f32.mrb[34].mxu1  ;;  %3969 = vmatpush3.bf16.msra.mxu1 %v4417_v18 }
 0x13a   :  { %v905_v56 = vadd.f32 %v3496_v8, %v5394_v43  ;;  %v3499_v5 = vadd.f32 %v3498_v32, %v3497_v12  ;;  %v1004_v2 = vpop.f32.mrb[35].mxu1  ;;  %3970 = vmatprep.subr.bf16.mxu1 %v4418_v9  ;;  %4069 = vmatpush3.bf16.msra.mxu0 %v4416_v11  ;;  %v4419_v43 = vld [vmem:[%s5979_s1 + $0x130] sm:$0xff]  }
 0x13b   :  { %2641 = vmatmul.mubr.bf16.gmra.mrb[136].mxu0 %v4329_v28 }
 0x13c   :  { %v908_v41 = vadd.f32 %v3499_v5, %v5398_v16  ;;  %2576 = vmatmul.mubr.bf16.gmra.mrb[132].mxu1 %v4326_v47  ;;  %2648 = vmatprep.mubr.bf16.mxu0 %v4333_v63  ;;  %v5572_v14 = vadd.f32 %v985_v13, %v905_v56  ;;  %v4335_v16 = vld [vmem:[%s5980_s0 + $0x468] ss:$28 sps:$4 sm:$0xff]   ;;  %v4348_v56 = vld [vmem:[%s5980_s0 + $0x43c] ss:$28 sps:$4 sm:$0xff]  }
 0x13d   :  { %2583 = vmatprep.mubr.bf16.mxu1 %v4330_v51  ;;  %3971 = vmatpush3.bf16.msra.mxu1 %v4419_v43 }
 0x13e   :  { %v3500_v23 = vpop.f32.mrb[36].mxu0  ;;  %3972 = vmatprep.subr.bf16.mxu1 %v4420_v24  ;;  %v5580_v4 = vadd.f32 %v988_v21, %v908_v41 }
 0x13f   :  { %v3501_v42 = vpop.f32.mrb[37].mxu0 }
 0x140   :  { %v3502_v45 = vadd.f32 %v3501_v42, %v3500_v23  ;;  %v3503_v3 = vpop.f32.mrb[38].mxu0 }
 0x141   :  { %v3504_v52 = vpop.f32.mrb[39].mxu0  ;;  %3973 = vmatpush3.bf16.msra.mxu1 %v4421_v60  ;;  %v4354_v60 = vld [vmem:[%s5980_s0 + $0x474] ss:$28 sps:$4 sm:$0xff]  }
 0x142   :  { %v913_v55 = vadd.f32 %v3502_v45, %v5420_v49  ;;  %v3505_v10 = vadd.f32 %v3504_v52, %v3503_v3  ;;  %v4341_v49 = vld [vmem:[%s5980_s0 + $0x4a0] ss:$28 sps:$4 sm:$0xff]  }
 0x143   :  { %2649 = vmatmul.mubr.bf16.gmra.mrb[140].mxu0 %v4335_v16 }
 0x144   :  { %v916_v59 = vadd.f32 %v3505_v10, %v5424_v29  ;;  %2584 = vmatmul.mubr.bf16.gmra.mrb[136].mxu1 %v4332_v46  ;;  %2656 = vmatprep.mubr.bf16.mxu0 %v4339_v53  ;;  %v5600_v6 = vadd.f32 %v5511_v61, %v913_v55  ;;  %v4338_v29 = vld [vmem:[%s5980_s0 + $0x508] ss:$28 sps:$4 sm:$0xff]   ;;  %v4345_v61 = vld [vmem:[%s5980_s0 + $0x4dc] ss:$28 sps:$4 sm:$0xff]  }
 0x145   :  { %2591 = vmatprep.mubr.bf16.mxu1 %v4336_v7 }
 0x146   :  { %v3506_v34 = vpop.f32.mrb[40].mxu0  ;;  %v5603_v31 = vadd.f32 %v5519_v15, %v916_v59 }
 0x147   :  { %v3542_v62 = vpop.f32.mrb[36].mxu1  ;;  %v3507_v13 = vpop.f32.mrb[41].mxu0 }
 0x148   :  { %v3543_v0 = vpop.f32.mrb[37].mxu1  ;;  %v3508_v37 = vadd.f32 %v3507_v13, %v3506_v34  ;;  %v3509_v36 = vpop.f32.mrb[42].mxu0 }
 0x149   :  { %v3544_v19 = vadd.f32 %v3543_v0, %v3542_v62  ;;  %v3545_v15 = vpop.f32.mrb[38].mxu1  ;;  %v3510_v40 = vpop.f32.mrb[43].mxu0 }
 0x14a   :  { %v921_v21 = vadd.f32 %v3508_v37, %v5439_v26  ;;  %v3546_v22 = vpop.f32.mrb[39].mxu1  ;;  %v3511_v27 = vadd.f32 %v3510_v40, %v3509_v36  ;;  %v4347_v26 = vld [vmem:[%s5980_s0 + $0x4d8] ss:$28 sps:$4 sm:$0xff]   ;;  %v4358_v37 = vld [vmem:[%s5980_s0 + $0x440] ss:$28 sps:$4 sm:$0xff]  }
 0x14b   :  { %v3547_v50 = vadd.f32 %v3546_v22, %v3545_v15  ;;  %2657 = vmatmul.mubr.bf16.gmra.mrb[144].mxu0 %v4341_v49  ;;  %v4362_v15 = vld [vmem:[%s5980_s0 + $0x478] ss:$28 sps:$4 sm:$0xff]   ;;  %v4359_v22 = vld [vmem:[%s5980_s0 + $0x4ac] ss:$28 sps:$4 sm:$0xff]  }
 0x14c   :  { %v924_v33 = vadd.f32 %v3511_v27, %v5442_v17  ;;  %2592 = vmatmul.mubr.bf16.gmra.mrb[140].mxu1 %v4338_v29  ;;  %2664 = vmatprep.mubr.bf16.mxu0 %v4345_v61  ;;  %v5620_v25 = vadd.f32 %v5554_v30, %v921_v21  ;;  %v4342_v17 = vld [vmem:[%s5980_s0 + $0x400] ss:$28 sps:$4 sm:$0xff]   ;;  %v4350_v30 = vld [vmem:[%s5980_s0 + $0x514] ss:$28 sps:$4 sm:$0xff]  }
 0x14d   :  { %2713 = vmatprep.mubr.bf16.mxu1 %v4344_v20 }
 0x14e   :  { %v3512_v38 = vpop.f32.mrb[44].mxu0  ;;  %v5622_v28 = vadd.f32 %v1004_v2, %v924_v33 }
 0x14f   :  { %v3548_v11 = vpop.f32.mrb[40].mxu1  ;;  %v3513_v8 = vpop.f32.mrb[45].mxu0 }
 0x150   :  { %v3549_v12 = vpop.f32.mrb[41].mxu1  ;;  %v3514_v47 = vadd.f32 %v3513_v8, %v3512_v38  ;;  %v3515_v63 = vpop.f32.mrb[46].mxu0 }
 0x151   :  { %v3550_v32 = vadd.f32 %v3549_v12, %v3548_v11  ;;  %v3551_v51 = vpop.f32.mrb[42].mxu1  ;;  %v3516_v18 = vpop.f32.mrb[47].mxu0 }
 0x152   :  { %v929_v5 = vadd.f32 %v3514_v47, %v5467_v1  ;;  %v3552_v2 = vpop.f32.mrb[43].mxu1  ;;  %v3517_v9 = vadd.f32 %v3516_v18, %v3515_v63  ;;  %v4353_v1 = vld [vmem:[%s5980_s0 + $0x510] ss:$28 sps:$4 sm:$0xff]  }
 0x153   :  { %v3553_v41 = vadd.f32 %v3552_v2, %v3551_v51  ;;  %2665 = vmatmul.mubr.bf16.gmra.mrb[148].mxu0 %v4347_v26  ;;  %v4363_v47 = vld [vmem:[%s5980_s0 + $0x4b0] ss:$28 sps:$4 sm:$0xff]   ;;  %v4367_v51 = vld [vmem:[%s5980_s0 + $0x4e8] ss:$28 sps:$4 sm:$0xff]  }
 0x154   :  { %v5638_v43 = vadd.f32 %v5543_v58, %v929_v5  ;;  %v932_v23 = vadd.f32 %v3517_v9, %v5470_v48  ;;  %2714 = vmatmul.mubr.bf16.vlgmr.msra.gmra.mrb[144].mxu1 %v4342_v17  ;;  %2672 = vmatprep.mubr.bf16.mxu0 %v4350_v30  ;;  %v4352_v48 = vld [vmem:[%s5980_s0 + $0x438] ss:$28 sps:$4 sm:$0xff]   ;;  %v4357_v58 = vld [vmem:[%s5980_s0 + $0x408] ss:$28 sps:$4 sm:$0xff]  }
 0x155   :  { %2721 = vmatprep.mubr.bf16.mxu1 %v4348_v56  ;;  %v4364_v2 = vld [vmem:[%s5980_s0 + $0x4e4] ss:$28 sps:$4 sm:$0xff]  }
 0x156   :  { %v5642_v24 = vadd.f32 %v5559_v35, %v932_v23  ;;  %v3594_v42 = vpop.f32.mrb[48].mxu0 }
 0x157   :  { %v3554_v16 = vpop.f32.mrb[44].mxu1  ;;  %v3595_v45 = vpop.f32.mrb[49].mxu0 }
 0x158   :  { %v3555_v3 = vpop.f32.mrb[45].mxu1  ;;  %v3596_v46 = vadd.f32 %v3595_v45, %v3594_v42  ;;  %v3597_v53 = vpop.f32.mrb[50].mxu0 }
 0x159   :  { %v3556_v35 = vadd.f32 %v3555_v3, %v3554_v16  ;;  %v3557_v52 = vpop.f32.mrb[46].mxu1  ;;  %v3598_v7 = vpop.f32.mrb[51].mxu0 }
 0x15a   :  { %v5656_v55 = vadd.f32 %v3596_v46, %v3544_v19  ;;  %v3558_v10 = vpop.f32.mrb[47].mxu1  ;;  %v3599_v59 = vadd.f32 %v3598_v7, %v3597_v53  ;;  %v4356_v19 = vld [vmem:[%s5980_s0 + $0x470] ss:$28 sps:$4 sm:$0xff]   ;;  %v4368_v46 = vld [vmem:[%s5980_s0 + $0x520] ss:$28 sps:$4 sm:$0xff]  }
 0x15b   :  { %v3559_v34 = vadd.f32 %v3558_v10, %v3557_v52  ;;  %2673 = vmatmul.mubr.bf16.gmra.mrb[152].mxu0 %v4353_v1  ;;  %v4369_v10 = vld [vmem:[%s5980_s0 + $0x51c] ss:$28 sps:$4 sm:$0xff]  }
 0x15c   :  { %v5658_v62 = vadd.f32 %v3599_v59, %v3547_v50  ;;  %2722 = vmatmul.mubr.bf16.gmra.mrb[148].mxu1 %v4352_v48  ;;  %4070 = vmatprep.mubr.msk.bf16.mxu0 %vm673_vm0, %v4357_v58 }
 0x15d   :  { %2729 = vmatprep.mubr.bf16.mxu1 %v4354_v60 }
 0x15e   :  { %v3600_v13 = vpop.f32.mrb[52].mxu0 }
 0x15f   :  { %v3560_v49 = vpop.f32.mrb[48].mxu1  ;;  %v3601_v0 = vpop.f32.mrb[53].mxu0 }
 0x160   :  { %v3561_v36 = vpop.f32.mrb[49].mxu1  ;;  %v3602_v29 = vadd.f32 %v3601_v0, %v3600_v13  ;;  %v3603_v61 = vpop.f32.mrb[54].mxu0 }
 0x161   :  { %v3562_v40 = vadd.f32 %v3561_v36, %v3560_v49  ;;  %v3563_v20 = vpop.f32.mrb[50].mxu1  ;;  %v3604_v21 = vpop.f32.mrb[55].mxu0 }
 0x162   :  { %v5673_v27 = vadd.f32 %v3602_v29, %v3550_v32  ;;  %v3564_v50 = vpop.f32.mrb[51].mxu1  ;;  %v3605_v33 = vadd.f32 %v3604_v21, %v3603_v61  ;;  %v4361_v32 = vld [vmem:[%s5980_s0 + $0x4a8] ss:$28 sps:$4 sm:$0xff]  }
 0x163   :  { %v3565_v38 = vadd.f32 %v3564_v50, %v3563_v20  ;;  %4071 = vmatmul.mubr.msk.bf16.vlgmr.msra.gmra.mrb[156].mxu0 %vm673_vm0, %v4358_v37 }
 0x164   :  { %v5676_v11 = vadd.f32 %v3605_v33, %v3553_v41  ;;  %2730 = vmatmul.mubr.bf16.gmra.mrb[152].mxu1 %v4356_v19  ;;  %4074 = vmatprep.mubr.msk.bf16.mxu0 %vm673_vm0, %v4362_v15 }
 0x165   :  { %2737 = vmatprep.mubr.bf16.mxu1 %v4359_v22 }
 0x166   :  { %v3606_v8 = vpop.f32.mrb[56].mxu0 }
 0x167   :  { %v3566_v26 = vpop.f32.mrb[52].mxu1  ;;  %v3607_v12 = vpop.f32.mrb[57].mxu0 }
 0x168   :  { %v3567_v63 = vpop.f32.mrb[53].mxu1  ;;  %v3608_v17 = vadd.f32 %v3607_v12, %v3606_v8  ;;  %v3609_v30 = vpop.f32.mrb[58].mxu0 }
 0x169   :  { %v3568_v18 = vadd.f32 %v3567_v63, %v3566_v26  ;;  %v3569_v56 = vpop.f32.mrb[54].mxu1  ;;  %v3610_v5 = vpop.f32.mrb[59].mxu0 }
 0x16a   :  { %v5691_v9 = vadd.f32 %v3608_v17, %v3556_v35  ;;  %v3570_v41 = vpop.f32.mrb[55].mxu1  ;;  %v3611_v23 = vadd.f32 %v3610_v5, %v3609_v30  ;;  %v4366_v35 = vld [vmem:[%s5980_s0 + $0x4e0] ss:$28 sps:$4 sm:$0xff]  }
 0x16b   :  { %v3571_v42 = vadd.f32 %v3570_v41, %v3569_v56  ;;  %4075 = vmatmul.mubr.msk.bf16.gmra.mrb[160].mxu0 %vm673_vm0, %v4363_v47 }
 0x16c   :  { %v5694_v16 = vadd.f32 %v3611_v23, %v3559_v34  ;;  %2738 = vmatmul.mubr.bf16.gmra.mrb[156].mxu1 %v4361_v32  ;;  %4078 = vmatprep.mubr.msk.bf16.mxu0 %vm673_vm0, %v4367_v51 }
 0x16d   :  { %2745 = vmatprep.mubr.bf16.mxu1 %v4364_v2 }
 0x16e   :  { %v3612_v45 = vpop.f32.mrb[60].mxu0 }
 0x16f   :  { %v3572_v1 = vpop.f32.mrb[56].mxu1  ;;  %v3613_v3 = vpop.f32.mrb[61].mxu0 }
 0x170   :  { %v3573_v53 = vpop.f32.mrb[57].mxu1  ;;  %v3614_v48 = vadd.f32 %v3613_v3, %v3612_v45  ;;  %v3615_v58 = vpop.f32.mrb[62].mxu0 }
 0x171   :  { %v3574_v52 = vadd.f32 %v3573_v53, %v3572_v1  ;;  %v3575_v7 = vpop.f32.mrb[58].mxu1  ;;  %v3616_v60 = vpop.f32.mrb[63].mxu0 }
 0x172   :  { %v5706_v59 = vadd.f32 %v3614_v48, %v3562_v40  ;;  %v3576_v34 = vpop.f32.mrb[59].mxu1  ;;  %v3617_v13 = vadd.f32 %v3616_v60, %v3615_v58  ;;  %v4371_v40 = vld [vmem:[%s5980_s0 + $0x518] ss:$28 sps:$4 sm:$0xff]  }
 0x173   :  { %v3577_v49 = vadd.f32 %v3576_v34, %v3575_v7  ;;  %4079 = vmatmul.mubr.msk.bf16.gmra.mrb[164].mxu0 %vm673_vm0, %v4368_v46 }
 0x174   :  { %v5709_v0 = vadd.f32 %v3617_v13, %v3565_v38  ;;  %2746 = vmatmul.mubr.bf16.gmra.mrb[160].mxu1 %v4366_v35 }
 0x175   :  { %2753 = vmatprep.mubr.bf16.mxu1 %v4369_v10 }
 0x176   :  { %v3618_v37 = vpop.f32.mrb[64].mxu0 }
 0x177   :  { %v3646_v36 = vpop.f32.mrb[60].mxu1  ;;  %v3619_v29 = vpop.f32.mrb[65].mxu0 }
 0x178   :  { %v3647_v61 = vpop.f32.mrb[61].mxu1  ;;  %v3620_v19 = vadd.f32 %v3619_v29, %v3618_v37  ;;  %v3621_v15 = vpop.f32.mrb[66].mxu0 }
 0x179   :  { %v3648_v20 = vadd.f32 %v3647_v61, %v3646_v36  ;;  %v3649_v21 = vpop.f32.mrb[62].mxu1  ;;  %v3622_v22 = vpop.f32.mrb[67].mxu0 }
 0x17a   :  { %v5714_v50 = vadd.f32 %v3620_v19, %v3568_v18  ;;  %v3650_v33 = vpop.f32.mrb[63].mxu1  ;;  %v3623_v38 = vadd.f32 %v3622_v22, %v3621_v15 }
 0x17b   :  { %v3651_v8 = vadd.f32 %v3650_v33, %v3649_v21  ;;  %v1490_v26 = vadd.f32 %v3648_v20, %v5656_v55 }
 0x17c   :  { %v5717_v12 = vadd.f32 %v3623_v38, %v3571_v42  ;;  %2754 = vmatmul.mubr.bf16.gmra.mrb[164].mxu1 %v4371_v40 }
 0x17d   :  { %v1493_v47 = vadd.f32 %v3651_v8, %v5658_v62 }
 0x17e   :  { %v3624_v63 = vpop.f32.mrb[68].mxu0 }
 0x17f   :  { %v3652_v17 = vpop.f32.mrb[64].mxu1  ;;  %v3625_v30 = vpop.f32.mrb[69].mxu0 }
 0x180   :  { %v3653_v32 = vpop.f32.mrb[65].mxu1  ;;  %v3626_v51 = vadd.f32 %v3625_v30, %v3624_v63  ;;  %v3627_v56 = vpop.f32.mrb[70].mxu0 }
 0x181   :  { %v3654_v5 = vadd.f32 %v3653_v32, %v3652_v17  ;;  %v3655_v2 = vpop.f32.mrb[66].mxu1  ;;  %v3628_v18 = vpop.f32.mrb[71].mxu0 }
 0x182   :  { %v5720_v41 = vadd.f32 %v3626_v51, %v3574_v52  ;;  %v3656_v23 = vpop.f32.mrb[67].mxu1  ;;  %v3629_v45 = vadd.f32 %v3628_v18, %v3627_v56 }
 0x183   :  { %v3657_v1 = vadd.f32 %v3656_v23, %v3655_v2  ;;  %v1498_v55 = vadd.f32 %v3654_v5, %v5673_v27 }
 0x184   :  { %v5723_v42 = vadd.f32 %v3629_v45, %v3577_v49 }
 0x185   :  { %v1501_v62 = vadd.f32 %v3657_v1, %v5676_v11 }
 0x186   :  { %v4040_v3 = vpop.f32.mrb[72].mxu0 }
 0x187   :  { %v3658_v46 = vpop.f32.mrb[68].mxu1  ;;  %v5726_v53 = vadd.f32 %v4040_v3, %v1498_v55  ;;  %v1570_v48 = vpop.f32.mrb[73].mxu0 }
 0x188   :  { %v3659_v58 = vpop.f32.mrb[69].mxu1  ;;  %v5728_v35 = vadd.f32 %v1570_v48, %v1490_v26  ;;  %v4041_v7 = vpop.f32.mrb[74].mxu0 }
 0x189   :  { %v3660_v52 = vadd.f32 %v3659_v58, %v3658_v46  ;;  %v1619_v60 = vmax.f32 %v5532_v44, %v5726_v53  ;;  %v3661_v10 = vpop.f32.mrb[70].mxu1  ;;  %v5732_v34 = vadd.f32 %v4041_v7, %v1501_v62  ;;  %v1573_v27 = vpop.f32.mrb[75].mxu0 }
 0x18a   :  { %v1617_v11 = vmax.f32 %v5497_v54, %v5728_v35  ;;  %v3662_v13 = vpop.f32.mrb[71].mxu1  ;;  %v5736_v49 = vadd.f32 %v1573_v27, %v1493_v47 }
 0x18b   :  { %v3663_v37 = vadd.f32 %v3662_v13, %v3661_v10  ;;  %v1620_v36 = vmax.f32 %v5541_v39, %v5732_v34  ;;  %v1506_v29 = vadd.f32 %v3660_v52, %v5691_v9 }
 0x18c   :  { %v1618_v61 = vmax.f32 %v5503_v57, %v5736_v49 }
 0x18d   :  { %v1509_v19 = vadd.f32 %v3663_v37, %v5694_v16 }
 0x18e   :  { %v4044_v15 = vpop.f32.mrb[76].mxu0 }
 0x18f   :  { %v3664_v40 = vpop.f32.mrb[72].mxu1  ;;  %v1586_v20 = vpop.f32.mrb[77].mxu0 }
 0x190   :  { %v3665_v21 = vpop.f32.mrb[73].mxu1  ;;  %v5744_v22 = vadd.f32 %v1586_v20, %v1506_v29  ;;  %v4045_v33 = vpop.f32.mrb[78].mxu0 }
 0x191   :  { %v3666_v38 = vadd.f32 %v3665_v21, %v3664_v40  ;;  %v3667_v8 = vpop.f32.mrb[74].mxu1  ;;  %v1589_v26 = vpop.f32.mrb[79].mxu0 }
 0x192   :  { %v1621_v47 = vmax.f32 %v5572_v14, %v5744_v22  ;;  %v3668_v63 = vpop.f32.mrb[75].mxu1  ;;  %v5748_v9 = vadd.f32 %v1589_v26, %v1509_v19 }
 0x193   :  { %v1514_v17 = vadd.f32 %v3666_v38, %v5706_v59  ;;  %v3669_v30 = vadd.f32 %v3668_v63, %v3667_v8 }
 0x194   :  { %v1622_v16 = vmax.f32 %v5580_v4, %v5748_v9 }
 0x195   :  { %v5753_v32 = vadd.f32 %v4044_v15, %v1514_v17  ;;  %v1517_v51 = vadd.f32 %v3669_v30, %v5709_v0 }
 0x196   :  { %v4048_v56 = vpop.f32.mrb[80].mxu0 }
 0x197   :  { %v1623_v5 = vmax.f32 %v5600_v6, %v5753_v32  ;;  %v5758_v2 = vadd.f32 %v4045_v33, %v1517_v51  ;;  %v3670_v18 = vpop.f32.mrb[76].mxu1  ;;  %v1602_v23 = vpop.f32.mrb[81].mxu0 }
 0x198   :  { %v3671_v45 = vpop.f32.mrb[77].mxu1  ;;  %v4049_v1 = vpop.f32.mrb[82].mxu0 }
 0x199   :  { %v1624_v59 = vmax.f32 %v5603_v31, %v5758_v2  ;;  %v3672_v55 = vadd.f32 %v3671_v45, %v3670_v18  ;;  %v3673_v62 = vpop.f32.mrb[78].mxu1  ;;  %v1605_v3 = vpop.f32.mrb[83].mxu0 }
 0x19a   :  { %v3674_v46 = vpop.f32.mrb[79].mxu1 }
 0x19b   :  { %v3675_v48 = vadd.f32 %v3674_v46, %v3673_v62  ;;  %v1522_v0 = vadd.f32 %v3672_v55, %v5714_v50 }
 0x19d   :  { %v5763_v58 = vadd.f32 %v1602_v23, %v1522_v0  ;;  %v1525_v7 = vadd.f32 %v3675_v48, %v5717_v12 }
 0x19f   :  { %v5768_v10 = vadd.f32 %v1605_v3, %v1525_v7  ;;  %v3676_v27 = vpop.f32.mrb[80].mxu1 }
 0x1a0   :  { %v3677_v13 = vpop.f32.mrb[81].mxu1 }
 0x1a1   :  { %v3678_v29 = vadd.f32 %v3677_v13, %v3676_v27  ;;  %v3679_v19 = vpop.f32.mrb[82].mxu1 }
 0x1a2   :  { %v3680_v15 = vpop.f32.mrb[83].mxu1 }
 0x1a3   :  { %v1530_v40 = vadd.f32 %v3678_v29, %v5720_v41  ;;  %v3681_v50 = vadd.f32 %v3680_v15, %v3679_v19 }
 0x1a5   :  { %v5773_v20 = vadd.f32 %v4048_v56, %v1530_v40  ;;  %v1533_v12 = vadd.f32 %v3681_v50, %v5723_v42 }
 0x1a6   :  { %v3706_v21 = vpop.f32.mrb[84].mxu0 }
 0x1a7   :  { %v5778_v38 = vadd.f32 %v4049_v1, %v1533_v12  ;;  %v3758_v8 = vpop.f32.mrb[84].mxu1  ;;  %v3707_v26 = vpop.f32.mrb[85].mxu0 }
 0x1a8   :  { %v3708_v63 = vadd.f32 %v3707_v26, %v3706_v21  ;;  %v3759_v17 = vpop.f32.mrb[85].mxu1  ;;  %v3709_v30 = vpop.f32.mrb[86].mxu0 }
 0x1a9   :  { %v3760_v41 = vadd.f32 %v3759_v17, %v3758_v8  ;;  %v3761_v18 = vpop.f32.mrb[86].mxu1  ;;  %v3710_v56 = vpop.f32.mrb[87].mxu0 }
 0x1aa   :  { %v3711_v23 = vadd.f32 %v3710_v56, %v3709_v30  ;;  %v3762_v45 = vpop.f32.mrb[87].mxu1 }
 0x1ab   :  { %v5782_v42 = vadd.f32 %v3760_v41, %v3708_v63  ;;  %v3763_v55 = vadd.f32 %v3762_v45, %v3761_v18 }
 0x1ad   :  { %v5784_v62 = vadd.f32 %v3763_v55, %v3711_v23 }
 0x1ae   :  { %v3712_v1 = vpop.f32.mrb[88].mxu0 }
 0x1af   :  { %v3764_v3 = vpop.f32.mrb[88].mxu1  ;;  %v3713_v46 = vpop.f32.mrb[89].mxu0 }
 0x1b0   :  { %v3714_v48 = vadd.f32 %v3713_v46, %v3712_v1  ;;  %v3765_v0 = vpop.f32.mrb[89].mxu1  ;;  %v3715_v7 = vpop.f32.mrb[90].mxu0 }
 0x1b1   :  { %v3766_v27 = vadd.f32 %v3765_v0, %v3764_v3  ;;  %v3767_v13 = vpop.f32.mrb[90].mxu1  ;;  %v3716_v29 = vpop.f32.mrb[91].mxu0 }
 0x1b2   :  { %v3717_v19 = vadd.f32 %v3716_v29, %v3715_v7  ;;  %v3768_v15 = vpop.f32.mrb[91].mxu1 }
 0x1b3   :  { %v5786_v40 = vadd.f32 %v3766_v27, %v3714_v48  ;;  %v3769_v50 = vadd.f32 %v3768_v15, %v3767_v13 }
 0x1b5   :  { %v5788_v12 = vadd.f32 %v3769_v50, %v3717_v19 }
 0x1b6   :  { %v3718_v21 = vpop.f32.mrb[92].mxu0 }
 0x1b7   :  { %v3770_v8 = vpop.f32.mrb[92].mxu1  ;;  %v3719_v26 = vpop.f32.mrb[93].mxu0 }
 0x1b8   :  { %v3720_v63 = vadd.f32 %v3719_v26, %v3718_v21  ;;  %v3771_v17 = vpop.f32.mrb[93].mxu1  ;;  %v3721_v30 = vpop.f32.mrb[94].mxu0 }
 0x1b9   :  { %v3772_v41 = vadd.f32 %v3771_v17, %v3770_v8  ;;  %v3773_v18 = vpop.f32.mrb[94].mxu1  ;;  %v3722_v56 = vpop.f32.mrb[95].mxu0 }
 0x1ba   :  { %v3723_v23 = vadd.f32 %v3722_v56, %v3721_v30  ;;  %v3774_v45 = vpop.f32.mrb[95].mxu1 }
 0x1bb   :  { %v5790_v55 = vadd.f32 %v3772_v41, %v3720_v63  ;;  %v3775_v1 = vadd.f32 %v3774_v45, %v3773_v18 }
 0x1bd   :  { %v5792_v3 = vadd.f32 %v3775_v1, %v3723_v23 }
 0x1be   :  { %v3724_v46 = vpop.f32.mrb[96].mxu0 }
 0x1bf   :  { %v3776_v48 = vpop.f32.mrb[96].mxu1  ;;  %v3725_v0 = vpop.f32.mrb[97].mxu0 }
 0x1c0   :  { %v3726_v7 = vadd.f32 %v3725_v0, %v3724_v46  ;;  %v3777_v27 = vpop.f32.mrb[97].mxu1  ;;  %v3727_v13 = vpop.f32.mrb[98].mxu0 }
 0x1c1   :  { %v3778_v29 = vadd.f32 %v3777_v27, %v3776_v48  ;;  %v3779_v19 = vpop.f32.mrb[98].mxu1  ;;  %v3728_v15 = vpop.f32.mrb[99].mxu0 }
 0x1c2   :  { %v3729_v50 = vadd.f32 %v3728_v15, %v3727_v13  ;;  %v3780_v21 = vpop.f32.mrb[99].mxu1 }
 0x1c3   :  { %v5794_v8 = vadd.f32 %v3778_v29, %v3726_v7  ;;  %v3781_v26 = vadd.f32 %v3780_v21, %v3779_v19 }
 0x1c5   :  { %v5796_v17 = vadd.f32 %v3781_v26, %v3729_v50 }
 0x1c6   :  { %v3730_v63 = vpop.f32.mrb[100].mxu0 }
 0x1c7   :  { %v3782_v30 = vpop.f32.mrb[100].mxu1  ;;  %v3731_v41 = vpop.f32.mrb[101].mxu0 }
 0x1c8   :  { %v3732_v18 = vadd.f32 %v3731_v41, %v3730_v63  ;;  %v3783_v56 = vpop.f32.mrb[101].mxu1  ;;  %v3733_v23 = vpop.f32.mrb[102].mxu0 }
 0x1c9   :  { %v3784_v45 = vadd.f32 %v3783_v56, %v3782_v30  ;;  %v3785_v1 = vpop.f32.mrb[102].mxu1  ;;  %v3734_v46 = vpop.f32.mrb[103].mxu0 }
 0x1ca   :  { %v3735_v0 = vadd.f32 %v3734_v46, %v3733_v23  ;;  %v3786_v48 = vpop.f32.mrb[103].mxu1 }
 0x1cb   :  { %v5798_v27 = vadd.f32 %v3784_v45, %v3732_v18  ;;  %v3787_v13 = vadd.f32 %v3786_v48, %v3785_v1 }
 0x1cd   :  { %v5800_v15 = vadd.f32 %v3787_v13, %v3735_v0 }
 0x1ce   :  { %v3736_v7 = vpop.f32.mrb[104].mxu0 }
 0x1cf   :  { %v3788_v29 = vpop.f32.mrb[104].mxu1  ;;  %v3737_v19 = vpop.f32.mrb[105].mxu0 }
 0x1d0   :  { %v3738_v50 = vadd.f32 %v3737_v19, %v3736_v7  ;;  %v3789_v21 = vpop.f32.mrb[105].mxu1  ;;  %v3739_v26 = vpop.f32.mrb[106].mxu0 }
 0x1d1   :  { %v3790_v51 = vadd.f32 %v3789_v21, %v3788_v29  ;;  %v3791_v63 = vpop.f32.mrb[106].mxu1  ;;  %v3740_v41 = vpop.f32.mrb[107].mxu0 }
 0x1d2   :  { %v3741_v33 = vadd.f32 %v3740_v41, %v3739_v26  ;;  %v3792_v30 = vpop.f32.mrb[107].mxu1 }
 0x1d3   :  { %v5802_v56 = vadd.f32 %v3790_v51, %v3738_v50  ;;  %v3793_v23 = vadd.f32 %v3792_v30, %v3791_v63 }
 0x1d5   :  { %v5804_v46 = vadd.f32 %v3793_v23, %v3741_v33 }
 0x1d6   :  { %v3810_v18 = vpop.f32.mrb[108].mxu0 }
 0x1d7   :  { %v4056_v45 = vpop.f32.mrb[108].mxu1  ;;  %v3811_v1 = vpop.f32.mrb[109].mxu0 }
 0x1d8   :  { %v3812_v0 = vadd.f32 %v3811_v1, %v3810_v18  ;;  %v2183_v48 = vpop.f32.mrb[109].mxu1  ;;  %v3813_v13 = vpop.f32.mrb[110].mxu0 }
 0x1d9   :  { %v4057_v37 = vpop.f32.mrb[110].mxu1  ;;  %v3814_v7 = vpop.f32.mrb[111].mxu0 }
 0x1da   :  { %v2103_v19 = vadd.f32 %v3812_v0, %v5782_v42  ;;  %v3815_v29 = vadd.f32 %v3814_v7, %v3813_v13  ;;  %v2186_v21 = vpop.f32.mrb[111].mxu1 }
 0x1dc   :  { %v2184_v52 = vadd.f32 %v2183_v48, %v2103_v19  ;;  %v2106_v26 = vadd.f32 %v3815_v29, %v5784_v62 }
 0x1de   :  { %v5811_v33 = vmax.f32 %v1617_v11, %v2184_v52  ;;  %v2187_v51 = vadd.f32 %v2186_v21, %v2106_v26  ;;  %v3816_v50 = vpop.f32.mrb[112].mxu0 }
 0x1df   :  { %v3817_v63 = vpop.f32.mrb[113].mxu0  ;;  %v4060_v41 = vpop.f32.mrb[112].mxu1 }
 0x1e0   :  { %v5816_v30 = vmax.f32 %v1618_v61, %v2187_v51  ;;  %v3818_v42 = vadd.f32 %v3817_v63, %v3816_v50  ;;  %v3819_v23 = vpop.f32.mrb[114].mxu0  ;;  %v2199_v18 = vpop.f32.mrb[113].mxu1 }
 0x1e1   :  { %v3820_v1 = vpop.f32.mrb[115].mxu0  ;;  %v4061_v0 = vpop.f32.mrb[114].mxu1 }
 0x1e2   :  { %v2111_v62 = vadd.f32 %v3818_v42, %v5786_v40  ;;  %v3821_v48 = vadd.f32 %v3820_v1, %v3819_v23  ;;  %v2202_v54 = vpop.f32.mrb[115].mxu1 }
 0x1e4   :  { %v2192_v35 = vadd.f32 %v4056_v45, %v2111_v62  ;;  %v2114_v11 = vadd.f32 %v3821_v48, %v5788_v12 }
 0x1e6   :  { %v2195_v52 = vadd.f32 %v4057_v37, %v2114_v11  ;;  %v3822_v13 = vpop.f32.mrb[116].mxu0  ;;  %v5823_v57 = vmax.f32 %v1619_v60, %v2192_v35 }
 0x1e7   :  { %v3823_v49 = vpop.f32.mrb[117].mxu0  ;;  %v4064_v61 = vpop.f32.mrb[116].mxu1 }
 0x1e8   :  { %v3824_v7 = vadd.f32 %v3823_v49, %v3822_v13  ;;  %v3825_v19 = vpop.f32.mrb[118].mxu0  ;;  %v2215_v29 = vpop.f32.mrb[117].mxu1  ;;  %v5828_v40 = vmax.f32 %v1620_v36, %v2195_v52  ;;  %v5983_v13 = vmax.f32 %v5620_v25, %v5763_v58 }
 0x1e9   :  { %v3826_v45 = vpop.f32.mrb[119].mxu0  ;;  %v4065_v21 = vpop.f32.mrb[118].mxu1 }
 0x1ea   :  { %v2119_v37 = vadd.f32 %v3824_v7, %v5790_v55  ;;  %v3827_v12 = vadd.f32 %v3826_v45, %v3825_v19  ;;  %v2218_v26 = vpop.f32.mrb[119].mxu1 }
 0x1ec   :  { %v2200_v51 = vadd.f32 %v2199_v18, %v2119_v37  ;;  %v2122_v44 = vadd.f32 %v3827_v12, %v5792_v3 }
 0x1ee   :  { %v2203_v53 = vadd.f32 %v2202_v54, %v2122_v44  ;;  %v3828_v60 = vpop.f32.mrb[120].mxu0  ;;  %v5835_v50 = vmax.f32 %v1621_v47, %v2200_v51 }
 0x1ef   :  { %v3829_v63 = vpop.f32.mrb[121].mxu0 }
 0x1f0   :  { %v3830_v39 = vadd.f32 %v3829_v63, %v3828_v60  ;;  %v3831_v34 = vpop.f32.mrb[122].mxu0  ;;  %v5840_v36 = vmax.f32 %v1622_v16, %v2203_v53  ;;  %v5985_v53 = vmax.f32 %v5638_v43, %v5773_v20 }
 0x1f1   :  { %v3832_v55 = vpop.f32.mrb[123].mxu0 }
 0x1f2   :  { %v2127_v42 = vadd.f32 %v3830_v39, %v5794_v8  ;;  %v3833_v23 = vadd.f32 %v3832_v55, %v3831_v34  ;;  %v5986_v34 = vmax.f32 %v5642_v24, %v5778_v38 }
 0x1f4   :  { %v2208_v3 = vadd.f32 %v4060_v41, %v2127_v42  ;;  %v2130_v18 = vadd.f32 %v3833_v23, %v5796_v17 }
 0x1f6   :  { %v2211_v1 = vadd.f32 %v4061_v0, %v2130_v18  ;;  %v3834_v62 = vpop.f32.mrb[124].mxu0  ;;  %v5847_v14 = vmax.f32 %v1623_v5, %v2208_v3 }
 0x1f7   :  { %v3870_v22 = vpop.f32.mrb[120].mxu1  ;;  %v3835_v47 = vpop.f32.mrb[125].mxu0 }
 0x1f8   :  { %v3871_v48 = vpop.f32.mrb[121].mxu1  ;;  %v3836_v4 = vadd.f32 %v3835_v47, %v3834_v62  ;;  %v3837_v9 = vpop.f32.mrb[126].mxu0  ;;  %v5852_v16 = vmax.f32 %v1624_v59, %v2211_v1 }
 0x1f9   :  { %v3872_v8 = vadd.f32 %v3871_v48, %v3870_v22  ;;  %v3873_v41 = vpop.f32.mrb[122].mxu1  ;;  %v3838_v17 = vpop.f32.mrb[127].mxu0 }
 0x1fa   :  { %v2135_v0 = vadd.f32 %v3836_v4, %v5798_v27  ;;  %v3874_v54 = vpop.f32.mrb[123].mxu1  ;;  %v3839_v35 = vadd.f32 %v3838_v17, %v3837_v9  ;;  %v5984_v27 = vmax.f32 %v5622_v28, %v5768_v10 }
 0x1fb   :  { %v3875_v6 = vadd.f32 %v3874_v54, %v3873_v41 }
 0x1fc   :  { %v2216_v32 = vadd.f32 %v2215_v29, %v2135_v0  ;;  %v2138_v5 = vadd.f32 %v3839_v35, %v5800_v15 }
 0x1fe   :  { %v2219_v11 = vadd.f32 %v2218_v26, %v2138_v5  ;;  %v3840_v52 = vpop.f32.mrb[128].mxu0  ;;  %v5859_v49 = vmax.f32 %v5983_v13, %v2216_v32 }
 0x1ff   :  { %v3876_v31 = vpop.f32.mrb[124].mxu1  ;;  %v3841_v2 = vpop.f32.mrb[129].mxu0 }
 0x200   :  { %v3877_v59 = vpop.f32.mrb[125].mxu1  ;;  %v3842_v7 = vadd.f32 %v3841_v2, %v3840_v52  ;;  %v3843_v19 = vpop.f32.mrb[130].mxu0  ;;  %v5864_v45 = vmax.f32 %v5984_v27, %v2219_v11 }
 0x201   :  { %v3878_v29 = vadd.f32 %v3877_v59, %v3876_v31  ;;  %v3879_v37 = vpop.f32.mrb[126].mxu1  ;;  %v3844_v15 = vpop.f32.mrb[131].mxu0 }
 0x202   :  { %v2143_v12 = vadd.f32 %v3842_v7, %v5802_v56  ;;  %v3880_v26 = vpop.f32.mrb[127].mxu1  ;;  %v3845_v51 = vadd.f32 %v3844_v15, %v3843_v19 }
 0x203   :  { %v3881_v25 = vadd.f32 %v3880_v26, %v3879_v37 }
 0x204   :  { %v2224_v58 = vadd.f32 %v4064_v61, %v2143_v12  ;;  %v2146_v44 = vadd.f32 %v3845_v51, %v5804_v46 }
 0x206   :  { %v5871_v60 = vmax.f32 %v5985_v53, %v2224_v58  ;;  %v2227_v63 = vadd.f32 %v4065_v21, %v2146_v44  ;;  %v3922_v28 = vpop.f32.mrb[132].mxu0 }
 0x207   :  { %v3882_v10 = vpop.f32.mrb[128].mxu1  ;;  %v3923_v39 = vpop.f32.mrb[133].mxu0 }
 0x208   :  { %v5876_v55 = vmax.f32 %v5986_v34, %v2227_v63  ;;  %v3883_v56 = vpop.f32.mrb[129].mxu1  ;;  %v3924_v42 = vadd.f32 %v3923_v39, %v3922_v28  ;;  %v3925_v23 = vpop.f32.mrb[134].mxu0 }
 0x209   :  { %v3884_v61 = vadd.f32 %v3883_v56, %v3882_v10  ;;  %v3885_v3 = vpop.f32.mrb[130].mxu1  ;;  %v3926_v46 = vpop.f32.mrb[135].mxu0 }
 0x20a   :  { %v2635_v18 = vadd.f32 %v3924_v42, %v3872_v8  ;;  %v3886_v1 = vpop.f32.mrb[131].mxu1  ;;  %v3927_v43 = vadd.f32 %v3926_v46, %v3925_v23 }
 0x20b   :  { %v3887_v20 = vadd.f32 %v3886_v1, %v3885_v3 }
 0x20c   :  { %v2638_v62 = vadd.f32 %v3927_v43, %v3875_v6 }
 0x20e   :  { %v3928_v21 = vpop.f32.mrb[136].mxu0 }
 0x20f   :  { %v3888_v22 = vpop.f32.mrb[132].mxu1  ;;  %v3929_v47 = vpop.f32.mrb[137].mxu0 }
 0x210   :  { %v3889_v48 = vpop.f32.mrb[133].mxu1  ;;  %v3930_v4 = vadd.f32 %v3929_v47, %v3928_v21  ;;  %v3931_v9 = vpop.f32.mrb[138].mxu0 }
 0x211   :  { %v3890_v24 = vadd.f32 %v3889_v48, %v3888_v22  ;;  %v3891_v38 = vpop.f32.mrb[134].mxu1  ;;  %v3932_v41 = vpop.f32.mrb[139].mxu0 }
 0x212   :  { %v2643_v17 = vadd.f32 %v3930_v4, %v3878_v29  ;;  %v3892_v0 = vpop.f32.mrb[135].mxu1  ;;  %v3933_v54 = vadd.f32 %v3932_v41, %v3931_v9 }
 0x213   :  { %v3893_v35 = vadd.f32 %v3892_v0, %v3891_v38 }
 0x214   :  { %v2646_v32 = vadd.f32 %v3933_v54, %v3881_v25 }
 0x216   :  { %v3934_v5 = vpop.f32.mrb[140].mxu0 }
 0x217   :  { %v3894_v8 = vpop.f32.mrb[136].mxu1  ;;  %v3935_v11 = vpop.f32.mrb[141].mxu0 }
 0x218   :  { %v3895_v52 = vpop.f32.mrb[137].mxu1  ;;  %v3936_v13 = vadd.f32 %v3935_v11, %v3934_v5  ;;  %v3937_v6 = vpop.f32.mrb[142].mxu0 }
 0x219   :  { %v3896_v31 = vadd.f32 %v3895_v52, %v3894_v8  ;;  %v3897_v2 = vpop.f32.mrb[138].mxu1  ;;  %v3938_v59 = vpop.f32.mrb[143].mxu0 }
 0x21a   :  { %v5878_v7 = vadd.f32 %v3936_v13, %v3884_v61  ;;  %v3898_v19 = vpop.f32.mrb[139].mxu1  ;;  %v3939_v27 = vadd.f32 %v3938_v59, %v3937_v6 }
 0x21b   :  { %v3899_v37 = vadd.f32 %v3898_v19, %v3897_v2 }
 0x21c   :  { %v5880_v15 = vadd.f32 %v3939_v27, %v3887_v20 }
 0x21e   :  { %v3940_v29 = vpop.f32.mrb[144].mxu0 }
 0x21f   :  { %v3900_v12 = vpop.f32.mrb[140].mxu1  ;;  %v3941_v26 = vpop.f32.mrb[145].mxu0 }
 0x220   :  { %v3901_v51 = vpop.f32.mrb[141].mxu1  ;;  %v3942_v25 = vadd.f32 %v3941_v26, %v3940_v29  ;;  %v3943_v58 = vpop.f32.mrb[146].mxu0 }
 0x221   :  { %v3902_v44 = vadd.f32 %v3901_v51, %v3900_v12  ;;  %v3903_v53 = vpop.f32.mrb[142].mxu1  ;;  %v3944_v63 = vpop.f32.mrb[147].mxu0  ;;  %v5897_v51 = vld [vmem:[%s5981_s2] ss:$0 sm:$0xff] }
 0x222   :  { %v5882_v28 = vadd.f32 %v3942_v25, %v3890_v24  ;;  %v3904_v10 = vpop.f32.mrb[143].mxu1  ;;  %v3945_v39 = vadd.f32 %v3944_v63, %v3943_v58 }
 0x223   :  { %v3905_v34 = vadd.f32 %v3904_v10, %v3903_v53 }
 0x224   :  { %v5884_v56 = vadd.f32 %v3945_v39, %v3893_v35 }
 0x226   :  { %v3946_v42 = vpop.f32.mrb[148].mxu0 }
 0x227   :  { %v3974_v23 = vpop.f32.mrb[144].mxu1  ;;  %v3947_v61 = vpop.f32.mrb[149].mxu0 }
 0x228   :  { %v3975_v3 = vpop.f32.mrb[145].mxu1  ;;  %v3948_v46 = vadd.f32 %v3947_v61, %v3946_v42  ;;  %v3949_v1 = vpop.f32.mrb[150].mxu0 }
 0x229   :  { %v3976_v43 = vadd.f32 %v3975_v3, %v3974_v23  ;;  %v3977_v20 = vpop.f32.mrb[146].mxu1  ;;  %v3950_v21 = vpop.f32.mrb[151].mxu0 }
 0x22a   :  { %v5886_v22 = vadd.f32 %v3948_v46, %v3896_v31  ;;  %v3978_v47 = vpop.f32.mrb[147].mxu1  ;;  %v3951_v48 = vadd.f32 %v3950_v21, %v3949_v1 }
 0x22b   :  { %v3979_v4 = vadd.f32 %v3978_v47, %v3977_v20  ;;  %v2716_v9 = vadd.f32 %v3976_v43, %v2635_v18 }
 0x22c   :  { %v5888_v24 = vadd.f32 %v3951_v48, %v3899_v37 }
 0x22d   :  { %v2719_v38 = vadd.f32 %v3979_v4, %v2638_v62 }
 0x22e   :  { %v3952_v41 = vpop.f32.mrb[152].mxu0 }
 0x22f   :  { %v3980_v0 = vpop.f32.mrb[148].mxu1  ;;  %v3953_v54 = vpop.f32.mrb[153].mxu0 }
 0x230   :  { %v3981_v35 = vpop.f32.mrb[149].mxu1  ;;  %v3954_v5 = vadd.f32 %v3953_v54, %v3952_v41  ;;  %v3955_v8 = vpop.f32.mrb[154].mxu0 }
 0x231   :  { %v3982_v11 = vadd.f32 %v3981_v35, %v3980_v0  ;;  %v3983_v52 = vpop.f32.mrb[150].mxu1  ;;  %v3956_v13 = vpop.f32.mrb[155].mxu0 }
 0x232   :  { %v5890_v6 = vadd.f32 %v3954_v5, %v3902_v44  ;;  %v3984_v31 = vpop.f32.mrb[151].mxu1  ;;  %v3957_v2 = vadd.f32 %v3956_v13, %v3955_v8 }
 0x233   :  { %v3985_v59 = vadd.f32 %v3984_v31, %v3983_v52  ;;  %v2724_v19 = vadd.f32 %v3982_v11, %v2643_v17 }
 0x234   :  { %v5892_v27 = vadd.f32 %v3957_v2, %v3905_v34 }
 0x235   :  { %v2727_v18 = vadd.f32 %v3985_v59, %v2646_v32 }
 0x236   :  { %v4072_v37 = vpop.f32.mrb[156].mxu0 }
 0x237   :  { %v3986_v62 = vpop.f32.mrb[152].mxu1  ;;  %v2805_v29 = vadd.f32 %v4072_v37, %v2724_v19  ;;  %v2796_v12 = vpop.f32.mrb[157].mxu0 }
 0x238   :  { %v3987_v26 = vpop.f32.mrb[153].mxu1  ;;  %v2797_v25 = vadd.f32 %v2796_v12, %v2716_v9  ;;  %v4073_v58 = vpop.f32.mrb[158].mxu0 }
 0x239   :  { %v3988_v44 = vadd.f32 %v3987_v26, %v3986_v62  ;;  %v2845_v53 = vmax.f32 %v5823_v57, %v2805_v29  ;;  %v3989_v63 = vpop.f32.mrb[154].mxu1  ;;  %v2808_v17 = vadd.f32 %v4073_v58, %v2727_v18  ;;  %v2799_v10 = vpop.f32.mrb[159].mxu0 }
 0x23a   :  { %v2843_v32 = vmax.f32 %v5811_v33, %v2797_v25  ;;  %v3990_v39 = vpop.f32.mrb[155].mxu1  ;;  %v2800_v34 = vadd.f32 %v2799_v10, %v2719_v38 }
 0x23b   :  { %v2864_v42 = vadd.f32 %v5897_v51, %v2845_v53  ;;  %v3991_v23 = vadd.f32 %v3990_v39, %v3989_v63  ;;  %v2846_v61 = vmax.f32 %v5828_v40, %v2808_v17  ;;  %v2732_v3 = vadd.f32 %v3988_v44, %v5878_v7 }
 0x23c   :  { %v2862_v46 = vadd.f32 %v5897_v51, %v2843_v32  ;;  %v2844_v1 = vmax.f32 %v5816_v30, %v2800_v34 }
 0x23d   :  { %v2876_v43 = vmax.f32 %v2864_v42, 0.0  ;;  %v2865_v57 = vadd.f32 %v5897_v51, %v2846_v61  ;;  %v2735_v20 = vadd.f32 %v3991_v23, %v5880_v15 }
 0x23e   :  { %v2874_v33 = vmax.f32 %v2862_v46, 0.0  ;;  %v2863_v21 = vadd.f32 %v5897_v51, %v2844_v1  ;;  %v4076_v47 = vpop.f32.mrb[160].mxu0 }
 0x23f   :  { %v3352_v48 = vpack.c.bf16 %v2876_v43, %v2876_v43  ;;  %v2877_v4 = vmax.f32 %v2865_v57, 0.0  ;;  %v3992_v9 = vpop.f32.mrb[156].mxu1  ;;  %v2812_v40 = vpop.f32.mrb[161].mxu0 }
 0x240   :  { %v3350_v38 = vpack.c.bf16 %v2874_v33, %v2874_v33  ;;  %v2875_v7 = vmax.f32 %v2863_v21, 0.0  ;;  %v3993_v41 = vpop.f32.mrb[157].mxu1  ;;  %v2813_v0 = vadd.f32 %v2812_v40, %v2732_v3  ;;  %v4077_v54 = vpop.f32.mrb[162].mxu0 }
 0x241   :  { %2937 = vst.msk [vmem:[%s5982_s3 + $0x8] sm:$0xf] %vm2934_vm1, %v3352_v48  ;;  %v3353_v30 = vpack.c.bf16 %v2877_v4, %v2877_v4  ;;  %v3994_v15 = vadd.f32 %v3993_v41, %v3992_v9  ;;  %v3995_v35 = vpop.f32.mrb[158].mxu1  ;;  %v2815_v5 = vpop.f32.mrb[163].mxu0 }
 0x242   :  { %2935 = vst.msk [vmem:[%s5982_s3] sm:$0xf] %vm2934_vm1, %v3350_v38  ;;  %v3351_v8 = vpack.c.bf16 %v2875_v7, %v2875_v7  ;;  %v2847_v11 = vmax.f32 %v5835_v50, %v2813_v0  ;;  %v3996_v52 = vpop.f32.mrb[159].mxu1  ;;  %v2816_v13 = vadd.f32 %v2815_v5, %v2735_v20 }
 0x243   :  { %2938 = vst.msk [vmem:[%s5982_s3 + $0xc] sm:$0xf] %vm2934_vm1, %v3353_v30  ;;  %v2740_v31 = vadd.f32 %v3994_v15, %v5882_v28  ;;  %v3997_v2 = vadd.f32 %v3996_v52, %v3995_v35 }
 0x244   :  { %2936 = vst.msk [vmem:[%s5982_s3 + $0x4] sm:$0xf] %vm2934_vm1, %v3351_v8  ;;  %v2866_v59 = vadd.f32 %v5897_v51, %v2847_v11  ;;  %v2848_v19 = vmax.f32 %v5840_v36, %v2816_v13 }
 0x245   :  { %v2821_v50 = vadd.f32 %v4076_v47, %v2740_v31  ;;  %v2743_v18 = vadd.f32 %v3997_v2, %v5884_v56 }
 0x246   :  { %v2878_v37 = vmax.f32 %v2866_v59, 0.0  ;;  %v2867_v62 = vadd.f32 %v5897_v51, %v2848_v19  ;;  %v4080_v29 = vpop.f32.mrb[164].mxu0 }
 0x247   :  { %v2849_v12 = vmax.f32 %v5847_v14, %v2821_v50  ;;  %v2824_v28 = vadd.f32 %v4077_v54, %v2743_v18  ;;  %v3998_v26 = vpop.f32.mrb[160].mxu1  ;;  %v2828_v25 = vpop.f32.mrb[165].mxu0 }
 0x248   :  { %v3354_v58 = vpack.c.bf16 %v2878_v37, %v2878_v37  ;;  %v2879_v44 = vmax.f32 %v2867_v62, 0.0  ;;  %v3999_v53 = vpop.f32.mrb[161].mxu1  ;;  %v4081_v63 = vpop.f32.mrb[166].mxu0 }
 0x249   :  { %v2868_v17 = vadd.f32 %v5897_v51, %v2849_v12  ;;  %v2850_v36 = vmax.f32 %v5852_v16, %v2824_v28  ;;  %v4000_v10 = vadd.f32 %v3999_v53, %v3998_v26  ;;  %v4001_v32 = vpop.f32.mrb[162].mxu1  ;;  %v2831_v56 = vpop.f32.mrb[167].mxu0 }
 0x24a   :  { %2939 = vst.msk [vmem:[%s5982_s3 + $0x10] sm:$0xf] %vm2934_vm1, %v3354_v58  ;;  %v3355_v14 = vpack.c.bf16 %v2879_v44, %v2879_v44  ;;  %v4002_v39 = vpop.f32.mrb[163].mxu1 }
 0x24b   :  { %v2880_v34 = vmax.f32 %v2868_v17, 0.0  ;;  %v2869_v42 = vadd.f32 %v5897_v51, %v2850_v36  ;;  %v4003_v23 = vadd.f32 %v4002_v39, %v4001_v32  ;;  %v2748_v61 = vadd.f32 %v4000_v10, %v5886_v22 }
 0x24c   :  { %2940 = vst.msk [vmem:[%s5982_s3 + $0x14] sm:$0xf] %vm2934_vm1, %v3355_v14 }
 0x24d   :  { %v3356_v16 = vpack.c.bf16 %v2880_v34, %v2880_v34  ;;  %v2881_v3 = vmax.f32 %v2869_v42, 0.0  ;;  %v2829_v46 = vadd.f32 %v2828_v25, %v2748_v61  ;;  %v2751_v1 = vadd.f32 %v4003_v23, %v5888_v24 }
 0x24f   :  { %2941 = vst.msk [vmem:[%s5982_s3 + $0x18] sm:$0xf] %vm2934_vm1, %v3356_v16  ;;  %v3357_v43 = vpack.c.bf16 %v2881_v3, %v2881_v3  ;;  %v2851_v57 = vmax.f32 %v5859_v49, %v2829_v46  ;;  %v2832_v20 = vadd.f32 %v2831_v56, %v2751_v1  ;;  %v4004_v22 = vpop.f32.mrb[164].mxu1 }
 0x250   :  { %v4005_v33 = vpop.f32.mrb[165].mxu1 }
 0x251   :  { %2942 = vst.msk [vmem:[%s5982_s3 + $0x1c] sm:$0xf] %vm2934_vm1, %v3357_v43  ;;  %v2870_v21 = vadd.f32 %v5897_v51, %v2851_v57  ;;  %v2852_v24 = vmax.f32 %v5864_v45, %v2832_v20  ;;  %v4006_v47 = vadd.f32 %v4005_v33, %v4004_v22  ;;  %v4007_v48 = vpop.f32.mrb[166].mxu1 }
 0x252   :  { %v4008_v4 = vpop.f32.mrb[167].mxu1 }
 0x253   :  { %v2882_v9 = vmax.f32 %v2870_v21, 0.0  ;;  %v2871_v40 = vadd.f32 %v5897_v51, %v2852_v24  ;;  %v2756_v49 = vadd.f32 %v4006_v47, %v5890_v6  ;;  %v4009_v38 = vadd.f32 %v4008_v4, %v4007_v48 }
 0x255   :  { %v3358_v7 = vpack.c.bf16 %v2882_v9, %v2882_v9  ;;  %v2883_v41 = vmax.f32 %v2871_v40, 0.0  ;;  %v2837_v0 = vadd.f32 %v4080_v29, %v2756_v49  ;;  %v2759_v54 = vadd.f32 %v4009_v38, %v5892_v27 }
 0x257   :  { %2943 = vst.msk [vmem:[%s5982_s3 + $0x20] sm:$0xf] %vm2934_vm1, %v3358_v7  ;;  %v3359_v45 = vpack.c.bf16 %v2883_v41, %v2883_v41  ;;  %v2853_v30 = vmax.f32 %v5871_v60, %v2837_v0  ;;  %v2840_v15 = vadd.f32 %v4081_v63, %v2759_v54 }
 0x259   :  { %2944 = vst.msk [vmem:[%s5982_s3 + $0x24] sm:$0xf] %vm2934_vm1, %v3359_v45  ;;  %v2872_v6 = vadd.f32 %v5897_v51, %v2853_v30  ;;  %v2854_v35 = vmax.f32 %v5876_v55, %v2840_v15 }
 0x25b   :  { %v2884_v5 = vmax.f32 %v2872_v6, 0.0  ;;  %v2873_v27 = vadd.f32 %v5897_v51, %v2854_v35 }
 0x25d   :  { %v3360_v8 = vpack.c.bf16 %v2884_v5, %v2884_v5  ;;  %v2885_v11 = vmax.f32 %v2873_v27, 0.0 }
 0x25f   :  { %2945 = vst.msk [vmem:[%s5982_s3 + $0x28] sm:$0xf] %vm2934_vm1, %v3360_v8  ;;  %v3361_v60 = vpack.c.bf16 %v2885_v11, %v2885_v11 }
 0x261   :  { %2946 = vst.msk [vmem:[%s5982_s3 + $0x2c] sm:$0xf] %vm2934_vm1, %v3361_v60 }

// kernel: asr_forward.7
= control target key start
LH: loop header
LB: loop body
LE: loop exit
PB: predicated region body
PF: predicated region fallthrough
CT: control target
= control target key end

     0   :  { %vm354_vm0 = vcmask 523264   ;;  %s2138_s1 = inlined_call_operand.vmem [shape: bf16[576,128], index: 1, kind: input, shape index: {}]   ;;  %s2139_s0 = inlined_call_operand.vmem [shape: bf16[4,24,576], index: 0, kind: input, shape index: {}]   ;;  %s2140_s2 = inlined_call_operand.vmem [shape: f32[1,128], index: 2, kind: input, shape index: {}]   ;;  %s2141_s3 = inlined_call_operand.vmem [shape: bf16[24,128], index: 3, kind: output, shape index: {}]  }
   0x1   :  { %v1679_v0 = vld [vmem:[%s2138_s1 + $0x40] sm:$0xff]   ;;  %v1702_v4 = vld [vmem:[%s2138_s1 + $0x48] sm:$0xff]   ;;  %v1726_v8 = vld [vmem:[%s2138_s1 + $0x50] sm:$0xff]  }
   0x2   :  { %v1684_v1 = vld [vmem:[%s2138_s1 + $0xc0] sm:$0xff]   ;;  %1276 = vmatprep.subr.bf16.mxu0 %v1679_v0  ;;  %v1708_v5 = vld [vmem:[%s2138_s1 + $0xc8] sm:$0xff]   ;;  %v1732_v9 = vld [vmem:[%s2138_s1 + $0xd0] sm:$0xff]  }
   0x3   :  { %v1690_v2 = vld [vmem:[%s2138_s1] sm:$0xff]   ;;  %1304 = vmatprep.subr.bf16.mxu1 %v1684_v1  ;;  %v1714_v6 = vld [vmem:[%s2138_s1 + $0x8] sm:$0xff]   ;;  %v1738_v10 = vld [vmem:[%s2138_s1 + $0x10] sm:$0xff]  }
   0x4   :  { %v1696_v3 = vld [vmem:[%s2138_s1 + $0x80] sm:$0xff]   ;;  %1277 = vmatpush3.bf16.msra.mxu0 %v1690_v2  ;;  %v1720_v7 = vld [vmem:[%s2138_s1 + $0x88] sm:$0xff]   ;;  %v1744_v11 = vld [vmem:[%s2138_s1 + $0x90] sm:$0xff]  }
   0x5   :  { %1305 = vmatpush3.bf16.msra.mxu1 %v1696_v3  ;;  %1278 = vmatprep.subr.bf16.mxu0 %v1702_v4  ;;  %v1750_v12 = vld [vmem:[%s2138_s1 + $0x58] sm:$0xff]   ;;  %v1774_v16 = vld [vmem:[%s2138_s1 + $0x60] sm:$0xff]   ;;  %v1798_v20 = vld [vmem:[%s2138_s1 + $0x68] sm:$0xff]  }
   0x6   :  { %1306 = vmatprep.subr.bf16.mxu1 %v1708_v5  ;;  %v1756_v13 = vld [vmem:[%s2138_s1 + $0xd8] sm:$0xff]   ;;  %v1780_v17 = vld [vmem:[%s2138_s1 + $0xe0] sm:$0xff]   ;;  %v1804_v21 = vld [vmem:[%s2138_s1 + $0xe8] sm:$0xff]  }
   0x7   :  { %v1762_v14 = vld [vmem:[%s2138_s1 + $0x18] sm:$0xff]   ;;  %v1786_v18 = vld [vmem:[%s2138_s1 + $0x20] sm:$0xff]   ;;  %v1810_v22 = vld [vmem:[%s2138_s1 + $0x28] sm:$0xff]  }
   0x8   :  { %1279 = vmatpush3.bf16.msra.mxu0 %v1714_v6  ;;  %v1768_v15 = vld [vmem:[%s2138_s1 + $0x98] sm:$0xff]   ;;  %v1792_v19 = vld [vmem:[%s2138_s1 + $0xa0] sm:$0xff]   ;;  %v1816_v23 = vld [vmem:[%s2138_s1 + $0xa8] sm:$0xff]  }
   0x9   :  { %1307 = vmatpush3.bf16.msra.mxu1 %v1720_v7  ;;  %1280 = vmatprep.subr.bf16.mxu0 %v1726_v8  ;;  %v1822_v24 = vld [vmem:[%s2138_s1 + $0x70] sm:$0xff]   ;;  %v1846_v28 = vld [vmem:[%s2138_s1 + $0x78] sm:$0xff]   ;;  %v1609_v35 = vld [vmem:[%s2139_s0 + $0xc] ss:$20 sps:$4 sm:$0xff]  }
   0xa   :  { %1308 = vmatprep.subr.bf16.mxu1 %v1732_v9  ;;  %v1828_v25 = vld [vmem:[%s2138_s1 + $0xf0] sm:$0xff]   ;;  %v1852_v29 = vld [vmem:[%s2138_s1 + $0xf8] sm:$0xff]   ;;  %v1884_v36 = vld [vmem:[%s2138_s1 + $0x100] sm:$0xff]   ;;  %441 = vmatprep.mubr.bf16.mxu1 %v1609_v35 }
   0xb   :  { %v1834_v26 = vld [vmem:[%s2138_s1 + $0x30] sm:$0xff]   ;;  %v1858_v30 = vld [vmem:[%s2138_s1 + $0x38] sm:$0xff]   ;;  %v1889_v37 = vld [vmem:[%s2138_s1 + $0x108] sm:$0xff]  }
   0xc   :  { %1281 = vmatpush3.bf16.msra.mxu0 %v1738_v10  ;;  %v1840_v27 = vld [vmem:[%s2138_s1 + $0xb0] sm:$0xff]   ;;  %v1864_v31 = vld [vmem:[%s2138_s1 + $0xb8] sm:$0xff]   ;;  %v93_v38 = vld [vmem:[%s2139_s0 + $0x28] sm:$0xff] }
   0xd   :  { %1309 = vmatpush3.bf16.msra.mxu1 %v1744_v11  ;;  %1282 = vmatprep.subr.bf16.mxu0 %v1750_v12  ;;  %v1604_v32 = vld [vmem:[%s2139_s0] ss:$20 sps:$4 sm:$0xff]   ;;  %v1606_v33 = vld [vmem:[%s2139_s0 + $0x4] ss:$20 sps:$4 sm:$0xff]   ;;  %v1607_v34 = vld [vmem:[%s2139_s0 + $0x8] ss:$20 sps:$4 sm:$0xff]   ;;  %v1159_v39 = vcombine.high %v93_v38, %v93_v38  ;;  %v1158_v43 = vcombine.low %v93_v38, %v93_v38 }
   0xe   :  { %1310 = vmatprep.subr.bf16.mxu1 %v1756_v13  ;;  %393 = vmatprep.mubr.bf16.mxu0 %v1606_v33  ;;  %v94_v40 = vld [vmem:[%s2139_s0 + $0x30] sm:$0xff]  ;;  %v1917_v46 = vld [vmem:[%s2138_s1 + $0x118] sm:$0xff]   ;;  %v1207_v51 = vld [vmem:[%s2139_s0 + $0x64] sm:$0xff] }
   0xf   :  { %v1161_v41 = vcombine.high %v94_v40, %v94_v40  ;;  %v1905_v42 = vld [vmem:[%s2138_s1 + $0x110] sm:$0xff]   ;;  %v1160_v44 = vcombine.low %v94_v40, %v94_v40  ;;  %v1619_v48 = vld [vmem:[%s2139_s0 + $0x38] ss:$0 sps:$4 sm:$0xff]   ;;  %v1627_v49 = vld [vmem:[%s2139_s0 + $0x48] ss:$20 sps:$4 sm:$0xff]   ;;  %v1216_v52 = vcombine.high %v1207_v51, %v1207_v51  ;;  %v1215_v53 = vcombine.low %v1207_v51, %v1207_v51 }
  0x10   :  { %1283 = vmatpush3.bf16.msra.mxu0 %v1762_v14  ;;  %v1618_v45 = vld [vmem:[%s2139_s0 + $0x10] ss:$20 sps:$4 sm:$0xff]   ;;  %v1622_v47 = vld [vmem:[%s2139_s0 + $0x40] ss:$20 sps:$4 sm:$0xff]   ;;  %v1632_v63 = vld [vmem:[%s2139_s0 + $0x78] ss:$20 sps:$4 sm:$0xff]  }
  0x11   :  { %1311 = vmatpush3.bf16.msra.mxu1 %v1768_v15  ;;  %1284 = vmatprep.subr.bf16.mxu0 %v1774_v16  ;;  %v1620_v50 = vld [vmem:[%s2139_s0 + $0x3c] ss:$20 sps:$4 sm:$0xff]   ;;  %v1628_v54 = vld [vmem:[%s2139_s0 + $0x4c] ss:$20 sps:$4 sm:$0xff]   ;;  %v1625_v55 = vld [vmem:[%s2139_s0 + $0x44] ss:$20 sps:$4 sm:$0xff]  }
  0x12   :  { %1312 = vmatprep.subr.bf16.mxu1 %v1780_v17  ;;  %v1629_v56 = vld [vmem:[%s2139_s0 + $0x74] ss:$0 sps:$4 sm:$0xff]   ;;  %v1208_v57 = vld [vmem:[%s2139_s0 + $0x6c] sm:$0xff]  ;;  %v1637_v59 = vld [vmem:[%s2139_s0 + $0x84] ss:$20 sps:$4 sm:$0xff]  }
  0x13   :  { %v1218_v58 = vcombine.high %v1208_v57, %v1208_v57  ;;  %v1217_v60 = vcombine.low %v1208_v57, %v1208_v57  ;;  %v1634_v61 = vld [vmem:[%s2139_s0 + $0x7c] ss:$20 sps:$4 sm:$0xff]   ;;  %v1228_v62 = vld [vmem:[%s2139_s0 + $0xa0] sm:$0xff]  ;;  %v1229_v33 = vld [vmem:[%s2139_s0 + $0xa8] sm:$0xff] }
  0x14   :  { %1285 = vmatpush3.bf16.msra.mxu0 %v1786_v18  ;;  %v1239_v35 = vcombine.high %v1229_v33, %v1229_v33  ;;  %v1236_v38 = vcombine.low %v1228_v62, %v1228_v62 }
  0x15   :  { %1313 = vmatpush3.bf16.msra.mxu1 %v1792_v19  ;;  %1286 = vmatprep.subr.bf16.mxu0 %v1798_v20 }
  0x16   :  { %1314 = vmatprep.subr.bf16.mxu1 %v1804_v21 }
  0x18   :  { %1287 = vmatpush3.bf16.msra.mxu0 %v1810_v22 }
  0x19   :  { %1315 = vmatpush3.bf16.msra.mxu1 %v1816_v23  ;;  %1288 = vmatprep.subr.bf16.mxu0 %v1822_v24 }
  0x1a   :  { %1316 = vmatprep.subr.bf16.mxu1 %v1828_v25 }
  0x1c   :  { %1289 = vmatpush3.bf16.msra.mxu0 %v1834_v26 }
  0x1d   :  { %1317 = vmatpush3.bf16.msra.mxu1 %v1840_v27  ;;  %1290 = vmatprep.subr.bf16.mxu0 %v1846_v28 }
  0x1e   :  { %1318 = vmatprep.subr.bf16.mxu1 %v1852_v29 }
  0x20   :  { %1291 = vmatpush3.bf16.msra.mxu0 %v1858_v30 }
  0x21   :  { %1319 = vmatpush3.bf16.msra.mxu1 %v1864_v31  ;;  %1524 = vmatprep.subr.bf16.mxu0 %v1884_v36 }
  0x22   :  { %1338 = vmatprep.subr.bf16.mxu1 %v1679_v0 }
  0x23   :  { %394 = vmatmul.mubr.bf16.vlgmr.msra.gmra.mrb[0].mxu0 %v1604_v32  ;;  %v1635_v32 = vld [vmem:[%s2139_s0 + $0x80] ss:$20 sps:$4 sm:$0xff]  }
  0x24   :  { %442 = vmatmul.mubr.bf16.vlgmr.msra.gmra.mrb[0].mxu1 %v1607_v34  ;;  %1525 = vmatpush3.bf16.msra.mxu0 %v1884_v36  ;;  %v1237_v34 = vcombine.high %v1228_v62, %v1228_v62 }
  0x25   :  { %1339 = vmatpush3.bf16.msra.mxu1 %v1690_v2  ;;  %1526 = vmatprep.subr.bf16.mxu0 %v1889_v37 }
  0x26   :  { %1340 = vmatprep.subr.bf16.mxu1 %v1702_v4  ;;  %401 = vmatprep.mubr.bf16.mxu0 %v1159_v39  ;;  %v1238_v39 = vcombine.low %v1229_v33, %v1229_v33 }
  0x27   :  { %449 = vmatprep.mubr.bf16.mxu1 %v1161_v41 }
  0x28   :  { %1527 = vmatpush3.bf16.msra.mxu0 %v1889_v37 }
  0x29   :  { %1341 = vmatpush3.bf16.msra.mxu1 %v1714_v6  ;;  %1528 = vmatprep.subr.bf16.mxu0 %v1905_v42 }
  0x2a   :  { %1342 = vmatprep.subr.bf16.mxu1 %v1726_v8 }
  0x2b   :  { %402 = vmatmul.mubr.bf16.gmra.mrb[4].mxu0 %v1158_v43 }
  0x2c   :  { %450 = vmatmul.mubr.bf16.gmra.mrb[4].mxu1 %v1160_v44  ;;  %1532 = vmatprep.mubr.msk.bf16.mxu0 %vm354_vm0, %v1618_v45 }
  0x2d   :  { %1529 = vmatpush3.bf16.msra.mxu0 %v1905_v42  ;;  %1343 = vmatpush3.bf16.msra.mxu1 %v1738_v10 }
  0x2e   :  { %1530 = vmatprep.subr.bf16.mxu0 %v1917_v46  ;;  %1344 = vmatprep.subr.bf16.mxu1 %v1750_v12 }
  0x2f   :  { %595 = vmatprep.mubr.bf16.mxu1 %v1622_v47 }
  0x31   :  { %1531 = vmatpush3.bf16.msra.mxu0 %v1917_v46  ;;  %1345 = vmatpush3.bf16.msra.mxu1 %v1762_v14 }
  0x32   :  { %1346 = vmatprep.subr.bf16.mxu1 %v1774_v16  ;;  %1366 = vmatprep.subr.bf16.mxu0 %v1684_v1 }
  0x34   :  { %1533 = vmatmul.mubr.msk.bf16.vlgmr.msra.gmra.mrb[8].mxu0 %vm354_vm0, %v1619_v48 }
  0x35   :  { %1347 = vmatpush3.bf16.msra.mxu1 %v1786_v18  ;;  %1367 = vmatpush3.bf16.msra.mxu0 %v1696_v3 }
  0x36   :  { %1348 = vmatprep.subr.bf16.mxu1 %v1798_v20  ;;  %1368 = vmatprep.subr.bf16.mxu0 %v1708_v5 }
  0x37   :  { %643 = vmatprep.mubr.bf16.mxu0 %v1627_v49 }
  0x39   :  { %1349 = vmatpush3.bf16.msra.mxu1 %v1810_v22  ;;  %1369 = vmatpush3.bf16.msra.mxu0 %v1720_v7 }
  0x3a   :  { %1350 = vmatprep.subr.bf16.mxu1 %v1822_v24  ;;  %1370 = vmatprep.subr.bf16.mxu0 %v1732_v9 }
  0x3d   :  { %1351 = vmatpush3.bf16.msra.mxu1 %v1834_v26  ;;  %1371 = vmatpush3.bf16.msra.mxu0 %v1744_v11 }
  0x3e   :  { %1352 = vmatprep.subr.bf16.mxu1 %v1846_v28  ;;  %1372 = vmatprep.subr.bf16.mxu0 %v1756_v13 }
  0x41   :  { %1353 = vmatpush3.bf16.msra.mxu1 %v1858_v30  ;;  %1373 = vmatpush3.bf16.msra.mxu0 %v1768_v15 }
  0x42   :  { %1374 = vmatprep.subr.bf16.mxu0 %v1780_v17  ;;  %1536 = vmatprep.subr.bf16.mxu1 %v1884_v36 }
  0x44   :  { %596 = vmatmul.mubr.bf16.vlgmr.msra.gmra.mrb[8].mxu1 %v1620_v50 }
  0x45   :  { %1375 = vmatpush3.bf16.msra.mxu0 %v1792_v19  ;;  %1537 = vmatpush3.bf16.msra.mxu1 %v1884_v36 }
  0x46   :  { %1376 = vmatprep.subr.bf16.mxu0 %v1804_v21  ;;  %1538 = vmatprep.subr.bf16.mxu1 %v1889_v37 }
  0x47   :  { %603 = vmatprep.mubr.bf16.mxu1 %v1216_v52 }
  0x49   :  { %1377 = vmatpush3.bf16.msra.mxu0 %v1816_v23  ;;  %1539 = vmatpush3.bf16.msra.mxu1 %v1889_v37 }
  0x4a   :  { %1378 = vmatprep.subr.bf16.mxu0 %v1828_v25  ;;  %1540 = vmatprep.subr.bf16.mxu1 %v1905_v42 }
  0x4c   :  { %604 = vmatmul.mubr.bf16.gmra.mrb[12].mxu1 %v1215_v53 }
  0x4d   :  { %1379 = vmatpush3.bf16.msra.mxu0 %v1840_v27  ;;  %1541 = vmatpush3.bf16.msra.mxu1 %v1905_v42 }
  0x4e   :  { %1380 = vmatprep.subr.bf16.mxu0 %v1852_v29  ;;  %1542 = vmatprep.subr.bf16.mxu1 %v1917_v46 }
  0x4f   :  { %1544 = vmatprep.mubr.msk.bf16.mxu1 %vm354_vm0, %v1628_v54 }
  0x51   :  { %1381 = vmatpush3.bf16.msra.mxu0 %v1864_v31  ;;  %1543 = vmatpush3.bf16.msra.mxu1 %v1917_v46 }
  0x52   :  { %1400 = vmatprep.subr.bf16.mxu0 %v1679_v0  ;;  %1428 = vmatprep.subr.bf16.mxu1 %v1684_v1 }
  0x54   :  { %644 = vmatmul.mubr.bf16.vlgmr.msra.gmra.mrb[12].mxu0 %v1625_v55  ;;  %1545 = vmatmul.mubr.msk.bf16.vlgmr.msra.gmra.mrb[16].mxu1 %vm354_vm0, %v1629_v56 }
  0x55   :  { %1401 = vmatpush3.bf16.msra.mxu0 %v1690_v2  ;;  %1429 = vmatpush3.bf16.msra.mxu1 %v1696_v3 }
  0x56   :  { %1402 = vmatprep.subr.bf16.mxu0 %v1702_v4  ;;  %1430 = vmatprep.subr.bf16.mxu1 %v1708_v5 }
  0x57   :  { %651 = vmatprep.mubr.bf16.mxu0 %v1218_v58  ;;  %848 = vmatprep.mubr.bf16.mxu1 %v1637_v59 }
  0x59   :  { %1403 = vmatpush3.bf16.msra.mxu0 %v1714_v6  ;;  %1431 = vmatpush3.bf16.msra.mxu1 %v1720_v7 }
  0x5a   :  { %1404 = vmatprep.subr.bf16.mxu0 %v1726_v8  ;;  %1432 = vmatprep.subr.bf16.mxu1 %v1732_v9 }
  0x5c   :  { %652 = vmatmul.mubr.bf16.gmra.mrb[16].mxu0 %v1217_v60 }
  0x5d   :  { %1405 = vmatpush3.bf16.msra.mxu0 %v1738_v10  ;;  %1433 = vmatpush3.bf16.msra.mxu1 %v1744_v11 }
  0x5e   :  { %1406 = vmatprep.subr.bf16.mxu0 %v1750_v12  ;;  %1434 = vmatprep.subr.bf16.mxu1 %v1756_v13 }
  0x5f   :  { %800 = vmatprep.mubr.bf16.mxu0 %v1634_v61 }
  0x61   :  { %1407 = vmatpush3.bf16.msra.mxu0 %v1762_v14  ;;  %1435 = vmatpush3.bf16.msra.mxu1 %v1768_v15 }
  0x62   :  { %1408 = vmatprep.subr.bf16.mxu0 %v1774_v16  ;;  %1436 = vmatprep.subr.bf16.mxu1 %v1780_v17 }
  0x65   :  { %1409 = vmatpush3.bf16.msra.mxu0 %v1786_v18  ;;  %1437 = vmatpush3.bf16.msra.mxu1 %v1792_v19 }
  0x66   :  { %1410 = vmatprep.subr.bf16.mxu0 %v1798_v20  ;;  %1438 = vmatprep.subr.bf16.mxu1 %v1804_v21 }
  0x69   :  { %1411 = vmatpush3.bf16.msra.mxu0 %v1810_v22  ;;  %1439 = vmatpush3.bf16.msra.mxu1 %v1816_v23 }
  0x6a   :  { %1412 = vmatprep.subr.bf16.mxu0 %v1822_v24  ;;  %1440 = vmatprep.subr.bf16.mxu1 %v1828_v25 }
  0x6d   :  { %1413 = vmatpush3.bf16.msra.mxu0 %v1834_v26  ;;  %1441 = vmatpush3.bf16.msra.mxu1 %v1840_v27 }
  0x6e   :  { %1414 = vmatprep.subr.bf16.mxu0 %v1846_v28  ;;  %1442 = vmatprep.subr.bf16.mxu1 %v1852_v29 }
  0x71   :  { %1415 = vmatpush3.bf16.msra.mxu0 %v1858_v30  ;;  %1443 = vmatpush3.bf16.msra.mxu1 %v1864_v31 }
  0x72   :  { %1548 = vmatprep.subr.bf16.mxu0 %v1884_v36  ;;  %1462 = vmatprep.subr.bf16.mxu1 %v1679_v0  ;;  %v1642_v0 = vld [vmem:[%s2139_s0 + $0x88] ss:$20 sps:$4 sm:$0xff]  }
  0x74   :  { %801 = vmatmul.mubr.bf16.vlgmr.msra.gmra.mrb[20].mxu0 %v1632_v63  ;;  %849 = vmatmul.mubr.bf16.vlgmr.msra.gmra.mrb[20].mxu1 %v1635_v32 }
  0x75   :  { %1549 = vmatpush3.bf16.msra.mxu0 %v1884_v36  ;;  %1463 = vmatpush3.bf16.msra.mxu1 %v1690_v2  ;;  %v1646_v2 = vld [vmem:[%s2139_s0 + $0xb8] ss:$20 sps:$4 sm:$0xff]  }
  0x76   :  { %1550 = vmatprep.subr.bf16.mxu0 %v1889_v37  ;;  %808 = vmatprep.mubr.bf16.mxu0 %v1237_v34 }
  0x77   :  { %856 = vmatprep.mubr.bf16.mxu1 %v1239_v35  ;;  %1464 = vmatprep.subr.bf16.mxu1 %v1702_v4  ;;  %v1643_v4 = vld [vmem:[%s2139_s0 + $0xb0] ss:$0 sps:$4 sm:$0xff]  }
  0x79   :  { %1551 = vmatpush3.bf16.msra.mxu0 %v1889_v37  ;;  %1465 = vmatpush3.bf16.msra.mxu1 %v1714_v6  ;;  %v1651_v6 = vld [vmem:[%s2139_s0 + $0xc0] ss:$20 sps:$4 sm:$0xff]  }
  0x7a   :  { %1552 = vmatprep.subr.bf16.mxu0 %v1905_v42  ;;  %1466 = vmatprep.subr.bf16.mxu1 %v1726_v8  ;;  %v1652_v8 = vld [vmem:[%s2139_s0 + $0xc4] ss:$20 sps:$4 sm:$0xff]  }
  0x7c   :  { %809 = vmatmul.mubr.bf16.gmra.mrb[24].mxu0 %v1236_v38  ;;  %857 = vmatmul.mubr.bf16.gmra.mrb[24].mxu1 %v1238_v39 }
  0x7d   :  { %1553 = vmatpush3.bf16.msra.mxu0 %v1905_v42  ;;  %1467 = vmatpush3.bf16.msra.mxu1 %v1738_v10  ;;  %v1649_v10 = vld [vmem:[%s2139_s0 + $0xbc] ss:$20 sps:$4 sm:$0xff]  }
  0x7e   :  { %1554 = vmatprep.subr.bf16.mxu0 %v1917_v46  ;;  %1556 = vmatprep.mubr.msk.bf16.mxu0 %vm354_vm0, %v1642_v0 }
  0x7f   :  { %1468 = vmatprep.subr.bf16.mxu1 %v1750_v12  ;;  %1005 = vmatprep.mubr.bf16.mxu1 %v1646_v2 }
  0x81   :  { %1555 = vmatpush3.bf16.msra.mxu0 %v1917_v46  ;;  %1469 = vmatpush3.bf16.msra.mxu1 %v1762_v14 }
  0x82   :  { %1490 = vmatprep.subr.bf16.mxu0 %v1684_v1  ;;  %1470 = vmatprep.subr.bf16.mxu1 %v1774_v16  ;;  %v1644_v1 = vld [vmem:[%s2139_s0 + $0xb4] ss:$20 sps:$4 sm:$0xff]  }
  0x84   :  { %1557 = vmatmul.mubr.msk.bf16.vlgmr.msra.gmra.mrb[28].mxu0 %vm354_vm0, %v1643_v4 }
  0x85   :  { %1491 = vmatpush3.bf16.msra.mxu0 %v1696_v3  ;;  %1471 = vmatpush3.bf16.msra.mxu1 %v1786_v18  ;;  %v1249_v3 = vld [vmem:[%s2139_s0 + $0xdc] sm:$0xff] }
  0x86   :  { %1492 = vmatprep.subr.bf16.mxu0 %v1708_v5  ;;  %1472 = vmatprep.subr.bf16.mxu1 %v1798_v20  ;;  %v1258_v5 = vcombine.high %v1249_v3, %v1249_v3 }
  0x87   :  { %1053 = vmatprep.mubr.bf16.mxu0 %v1651_v6 }
  0x89   :  { %1493 = vmatpush3.bf16.msra.mxu0 %v1720_v7  ;;  %1473 = vmatpush3.bf16.msra.mxu1 %v1810_v22  ;;  %v1257_v7 = vcombine.low %v1249_v3, %v1249_v3 }
  0x8a   :  { %1494 = vmatprep.subr.bf16.mxu0 %v1732_v9  ;;  %1474 = vmatprep.subr.bf16.mxu1 %v1822_v24  ;;  %v1250_v9 = vld [vmem:[%s2139_s0 + $0xe4] sm:$0xff] }
  0x8b   :  { %v1260_v12 = vcombine.high %v1250_v9, %v1250_v9 }
  0x8d   :  { %1495 = vmatpush3.bf16.msra.mxu0 %v1744_v11  ;;  %1475 = vmatpush3.bf16.msra.mxu1 %v1834_v26  ;;  %v1653_v11 = vld [vmem:[%s2139_s0 + $0xec] ss:$0 sps:$4 sm:$0xff]  }
  0x8e   :  { %1496 = vmatprep.subr.bf16.mxu0 %v1756_v13  ;;  %1476 = vmatprep.subr.bf16.mxu1 %v1846_v28  ;;  %v1259_v13 = vcombine.low %v1250_v9, %v1250_v9 }
  0x91   :  { %1497 = vmatpush3.bf16.msra.mxu0 %v1768_v15  ;;  %1477 = vmatpush3.bf16.msra.mxu1 %v1858_v30 }
  0x92   :  { %1498 = vmatprep.subr.bf16.mxu0 %v1780_v17  ;;  %1560 = vmatprep.subr.bf16.mxu1 %v1884_v36 }
  0x94   :  { %1006 = vmatmul.mubr.bf16.vlgmr.msra.gmra.mrb[28].mxu1 %v1644_v1 }
  0x95   :  { %1499 = vmatpush3.bf16.msra.mxu0 %v1792_v19  ;;  %1561 = vmatpush3.bf16.msra.mxu1 %v1884_v36 }
  0x96   :  { %1500 = vmatprep.subr.bf16.mxu0 %v1804_v21  ;;  %1562 = vmatprep.subr.bf16.mxu1 %v1889_v37 }
  0x97   :  { %1013 = vmatprep.mubr.bf16.mxu1 %v1258_v5 }
  0x99   :  { %1501 = vmatpush3.bf16.msra.mxu0 %v1816_v23  ;;  %1563 = vmatpush3.bf16.msra.mxu1 %v1889_v37 }
  0x9a   :  { %1502 = vmatprep.subr.bf16.mxu0 %v1828_v25  ;;  %1564 = vmatprep.subr.bf16.mxu1 %v1905_v42 }
  0x9c   :  { %1014 = vmatmul.mubr.bf16.gmra.mrb[32].mxu1 %v1257_v7 }
  0x9d   :  { %1503 = vmatpush3.bf16.msra.mxu0 %v1840_v27  ;;  %1565 = vmatpush3.bf16.msra.mxu1 %v1905_v42 }
  0x9e   :  { %1504 = vmatprep.subr.bf16.mxu0 %v1852_v29  ;;  %1566 = vmatprep.subr.bf16.mxu1 %v1917_v46 }
  0x9f   :  { %1568 = vmatprep.mubr.msk.bf16.mxu1 %vm354_vm0, %v1652_v8 }
  0xa1   :  { %1505 = vmatpush3.bf16.msra.mxu0 %v1864_v31  ;;  %1567 = vmatpush3.bf16.msra.mxu1 %v1917_v46 }
  0xa4   :  { %1054 = vmatmul.mubr.bf16.vlgmr.msra.gmra.mrb[32].mxu0 %v1649_v10  ;;  %1569 = vmatmul.mubr.msk.bf16.vlgmr.msra.gmra.mrb[36].mxu1 %vm354_vm0, %v1653_v11 }
  0xa5   :  { %1061 = vmatprep.mubr.bf16.mxu0 %v1260_v12 }
  0xac   :  { %1062 = vmatmul.mubr.bf16.gmra.mrb[36].mxu0 %v1259_v13 }
  0xf6   :  { %v1292_v14 = vpop.f32.mrb[0].mxu0 }
  0xf7   :  { %v1320_v15 = vpop.f32.mrb[0].mxu1  ;;  %v1293_v16 = vpop.f32.mrb[1].mxu0 }
  0xf8   :  { %v1294_v17 = vadd.f32 %v1293_v16, %v1292_v14  ;;  %v1321_v18 = vpop.f32.mrb[1].mxu1  ;;  %v1295_v19 = vpop.f32.mrb[2].mxu0 }
  0xf9   :  { %v1322_v20 = vadd.f32 %v1321_v18, %v1320_v15  ;;  %v1323_v21 = vpop.f32.mrb[2].mxu1  ;;  %v1296_v22 = vpop.f32.mrb[3].mxu0 }
  0xfa   :  { %v1297_v23 = vadd.f32 %v1296_v22, %v1295_v19  ;;  %v1324_v24 = vpop.f32.mrb[3].mxu1 }
  0xfb   :  { %v1325_v25 = vadd.f32 %v1324_v24, %v1323_v21  ;;  %v444_v26 = vadd.f32 %v1322_v20, %v1294_v17 }
  0xfd   :  { %v447_v27 = vadd.f32 %v1325_v25, %v1297_v23 }
  0xfe   :  { %v1298_v28 = vpop.f32.mrb[4].mxu0 }
  0xff   :  { %v1326_v29 = vpop.f32.mrb[4].mxu1  ;;  %v1299_v30 = vpop.f32.mrb[5].mxu0 }
 0x100   :  { %v1300_v31 = vadd.f32 %v1299_v30, %v1298_v28  ;;  %v1327_v36 = vpop.f32.mrb[5].mxu1  ;;  %v1301_v37 = vpop.f32.mrb[6].mxu0 }
 0x101   :  { %v1328_v40 = vadd.f32 %v1327_v36, %v1326_v29  ;;  %v1302_v41 = vpop.f32.mrb[7].mxu0  ;;  %v1329_v42 = vpop.f32.mrb[6].mxu1 }
 0x102   :  { %v1330_v43 = vpop.f32.mrb[7].mxu1 }
 0x103   :  { %v452_v44 = vadd.f32 %v1328_v40, %v1300_v31 }
 0x107   :  { %v1534_v45 = vpop.f32.mrb[8].mxu0 }
 0x108   :  { %v2120_v46 = vadd.f32 %v1534_v45, %v452_v44  ;;  %v491_v47 = vpop.f32.mrb[9].mxu0 }
 0x109   :  { %v2122_v48 = vadd.f32 %v491_v47, %v444_v26  ;;  %v1535_v49 = vpop.f32.mrb[10].mxu0 }
 0x10a   :  { %v494_v50 = vpop.f32.mrb[11].mxu0 }
 0x10b   :  { %v2124_v51 = vadd.f32 %v494_v50, %v447_v27 }
 0x117   :  { %v1354_v52 = vpop.f32.mrb[8].mxu1 }
 0x118   :  { %v1355_v53 = vpop.f32.mrb[9].mxu1 }
 0x119   :  { %v1356_v54 = vadd.f32 %v1355_v53, %v1354_v52  ;;  %v1357_v55 = vpop.f32.mrb[10].mxu1 }
 0x11a   :  { %v1358_v56 = vpop.f32.mrb[11].mxu1 }
 0x11b   :  { %v1359_v57 = vadd.f32 %v1358_v56, %v1357_v55 }
 0x11f   :  { %v1360_v58 = vpop.f32.mrb[12].mxu1 }
 0x120   :  { %v1361_v59 = vpop.f32.mrb[13].mxu1 }
 0x121   :  { %v1362_v60 = vadd.f32 %v1361_v59, %v1360_v58  ;;  %v1363_v61 = vpop.f32.mrb[14].mxu1 }
 0x122   :  { %v1364_v62 = vpop.f32.mrb[15].mxu1 }
 0x127   :  { %v1382_v63 = vpop.f32.mrb[12].mxu0  ;;  %v1546_v32 = vpop.f32.mrb[16].mxu1 }
 0x128   :  { %v1383_v33 = vpop.f32.mrb[13].mxu0  ;;  %v693_v34 = vpop.f32.mrb[17].mxu1 }
 0x129   :  { %v1384_v35 = vadd.f32 %v1383_v33, %v1382_v63  ;;  %v1385_v38 = vpop.f32.mrb[14].mxu0  ;;  %v1547_v39 = vpop.f32.mrb[18].mxu1 }
 0x12a   :  { %v1386_v0 = vpop.f32.mrb[15].mxu0  ;;  %v696_v2 = vpop.f32.mrb[19].mxu1 }
 0x12b   :  { %v1387_v4 = vadd.f32 %v1386_v0, %v1385_v38  ;;  %v646_v6 = vadd.f32 %v1384_v35, %v1356_v54 }
 0x12d   :  { %v694_v1 = vadd.f32 %v693_v34, %v646_v6  ;;  %v649_v3 = vadd.f32 %v1387_v4, %v1359_v57 }
 0x12f   :  { %v707_v5 = vmax.f32 %v2122_v48, %v694_v1  ;;  %v697_v7 = vadd.f32 %v696_v2, %v649_v3  ;;  %v1388_v8 = vpop.f32.mrb[16].mxu0 }
 0x130   :  { %v1389_v9 = vpop.f32.mrb[17].mxu0 }
 0x131   :  { %v708_v10 = vmax.f32 %v2124_v51, %v697_v7  ;;  %v1390_v11 = vadd.f32 %v1389_v9, %v1388_v8  ;;  %v1391_v12 = vpop.f32.mrb[18].mxu0 }
 0x132   :  { %v1392_v13 = vpop.f32.mrb[19].mxu0  ;;  %v1264_v12 = vld [vmem:[%s2140_s2] ss:$0 sm:$0xff] }
 0x133   :  { %v654_v14 = vadd.f32 %v1390_v11, %v1362_v60 }
 0x135   :  { %v702_v15 = vadd.f32 %v1546_v32, %v654_v14 }
 0x137   :  { %v709_v16 = vmax.f32 %v2120_v46, %v702_v15 }
 0x147   :  { %v1416_v17 = vpop.f32.mrb[20].mxu0  ;;  %v1444_v18 = vpop.f32.mrb[20].mxu1 }
 0x148   :  { %v1417_v19 = vpop.f32.mrb[21].mxu0  ;;  %v1445_v20 = vpop.f32.mrb[21].mxu1 }
 0x149   :  { %v1418_v21 = vadd.f32 %v1417_v19, %v1416_v17  ;;  %v1446_v22 = vadd.f32 %v1445_v20, %v1444_v18  ;;  %v1419_v23 = vpop.f32.mrb[22].mxu0  ;;  %v1447_v24 = vpop.f32.mrb[22].mxu1 }
 0x14a   :  { %v1420_v25 = vpop.f32.mrb[23].mxu0  ;;  %v1448_v26 = vpop.f32.mrb[23].mxu1 }
 0x14b   :  { %v1421_v27 = vadd.f32 %v1420_v25, %v1419_v23  ;;  %v1449_v28 = vadd.f32 %v1448_v26, %v1447_v24  ;;  %v851_v29 = vadd.f32 %v1446_v22, %v1418_v21 }
 0x14d   :  { %v854_v30 = vadd.f32 %v1449_v28, %v1421_v27 }
 0x14f   :  { %v1422_v31 = vpop.f32.mrb[24].mxu0  ;;  %v1450_v36 = vpop.f32.mrb[24].mxu1 }
 0x150   :  { %v1423_v37 = vpop.f32.mrb[25].mxu0  ;;  %v1451_v40 = vpop.f32.mrb[25].mxu1 }
 0x151   :  { %v1424_v41 = vadd.f32 %v1423_v37, %v1422_v31  ;;  %v1452_v42 = vadd.f32 %v1451_v40, %v1450_v36  ;;  %v1425_v43 = vpop.f32.mrb[26].mxu0  ;;  %v1453_v44 = vpop.f32.mrb[26].mxu1 }
 0x152   :  { %v1426_v45 = vpop.f32.mrb[27].mxu0  ;;  %v1454_v46 = vpop.f32.mrb[27].mxu1 }
 0x153   :  { %v859_v47 = vadd.f32 %v1452_v42, %v1424_v41 }
 0x157   :  { %v1558_v48 = vpop.f32.mrb[28].mxu0 }
 0x158   :  { %v907_v49 = vadd.f32 %v1558_v48, %v859_v47  ;;  %v898_v50 = vpop.f32.mrb[29].mxu0 }
 0x159   :  { %v899_v51 = vadd.f32 %v898_v50, %v851_v29  ;;  %v1559_v52 = vpop.f32.mrb[30].mxu0 }
 0x15a   :  { %v914_v53 = vmax.f32 %v709_v16, %v907_v49  ;;  %v901_v54 = vpop.f32.mrb[31].mxu0 }
 0x15b   :  { %v912_v55 = vmax.f32 %v707_v5, %v899_v51  ;;  %v902_v56 = vadd.f32 %v901_v54, %v854_v30 }
 0x15d   :  { %v913_v57 = vmax.f32 %v708_v10, %v902_v56 }
 0x167   :  { %v1478_v58 = vpop.f32.mrb[28].mxu1 }
 0x168   :  { %v1479_v59 = vpop.f32.mrb[29].mxu1 }
 0x169   :  { %v1480_v60 = vadd.f32 %v1479_v59, %v1478_v58  ;;  %v1481_v61 = vpop.f32.mrb[30].mxu1 }
 0x16a   :  { %v1482_v62 = vpop.f32.mrb[31].mxu1 }
 0x16b   :  { %v1483_v63 = vadd.f32 %v1482_v62, %v1481_v61 }
 0x16f   :  { %v1484_v32 = vpop.f32.mrb[32].mxu1 }
 0x170   :  { %v1485_v33 = vpop.f32.mrb[33].mxu1 }
 0x171   :  { %v1486_v34 = vadd.f32 %v1485_v33, %v1484_v32  ;;  %v1487_v35 = vpop.f32.mrb[34].mxu1 }
 0x172   :  { %v1488_v38 = vpop.f32.mrb[35].mxu1 }
 0x177   :  { %v1506_v39 = vpop.f32.mrb[32].mxu0  ;;  %v1570_v0 = vpop.f32.mrb[36].mxu1 }
 0x178   :  { %v1507_v2 = vpop.f32.mrb[33].mxu0  ;;  %v1103_v4 = vpop.f32.mrb[37].mxu1 }
 0x179   :  { %v1508_v6 = vadd.f32 %v1507_v2, %v1506_v39  ;;  %v1509_v1 = vpop.f32.mrb[34].mxu0  ;;  %v1571_v3 = vpop.f32.mrb[38].mxu1 }
 0x17a   :  { %v1510_v5 = vpop.f32.mrb[35].mxu0  ;;  %v1106_v7 = vpop.f32.mrb[39].mxu1 }
 0x17b   :  { %v1511_v8 = vadd.f32 %v1510_v5, %v1509_v1  ;;  %v1056_v9 = vadd.f32 %v1508_v6, %v1480_v60 }
 0x17d   :  { %v1104_v10 = vadd.f32 %v1103_v4, %v1056_v9  ;;  %v1059_v11 = vadd.f32 %v1511_v8, %v1483_v63 }
 0x17f   :  { %v1117_v13 = vmax.f32 %v912_v55, %v1104_v10  ;;  %v1107_v14 = vadd.f32 %v1106_v7, %v1059_v11  ;;  %v1512_v15 = vpop.f32.mrb[36].mxu0 }
 0x180   :  { %v1513_v16 = vpop.f32.mrb[37].mxu0 }
 0x181   :  { %v1127_v17 = vadd.f32 %v1264_v12, %v1117_v13  ;;  %v1118_v18 = vmax.f32 %v913_v57, %v1107_v14  ;;  %v1514_v19 = vadd.f32 %v1513_v16, %v1512_v15  ;;  %v1515_v20 = vpop.f32.mrb[38].mxu0 }
 0x182   :  { %v1516_v21 = vpop.f32.mrb[39].mxu0 }
 0x183   :  { %v1128_v22 = vadd.f32 %v1264_v12, %v1118_v18  ;;  %v1064_v23 = vadd.f32 %v1514_v19, %v1486_v34  ;;  %v1130_v24 = vmax.f32 %v1127_v17, 0.0 }
 0x185   :  { %v1131_v25 = vmax.f32 %v1128_v22, 0.0  ;;  %v1112_v26 = vadd.f32 %v1570_v0, %v1064_v23 }
 0x187   :  { %v1274_v27 = vpack.c.bf16 %v1131_v25, %v1130_v24  ;;  %v1119_v28 = vmax.f32 %v914_v53, %v1112_v26 }
 0x189   :  { %1275 = vst [vmem:[%s2141_s3] sm:$0xff] %v1274_v27   ;;  %v1129_v29 = vadd.f32 %v1264_v12, %v1119_v28 }
 0x18b   :  { %v1132_v30 = vmax.f32 %v1129_v29, 0.0 }
 0x18d   :  { %v1270_v31 = vpack.c.bf16 %v1132_v30, %v1132_v30 }
 0x18f   :  { %1148 = vst [vmem:[%s2141_s3 + $0x8] sm:$0xf] %v1270_v31 }

// kernel: asr_forward.8
= control target key start
LH: loop header
LB: loop body
LE: loop exit
PB: predicated region body
PF: predicated region fallthrough
CT: control target
= control target key end

     0   :  { %v2446_v7 = vmov 1983009808   ;;  %v169_v9 = vlaneseq  ;;  %s3878_s1 = inlined_call_operand.vmem [shape: bf16[1152,256], index: 1, kind: input, shape index: {}]   ;;  %s3879_s0 = inlined_call_operand.vmem [shape: bf16[4,4,1152], index: 0, kind: input, shape index: {}]   ;;  %s3880_s2 = inlined_call_operand.vmem [shape: f32[1,256], index: 2, kind: input, shape index: {}]   ;;  %s3881_s3 = inlined_call_operand.vmem [shape: bf16[4,256], index: 3, kind: output, shape index: {}]  }
   0x1   :  { %v2191_v0 = vld [vmem:[%s3878_s1 + $0x4] ss:$8 sps:$4 sm:$0xff]   ;;  %v2193_v1 = vld [vmem:[%s3878_s1] ss:$8 sps:$4 sm:$0xff]   ;;  %v2194_v2 = vld [vmem:[%s3878_s1 + $0x14] ss:$8 sps:$4 sm:$0xff]   ;;  %v167_v8 = vunpack.c.l.s4 %v2446_v7 }
   0x2   :  { %935 = vmatprep.subr.bf16.mxu0 %v2191_v0  ;;  %1197 = vmatprep.subr.bf16.mxu1 %v2191_v0  ;;  %v2196_v3 = vld [vmem:[%s3878_s1 + $0x10] ss:$8 sps:$4 sm:$0xff]   ;;  %v2197_v4 = vld [vmem:[%s3878_s1 + $0x24] ss:$8 sps:$4 sm:$0xff]   ;;  %v2199_v5 = vld [vmem:[%s3878_s1 + $0x20] ss:$8 sps:$4 sm:$0xff]  }
   0x3   :  { %936 = vmatpush1.bf16.msra.mxu0 %v2193_v1  ;;  %1198 = vmatpush1.bf16.msra.mxu1 %v2193_v1  ;;  %v2200_v6 = vld [vmem:[%s3878_s1 + $0x34] ss:$8 sps:$4 sm:$0xff]   ;;  %v2202_v10 = vld [vmem:[%s3878_s1 + $0x30] ss:$8 sps:$4 sm:$0xff]   ;;  %v2203_v11 = vld [vmem:[%s3878_s1 + $0x44] ss:$8 sps:$4 sm:$0xff]   ;;  %v168_v12 = vunpack.c.0.s8 %v167_v8 }
   0x4   :  { %937 = vmatprep.subr.bf16.mxu0 %v2194_v2  ;;  %1199 = vmatprep.subr.bf16.mxu1 %v2194_v2  ;;  %v2495_v13 = vshrl.u32 %v169_v9, 7  ;;  %v2205_v14 = vld [vmem:[%s3878_s1 + $0x40] ss:$8 sps:$4 sm:$0xff]   ;;  %v2206_v15 = vld [vmem:[%s3878_s1 + $0x54] ss:$8 sps:$4 sm:$0xff]  }
   0x5   :  { %v2208_v17 = vld [vmem:[%s3878_s1 + $0x50] ss:$8 sps:$4 sm:$0xff]   ;;  %v2209_v18 = vld [vmem:[%s3878_s1 + $0x64] ss:$8 sps:$4 sm:$0xff]   ;;  %v2211_v22 = vld [vmem:[%s3878_s1 + $0x60] ss:$8 sps:$4 sm:$0xff]  }
   0x6   :  { %4008 = vst [vmem:[#allocation2_spill] sm:$0xff] %v2495_v13  ;;  %v2504_v16 = vsub.s32 %v168_v12, %v2495_v13  ;;  %v2515_v19 = vld [vmem:[%s3879_s0] sm:$0xff]  ;;  %v2524_v21 = vld [vmem:[%s3879_s0 + $0x12] sm:$0xff] }
   0x7   :  { %938 = vmatpush1.bf16.msra.mxu0 %v2196_v3  ;;  %1200 = vmatpush1.bf16.msra.mxu1 %v2196_v3  ;;  %v2212_v24 = vld [vmem:[%s3878_s1 + $0x74] ss:$8 sps:$4 sm:$0xff]   ;;  %v2214_v27 = vld [vmem:[%s3878_s1 + $0x70] ss:$8 sps:$4 sm:$0xff]   ;;  %v2215_v28 = vld [vmem:[%s3878_s1 + $0x84] ss:$8 sps:$4 sm:$0xff]   ;;  %v165_v43 = vcombine.high %v2515_v19, %v2515_v19  ;;  %v1147_v44 = vcombine.high %v2524_v21, %v2524_v21 }
   0x8   :  { %939 = vmatprep.subr.bf16.mxu0 %v2197_v4  ;;  %1201 = vmatprep.subr.bf16.mxu1 %v2197_v4  ;;  %v2519_v20 = vrot.slane %v2515_v19, %v2504_v16  ;;  %v2531_v23 = vrot.slane %v2524_v21, %v2504_v16  ;;  %v2217_v29 = vld [vmem:[%s3878_s1 + $0x80] ss:$8 sps:$4 sm:$0xff]   ;;  %v2218_v30 = vld [vmem:[%s3878_s1 + $0x94] ss:$8 sps:$4 sm:$0xff]   ;;  %v2220_v31 = vld [vmem:[%s3878_s1 + $0x90] ss:$8 sps:$4 sm:$0xff]  }
   0x9   :  { %v2221_v32 = vld [vmem:[%s3878_s1 + $0xa4] ss:$8 sps:$4 sm:$0xff]   ;;  %v2223_v33 = vld [vmem:[%s3878_s1 + $0xa0] ss:$8 sps:$4 sm:$0xff]   ;;  %v2224_v34 = vld [vmem:[%s3878_s1 + $0xb4] ss:$8 sps:$4 sm:$0xff]   ;;  %v2603_v47 = vrot.slane %v165_v43, %v2504_v16  ;;  %v2606_v48 = vrot.slane %v1147_v44, %v2504_v16 }
   0xa   :  { %v180_v25 = vcombine.high %v2519_v20, %v2519_v20  ;;  %v1162_v26 = vcombine.high %v2531_v23, %v2531_v23  ;;  %v2226_v35 = vld [vmem:[%s3878_s1 + $0xb0] ss:$8 sps:$4 sm:$0xff]   ;;  %v2227_v36 = vld [vmem:[%s3878_s1 + $0xc4] ss:$8 sps:$4 sm:$0xff]   ;;  %v2229_v37 = vld [vmem:[%s3878_s1 + $0xc0] ss:$8 sps:$4 sm:$0xff]  }
   0xb   :  { %940 = vmatpush1.bf16.msra.mxu0 %v2199_v5  ;;  %1202 = vmatpush1.bf16.msra.mxu1 %v2199_v5  ;;  %v2230_v38 = vld [vmem:[%s3878_s1 + $0xd4] ss:$8 sps:$4 sm:$0xff]   ;;  %v2232_v39 = vld [vmem:[%s3878_s1 + $0xd0] ss:$8 sps:$4 sm:$0xff]   ;;  %v2233_v40 = vld [vmem:[%s3878_s1 + $0xe4] ss:$8 sps:$4 sm:$0xff]   ;;  %v181_v51 = vcombine.high %v2603_v47, %v2603_v47  ;;  %v1163_v52 = vcombine.high %v2606_v48, %v2606_v48 }
   0xc   :  { %941 = vmatprep.subr.bf16.mxu0 %v2200_v6  ;;  %1203 = vmatprep.subr.bf16.mxu1 %v2200_v6  ;;  %v2235_v41 = vld [vmem:[%s3878_s1 + $0xe0] ss:$8 sps:$4 sm:$0xff]   ;;  %v2236_v42 = vld [vmem:[%s3878_s1 + $0xf4] ss:$8 sps:$4 sm:$0xff]   ;;  %v2595_v45 = vld [vmem:[%s3878_s1 + $0xf0] ss:$8 sps:$4 sm:$0xff]  }
   0xd   :  { %967 = vmatprep.mubr.bf16.mxu0 %v180_v25  ;;  %1229 = vmatprep.mubr.bf16.mxu1 %v1162_v26  ;;  %v2600_v46 = vld [vmem:[%s3878_s1 + $0x104] ss:$8 sps:$4 sm:$0xff]   ;;  %v2613_v49 = vld [vmem:[%s3878_s1 + $0x100] ss:$8 sps:$4 sm:$0xff]   ;;  %v2620_v50 = vld [vmem:[%s3878_s1 + $0x114] ss:$8 sps:$4 sm:$0xff]  }
   0xe   :  { %v2633_v53 = vld [vmem:[%s3878_s1 + $0x110] ss:$8 sps:$4 sm:$0xff]   ;;  %v2640_v54 = vld [vmem:[%s3878_s1 + $0x124] ss:$8 sps:$4 sm:$0xff]   ;;  %v2647_v55 = vld [vmem:[%s3878_s1 + $0x120] ss:$8 sps:$4 sm:$0xff]  }
   0xf   :  { %942 = vmatpush1.bf16.msra.mxu0 %v2202_v10  ;;  %1204 = vmatpush1.bf16.msra.mxu1 %v2202_v10  ;;  %v2654_v56 = vld [vmem:[%s3878_s1 + $0x134] ss:$8 sps:$4 sm:$0xff]   ;;  %v2661_v57 = vld [vmem:[%s3878_s1 + $0x130] ss:$8 sps:$4 sm:$0xff]   ;;  %v2668_v58 = vld [vmem:[%s3878_s1 + $0x144] ss:$8 sps:$4 sm:$0xff]  }
  0x10   :  { %943 = vmatprep.subr.bf16.mxu0 %v2203_v11  ;;  %1205 = vmatprep.subr.bf16.mxu1 %v2203_v11  ;;  %v2675_v59 = vld [vmem:[%s3878_s1 + $0x140] ss:$8 sps:$4 sm:$0xff]   ;;  %v2682_v60 = vld [vmem:[%s3878_s1 + $0x154] ss:$8 sps:$4 sm:$0xff]   ;;  %v2689_v61 = vld [vmem:[%s3878_s1 + $0x150] ss:$8 sps:$4 sm:$0xff]  }
  0x11   :  { %v2696_v62 = vld [vmem:[%s3878_s1 + $0x164] ss:$8 sps:$4 sm:$0xff]   ;;  %v2703_v63 = vld [vmem:[%s3878_s1 + $0x160] ss:$8 sps:$4 sm:$0xff]   ;;  %v2710_v0 = vld [vmem:[%s3878_s1 + $0x174] ss:$8 sps:$4 sm:$0xff]  }
  0x12   :  { %v2717_v1 = vld [vmem:[%s3878_s1 + $0x170] ss:$8 sps:$4 sm:$0xff]   ;;  %v2724_v2 = vld [vmem:[%s3878_s1 + $0x184] ss:$8 sps:$4 sm:$0xff]   ;;  %v2731_v3 = vld [vmem:[%s3878_s1 + $0x180] ss:$8 sps:$4 sm:$0xff]  }
  0x13   :  { %944 = vmatpush1.bf16.msra.mxu0 %v2205_v14  ;;  %1206 = vmatpush1.bf16.msra.mxu1 %v2205_v14  ;;  %v2738_v4 = vld [vmem:[%s3878_s1 + $0x194] ss:$8 sps:$4 sm:$0xff]   ;;  %v2745_v5 = vld [vmem:[%s3878_s1 + $0x190] ss:$8 sps:$4 sm:$0xff]   ;;  %v2752_v6 = vld [vmem:[%s3878_s1 + $0x1a4] ss:$8 sps:$4 sm:$0xff]  }
  0x14   :  { %945 = vmatprep.subr.bf16.mxu0 %v2206_v15  ;;  %1207 = vmatprep.subr.bf16.mxu1 %v2206_v15  ;;  %v2759_v7 = vld [vmem:[%s3878_s1 + $0x1a0] ss:$8 sps:$4 sm:$0xff]   ;;  %v2766_v8 = vld [vmem:[%s3878_s1 + $0x1b4] ss:$8 sps:$4 sm:$0xff]   ;;  %v2773_v9 = vld [vmem:[%s3878_s1 + $0x1b0] ss:$8 sps:$4 sm:$0xff]  }
  0x15   :  { %v2780_v10 = vld [vmem:[%s3878_s1 + $0x1c4] ss:$8 sps:$4 sm:$0xff]   ;;  %v2787_v11 = vld [vmem:[%s3878_s1 + $0x1c0] ss:$8 sps:$4 sm:$0xff]   ;;  %v2794_v12 = vld [vmem:[%s3878_s1 + $0x1d4] ss:$8 sps:$4 sm:$0xff]  }
  0x16   :  { %v2801_v14 = vld [vmem:[%s3878_s1 + $0x1d0] ss:$8 sps:$4 sm:$0xff]   ;;  %v2808_v15 = vld [vmem:[%s3878_s1 + $0x1e4] ss:$8 sps:$4 sm:$0xff]   ;;  %v2861_v25 = vld [vmem:[%s3878_s1 + $0x200] ss:$8 sps:$4 sm:$0xff]  }
  0x17   :  { %946 = vmatpush1.bf16.msra.mxu0 %v2208_v17  ;;  %1208 = vmatpush1.bf16.msra.mxu1 %v2208_v17  ;;  %v2815_v17 = vld [vmem:[%s3878_s1 + $0x1e0] ss:$8 sps:$4 sm:$0xff]   ;;  %v2839_v21 = vld [vmem:[%s3878_s1 + $0x1f0] ss:$8 sps:$4 sm:$0xff]   ;;  %v2868_v26 = vld [vmem:[%s3878_s1 + $0x214] ss:$8 sps:$4 sm:$0xff]  }
  0x18   :  { %947 = vmatprep.subr.bf16.mxu0 %v2209_v18  ;;  %1209 = vmatprep.subr.bf16.mxu1 %v2209_v18  ;;  %v2822_v18 = vld [vmem:[%s3878_s1 + $0x1f4] ss:$8 sps:$4 sm:$0xff]   ;;  %v2827_v19 = vld [vmem:[%s3879_s0 + $0x8] sm:$0xff] }
  0x19   :  { %v2979_v43 = vld [vmem:[%s3878_s1 + $0x280] ss:$8 sps:$4 sm:$0xff]   ;;  %v2986_v44 = vld [vmem:[%s3878_s1 + $0x294] ss:$8 sps:$4 sm:$0xff]  }
  0x1a   :  { %v3035_v13 = vld [vmem:[%s3878_s1 + $0x2c0] ss:$8 sps:$4 sm:$0xff]  }
  0x1b   :  { %948 = vmatpush1.bf16.msra.mxu0 %v2211_v22  ;;  %1210 = vmatpush1.bf16.msra.mxu1 %v2211_v22  ;;  %v2846_v22 = vld [vmem:[%s3878_s1 + $0x204] ss:$8 sps:$4 sm:$0xff]   ;;  %4015 = vst [vmem:[#allocation9_spill] sm:$0xff] %v3035_v13 }
  0x1c   :  { %949 = vmatprep.subr.bf16.mxu0 %v2212_v24  ;;  %1211 = vmatprep.subr.bf16.mxu1 %v2212_v24 }
  0x1f   :  { %950 = vmatpush1.bf16.msra.mxu0 %v2214_v27  ;;  %1212 = vmatpush1.bf16.msra.mxu1 %v2214_v27 }
  0x20   :  { %951 = vmatprep.subr.bf16.mxu0 %v2215_v28  ;;  %1213 = vmatprep.subr.bf16.mxu1 %v2215_v28 }
  0x23   :  { %952 = vmatpush1.bf16.msra.mxu0 %v2217_v29  ;;  %1214 = vmatpush1.bf16.msra.mxu1 %v2217_v29  ;;  %v2881_v29 = vld [vmem:[%s3878_s1 + $0x210] ss:$8 sps:$4 sm:$0xff]  }
  0x24   :  { %953 = vmatprep.subr.bf16.mxu0 %v2218_v30  ;;  %1215 = vmatprep.subr.bf16.mxu1 %v2218_v30  ;;  %v2888_v30 = vld [vmem:[%s3878_s1 + $0x224] ss:$8 sps:$4 sm:$0xff]  }
  0x27   :  { %954 = vmatpush1.bf16.msra.mxu0 %v2220_v31  ;;  %1216 = vmatpush1.bf16.msra.mxu1 %v2220_v31  ;;  %v2895_v31 = vld [vmem:[%s3878_s1 + $0x220] ss:$8 sps:$4 sm:$0xff]  }
  0x28   :  { %955 = vmatprep.subr.bf16.mxu0 %v2221_v32  ;;  %1217 = vmatprep.subr.bf16.mxu1 %v2221_v32  ;;  %v2902_v32 = vld [vmem:[%s3878_s1 + $0x234] ss:$8 sps:$4 sm:$0xff]  }
  0x2b   :  { %956 = vmatpush1.bf16.msra.mxu0 %v2223_v33  ;;  %1218 = vmatpush1.bf16.msra.mxu1 %v2223_v33  ;;  %v2909_v33 = vld [vmem:[%s3878_s1 + $0x230] ss:$8 sps:$4 sm:$0xff]  }
  0x2c   :  { %957 = vmatprep.subr.bf16.mxu0 %v2224_v34  ;;  %1219 = vmatprep.subr.bf16.mxu1 %v2224_v34  ;;  %v2916_v34 = vld [vmem:[%s3878_s1 + $0x244] ss:$8 sps:$4 sm:$0xff]  }
  0x2f   :  { %958 = vmatpush1.bf16.msra.mxu0 %v2226_v35  ;;  %1220 = vmatpush1.bf16.msra.mxu1 %v2226_v35  ;;  %v2923_v35 = vld [vmem:[%s3878_s1 + $0x240] ss:$8 sps:$4 sm:$0xff]  }
  0x30   :  { %959 = vmatprep.subr.bf16.mxu0 %v2227_v36  ;;  %1221 = vmatprep.subr.bf16.mxu1 %v2227_v36  ;;  %v2930_v36 = vld [vmem:[%s3878_s1 + $0x254] ss:$8 sps:$4 sm:$0xff]  }
  0x33   :  { %960 = vmatpush1.bf16.msra.mxu0 %v2229_v37  ;;  %1222 = vmatpush1.bf16.msra.mxu1 %v2229_v37  ;;  %v2937_v37 = vld [vmem:[%s3878_s1 + $0x250] ss:$8 sps:$4 sm:$0xff]  }
  0x34   :  { %961 = vmatprep.subr.bf16.mxu0 %v2230_v38  ;;  %1223 = vmatprep.subr.bf16.mxu1 %v2230_v38  ;;  %v2944_v38 = vld [vmem:[%s3878_s1 + $0x264] ss:$8 sps:$4 sm:$0xff]  }
  0x37   :  { %962 = vmatpush1.bf16.msra.mxu0 %v2232_v39  ;;  %1224 = vmatpush1.bf16.msra.mxu1 %v2232_v39  ;;  %v2951_v39 = vld [vmem:[%s3878_s1 + $0x260] ss:$8 sps:$4 sm:$0xff]  }
  0x38   :  { %963 = vmatprep.subr.bf16.mxu0 %v2233_v40  ;;  %1225 = vmatprep.subr.bf16.mxu1 %v2233_v40  ;;  %v2958_v40 = vld [vmem:[%s3878_s1 + $0x274] ss:$8 sps:$4 sm:$0xff]  }
  0x3b   :  { %964 = vmatpush1.bf16.msra.mxu0 %v2235_v41  ;;  %1226 = vmatpush1.bf16.msra.mxu1 %v2235_v41  ;;  %v2965_v41 = vld [vmem:[%s3878_s1 + $0x270] ss:$8 sps:$4 sm:$0xff]  }
  0x3c   :  { %965 = vmatprep.subr.bf16.mxu0 %v2236_v42  ;;  %1227 = vmatprep.subr.bf16.mxu1 %v2236_v42  ;;  %v2972_v42 = vld [vmem:[%s3878_s1 + $0x284] ss:$8 sps:$4 sm:$0xff]  }
  0x3f   :  { %966 = vmatpush1.bf16.msra.mxu0 %v2595_v45  ;;  %1228 = vmatpush1.bf16.msra.mxu1 %v2595_v45 }
  0x40   :  { %976 = vmatprep.subr.bf16.mxu0 %v2600_v46  ;;  %1238 = vmatprep.subr.bf16.mxu1 %v2600_v46 }
  0x42   :  { %968 = vmatmul.mubr.bf16.vlgmr.msra.gmra.mrb[0].mxu0 %v2519_v20  ;;  %1230 = vmatmul.mubr.bf16.vlgmr.msra.gmra.mrb[0].mxu1 %v2531_v23  ;;  %v2832_v20 = vld [vmem:[%s3879_s0 + $0x1a] sm:$0xff]  ;;  %v2850_v23 = vrot.slane %v2827_v19, %v2504_v16 }
  0x43   :  { %977 = vmatpush1.bf16.msra.mxu0 %v2613_v49  ;;  %1239 = vmatpush1.bf16.msra.mxu1 %v2613_v49  ;;  %v2854_v24 = vrot.slane %v2832_v20, %v2504_v16 }
  0x44   :  { %978 = vmatprep.subr.bf16.mxu0 %v2620_v50  ;;  %1240 = vmatprep.subr.bf16.mxu1 %v2620_v50  ;;  %v197_v27 = vcombine.high %v2850_v23, %v2850_v23 }
  0x45   :  { %1008 = vmatprep.mubr.bf16.mxu0 %v181_v51  ;;  %1270 = vmatprep.mubr.bf16.mxu1 %v1163_v52  ;;  %v1179_v28 = vcombine.high %v2854_v24, %v2854_v24  ;;  %v3007_v51 = vld [vmem:[%s3878_s1 + $0x2a0] ss:$8 sps:$4 sm:$0xff]   ;;  %v3014_v52 = vld [vmem:[%s3878_s1 + $0x2b4] ss:$8 sps:$4 sm:$0xff]  }
  0x46   :  { %4011 = vst [vmem:[#allocation5_spill] sm:$0xff] %v3007_v51  ;;  %4012 = vst [vmem:[#allocation6_spill] sm:$0xff] %v3014_v52 }
  0x47   :  { %979 = vmatpush1.bf16.msra.mxu0 %v2633_v53  ;;  %1241 = vmatpush1.bf16.msra.mxu1 %v2633_v53 }
  0x48   :  { %980 = vmatprep.subr.bf16.mxu0 %v2640_v54  ;;  %1242 = vmatprep.subr.bf16.mxu1 %v2640_v54 }
  0x4b   :  { %981 = vmatpush1.bf16.msra.mxu0 %v2647_v55  ;;  %1243 = vmatpush1.bf16.msra.mxu1 %v2647_v55 }
  0x4c   :  { %982 = vmatprep.subr.bf16.mxu0 %v2654_v56  ;;  %1244 = vmatprep.subr.bf16.mxu1 %v2654_v56 }
  0x4f   :  { %983 = vmatpush1.bf16.msra.mxu0 %v2661_v57  ;;  %1245 = vmatpush1.bf16.msra.mxu1 %v2661_v57 }
  0x50   :  { %984 = vmatprep.subr.bf16.mxu0 %v2668_v58  ;;  %1246 = vmatprep.subr.bf16.mxu1 %v2668_v58 }
  0x53   :  { %985 = vmatpush1.bf16.msra.mxu0 %v2675_v59  ;;  %1247 = vmatpush1.bf16.msra.mxu1 %v2675_v59 }
  0x54   :  { %986 = vmatprep.subr.bf16.mxu0 %v2682_v60  ;;  %1248 = vmatprep.subr.bf16.mxu1 %v2682_v60 }
  0x57   :  { %987 = vmatpush1.bf16.msra.mxu0 %v2689_v61  ;;  %1249 = vmatpush1.bf16.msra.mxu1 %v2689_v61 }
  0x58   :  { %988 = vmatprep.subr.bf16.mxu0 %v2696_v62  ;;  %1250 = vmatprep.subr.bf16.mxu1 %v2696_v62 }
  0x5b   :  { %989 = vmatpush1.bf16.msra.mxu0 %v2703_v63  ;;  %1251 = vmatpush1.bf16.msra.mxu1 %v2703_v63 }
  0x5c   :  { %990 = vmatprep.subr.bf16.mxu0 %v2710_v0  ;;  %1252 = vmatprep.subr.bf16.mxu1 %v2710_v0 }
  0x5f   :  { %991 = vmatpush1.bf16.msra.mxu0 %v2717_v1  ;;  %1253 = vmatpush1.bf16.msra.mxu1 %v2717_v1 }
  0x60   :  { %992 = vmatprep.subr.bf16.mxu0 %v2724_v2  ;;  %1254 = vmatprep.subr.bf16.mxu1 %v2724_v2 }
  0x63   :  { %993 = vmatpush1.bf16.msra.mxu0 %v2731_v3  ;;  %1255 = vmatpush1.bf16.msra.mxu1 %v2731_v3 }
  0x64   :  { %994 = vmatprep.subr.bf16.mxu0 %v2738_v4  ;;  %1256 = vmatprep.subr.bf16.mxu1 %v2738_v4 }
  0x67   :  { %995 = vmatpush1.bf16.msra.mxu0 %v2745_v5  ;;  %1257 = vmatpush1.bf16.msra.mxu1 %v2745_v5 }
  0x68   :  { %996 = vmatprep.subr.bf16.mxu0 %v2752_v6  ;;  %1258 = vmatprep.subr.bf16.mxu1 %v2752_v6 }
  0x6b   :  { %997 = vmatpush1.bf16.msra.mxu0 %v2759_v7  ;;  %1259 = vmatpush1.bf16.msra.mxu1 %v2759_v7 }
  0x6c   :  { %998 = vmatprep.subr.bf16.mxu0 %v2766_v8  ;;  %1260 = vmatprep.subr.bf16.mxu1 %v2766_v8 }
  0x6f   :  { %999 = vmatpush1.bf16.msra.mxu0 %v2773_v9  ;;  %1261 = vmatpush1.bf16.msra.mxu1 %v2773_v9 }
  0x70   :  { %1000 = vmatprep.subr.bf16.mxu0 %v2780_v10  ;;  %1262 = vmatprep.subr.bf16.mxu1 %v2780_v10 }
  0x73   :  { %1001 = vmatpush1.bf16.msra.mxu0 %v2787_v11  ;;  %1263 = vmatpush1.bf16.msra.mxu1 %v2787_v11 }
  0x74   :  { %1002 = vmatprep.subr.bf16.mxu0 %v2794_v12  ;;  %1264 = vmatprep.subr.bf16.mxu1 %v2794_v12 }
  0x77   :  { %1003 = vmatpush1.bf16.msra.mxu0 %v2801_v14  ;;  %1265 = vmatpush1.bf16.msra.mxu1 %v2801_v14 }
  0x78   :  { %1004 = vmatprep.subr.bf16.mxu0 %v2808_v15  ;;  %1266 = vmatprep.subr.bf16.mxu1 %v2808_v15 }
  0x7b   :  { %1005 = vmatpush1.bf16.msra.mxu0 %v2815_v17  ;;  %1267 = vmatpush1.bf16.msra.mxu1 %v2815_v17 }
  0x7c   :  { %1006 = vmatprep.subr.bf16.mxu0 %v2822_v18  ;;  %1268 = vmatprep.subr.bf16.mxu1 %v2822_v18 }
  0x7f   :  { %1007 = vmatpush1.bf16.msra.mxu0 %v2839_v21  ;;  %1269 = vmatpush1.bf16.msra.mxu1 %v2839_v21 }
  0x80   :  { %1017 = vmatprep.subr.bf16.mxu0 %v2846_v22  ;;  %1279 = vmatprep.subr.bf16.mxu1 %v2846_v22 }
  0x82   :  { %1009 = vmatmul.mubr.bf16.vlgmr.msra.gmra.mrb[0].mxu0 %v2603_v47  ;;  %1271 = vmatmul.mubr.bf16.vlgmr.msra.gmra.mrb[0].mxu1 %v2606_v48  ;;  %v2993_v47 = vld [vmem:[%s3878_s1 + $0x290] ss:$8 sps:$4 sm:$0xff]   ;;  %v3000_v48 = vld [vmem:[%s3878_s1 + $0x2a4] ss:$8 sps:$4 sm:$0xff]  }
  0x83   :  { %1018 = vmatpush1.bf16.msra.mxu0 %v2861_v25  ;;  %1280 = vmatpush1.bf16.msra.mxu1 %v2861_v25  ;;  %4009 = vst [vmem:[#allocation3_spill] sm:$0xff] %v2993_v47  ;;  %4010 = vst [vmem:[#allocation4_spill] sm:$0xff] %v3000_v48 }
  0x84   :  { %1019 = vmatprep.subr.bf16.mxu0 %v2868_v26  ;;  %1281 = vmatprep.subr.bf16.mxu1 %v2868_v26 }
  0x85   :  { %1049 = vmatprep.mubr.bf16.mxu0 %v197_v27  ;;  %1311 = vmatprep.mubr.bf16.mxu1 %v1179_v28  ;;  %v3021_v27 = vld [vmem:[%s3878_s1 + $0x2b0] ss:$8 sps:$4 sm:$0xff]   ;;  %v3028_v28 = vld [vmem:[%s3878_s1 + $0x2c4] ss:$8 sps:$4 sm:$0xff]  }
  0x86   :  { %4013 = vst [vmem:[#allocation7_spill] sm:$0xff] %v3021_v27  ;;  %4014 = vst [vmem:[#allocation8_spill] sm:$0xff] %v3028_v28 }
  0x87   :  { %1020 = vmatpush1.bf16.msra.mxu0 %v2881_v29  ;;  %1282 = vmatpush1.bf16.msra.mxu1 %v2881_v29 }
  0x88   :  { %1021 = vmatprep.subr.bf16.mxu0 %v2888_v30  ;;  %1283 = vmatprep.subr.bf16.mxu1 %v2888_v30 }
  0x8b   :  { %1022 = vmatpush1.bf16.msra.mxu0 %v2895_v31  ;;  %1284 = vmatpush1.bf16.msra.mxu1 %v2895_v31 }
  0x8c   :  { %1023 = vmatprep.subr.bf16.mxu0 %v2902_v32  ;;  %1285 = vmatprep.subr.bf16.mxu1 %v2902_v32 }
  0x8f   :  { %1024 = vmatpush1.bf16.msra.mxu0 %v2909_v33  ;;  %1286 = vmatpush1.bf16.msra.mxu1 %v2909_v33 }
  0x90   :  { %1025 = vmatprep.subr.bf16.mxu0 %v2916_v34  ;;  %1287 = vmatprep.subr.bf16.mxu1 %v2916_v34 }
  0x93   :  { %1026 = vmatpush1.bf16.msra.mxu0 %v2923_v35  ;;  %1288 = vmatpush1.bf16.msra.mxu1 %v2923_v35 }
  0x94   :  { %1027 = vmatprep.subr.bf16.mxu0 %v2930_v36  ;;  %1289 = vmatprep.subr.bf16.mxu1 %v2930_v36 }
  0x97   :  { %1028 = vmatpush1.bf16.msra.mxu0 %v2937_v37  ;;  %1290 = vmatpush1.bf16.msra.mxu1 %v2937_v37 }
  0x98   :  { %1029 = vmatprep.subr.bf16.mxu0 %v2944_v38  ;;  %1291 = vmatprep.subr.bf16.mxu1 %v2944_v38 }
  0x9b   :  { %1030 = vmatpush1.bf16.msra.mxu0 %v2951_v39  ;;  %1292 = vmatpush1.bf16.msra.mxu1 %v2951_v39 }
  0x9c   :  { %1031 = vmatprep.subr.bf16.mxu0 %v2958_v40  ;;  %1293 = vmatprep.subr.bf16.mxu1 %v2958_v40 }
  0x9f   :  { %1032 = vmatpush1.bf16.msra.mxu0 %v2965_v41  ;;  %1294 = vmatpush1.bf16.msra.mxu1 %v2965_v41 }
  0xa0   :  { %1033 = vmatprep.subr.bf16.mxu0 %v2972_v42  ;;  %1295 = vmatprep.subr.bf16.mxu1 %v2972_v42 }
  0xa3   :  { %1034 = vmatpush1.bf16.msra.mxu0 %v2979_v43  ;;  %1296 = vmatpush1.bf16.msra.mxu1 %v2979_v43 }
  0xa4   :  { %1035 = vmatprep.subr.bf16.mxu0 %v2986_v44  ;;  %1297 = vmatprep.subr.bf16.mxu1 %v2986_v44 }
  0xa7   :  { %1036 = vmatpush1.bf16.msra.mxu0 %v2993_v47  ;;  %1298 = vmatpush1.bf16.msra.mxu1 %v2993_v47  ;;  %v2417_v47 = vld [vmem:[%s3878_s1 + $0x14] ss:$8 sps:$4 sm:$0xff]  }
  0xa8   :  { %1037 = vmatprep.subr.bf16.mxu0 %v3000_v48  ;;  %1299 = vmatprep.subr.bf16.mxu1 %v3000_v48  ;;  %v3081_v48 = vld [vmem:[%s3878_s1 + $0x2f0] ss:$8 sps:$4 sm:$0xff]  }
  0xa9   :  { %4021 = vst [vmem:[#allocation15_spill] sm:$0xff] %v3081_v48 }
  0xab   :  { %1038 = vmatpush1.bf16.msra.mxu0 %v3007_v51  ;;  %1300 = vmatpush1.bf16.msra.mxu1 %v3007_v51  ;;  %v182_v51 = vcombine.high %v2827_v19, %v2827_v19  ;;  %v3088_v19 = vld [vmem:[%s3878_s1 + $0x304] ss:$8 sps:$4 sm:$0xff]  }
  0xac   :  { %1039 = vmatprep.subr.bf16.mxu0 %v3014_v52  ;;  %1301 = vmatprep.subr.bf16.mxu1 %v3014_v52  ;;  %v3042_v52 = vld [vmem:[%s3878_s1 + $0x2d4] ss:$8 sps:$4 sm:$0xff]   ;;  %4022 = vst [vmem:[#allocation16_spill] sm:$0xff] %v3088_v19 }
  0xad   :  { %4016 = vst [vmem:[#allocation10_spill] sm:$0xff] %v3042_v52 }
  0xaf   :  { %1040 = vmatpush1.bf16.msra.mxu0 %v3021_v27  ;;  %1302 = vmatpush1.bf16.msra.mxu1 %v3021_v27  ;;  %v3049_v27 = vld [vmem:[%s3878_s1 + $0x2d0] ss:$8 sps:$4 sm:$0xff]  }
  0xb0   :  { %1041 = vmatprep.subr.bf16.mxu0 %v3028_v28  ;;  %1303 = vmatprep.subr.bf16.mxu1 %v3028_v28  ;;  %4017 = vst [vmem:[#allocation11_spill] sm:$0xff] %v3049_v27  ;;  %v3056_v28 = vld [vmem:[%s3878_s1 + $0x2e4] ss:$8 sps:$4 sm:$0xff]  }
  0xb1   :  { %4018 = vst [vmem:[#allocation12_spill] sm:$0xff] %v3056_v28 }
  0xb3   :  { %1042 = vmatpush1.bf16.msra.mxu0 %v3035_v13  ;;  %1304 = vmatpush1.bf16.msra.mxu1 %v3035_v13  ;;  %v3063_v13 = vld [vmem:[%s3878_s1 + $0x2e0] ss:$8 sps:$4 sm:$0xff]  }
  0xb4   :  { %1043 = vmatprep.subr.bf16.mxu0 %v3042_v52  ;;  %1305 = vmatprep.subr.bf16.mxu1 %v3042_v52  ;;  %4019 = vst [vmem:[#allocation13_spill] sm:$0xff] %v3063_v13  ;;  %v3070_v52 = vld [vmem:[%s3878_s1 + $0x2f4] ss:$8 sps:$4 sm:$0xff]  }
  0xb5   :  { %4020 = vst [vmem:[#allocation14_spill] sm:$0xff] %v3070_v52 }
  0xb7   :  { %1044 = vmatpush1.bf16.msra.mxu0 %v3049_v27  ;;  %1306 = vmatpush1.bf16.msra.mxu1 %v3049_v27  ;;  %v1164_v27 = vcombine.high %v2832_v20, %v2832_v20  ;;  %v3091_v20 = vrot.slane %v182_v51, %v2504_v16  ;;  %v3108_v51 = vld [vmem:[%s3878_s1 + $0x314] ss:$8 sps:$4 sm:$0xff]  }
  0xb8   :  { %1045 = vmatprep.subr.bf16.mxu0 %v3056_v28  ;;  %1307 = vmatprep.subr.bf16.mxu1 %v3056_v28  ;;  %4024 = vst [vmem:[#allocation18_spill] sm:$0xff] %v3108_v51 }
  0xb9   :  { %v3094_v28 = vrot.slane %v1164_v27, %v2504_v16  ;;  %v198_v27 = vcombine.high %v3091_v20, %v3091_v20 }
  0xbb   :  { %1046 = vmatpush1.bf16.msra.mxu0 %v3063_v13  ;;  %1308 = vmatpush1.bf16.msra.mxu1 %v3063_v13  ;;  %v3101_v13 = vld [vmem:[%s3878_s1 + $0x300] ss:$8 sps:$4 sm:$0xff]  }
  0xbc   :  { %1047 = vmatprep.subr.bf16.mxu0 %v3070_v52  ;;  %1309 = vmatprep.subr.bf16.mxu1 %v3070_v52  ;;  %4023 = vst [vmem:[#allocation17_spill] sm:$0xff] %v3101_v13  ;;  %v3128_v52 = vld [vmem:[%s3878_s1 + $0x324] ss:$8 sps:$4 sm:$0xff]  }
  0xbd   :  { %4026 = vst [vmem:[#allocation20_spill] sm:$0xff] %v3128_v52 }
  0xbf   :  { %1048 = vmatpush1.bf16.msra.mxu0 %v3081_v48  ;;  %1310 = vmatpush1.bf16.msra.mxu1 %v3081_v48  ;;  %v1180_v48 = vcombine.high %v3094_v28, %v3094_v28 }
  0xc0   :  { %1058 = vmatprep.subr.bf16.mxu0 %v3088_v19  ;;  %1320 = vmatprep.subr.bf16.mxu1 %v3088_v19  ;;  %v3121_v19 = vld [vmem:[%s3878_s1 + $0x310] ss:$8 sps:$4 sm:$0xff]  }
  0xc1   :  { %4025 = vst [vmem:[#allocation19_spill] sm:$0xff] %v3121_v19 }
  0xc2   :  { %1050 = vmatmul.mubr.bf16.vlgmr.msra.gmra.mrb[0].mxu0 %v2850_v23  ;;  %1312 = vmatmul.mubr.bf16.vlgmr.msra.gmra.mrb[0].mxu1 %v2854_v24  ;;  %v3135_v23 = vld [vmem:[%s3878_s1 + $0x320] ss:$8 sps:$4 sm:$0xff]   ;;  %v3142_v24 = vld [vmem:[%s3878_s1 + $0x334] ss:$8 sps:$4 sm:$0xff]  }
  0xc3   :  { %1059 = vmatpush1.bf16.msra.mxu0 %v3101_v13  ;;  %1321 = vmatpush1.bf16.msra.mxu1 %v3101_v13  ;;  %4027 = vst [vmem:[#allocation21_spill] sm:$0xff] %v3135_v23  ;;  %4028 = vst [vmem:[#allocation22_spill] sm:$0xff] %v3142_v24 }
  0xc4   :  { %1060 = vmatprep.subr.bf16.mxu0 %v3108_v51  ;;  %1322 = vmatprep.subr.bf16.mxu1 %v3108_v51 }
  0xc5   :  { %1090 = vmatprep.mubr.bf16.mxu0 %v198_v27  ;;  %1352 = vmatprep.mubr.bf16.mxu1 %v1180_v48  ;;  %v3149_v48 = vld [vmem:[%s3878_s1 + $0x330] ss:$8 sps:$4 sm:$0xff]   ;;  %v3156_v27 = vld [vmem:[%s3878_s1 + $0x344] ss:$8 sps:$4 sm:$0xff]  }
  0xc6   :  { %4029 = vst [vmem:[#allocation23_spill] sm:$0xff] %v3149_v48  ;;  %4030 = vst [vmem:[#allocation24_spill] sm:$0xff] %v3156_v27 }
  0xc7   :  { %1061 = vmatpush1.bf16.msra.mxu0 %v3121_v19  ;;  %1323 = vmatpush1.bf16.msra.mxu1 %v3121_v19  ;;  %v2415_v19 = vld [vmem:[%s3878_s1 + $0x4] ss:$8 sps:$4 sm:$0xff]  }
  0xc8   :  { %1062 = vmatprep.subr.bf16.mxu0 %v3128_v52  ;;  %1324 = vmatprep.subr.bf16.mxu1 %v3128_v52 }
  0xcb   :  { %1063 = vmatpush1.bf16.msra.mxu0 %v3135_v23  ;;  %1325 = vmatpush1.bf16.msra.mxu1 %v3135_v23  ;;  %v3163_v23 = vld [vmem:[%s3878_s1 + $0x340] ss:$8 sps:$4 sm:$0xff]  }
  0xcc   :  { %1064 = vmatprep.subr.bf16.mxu0 %v3142_v24  ;;  %1326 = vmatprep.subr.bf16.mxu1 %v3142_v24  ;;  %4031 = vst [vmem:[#allocation25_spill] sm:$0xff] %v3163_v23  ;;  %v3170_v24 = vld [vmem:[%s3878_s1 + $0x354] ss:$8 sps:$4 sm:$0xff]  }
  0xcd   :  { %4032 = vst [vmem:[#allocation26_spill] sm:$0xff] %v3170_v24 }
  0xcf   :  { %1065 = vmatpush1.bf16.msra.mxu0 %v3149_v48  ;;  %1327 = vmatpush1.bf16.msra.mxu1 %v3149_v48  ;;  %v3177_v48 = vld [vmem:[%s3878_s1 + $0x350] ss:$8 sps:$4 sm:$0xff]  }
  0xd0   :  { %1066 = vmatprep.subr.bf16.mxu0 %v3156_v27  ;;  %1328 = vmatprep.subr.bf16.mxu1 %v3156_v27  ;;  %4033 = vst [vmem:[#allocation27_spill] sm:$0xff] %v3177_v48  ;;  %v3184_v27 = vld [vmem:[%s3878_s1 + $0x364] ss:$8 sps:$4 sm:$0xff]  }
  0xd1   :  { %4034 = vst [vmem:[#allocation28_spill] sm:$0xff] %v3184_v27 }
  0xd3   :  { %1067 = vmatpush1.bf16.msra.mxu0 %v3163_v23  ;;  %1329 = vmatpush1.bf16.msra.mxu1 %v3163_v23  ;;  %v3191_v23 = vld [vmem:[%s3878_s1 + $0x360] ss:$8 sps:$4 sm:$0xff]  }
  0xd4   :  { %1068 = vmatprep.subr.bf16.mxu0 %v3170_v24  ;;  %1330 = vmatprep.subr.bf16.mxu1 %v3170_v24  ;;  %4035 = vst [vmem:[#allocation29_spill] sm:$0xff] %v3191_v23  ;;  %v3198_v24 = vld [vmem:[%s3878_s1 + $0x374] ss:$8 sps:$4 sm:$0xff]  }
  0xd5   :  { %4036 = vst [vmem:[#allocation30_spill] sm:$0xff] %v3198_v24 }
  0xd7   :  { %1069 = vmatpush1.bf16.msra.mxu0 %v3177_v48  ;;  %1331 = vmatpush1.bf16.msra.mxu1 %v3177_v48  ;;  %v3205_v48 = vld [vmem:[%s3878_s1 + $0x370] ss:$8 sps:$4 sm:$0xff]  }
  0xd8   :  { %1070 = vmatprep.subr.bf16.mxu0 %v3184_v27  ;;  %1332 = vmatprep.subr.bf16.mxu1 %v3184_v27  ;;  %4037 = vst [vmem:[#allocation31_spill] sm:$0xff] %v3205_v48  ;;  %v3212_v27 = vld [vmem:[%s3878_s1 + $0x384] ss:$8 sps:$4 sm:$0xff]  }
  0xd9   :  { %4038 = vst [vmem:[#allocation32_spill] sm:$0xff] %v3212_v27 }
  0xdb   :  { %1071 = vmatpush1.bf16.msra.mxu0 %v3191_v23  ;;  %1333 = vmatpush1.bf16.msra.mxu1 %v3191_v23  ;;  %v3219_v23 = vld [vmem:[%s3878_s1 + $0x380] ss:$8 sps:$4 sm:$0xff]  }
  0xdc   :  { %1072 = vmatprep.subr.bf16.mxu0 %v3198_v24  ;;  %1334 = vmatprep.subr.bf16.mxu1 %v3198_v24  ;;  %4039 = vst [vmem:[#allocation33_spill] sm:$0xff] %v3219_v23  ;;  %v3226_v24 = vld [vmem:[%s3878_s1 + $0x394] ss:$8 sps:$4 sm:$0xff]  }
  0xdd   :  { %4040 = vst [vmem:[#allocation34_spill] sm:$0xff] %v3226_v24 }
  0xdf   :  { %1073 = vmatpush1.bf16.msra.mxu0 %v3205_v48  ;;  %1335 = vmatpush1.bf16.msra.mxu1 %v3205_v48  ;;  %v3233_v48 = vld [vmem:[%s3878_s1 + $0x390] ss:$8 sps:$4 sm:$0xff]  }
  0xe0   :  { %1074 = vmatprep.subr.bf16.mxu0 %v3212_v27  ;;  %1336 = vmatprep.subr.bf16.mxu1 %v3212_v27  ;;  %4041 = vst [vmem:[#allocation35_spill] sm:$0xff] %v3233_v48  ;;  %v3240_v27 = vld [vmem:[%s3878_s1 + $0x3a4] ss:$8 sps:$4 sm:$0xff]  }
  0xe1   :  { %4042 = vst [vmem:[#allocation36_spill] sm:$0xff] %v3240_v27 }
  0xe3   :  { %1075 = vmatpush1.bf16.msra.mxu0 %v3219_v23  ;;  %1337 = vmatpush1.bf16.msra.mxu1 %v3219_v23  ;;  %v3247_v23 = vld [vmem:[%s3878_s1 + $0x3a0] ss:$8 sps:$4 sm:$0xff]  }
  0xe4   :  { %1076 = vmatprep.subr.bf16.mxu0 %v3226_v24  ;;  %1338 = vmatprep.subr.bf16.mxu1 %v3226_v24  ;;  %4043 = vst [vmem:[#allocation37_spill] sm:$0xff] %v3247_v23  ;;  %v3254_v24 = vld [vmem:[%s3878_s1 + $0x3b4] ss:$8 sps:$4 sm:$0xff]  }
  0xe5   :  { %4044 = vst [vmem:[#allocation38_spill] sm:$0xff] %v3254_v24 }
  0xe7   :  { %1077 = vmatpush1.bf16.msra.mxu0 %v3233_v48  ;;  %1339 = vmatpush1.bf16.msra.mxu1 %v3233_v48  ;;  %v3261_v48 = vld [vmem:[%s3878_s1 + $0x3b0] ss:$8 sps:$4 sm:$0xff]  }
  0xe8   :  { %1078 = vmatprep.subr.bf16.mxu0 %v3240_v27  ;;  %1340 = vmatprep.subr.bf16.mxu1 %v3240_v27  ;;  %4045 = vst [vmem:[#allocation39_spill] sm:$0xff] %v3261_v48  ;;  %v3268_v27 = vld [vmem:[%s3878_s1 + $0x3c4] ss:$8 sps:$4 sm:$0xff]  }
  0xe9   :  { %4046 = vst [vmem:[#allocation40_spill] sm:$0xff] %v3268_v27 }
  0xeb   :  { %1079 = vmatpush1.bf16.msra.mxu0 %v3247_v23  ;;  %1341 = vmatpush1.bf16.msra.mxu1 %v3247_v23  ;;  %v3275_v23 = vld [vmem:[%s3878_s1 + $0x3c0] ss:$8 sps:$4 sm:$0xff]  }
  0xec   :  { %1080 = vmatprep.subr.bf16.mxu0 %v3254_v24  ;;  %1342 = vmatprep.subr.bf16.mxu1 %v3254_v24  ;;  %4047 = vst [vmem:[#allocation41_spill] sm:$0xff] %v3275_v23  ;;  %v3282_v24 = vld [vmem:[%s3878_s1 + $0x3d4] ss:$8 sps:$4 sm:$0xff]  }
  0xed   :  { %4048 = vst [vmem:[#allocation42_spill] sm:$0xff] %v3282_v24 }
  0xef   :  { %1081 = vmatpush1.bf16.msra.mxu0 %v3261_v48  ;;  %1343 = vmatpush1.bf16.msra.mxu1 %v3261_v48  ;;  %v3289_v48 = vld [vmem:[%s3878_s1 + $0x3d0] ss:$8 sps:$4 sm:$0xff]  }
  0xf0   :  { %1082 = vmatprep.subr.bf16.mxu0 %v3268_v27  ;;  %1344 = vmatprep.subr.bf16.mxu1 %v3268_v27  ;;  %4049 = vst [vmem:[#allocation43_spill] sm:$0xff] %v3289_v48  ;;  %v3296_v27 = vld [vmem:[%s3878_s1 + $0x3e4] ss:$8 sps:$4 sm:$0xff]  }
  0xf1   :  { %4050 = vst [vmem:[#allocation44_spill] sm:$0xff] %v3296_v27 }
  0xf3   :  { %1083 = vmatpush1.bf16.msra.mxu0 %v3275_v23  ;;  %1345 = vmatpush1.bf16.msra.mxu1 %v3275_v23  ;;  %v3303_v23 = vld [vmem:[%s3878_s1 + $0x3e0] ss:$8 sps:$4 sm:$0xff]  }
  0xf4   :  { %1084 = vmatprep.subr.bf16.mxu0 %v3282_v24  ;;  %1346 = vmatprep.subr.bf16.mxu1 %v3282_v24  ;;  %4051 = vst [vmem:[#allocation45_spill] sm:$0xff] %v3303_v23  ;;  %v3310_v24 = vld [vmem:[%s3878_s1 + $0x3f4] ss:$8 sps:$4 sm:$0xff]  }
  0xf5   :  { %4052 = vst [vmem:[#allocation46_spill] sm:$0xff] %v3310_v24 }
  0xf7   :  { %1085 = vmatpush1.bf16.msra.mxu0 %v3289_v48  ;;  %1347 = vmatpush1.bf16.msra.mxu1 %v3289_v48  ;;  %v3317_v48 = vld [vmem:[%s3878_s1 + $0x3f0] ss:$8 sps:$4 sm:$0xff]  }
  0xf8   :  { %1086 = vmatprep.subr.bf16.mxu0 %v3296_v27  ;;  %1348 = vmatprep.subr.bf16.mxu1 %v3296_v27  ;;  %4053 = vst [vmem:[#allocation47_spill] sm:$0xff] %v3317_v48  ;;  %v3324_v27 = vld [vmem:[%s3878_s1 + $0x404] ss:$8 sps:$4 sm:$0xff]  }
  0xf9   :  { %4054 = vst [vmem:[#allocation48_spill] sm:$0xff] %v3324_v27 }
  0xfb   :  { %1087 = vmatpush1.bf16.msra.mxu0 %v3303_v23  ;;  %1349 = vmatpush1.bf16.msra.mxu1 %v3303_v23  ;;  %v3331_v23 = vld [vmem:[%s3878_s1 + $0x400] ss:$8 sps:$4 sm:$0xff]  }
  0xfc   :  { %1088 = vmatprep.subr.bf16.mxu0 %v3310_v24  ;;  %1350 = vmatprep.subr.bf16.mxu1 %v3310_v24  ;;  %4055 = vst [vmem:[#allocation49_spill] sm:$0xff] %v3331_v23  ;;  %v3338_v24 = vld [vmem:[%s3878_s1 + $0x414] ss:$8 sps:$4 sm:$0xff]  }
  0xfd   :  { %4056 = vst [vmem:[#allocation50_spill] sm:$0xff] %v3338_v24 }
  0xff   :  { %1089 = vmatpush1.bf16.msra.mxu0 %v3317_v48  ;;  %1351 = vmatpush1.bf16.msra.mxu1 %v3317_v48  ;;  %v3347_v48 = vld [vmem:[%s3878_s1 + $0x410] ss:$8 sps:$4 sm:$0xff]  }
 0x100   :  { %1099 = vmatprep.subr.bf16.mxu0 %v3324_v27  ;;  %1361 = vmatprep.subr.bf16.mxu1 %v3324_v27  ;;  %4057 = vst [vmem:[#allocation51_spill] sm:$0xff] %v3347_v48  ;;  %v3354_v27 = vld [vmem:[%s3878_s1 + $0x424] ss:$8 sps:$4 sm:$0xff]  }
 0x101   :  { %4058 = vst [vmem:[#allocation52_spill] sm:$0xff] %v3354_v27 }
 0x102   :  { %1091 = vmatmul.mubr.bf16.vlgmr.msra.gmra.mrb[0].mxu0 %v3091_v20  ;;  %1353 = vmatmul.mubr.bf16.vlgmr.msra.gmra.mrb[0].mxu1 %v3094_v28  ;;  %v3968_v20 = vmov 0   ;;  %v3363_v28 = vld [vmem:[%s3878_s1 + $0x420] ss:$8 sps:$4 sm:$0xff]  }
 0x103   :  { %1100 = vmatpush1.bf16.msra.mxu0 %v3331_v23  ;;  %1362 = vmatpush1.bf16.msra.mxu1 %v3331_v23  ;;  %4059 = vst [vmem:[#allocation53_spill] sm:$0xff] %v3363_v28 }
 0x104   :  { %1101 = vmatprep.subr.bf16.mxu0 %v3338_v24  ;;  %1363 = vmatprep.subr.bf16.mxu1 %v3338_v24  ;;  %v3370_v24 = vld [vmem:[%s3878_s1 + $0x434] ss:$8 sps:$4 sm:$0xff]  }
 0x105   :  { %1131 = vmatprep.mubr.bf16.mxu0 %v3968_v20  ;;  %1393 = vmatprep.mubr.bf16.mxu1 %v3968_v20  ;;  %4060 = vst [vmem:[#allocation54_spill] sm:$0xff] %v3370_v24  ;;  %v3377_v20 = vld [vmem:[%s3878_s1 + $0x430] ss:$8 sps:$4 sm:$0xff]  }
 0x106   :  { %4061 = vst [vmem:[#allocation55_spill] sm:$0xff] %v3377_v20 }
 0x107   :  { %1102 = vmatpush1.bf16.msra.mxu0 %v3347_v48  ;;  %1364 = vmatpush1.bf16.msra.mxu1 %v3347_v48  ;;  %v3431_v48 = vld [vmem:[%s3879_s0 + $0x24] sm:$0xff] }
 0x108   :  { %1103 = vmatprep.subr.bf16.mxu0 %v3354_v27  ;;  %1365 = vmatprep.subr.bf16.mxu1 %v3354_v27  ;;  %v3384_v27 = vld [vmem:[%s3878_s1 + $0x444] ss:$8 sps:$4 sm:$0xff]   ;;  %v3449_v23 = vrot.slane %v3431_v48, %v2504_v16 }
 0x109   :  { %4062 = vst [vmem:[#allocation56_spill] sm:$0xff] %v3384_v27 }
 0x10a   :  { %v1426_v51 = vcombine.high %v3449_v23, %v3449_v23 }
 0x10b   :  { %1104 = vmatpush1.bf16.msra.mxu0 %v3363_v28  ;;  %1366 = vmatpush1.bf16.msra.mxu1 %v3363_v28  ;;  %v3391_v28 = vld [vmem:[%s3878_s1 + $0x440] ss:$8 sps:$4 sm:$0xff]  }
 0x10c   :  { %1105 = vmatprep.subr.bf16.mxu0 %v3370_v24  ;;  %1367 = vmatprep.subr.bf16.mxu1 %v3370_v24  ;;  %4063 = vst [vmem:[#allocation57_spill] sm:$0xff] %v3391_v28  ;;  %v3398_v24 = vld [vmem:[%s3878_s1 + $0x454] ss:$8 sps:$4 sm:$0xff]  }
 0x10d   :  { %4064 = vst [vmem:[#allocation58_spill] sm:$0xff] %v3398_v24 }
 0x10f   :  { %1106 = vmatpush1.bf16.msra.mxu0 %v3377_v20  ;;  %1368 = vmatpush1.bf16.msra.mxu1 %v3377_v20  ;;  %v3405_v20 = vld [vmem:[%s3878_s1 + $0x450] ss:$8 sps:$4 sm:$0xff]  }
 0x110   :  { %1107 = vmatprep.subr.bf16.mxu0 %v3384_v27  ;;  %1369 = vmatprep.subr.bf16.mxu1 %v3384_v27  ;;  %4065 = vst [vmem:[#allocation59_spill] sm:$0xff] %v3405_v20  ;;  %v3412_v27 = vld [vmem:[%s3878_s1 + $0x464] ss:$8 sps:$4 sm:$0xff]  }
 0x111   :  { %4066 = vst [vmem:[#allocation60_spill] sm:$0xff] %v3412_v27 }
 0x113   :  { %1108 = vmatpush1.bf16.msra.mxu0 %v3391_v28  ;;  %1370 = vmatpush1.bf16.msra.mxu1 %v3391_v28  ;;  %v3419_v28 = vld [vmem:[%s3878_s1 + $0x460] ss:$8 sps:$4 sm:$0xff]  }
 0x114   :  { %1109 = vmatprep.subr.bf16.mxu0 %v3398_v24  ;;  %1371 = vmatprep.subr.bf16.mxu1 %v3398_v24  ;;  %4067 = vst [vmem:[#allocation61_spill] sm:$0xff] %v3419_v28  ;;  %v3426_v24 = vld [vmem:[%s3878_s1 + $0x474] ss:$8 sps:$4 sm:$0xff]  }
 0x115   :  { %4068 = vst [vmem:[#allocation62_spill] sm:$0xff] %v3426_v24 }
 0x117   :  { %1110 = vmatpush1.bf16.msra.mxu0 %v3405_v20  ;;  %1372 = vmatpush1.bf16.msra.mxu1 %v3405_v20  ;;  %v3436_v20 = vld [vmem:[%s3879_s0 + $0x36] sm:$0xff] }
 0x118   :  { %1111 = vmatprep.subr.bf16.mxu0 %v3412_v27  ;;  %1373 = vmatprep.subr.bf16.mxu1 %v3412_v27  ;;  %v3443_v27 = vld [vmem:[%s3878_s1 + $0x470] ss:$8 sps:$4 sm:$0xff]   ;;  %v3453_v52 = vrot.slane %v3436_v20, %v2504_v16 }
 0x119   :  { %4069 = vst [vmem:[#allocation63_spill] sm:$0xff] %v3443_v27 }
 0x11a   :  { %v1690_v13 = vcombine.high %v3453_v52, %v3453_v52 }
 0x11b   :  { %1112 = vmatpush1.bf16.msra.mxu0 %v3419_v28  ;;  %1374 = vmatpush1.bf16.msra.mxu1 %v3419_v28  ;;  %v1966_v28 = vld.sshfl [vmem:[%s3879_s0 + $0x10] sm:$0x3 pattern:$0x76325410] }
 0x11c   :  { %1113 = vmatprep.subr.bf16.mxu0 %v3426_v24  ;;  %1375 = vmatprep.subr.bf16.mxu1 %v3426_v24  ;;  %v2114_v24 = vld.sshfl [vmem:[%s3879_s0 + $0x22] sm:$0x3 pattern:$0x76325410] }
 0x11f   :  { %1114 = vmatpush1.bf16.msra.mxu0 %v3443_v27  ;;  %1376 = vmatpush1.bf16.msra.mxu1 %v3443_v27  ;;  %v2416_v27 = vld [vmem:[%s3878_s1] ss:$8 sps:$4 sm:$0xff]  }
 0x120   :  { %1461 = vmatprep.subr.bf16.mxu0 %v2415_v19  ;;  %1725 = vmatprep.subr.bf16.mxu1 %v2415_v19  ;;  %v2418_v19 = vld [vmem:[%s3878_s1 + $0x10] ss:$8 sps:$4 sm:$0xff]  }
 0x122   :  { %1132 = vmatmul.mubr.bf16.vlgmr.msra.gmra.mrb[0].mxu0 %v1966_v28  ;;  %1394 = vmatmul.mubr.bf16.vlgmr.msra.gmra.mrb[0].mxu1 %v2114_v24  ;;  %v2419_v24 = vld [vmem:[%s3878_s1 + $0x24] ss:$8 sps:$4 sm:$0xff]   ;;  %v2424_v28 = vld [vmem:[%s3878_s1 + $0x40] ss:$8 sps:$4 sm:$0xff]  }
 0x123   :  { %1462 = vmatpush1.bf16.msra.mxu0 %v2416_v27  ;;  %1726 = vmatpush1.bf16.msra.mxu1 %v2416_v27  ;;  %v2420_v27 = vld [vmem:[%s3878_s1 + $0x20] ss:$8 sps:$4 sm:$0xff]  }
 0x124   :  { %1463 = vmatprep.subr.bf16.mxu0 %v2417_v47  ;;  %1727 = vmatprep.subr.bf16.mxu1 %v2417_v47  ;;  %v2422_v47 = vld [vmem:[%s3878_s1 + $0x30] ss:$8 sps:$4 sm:$0xff]  }
 0x125   :  { %1493 = vmatprep.mubr.bf16.mxu0 %v1426_v51  ;;  %1757 = vmatprep.mubr.bf16.mxu1 %v1690_v13  ;;  %v2421_v13 = vld [vmem:[%s3878_s1 + $0x34] ss:$8 sps:$4 sm:$0xff]   ;;  %v2423_v51 = vld [vmem:[%s3878_s1 + $0x44] ss:$8 sps:$4 sm:$0xff]  }
 0x127   :  { %1464 = vmatpush1.bf16.msra.mxu0 %v2418_v19  ;;  %1728 = vmatpush1.bf16.msra.mxu1 %v2418_v19  ;;  %v2425_v19 = vld [vmem:[%s3878_s1 + $0x54] ss:$8 sps:$4 sm:$0xff]  }
 0x128   :  { %1465 = vmatprep.subr.bf16.mxu0 %v2419_v24  ;;  %1729 = vmatprep.subr.bf16.mxu1 %v2419_v24  ;;  %v2426_v24 = vld [vmem:[%s3878_s1 + $0x50] ss:$8 sps:$4 sm:$0xff]  }
 0x12b   :  { %1466 = vmatpush1.bf16.msra.mxu0 %v2420_v27  ;;  %1730 = vmatpush1.bf16.msra.mxu1 %v2420_v27  ;;  %v2427_v27 = vld [vmem:[%s3878_s1 + $0x64] ss:$8 sps:$4 sm:$0xff]  }
 0x12c   :  { %1467 = vmatprep.subr.bf16.mxu0 %v2421_v13  ;;  %1731 = vmatprep.subr.bf16.mxu1 %v2421_v13  ;;  %v2428_v13 = vld [vmem:[%s3878_s1 + $0x60] ss:$8 sps:$4 sm:$0xff]  }
 0x12f   :  { %1468 = vmatpush1.bf16.msra.mxu0 %v2422_v47  ;;  %1732 = vmatpush1.bf16.msra.mxu1 %v2422_v47  ;;  %v2429_v47 = vld [vmem:[%s3878_s1 + $0x74] ss:$8 sps:$4 sm:$0xff]  }
 0x130   :  { %1469 = vmatprep.subr.bf16.mxu0 %v2423_v51  ;;  %1733 = vmatprep.subr.bf16.mxu1 %v2423_v51  ;;  %v2430_v51 = vld [vmem:[%s3878_s1 + $0x70] ss:$8 sps:$4 sm:$0xff]  }
 0x133   :  { %1470 = vmatpush1.bf16.msra.mxu0 %v2424_v28  ;;  %1734 = vmatpush1.bf16.msra.mxu1 %v2424_v28  ;;  %v2431_v28 = vld [vmem:[%s3878_s1 + $0x84] ss:$8 sps:$4 sm:$0xff]  }
 0x134   :  { %1471 = vmatprep.subr.bf16.mxu0 %v2425_v19  ;;  %1735 = vmatprep.subr.bf16.mxu1 %v2425_v19  ;;  %v2432_v19 = vld [vmem:[%s3878_s1 + $0x80] ss:$8 sps:$4 sm:$0xff]  }
 0x137   :  { %1472 = vmatpush1.bf16.msra.mxu0 %v2426_v24  ;;  %1736 = vmatpush1.bf16.msra.mxu1 %v2426_v24  ;;  %v2433_v24 = vld [vmem:[%s3878_s1 + $0x94] ss:$8 sps:$4 sm:$0xff]  }
 0x138   :  { %1473 = vmatprep.subr.bf16.mxu0 %v2427_v27  ;;  %1737 = vmatprep.subr.bf16.mxu1 %v2427_v27  ;;  %v2434_v27 = vld [vmem:[%s3878_s1 + $0x90] ss:$8 sps:$4 sm:$0xff]  }
 0x13b   :  { %1474 = vmatpush1.bf16.msra.mxu0 %v2428_v13  ;;  %1738 = vmatpush1.bf16.msra.mxu1 %v2428_v13  ;;  %v2435_v13 = vld [vmem:[%s3878_s1 + $0xa4] ss:$8 sps:$4 sm:$0xff]  }
 0x13c   :  { %1475 = vmatprep.subr.bf16.mxu0 %v2429_v47  ;;  %1739 = vmatprep.subr.bf16.mxu1 %v2429_v47  ;;  %v2436_v47 = vld [vmem:[%s3878_s1 + $0xa0] ss:$8 sps:$4 sm:$0xff]  }
 0x13f   :  { %1476 = vmatpush1.bf16.msra.mxu0 %v2430_v51  ;;  %1740 = vmatpush1.bf16.msra.mxu1 %v2430_v51  ;;  %v2437_v51 = vld [vmem:[%s3878_s1 + $0xb4] ss:$8 sps:$4 sm:$0xff]  }
 0x140   :  { %1477 = vmatprep.subr.bf16.mxu0 %v2431_v28  ;;  %1741 = vmatprep.subr.bf16.mxu1 %v2431_v28  ;;  %v2438_v28 = vld [vmem:[%s3878_s1 + $0xb0] ss:$8 sps:$4 sm:$0xff]  }
 0x143   :  { %1478 = vmatpush1.bf16.msra.mxu0 %v2432_v19  ;;  %1742 = vmatpush1.bf16.msra.mxu1 %v2432_v19  ;;  %v2439_v19 = vld [vmem:[%s3878_s1 + $0xc4] ss:$8 sps:$4 sm:$0xff]  }
 0x144   :  { %1479 = vmatprep.subr.bf16.mxu0 %v2433_v24  ;;  %1743 = vmatprep.subr.bf16.mxu1 %v2433_v24  ;;  %v2440_v24 = vld [vmem:[%s3878_s1 + $0xc0] ss:$8 sps:$4 sm:$0xff]  }
 0x147   :  { %1480 = vmatpush1.bf16.msra.mxu0 %v2434_v27  ;;  %1744 = vmatpush1.bf16.msra.mxu1 %v2434_v27  ;;  %v2441_v27 = vld [vmem:[%s3878_s1 + $0xd4] ss:$8 sps:$4 sm:$0xff]  }
 0x148   :  { %1481 = vmatprep.subr.bf16.mxu0 %v2435_v13  ;;  %1745 = vmatprep.subr.bf16.mxu1 %v2435_v13  ;;  %v2442_v13 = vld [vmem:[%s3878_s1 + $0xd0] ss:$8 sps:$4 sm:$0xff]  }
 0x14b   :  { %1482 = vmatpush1.bf16.msra.mxu0 %v2436_v47  ;;  %1746 = vmatpush1.bf16.msra.mxu1 %v2436_v47  ;;  %v2443_v47 = vld [vmem:[%s3878_s1 + $0xe4] ss:$8 sps:$4 sm:$0xff]  }
 0x14c   :  { %1483 = vmatprep.subr.bf16.mxu0 %v2437_v51  ;;  %1747 = vmatprep.subr.bf16.mxu1 %v2437_v51  ;;  %v1411_v51 = vcombine.high %v3431_v48, %v3431_v48 }
 0x14f   :  { %1484 = vmatpush1.bf16.msra.mxu0 %v2438_v28  ;;  %1748 = vmatpush1.bf16.msra.mxu1 %v2438_v28  ;;  %v1675_v28 = vcombine.high %v3436_v20, %v3436_v20 }
 0x150   :  { %1485 = vmatprep.subr.bf16.mxu0 %v2439_v19  ;;  %1749 = vmatprep.subr.bf16.mxu1 %v2439_v19  ;;  %v2444_v19 = vld [vmem:[%s3878_s1 + $0xe0] ss:$8 sps:$4 sm:$0xff]  }
 0x151   :  { %v3568_v48 = vrot.slane %v1675_v28, %v2504_v16  ;;  %v4105_v28 = vld [vmem:[#allocation38_spill] sm:$0xff] }
 0x153   :  { %1486 = vmatpush1.bf16.msra.mxu0 %v2440_v24  ;;  %1750 = vmatpush1.bf16.msra.mxu1 %v2440_v24  ;;  %v2445_v24 = vld [vmem:[%s3878_s1 + $0xf4] ss:$8 sps:$4 sm:$0xff]  }
 0x154   :  { %1487 = vmatprep.subr.bf16.mxu0 %v2441_v27  ;;  %1751 = vmatprep.subr.bf16.mxu1 %v2441_v27  ;;  %v3565_v27 = vrot.slane %v1411_v51, %v2504_v16  ;;  %v4104_v51 = vld [vmem:[#allocation37_spill] sm:$0xff] }
 0x156   :  { %v1427_v20 = vcombine.high %v3565_v27, %v3565_v27 }
 0x157   :  { %1488 = vmatpush1.bf16.msra.mxu0 %v2442_v13  ;;  %1752 = vmatpush1.bf16.msra.mxu1 %v2442_v13  ;;  %v1691_v13 = vcombine.high %v3568_v48, %v3568_v48 }
 0x158   :  { %1489 = vmatprep.subr.bf16.mxu0 %v2443_v47  ;;  %1753 = vmatprep.subr.bf16.mxu1 %v2443_v47  ;;  %v4103_v47 = vld [vmem:[#allocation36_spill] sm:$0xff] }
 0x15b   :  { %1490 = vmatpush1.bf16.msra.mxu0 %v2444_v19  ;;  %1754 = vmatpush1.bf16.msra.mxu1 %v2444_v19  ;;  %v4106_v19 = vld [vmem:[#allocation39_spill] sm:$0xff] }
 0x15c   :  { %1491 = vmatprep.subr.bf16.mxu0 %v2445_v24  ;;  %1755 = vmatprep.subr.bf16.mxu1 %v2445_v24  ;;  %v4107_v24 = vld [vmem:[#allocation40_spill] sm:$0xff] }
 0x15f   :  { %1492 = vmatpush1.bf16.msra.mxu0 %v2595_v45  ;;  %1756 = vmatpush1.bf16.msra.mxu1 %v2595_v45  ;;  %v3639_v45 = vld [vmem:[%s3879_s0 + $0x2c] sm:$0xff] }
 0x160   :  { %1502 = vmatprep.subr.bf16.mxu0 %v2600_v46  ;;  %1766 = vmatprep.subr.bf16.mxu1 %v2600_v46  ;;  %v3644_v46 = vld [vmem:[%s3879_s0 + $0x3e] sm:$0xff] }
 0x162   :  { %1494 = vmatmul.mubr.bf16.vlgmr.msra.gmra.mrb[4].mxu0 %v3449_v23  ;;  %1758 = vmatmul.mubr.bf16.vlgmr.msra.gmra.mrb[4].mxu1 %v3453_v52  ;;  %v4101_v52 = vld [vmem:[#allocation34_spill] sm:$0xff]  ;;  %v4102_v23 = vld [vmem:[#allocation35_spill] sm:$0xff] }
 0x163   :  { %1503 = vmatpush1.bf16.msra.mxu0 %v2613_v49  ;;  %1767 = vmatpush1.bf16.msra.mxu1 %v2613_v49  ;;  %v3652_v49 = vrot.slane %v3639_v45, %v2504_v16 }
 0x164   :  { %1504 = vmatprep.subr.bf16.mxu0 %v2620_v50  ;;  %1768 = vmatprep.subr.bf16.mxu1 %v2620_v50  ;;  %v3656_v50 = vrot.slane %v3644_v46, %v2504_v16 }
 0x165   :  { %1534 = vmatprep.mubr.bf16.mxu0 %v1427_v20  ;;  %1798 = vmatprep.mubr.bf16.mxu1 %v1691_v13  ;;  %v4110_v20 = vld [vmem:[#allocation43_spill] sm:$0xff]  ;;  %v4111_v13 = vld [vmem:[#allocation44_spill] sm:$0xff] }
 0x167   :  { %1505 = vmatpush1.bf16.msra.mxu0 %v2633_v53  ;;  %1769 = vmatpush1.bf16.msra.mxu1 %v2633_v53  ;;  %v1443_v53 = vcombine.high %v3652_v49, %v3652_v49 }
 0x168   :  { %1506 = vmatprep.subr.bf16.mxu0 %v2640_v54  ;;  %1770 = vmatprep.subr.bf16.mxu1 %v2640_v54  ;;  %v1707_v54 = vcombine.high %v3656_v50, %v3656_v50 }
 0x16b   :  { %1507 = vmatpush1.bf16.msra.mxu0 %v2647_v55  ;;  %1771 = vmatpush1.bf16.msra.mxu1 %v2647_v55  ;;  %v4070_v55 = vld [vmem:[#allocation3_spill] sm:$0xff] }
 0x16c   :  { %1508 = vmatprep.subr.bf16.mxu0 %v2654_v56  ;;  %1772 = vmatprep.subr.bf16.mxu1 %v2654_v56  ;;  %v4071_v56 = vld [vmem:[#allocation4_spill] sm:$0xff] }
 0x16f   :  { %1509 = vmatpush1.bf16.msra.mxu0 %v2661_v57  ;;  %1773 = vmatpush1.bf16.msra.mxu1 %v2661_v57  ;;  %v4072_v57 = vld [vmem:[#allocation5_spill] sm:$0xff] }
 0x170   :  { %1510 = vmatprep.subr.bf16.mxu0 %v2668_v58  ;;  %1774 = vmatprep.subr.bf16.mxu1 %v2668_v58  ;;  %v4073_v58 = vld [vmem:[#allocation6_spill] sm:$0xff] }
 0x173   :  { %1511 = vmatpush1.bf16.msra.mxu0 %v2675_v59  ;;  %1775 = vmatpush1.bf16.msra.mxu1 %v2675_v59  ;;  %v4074_v59 = vld [vmem:[#allocation7_spill] sm:$0xff] }
 0x174   :  { %1512 = vmatprep.subr.bf16.mxu0 %v2682_v60  ;;  %1776 = vmatprep.subr.bf16.mxu1 %v2682_v60  ;;  %v4075_v60 = vld [vmem:[#allocation8_spill] sm:$0xff] }
 0x177   :  { %1513 = vmatpush1.bf16.msra.mxu0 %v2689_v61  ;;  %1777 = vmatpush1.bf16.msra.mxu1 %v2689_v61  ;;  %v4076_v61 = vld [vmem:[#allocation9_spill] sm:$0xff] }
 0x178   :  { %1514 = vmatprep.subr.bf16.mxu0 %v2696_v62  ;;  %1778 = vmatprep.subr.bf16.mxu1 %v2696_v62  ;;  %v4077_v62 = vld [vmem:[#allocation10_spill] sm:$0xff] }
 0x17b   :  { %1515 = vmatpush1.bf16.msra.mxu0 %v2703_v63  ;;  %1779 = vmatpush1.bf16.msra.mxu1 %v2703_v63  ;;  %v4078_v63 = vld [vmem:[#allocation11_spill] sm:$0xff] }
 0x17c   :  { %1516 = vmatprep.subr.bf16.mxu0 %v2710_v0  ;;  %1780 = vmatprep.subr.bf16.mxu1 %v2710_v0  ;;  %v4079_v0 = vld [vmem:[#allocation12_spill] sm:$0xff] }
 0x17f   :  { %1517 = vmatpush1.bf16.msra.mxu0 %v2717_v1  ;;  %1781 = vmatpush1.bf16.msra.mxu1 %v2717_v1  ;;  %v1428_v1 = vcombine.high %v3639_v45, %v3639_v45  ;;  %v4112_v45 = vld [vmem:[#allocation45_spill] sm:$0xff] }
 0x180   :  { %1518 = vmatprep.subr.bf16.mxu0 %v2724_v2  ;;  %1782 = vmatprep.subr.bf16.mxu1 %v2724_v2  ;;  %v1692_v2 = vcombine.high %v3644_v46, %v3644_v46  ;;  %v4113_v46 = vld [vmem:[#allocation46_spill] sm:$0xff] }
 0x183   :  { %1519 = vmatpush1.bf16.msra.mxu0 %v2731_v3  ;;  %1783 = vmatpush1.bf16.msra.mxu1 %v2731_v3  ;;  %v4080_v3 = vld [vmem:[#allocation13_spill] sm:$0xff] }
 0x184   :  { %1520 = vmatprep.subr.bf16.mxu0 %v2738_v4  ;;  %1784 = vmatprep.subr.bf16.mxu1 %v2738_v4  ;;  %v4081_v4 = vld [vmem:[#allocation14_spill] sm:$0xff] }
 0x187   :  { %1521 = vmatpush1.bf16.msra.mxu0 %v2745_v5  ;;  %1785 = vmatpush1.bf16.msra.mxu1 %v2745_v5  ;;  %v3733_v5 = vrot.slane %v1428_v1, %v2504_v16  ;;  %v4128_v1 = vld [vmem:[#allocation60_spill] sm:$0xff] }
 0x188   :  { %1522 = vmatprep.subr.bf16.mxu0 %v2752_v6  ;;  %1786 = vmatprep.subr.bf16.mxu1 %v2752_v6  ;;  %v3736_v6 = vrot.slane %v1692_v2, %v2504_v16  ;;  %v4084_v16 = vld [vmem:[#allocation17_spill] sm:$0xff] }
 0x189   :  { %v4129_v2 = vld [vmem:[#allocation61_spill] sm:$0xff] }
 0x18b   :  { %1523 = vmatpush1.bf16.msra.mxu0 %v2759_v7  ;;  %1787 = vmatpush1.bf16.msra.mxu1 %v2759_v7  ;;  %v4082_v7 = vld [vmem:[#allocation15_spill] sm:$0xff] }
 0x18c   :  { %1524 = vmatprep.subr.bf16.mxu0 %v2766_v8  ;;  %1788 = vmatprep.subr.bf16.mxu1 %v2766_v8  ;;  %v4083_v8 = vld [vmem:[#allocation16_spill] sm:$0xff] }
 0x18f   :  { %1525 = vmatpush1.bf16.msra.mxu0 %v2773_v9  ;;  %1789 = vmatpush1.bf16.msra.mxu1 %v2773_v9  ;;  %v1444_v9 = vcombine.high %v3733_v5, %v3733_v5 }
 0x190   :  { %1526 = vmatprep.subr.bf16.mxu0 %v2780_v10  ;;  %1790 = vmatprep.subr.bf16.mxu1 %v2780_v10  ;;  %v1708_v10 = vcombine.high %v3736_v6, %v3736_v6 }
 0x193   :  { %1527 = vmatpush1.bf16.msra.mxu0 %v2787_v11  ;;  %1791 = vmatpush1.bf16.msra.mxu1 %v2787_v11  ;;  %v4085_v11 = vld [vmem:[#allocation18_spill] sm:$0xff] }
 0x194   :  { %1528 = vmatprep.subr.bf16.mxu0 %v2794_v12  ;;  %1792 = vmatprep.subr.bf16.mxu1 %v2794_v12  ;;  %v4086_v12 = vld [vmem:[#allocation19_spill] sm:$0xff] }
 0x197   :  { %1529 = vmatpush1.bf16.msra.mxu0 %v2801_v14  ;;  %1793 = vmatpush1.bf16.msra.mxu1 %v2801_v14  ;;  %v4087_v14 = vld [vmem:[#allocation20_spill] sm:$0xff] }
 0x198   :  { %1530 = vmatprep.subr.bf16.mxu0 %v2808_v15  ;;  %1794 = vmatprep.subr.bf16.mxu1 %v2808_v15  ;;  %v4088_v15 = vld [vmem:[#allocation21_spill] sm:$0xff] }
 0x19b   :  { %1531 = vmatpush1.bf16.msra.mxu0 %v2815_v17  ;;  %1795 = vmatpush1.bf16.msra.mxu1 %v2815_v17  ;;  %v4089_v17 = vld [vmem:[#allocation22_spill] sm:$0xff] }
 0x19c   :  { %1532 = vmatprep.subr.bf16.mxu0 %v2822_v18  ;;  %1796 = vmatprep.subr.bf16.mxu1 %v2822_v18  ;;  %v4090_v18 = vld [vmem:[#allocation23_spill] sm:$0xff] }
 0x19f   :  { %1533 = vmatpush1.bf16.msra.mxu0 %v2839_v21  ;;  %1797 = vmatpush1.bf16.msra.mxu1 %v2839_v21  ;;  %v4091_v21 = vld [vmem:[#allocation24_spill] sm:$0xff] }
 0x1a0   :  { %1543 = vmatprep.subr.bf16.mxu0 %v2846_v22  ;;  %1807 = vmatprep.subr.bf16.mxu1 %v2846_v22  ;;  %v4092_v22 = vld [vmem:[#allocation25_spill] sm:$0xff] }
 0x1a2   :  { %1535 = vmatmul.mubr.bf16.vlgmr.msra.gmra.mrb[4].mxu0 %v3565_v27  ;;  %1799 = vmatmul.mubr.bf16.vlgmr.msra.gmra.mrb[4].mxu1 %v3568_v48  ;;  %v4108_v27 = vld [vmem:[#allocation41_spill] sm:$0xff]  ;;  %v4109_v48 = vld [vmem:[#allocation42_spill] sm:$0xff] }
 0x1a3   :  { %1544 = vmatpush1.bf16.msra.mxu0 %v2861_v25  ;;  %1808 = vmatpush1.bf16.msra.mxu1 %v2861_v25  ;;  %v4093_v25 = vld [vmem:[#allocation26_spill] sm:$0xff] }
 0x1a4   :  { %1545 = vmatprep.subr.bf16.mxu0 %v2868_v26  ;;  %1809 = vmatprep.subr.bf16.mxu1 %v2868_v26 }
 0x1a5   :  { %1575 = vmatprep.mubr.bf16.mxu0 %v1443_v53  ;;  %1839 = vmatprep.mubr.bf16.mxu1 %v1707_v54  ;;  %v4116_v53 = vld [vmem:[#allocation49_spill] sm:$0xff]  ;;  %v4117_v54 = vld [vmem:[#allocation50_spill] sm:$0xff] }
 0x1a7   :  { %1546 = vmatpush1.bf16.msra.mxu0 %v2881_v29  ;;  %1810 = vmatpush1.bf16.msra.mxu1 %v2881_v29 }
 0x1a8   :  { %1547 = vmatprep.subr.bf16.mxu0 %v2888_v30  ;;  %1811 = vmatprep.subr.bf16.mxu1 %v2888_v30 }
 0x1ab   :  { %1548 = vmatpush1.bf16.msra.mxu0 %v2895_v31  ;;  %1812 = vmatpush1.bf16.msra.mxu1 %v2895_v31 }
 0x1ac   :  { %1549 = vmatprep.subr.bf16.mxu0 %v2902_v32  ;;  %1813 = vmatprep.subr.bf16.mxu1 %v2902_v32 }
 0x1af   :  { %1550 = vmatpush1.bf16.msra.mxu0 %v2909_v33  ;;  %1814 = vmatpush1.bf16.msra.mxu1 %v2909_v33 }
 0x1b0   :  { %1551 = vmatprep.subr.bf16.mxu0 %v2916_v34  ;;  %1815 = vmatprep.subr.bf16.mxu1 %v2916_v34 }
 0x1b3   :  { %1552 = vmatpush1.bf16.msra.mxu0 %v2923_v35  ;;  %1816 = vmatpush1.bf16.msra.mxu1 %v2923_v35 }
 0x1b4   :  { %1553 = vmatprep.subr.bf16.mxu0 %v2930_v36  ;;  %1817 = vmatprep.subr.bf16.mxu1 %v2930_v36  ;;  %v4094_v36 = vld [vmem:[#allocation27_spill] sm:$0xff] }
 0x1b7   :  { %1554 = vmatpush1.bf16.msra.mxu0 %v2937_v37  ;;  %1818 = vmatpush1.bf16.msra.mxu1 %v2937_v37 }
 0x1b8   :  { %1555 = vmatprep.subr.bf16.mxu0 %v2944_v38  ;;  %1819 = vmatprep.subr.bf16.mxu1 %v2944_v38 }
 0x1bb   :  { %1556 = vmatpush1.bf16.msra.mxu0 %v2951_v39  ;;  %1820 = vmatpush1.bf16.msra.mxu1 %v2951_v39  ;;  %v4095_v39 = vld [vmem:[#allocation28_spill] sm:$0xff] }
 0x1bc   :  { %1557 = vmatprep.subr.bf16.mxu0 %v2958_v40  ;;  %1821 = vmatprep.subr.bf16.mxu1 %v2958_v40  ;;  %v4096_v40 = vld [vmem:[#allocation29_spill] sm:$0xff] }
 0x1bf   :  { %1558 = vmatpush1.bf16.msra.mxu0 %v2965_v41  ;;  %1822 = vmatpush1.bf16.msra.mxu1 %v2965_v41  ;;  %v4097_v41 = vld [vmem:[#allocation30_spill] sm:$0xff] }
 0x1c0   :  { %1559 = vmatprep.subr.bf16.mxu0 %v2972_v42  ;;  %1823 = vmatprep.subr.bf16.mxu1 %v2972_v42  ;;  %v4098_v42 = vld [vmem:[#allocation31_spill] sm:$0xff] }
 0x1c3   :  { %1560 = vmatpush1.bf16.msra.mxu0 %v2979_v43  ;;  %1824 = vmatpush1.bf16.msra.mxu1 %v2979_v43  ;;  %v4099_v43 = vld [vmem:[#allocation32_spill] sm:$0xff] }
 0x1c4   :  { %1561 = vmatprep.subr.bf16.mxu0 %v2986_v44  ;;  %1825 = vmatprep.subr.bf16.mxu1 %v2986_v44  ;;  %v4100_v44 = vld [vmem:[#allocation33_spill] sm:$0xff] }
 0x1c7   :  { %1562 = vmatpush1.bf16.msra.mxu0 %v4070_v55  ;;  %1826 = vmatpush1.bf16.msra.mxu1 %v4070_v55  ;;  %v4118_v55 = vmov 0  }
 0x1c8   :  { %1563 = vmatprep.subr.bf16.mxu0 %v4071_v56  ;;  %1827 = vmatprep.subr.bf16.mxu1 %v4071_v56  ;;  %v4119_v56 = vld [vmem:[#allocation51_spill] sm:$0xff] }
 0x1cb   :  { %1564 = vmatpush1.bf16.msra.mxu0 %v4072_v57  ;;  %1828 = vmatpush1.bf16.msra.mxu1 %v4072_v57  ;;  %v4120_v57 = vld [vmem:[#allocation52_spill] sm:$0xff] }
 0x1cc   :  { %1565 = vmatprep.subr.bf16.mxu0 %v4073_v58  ;;  %1829 = vmatprep.subr.bf16.mxu1 %v4073_v58  ;;  %v4121_v58 = vld [vmem:[#allocation53_spill] sm:$0xff] }
 0x1cf   :  { %1566 = vmatpush1.bf16.msra.mxu0 %v4074_v59  ;;  %1830 = vmatpush1.bf16.msra.mxu1 %v4074_v59  ;;  %v4122_v59 = vld [vmem:[#allocation54_spill] sm:$0xff] }
 0x1d0   :  { %1567 = vmatprep.subr.bf16.mxu0 %v4075_v60  ;;  %1831 = vmatprep.subr.bf16.mxu1 %v4075_v60  ;;  %v4123_v60 = vld [vmem:[#allocation55_spill] sm:$0xff] }
 0x1d3   :  { %1568 = vmatpush1.bf16.msra.mxu0 %v4076_v61  ;;  %1832 = vmatpush1.bf16.msra.mxu1 %v4076_v61  ;;  %v4124_v61 = vld [vmem:[#allocation56_spill] sm:$0xff] }
 0x1d4   :  { %1569 = vmatprep.subr.bf16.mxu0 %v4077_v62  ;;  %1833 = vmatprep.subr.bf16.mxu1 %v4077_v62  ;;  %v4125_v62 = vld [vmem:[#allocation57_spill] sm:$0xff] }
 0x1d7   :  { %1570 = vmatpush1.bf16.msra.mxu0 %v4078_v63  ;;  %1834 = vmatpush1.bf16.msra.mxu1 %v4078_v63  ;;  %v4126_v63 = vld [vmem:[#allocation58_spill] sm:$0xff] }
 0x1d8   :  { %1571 = vmatprep.subr.bf16.mxu0 %v4079_v0  ;;  %1835 = vmatprep.subr.bf16.mxu1 %v4079_v0  ;;  %v4127_v0 = vld [vmem:[#allocation59_spill] sm:$0xff] }
 0x1db   :  { %1572 = vmatpush1.bf16.msra.mxu0 %v4080_v3  ;;  %1836 = vmatpush1.bf16.msra.mxu1 %v4080_v3  ;;  %v4130_v3 = vld [vmem:[#allocation62_spill] sm:$0xff] }
 0x1dc   :  { %1573 = vmatprep.subr.bf16.mxu0 %v4081_v4  ;;  %1837 = vmatprep.subr.bf16.mxu1 %v4081_v4  ;;  %v2118_v4 = vld.sshfl [vmem:[%s3879_s0 + $0x34] sm:$0x3 pattern:$0x76325410] }
 0x1df   :  { %1574 = vmatpush1.bf16.msra.mxu0 %v4082_v7  ;;  %1838 = vmatpush1.bf16.msra.mxu1 %v4082_v7  ;;  %v4132_v7 = vld [vmem:[#allocation2_spill] sm:$0xff] }
 0x1e0   :  { %1584 = vmatprep.subr.bf16.mxu0 %v4083_v8  ;;  %1848 = vmatprep.subr.bf16.mxu1 %v4083_v8  ;;  %v1936_v8 = vsub.s32 0, %v4132_v7 }
 0x1e2   :  { %1576 = vmatmul.mubr.bf16.vlgmr.msra.gmra.mrb[4].mxu0 %v3652_v49  ;;  %1840 = vmatmul.mubr.bf16.vlgmr.msra.gmra.mrb[4].mxu1 %v3656_v50  ;;  %v4114_v49 = vld [vmem:[#allocation47_spill] sm:$0xff]  ;;  %v4115_v50 = vld [vmem:[#allocation48_spill] sm:$0xff] }
 0x1e3   :  { %1585 = vmatpush1.bf16.msra.mxu0 %v4084_v16  ;;  %1849 = vmatpush1.bf16.msra.mxu1 %v4084_v16 }
 0x1e4   :  { %1586 = vmatprep.subr.bf16.mxu0 %v4085_v11  ;;  %1850 = vmatprep.subr.bf16.mxu1 %v4085_v11 }
 0x1e5   :  { %1616 = vmatprep.mubr.bf16.mxu0 %v1444_v9  ;;  %1880 = vmatprep.mubr.bf16.mxu1 %v1708_v10  ;;  %v1932_v9 = vld [vmem:[%s3880_s2] sm:$0x3]  ;;  %v1940_v10 = vsub.s32 1, %v4132_v7 }
 0x1e7   :  { %1587 = vmatpush1.bf16.msra.mxu0 %v4086_v12  ;;  %1851 = vmatpush1.bf16.msra.mxu1 %v4086_v12 }
 0x1e8   :  { %1588 = vmatprep.subr.bf16.mxu0 %v4087_v14  ;;  %1852 = vmatprep.subr.bf16.mxu1 %v4087_v14  ;;  %v1937_v14 = vrot.slane %v1932_v9, %v1936_v8 }
 0x1eb   :  { %1589 = vmatpush1.bf16.msra.mxu0 %v4088_v15  ;;  %1853 = vmatpush1.bf16.msra.mxu1 %v4088_v15 }
 0x1ec   :  { %1590 = vmatprep.subr.bf16.mxu0 %v4089_v17  ;;  %1854 = vmatprep.subr.bf16.mxu1 %v4089_v17 }
 0x1ef   :  { %1591 = vmatpush1.bf16.msra.mxu0 %v4090_v18  ;;  %1855 = vmatpush1.bf16.msra.mxu1 %v4090_v18 }
 0x1f0   :  { %1592 = vmatprep.subr.bf16.mxu0 %v4091_v21  ;;  %1856 = vmatprep.subr.bf16.mxu1 %v4091_v21  ;;  %v1941_v21 = vrot.slane %v1932_v9, %v1940_v10 }
 0x1f3   :  { %1593 = vmatpush1.bf16.msra.mxu0 %v4092_v22  ;;  %1857 = vmatpush1.bf16.msra.mxu1 %v4092_v22 }
 0x1f4   :  { %1594 = vmatprep.subr.bf16.mxu0 %v4093_v25  ;;  %1858 = vmatprep.subr.bf16.mxu1 %v4093_v25 }
 0x1f5   :  { %v3768_v26 = vpop.f32.mrb[0].mxu0  ;;  %v3770_v29 = vpop.f32.mrb[0].mxu1 }
 0x1f6   :  { %v1402_v30 = vmax.f32 %v3768_v26, %v3770_v29  ;;  %v3774_v31 = vpop.f32.mrb[1].mxu0  ;;  %v3776_v32 = vpop.f32.mrb[1].mxu1 }
 0x1f7   :  { %v1403_v33 = vmax.f32 %v3774_v31, %v3776_v32  ;;  %v1137_v34 = vpop.f32.mrb[2].mxu0  ;;  %v1399_v35 = vpop.f32.mrb[2].mxu1  ;;  %1595 = vmatpush1.bf16.msra.mxu0 %v4094_v36  ;;  %1859 = vmatpush1.bf16.msra.mxu1 %v4094_v36 }
 0x1f8   :  { %v1138_v37 = vpop.f32.mrb[3].mxu0  ;;  %v1400_v38 = vpop.f32.mrb[3].mxu1  ;;  %1596 = vmatprep.subr.bf16.mxu0 %v4095_v39  ;;  %1860 = vmatprep.subr.bf16.mxu1 %v4095_v39 }
 0x1fb   :  { %1597 = vmatpush1.bf16.msra.mxu0 %v4096_v40  ;;  %1861 = vmatpush1.bf16.msra.mxu1 %v4096_v40 }
 0x1fc   :  { %1598 = vmatprep.subr.bf16.mxu0 %v4097_v41  ;;  %1862 = vmatprep.subr.bf16.mxu1 %v4097_v41 }
 0x1ff   :  { %1599 = vmatpush1.bf16.msra.mxu0 %v4098_v42  ;;  %1863 = vmatpush1.bf16.msra.mxu1 %v4098_v42 }
 0x200   :  { %1600 = vmatprep.subr.bf16.mxu0 %v4099_v43  ;;  %1864 = vmatprep.subr.bf16.mxu1 %v4099_v43 }
 0x203   :  { %1601 = vmatpush1.bf16.msra.mxu0 %v4100_v44  ;;  %1865 = vmatpush1.bf16.msra.mxu1 %v4100_v44 }
 0x204   :  { %1602 = vmatprep.subr.bf16.mxu0 %v4101_v52  ;;  %1866 = vmatprep.subr.bf16.mxu1 %v4101_v52 }
 0x207   :  { %1603 = vmatpush1.bf16.msra.mxu0 %v4102_v23  ;;  %1867 = vmatpush1.bf16.msra.mxu1 %v4102_v23 }
 0x208   :  { %1604 = vmatprep.subr.bf16.mxu0 %v4103_v47  ;;  %1868 = vmatprep.subr.bf16.mxu1 %v4103_v47 }
 0x20b   :  { %1605 = vmatpush1.bf16.msra.mxu0 %v4104_v51  ;;  %1869 = vmatpush1.bf16.msra.mxu1 %v4104_v51 }
 0x20c   :  { %1606 = vmatprep.subr.bf16.mxu0 %v4105_v28  ;;  %1870 = vmatprep.subr.bf16.mxu1 %v4105_v28 }
 0x20f   :  { %1607 = vmatpush1.bf16.msra.mxu0 %v4106_v19  ;;  %1871 = vmatpush1.bf16.msra.mxu1 %v4106_v19 }
 0x210   :  { %1608 = vmatprep.subr.bf16.mxu0 %v4107_v24  ;;  %1872 = vmatprep.subr.bf16.mxu1 %v4107_v24 }
 0x213   :  { %1609 = vmatpush1.bf16.msra.mxu0 %v4108_v27  ;;  %1873 = vmatpush1.bf16.msra.mxu1 %v4108_v27 }
 0x214   :  { %1610 = vmatprep.subr.bf16.mxu0 %v4109_v48  ;;  %1874 = vmatprep.subr.bf16.mxu1 %v4109_v48 }
 0x217   :  { %1611 = vmatpush1.bf16.msra.mxu0 %v4110_v20  ;;  %1875 = vmatpush1.bf16.msra.mxu1 %v4110_v20 }
 0x218   :  { %1612 = vmatprep.subr.bf16.mxu0 %v4111_v13  ;;  %1876 = vmatprep.subr.bf16.mxu1 %v4111_v13 }
 0x21b   :  { %1613 = vmatpush1.bf16.msra.mxu0 %v4112_v45  ;;  %1877 = vmatpush1.bf16.msra.mxu1 %v4112_v45 }
 0x21c   :  { %1614 = vmatprep.subr.bf16.mxu0 %v4113_v46  ;;  %1878 = vmatprep.subr.bf16.mxu1 %v4113_v46 }
 0x21f   :  { %1615 = vmatpush1.bf16.msra.mxu0 %v4114_v49  ;;  %1879 = vmatpush1.bf16.msra.mxu1 %v4114_v49 }
 0x220   :  { %1625 = vmatprep.subr.bf16.mxu0 %v4115_v50  ;;  %1889 = vmatprep.subr.bf16.mxu1 %v4115_v50 }
 0x222   :  { %1617 = vmatmul.mubr.bf16.vlgmr.msra.gmra.mrb[4].mxu0 %v3733_v5  ;;  %1881 = vmatmul.mubr.bf16.vlgmr.msra.gmra.mrb[4].mxu1 %v3736_v6  ;;  %v4131_v5 = vld [vmem:[#allocation63_spill] sm:$0xff]  ;;  %v2122_v6 = vld.sshfl [vmem:[%s3879_s0 + $0x46] sm:$0x3 pattern:$0x76325410] }
 0x223   :  { %1626 = vmatpush1.bf16.msra.mxu0 %v4116_v53  ;;  %1890 = vmatpush1.bf16.msra.mxu1 %v4116_v53 }
 0x224   :  { %1627 = vmatprep.subr.bf16.mxu0 %v4117_v54  ;;  %1891 = vmatprep.subr.bf16.mxu1 %v4117_v54 }
 0x225   :  { %1657 = vmatprep.mubr.bf16.mxu0 %v4118_v55  ;;  %1921 = vmatprep.mubr.bf16.mxu1 %v4118_v55 }
 0x227   :  { %1628 = vmatpush1.bf16.msra.mxu0 %v4119_v56  ;;  %1892 = vmatpush1.bf16.msra.mxu1 %v4119_v56 }
 0x228   :  { %1629 = vmatprep.subr.bf16.mxu0 %v4120_v57  ;;  %1893 = vmatprep.subr.bf16.mxu1 %v4120_v57 }
 0x22b   :  { %1630 = vmatpush1.bf16.msra.mxu0 %v4121_v58  ;;  %1894 = vmatpush1.bf16.msra.mxu1 %v4121_v58 }
 0x22c   :  { %1631 = vmatprep.subr.bf16.mxu0 %v4122_v59  ;;  %1895 = vmatprep.subr.bf16.mxu1 %v4122_v59 }
 0x22f   :  { %1632 = vmatpush1.bf16.msra.mxu0 %v4123_v60  ;;  %1896 = vmatpush1.bf16.msra.mxu1 %v4123_v60 }
 0x230   :  { %1633 = vmatprep.subr.bf16.mxu0 %v4124_v61  ;;  %1897 = vmatprep.subr.bf16.mxu1 %v4124_v61 }
 0x233   :  { %1634 = vmatpush1.bf16.msra.mxu0 %v4125_v62  ;;  %1898 = vmatpush1.bf16.msra.mxu1 %v4125_v62 }
 0x234   :  { %1635 = vmatprep.subr.bf16.mxu0 %v4126_v63  ;;  %1899 = vmatprep.subr.bf16.mxu1 %v4126_v63 }
 0x237   :  { %1636 = vmatpush1.bf16.msra.mxu0 %v4127_v0  ;;  %1900 = vmatpush1.bf16.msra.mxu1 %v4127_v0 }
 0x238   :  { %1637 = vmatprep.subr.bf16.mxu0 %v4128_v1  ;;  %1901 = vmatprep.subr.bf16.mxu1 %v4128_v1 }
 0x23b   :  { %1638 = vmatpush1.bf16.msra.mxu0 %v4129_v2  ;;  %1902 = vmatpush1.bf16.msra.mxu1 %v4129_v2 }
 0x23c   :  { %1639 = vmatprep.subr.bf16.mxu0 %v4130_v3  ;;  %1903 = vmatprep.subr.bf16.mxu1 %v4130_v3 }
 0x23f   :  { %1640 = vmatpush1.bf16.msra.mxu0 %v4131_v5  ;;  %1904 = vmatpush1.bf16.msra.mxu1 %v4131_v5 }
 0x242   :  { %1658 = vmatmul.mubr.bf16.vlgmr.msra.gmra.mrb[4].mxu0 %v2118_v4  ;;  %1922 = vmatmul.mubr.bf16.vlgmr.msra.gmra.mrb[4].mxu1 %v2122_v6 }
 0x315   :  { %v1659_v16 = vpop.f32.mrb[4].mxu0  ;;  %v1923_v11 = vpop.f32.mrb[4].mxu1 }
 0x316   :  { %v1666_v12 = vmax.f32 %v1402_v30, %v1659_v16  ;;  %v1661_v15 = vpop.f32.mrb[5].mxu0  ;;  %v1925_v17 = vpop.f32.mrb[5].mxu1 }
 0x317   :  { %v1667_v18 = vmax.f32 %v1403_v33, %v1661_v15  ;;  %v1663_v22 = vpop.f32.mrb[6].mxu0  ;;  %v1927_v25 = vpop.f32.mrb[6].mxu1 }
 0x318   :  { %v1930_v34 = vmax.f32 %v1666_v12, %v1923_v11  ;;  %v1664_v35 = vpop.f32.mrb[7].mxu0  ;;  %v1928_v36 = vpop.f32.mrb[7].mxu1 }
 0x319   :  { %v1931_v37 = vmax.f32 %v1667_v18, %v1925_v17 }
 0x31a   :  { %v1944_v38 = vadd.f32 %v1937_v14, %v1930_v34 }
 0x31b   :  { %v1945_v39 = vadd.f32 %v1941_v21, %v1931_v37 }
 0x31c   :  { %v1946_v40 = vmax.f32 %v1944_v38, 0.0 }
 0x31d   :  { %v1947_v41 = vmax.f32 %v1945_v39, 0.0 }
 0x31f   :  { %v2123_v26 = vpack.c.bf16 %v1947_v41, %v1946_v40 }
 0x321   :  { %2124 = vst.sshfl [vmem:[%s3881_s3] sm:$0x33 pattern:$0x76325410] %v2123_v26 }

// kernel: asr_forward.9
= control target key start
LH: loop header
LB: loop body
LE: loop exit
PB: predicated region body
PF: predicated region fallthrough
CT: control target
= control target key end

     0   :  { %v800_v38 = vmov 1983009808   ;;  %v26_v40 = vlaneseq  ;;  %s1049_s0 = inlined_call_operand.vmem [shape: bf16[2,1,2,256], index: 0, kind: input, shape index: {}]   ;;  %s1050_s1 = inlined_call_operand.vmem [shape: bf16[2,256,176], index: 1, kind: input, shape index: {}]   ;;  %s1051_s2 = inlined_call_operand.vmem [shape: f32[1,176], index: 2, kind: input, shape index: {}]   ;;  %s1052_s3 = inlined_call_operand.hbm [shape: f32[2,176], index: 3, kind: output, shape index: {}]  }
   0x1   :  { %v680_v0 = vld [vmem:[%s1050_s1 + $0x104] ss:$8 sps:$4 sm:$0xff]   ;;  %v684_v2 = vld [vmem:[%s1050_s1 + $0x100] ss:$8 sps:$4 sm:$0xff]   ;;  %v686_v4 = vld [vmem:[%s1050_s1 + $0x114] ss:$8 sps:$4 sm:$0xff]   ;;  %v24_v39 = vunpack.c.l.s4 %v800_v38 }
   0x2   :  { %v682_v1 = vld [vmem:[%s1050_s1 + $0x4] ss:$8 sps:$4 sm:$0xff]   ;;  %289 = vmatprep.subr.bf16.mxu0 %v680_v0  ;;  %v685_v3 = vld [vmem:[%s1050_s1] ss:$8 sps:$4 sm:$0xff]   ;;  %v688_v5 = vld [vmem:[%s1050_s1 + $0x14] ss:$8 sps:$4 sm:$0xff]  }
   0x3   :  { %498 = vmatprep.subr.bf16.mxu1 %v682_v1  ;;  %290 = vmatpush1.bf16.msra.mxu0 %v684_v2  ;;  %v690_v6 = vld [vmem:[%s1050_s1 + $0x110] ss:$8 sps:$4 sm:$0xff]   ;;  %v692_v8 = vld [vmem:[%s1050_s1 + $0x124] ss:$8 sps:$4 sm:$0xff]   ;;  %v696_v10 = vld [vmem:[%s1050_s1 + $0x120] ss:$8 sps:$4 sm:$0xff]   ;;  %v25_v45 = vunpack.c.0.s8 %v24_v39 }
   0x4   :  { %499 = vmatpush1.bf16.msra.mxu1 %v685_v3  ;;  %291 = vmatprep.subr.bf16.mxu0 %v686_v4  ;;  %v691_v7 = vld [vmem:[%s1050_s1 + $0x10] ss:$8 sps:$4 sm:$0xff]   ;;  %v694_v9 = vld [vmem:[%s1050_s1 + $0x24] ss:$8 sps:$4 sm:$0xff]   ;;  %v697_v11 = vld [vmem:[%s1050_s1 + $0x20] ss:$8 sps:$4 sm:$0xff]  }
   0x5   :  { %500 = vmatprep.subr.bf16.mxu1 %v688_v5  ;;  %v698_v12 = vld [vmem:[%s1050_s1 + $0x134] ss:$8 sps:$4 sm:$0xff]   ;;  %v702_v14 = vld [vmem:[%s1050_s1 + $0x130] ss:$8 sps:$4 sm:$0xff]   ;;  %v704_v16 = vld [vmem:[%s1050_s1 + $0x144] ss:$8 sps:$4 sm:$0xff]  }
   0x6   :  { %v700_v13 = vld [vmem:[%s1050_s1 + $0x34] ss:$8 sps:$4 sm:$0xff]   ;;  %v703_v15 = vld [vmem:[%s1050_s1 + $0x30] ss:$8 sps:$4 sm:$0xff]   ;;  %v706_v17 = vld [vmem:[%s1050_s1 + $0x44] ss:$8 sps:$4 sm:$0xff]  }
   0x7   :  { %292 = vmatpush1.bf16.msra.mxu0 %v690_v6  ;;  %v708_v18 = vld [vmem:[%s1050_s1 + $0x140] ss:$8 sps:$4 sm:$0xff]   ;;  %v710_v20 = vld [vmem:[%s1050_s1 + $0x154] ss:$8 sps:$4 sm:$0xff]   ;;  %v714_v22 = vld [vmem:[%s1050_s1 + $0x150] ss:$8 sps:$4 sm:$0xff]  }
   0x8   :  { %501 = vmatpush1.bf16.msra.mxu1 %v691_v7  ;;  %293 = vmatprep.subr.bf16.mxu0 %v692_v8  ;;  %v709_v19 = vld [vmem:[%s1050_s1 + $0x40] ss:$8 sps:$4 sm:$0xff]   ;;  %v712_v21 = vld [vmem:[%s1050_s1 + $0x54] ss:$8 sps:$4 sm:$0xff]   ;;  %v715_v23 = vld [vmem:[%s1050_s1 + $0x50] ss:$8 sps:$4 sm:$0xff]  }
   0x9   :  { %502 = vmatprep.subr.bf16.mxu1 %v694_v9  ;;  %v716_v24 = vld [vmem:[%s1050_s1 + $0x164] ss:$8 sps:$4 sm:$0xff]   ;;  %v720_v26 = vld [vmem:[%s1050_s1 + $0x160] ss:$8 sps:$4 sm:$0xff]   ;;  %v722_v28 = vld [vmem:[%s1050_s1 + $0x174] ss:$8 sps:$4 sm:$0xff]  }
   0xa   :  { %v718_v25 = vld [vmem:[%s1050_s1 + $0x64] ss:$8 sps:$4 sm:$0xff]   ;;  %v721_v27 = vld [vmem:[%s1050_s1 + $0x60] ss:$8 sps:$4 sm:$0xff]   ;;  %v724_v29 = vld [vmem:[%s1050_s1 + $0x74] ss:$8 sps:$4 sm:$0xff]  }
   0xb   :  { %294 = vmatpush1.bf16.msra.mxu0 %v696_v10  ;;  %v726_v30 = vld [vmem:[%s1050_s1 + $0x170] ss:$8 sps:$4 sm:$0xff]   ;;  %v728_v32 = vld [vmem:[%s1050_s1 + $0x184] ss:$8 sps:$4 sm:$0xff]   ;;  %v732_v34 = vld [vmem:[%s1050_s1 + $0x180] ss:$8 sps:$4 sm:$0xff]  }
   0xc   :  { %503 = vmatpush1.bf16.msra.mxu1 %v697_v11  ;;  %295 = vmatprep.subr.bf16.mxu0 %v698_v12  ;;  %v727_v31 = vld [vmem:[%s1050_s1 + $0x70] ss:$8 sps:$4 sm:$0xff]   ;;  %v730_v33 = vld [vmem:[%s1050_s1 + $0x84] ss:$8 sps:$4 sm:$0xff]   ;;  %v733_v35 = vld [vmem:[%s1050_s1 + $0x80] ss:$8 sps:$4 sm:$0xff]  }
   0xd   :  { %504 = vmatprep.subr.bf16.mxu1 %v700_v13  ;;  %v734_v36 = vld [vmem:[%s1050_s1 + $0x194] ss:$8 sps:$4 sm:$0xff]   ;;  %v738_v41 = vld [vmem:[%s1050_s1 + $0x190] ss:$8 sps:$4 sm:$0xff]   ;;  %v740_v43 = vld [vmem:[%s1050_s1 + $0x1a4] ss:$8 sps:$4 sm:$0xff]  }
   0xe   :  { %v736_v37 = vld [vmem:[%s1050_s1 + $0x94] ss:$8 sps:$4 sm:$0xff]   ;;  %v739_v42 = vld [vmem:[%s1050_s1 + $0x90] ss:$8 sps:$4 sm:$0xff]   ;;  %v742_v44 = vld [vmem:[%s1050_s1 + $0xa4] ss:$8 sps:$4 sm:$0xff]  }
   0xf   :  { %296 = vmatpush1.bf16.msra.mxu0 %v702_v14  ;;  %v948_v46 = vshrl.u32 %v26_v40, 7  ;;  %v744_v47 = vld [vmem:[%s1050_s1 + $0x1a0] ss:$8 sps:$4 sm:$0xff]   ;;  %v746_v49 = vld [vmem:[%s1050_s1 + $0x1b4] ss:$8 sps:$4 sm:$0xff]  }
  0x10   :  { %505 = vmatpush1.bf16.msra.mxu1 %v703_v15  ;;  %297 = vmatprep.subr.bf16.mxu0 %v704_v16  ;;  %v745_v48 = vld [vmem:[%s1050_s1 + $0xa0] ss:$8 sps:$4 sm:$0xff]   ;;  %v748_v50 = vld [vmem:[%s1050_s1 + $0xb4] ss:$8 sps:$4 sm:$0xff]  }
  0x11   :  { %506 = vmatprep.subr.bf16.mxu1 %v706_v17  ;;  %v963_v51 = vsub.s32 %v25_v45, %v948_v46  ;;  %v15_v52 = vld [vmem:[%s1049_s0] sm:$0x3]  ;;  %v16_v53 = vld [vmem:[%s1049_s0 + $0x2] sm:$0x3] }
  0x12   :  { %v17_v54 = vunpack.c.l.bf16 %v15_v52 }
  0x13   :  { %298 = vmatpush1.bf16.msra.mxu0 %v708_v18 }
  0x14   :  { %507 = vmatpush1.bf16.msra.mxu1 %v709_v19  ;;  %299 = vmatprep.subr.bf16.mxu0 %v710_v20 }
  0x15   :  { %508 = vmatprep.subr.bf16.mxu1 %v712_v21 }
  0x17   :  { %300 = vmatpush1.bf16.msra.mxu0 %v714_v22 }
  0x18   :  { %509 = vmatpush1.bf16.msra.mxu1 %v715_v23  ;;  %301 = vmatprep.subr.bf16.mxu0 %v716_v24 }
  0x19   :  { %510 = vmatprep.subr.bf16.mxu1 %v718_v25 }
  0x1b   :  { %302 = vmatpush1.bf16.msra.mxu0 %v720_v26 }
  0x1c   :  { %511 = vmatpush1.bf16.msra.mxu1 %v721_v27  ;;  %303 = vmatprep.subr.bf16.mxu0 %v722_v28 }
  0x1d   :  { %512 = vmatprep.subr.bf16.mxu1 %v724_v29 }
  0x1f   :  { %304 = vmatpush1.bf16.msra.mxu0 %v726_v30 }
  0x20   :  { %513 = vmatpush1.bf16.msra.mxu1 %v727_v31  ;;  %305 = vmatprep.subr.bf16.mxu0 %v728_v32 }
  0x21   :  { %514 = vmatprep.subr.bf16.mxu1 %v730_v33 }
  0x23   :  { %306 = vmatpush1.bf16.msra.mxu0 %v732_v34 }
  0x24   :  { %515 = vmatpush1.bf16.msra.mxu1 %v733_v35  ;;  %307 = vmatprep.subr.bf16.mxu0 %v734_v36 }
  0x25   :  { %516 = vmatprep.subr.bf16.mxu1 %v736_v37 }
  0x27   :  { %308 = vmatpush1.bf16.msra.mxu0 %v738_v41 }
  0x28   :  { %517 = vmatpush1.bf16.msra.mxu1 %v739_v42  ;;  %309 = vmatprep.subr.bf16.mxu0 %v740_v43 }
  0x29   :  { %518 = vmatprep.subr.bf16.mxu1 %v742_v44 }
  0x2a   :  { %8 = vsyncpa [#allocation3], 0  ;;  %v750_v55 = vld [vmem:[%s1050_s1 + $0x1b0] ss:$8 sps:$4 sm:$0xff]   ;;  %v18_v57 = vunpack.c.l.bf16 %v16_v53  ;;  %v752_v58 = vld [vmem:[%s1050_s1 + $0x1c4] ss:$8 sps:$4 sm:$0xff]   ;;  %v29_v60 = vrot.slane %v17_v54, %v963_v51 }
  0x2b   :  { %310 = vmatpush1.bf16.msra.mxu0 %v744_v47  ;;  %v751_v56 = vld [vmem:[%s1050_s1 + $0xb0] ss:$8 sps:$4 sm:$0xff]   ;;  %v754_v59 = vld [vmem:[%s1050_s1 + $0xc4] ss:$8 sps:$4 sm:$0xff]   ;;  %v756_v63 = vld [vmem:[%s1050_s1 + $0x1c0] ss:$8 sps:$4 sm:$0xff]  }
  0x2c   :  { %519 = vmatpush1.bf16.msra.mxu1 %v745_v48  ;;  %311 = vmatprep.subr.bf16.mxu0 %v746_v49  ;;  %v37_v61 = vrot.slane %v18_v57, %v963_v51  ;;  %v30_v62 = vcombine.high %v29_v60, %v29_v60  ;;  %v757_v0 = vld [vmem:[%s1050_s1 + $0xc0] ss:$8 sps:$4 sm:$0xff]   ;;  %v43_v2 = vpack.c.bf16 %v29_v60, %v29_v60  ;;  %v758_v4 = vld [vmem:[%s1050_s1 + $0x1d4] ss:$8 sps:$4 sm:$0xff]   ;;  %v762_v9 = vld [vmem:[%s1050_s1 + $0x1d0] ss:$8 sps:$4 sm:$0xff]  }
  0x2d   :  { %520 = vmatprep.subr.bf16.mxu1 %v748_v50  ;;  %v760_v5 = vld [vmem:[%s1050_s1 + $0xd4] ss:$8 sps:$4 sm:$0xff]   ;;  %v763_v10 = vld [vmem:[%s1050_s1 + $0xd0] ss:$8 sps:$4 sm:$0xff]   ;;  %vm121_vm0 = vcmask 1041409   ;;  %v543_v34 = vsub.s32 0, %v948_v46 }
  0x2e   :  { %v38_v1 = vcombine.high %v37_v61, %v37_v61  ;;  %v45_v3 = vpack.c.bf16 %v37_v61, %v37_v61  ;;  %v44_v6 = vpack.c.bf16 %v30_v62, %v30_v62  ;;  %v116_v12 = vunpack.c.l.b16 %v43_v2  ;;  %v764_v14 = vld [vmem:[%s1050_s1 + $0x1e4] ss:$8 sps:$4 sm:$0xff]   ;;  %v768_v19 = vld [vmem:[%s1050_s1 + $0x1e0] ss:$8 sps:$4 sm:$0xff]   ;;  %v770_v25 = vld [vmem:[%s1050_s1 + $0x1f4] ss:$8 sps:$4 sm:$0xff]  }
  0x2f   :  { %312 = vmatpush1.bf16.msra.mxu0 %v750_v55  ;;  %v766_v15 = vld [vmem:[%s1050_s1 + $0xe4] ss:$8 sps:$4 sm:$0xff]   ;;  %v769_v20 = vld [vmem:[%s1050_s1 + $0xe0] ss:$8 sps:$4 sm:$0xff]   ;;  %v772_v26 = vld [vmem:[%s1050_s1 + $0xf4] ss:$8 sps:$4 sm:$0xff]  }
  0x30   :  { %521 = vmatpush1.bf16.msra.mxu1 %v751_v56  ;;  %313 = vmatprep.subr.bf16.mxu0 %v752_v58  ;;  %v46_v7 = vpack.c.bf16 %v38_v1, %v38_v1  ;;  %v117_v8 = vunpack.c.l.b16 %v44_v6  ;;  %v118_v13 = vunpack.c.l.b16 %v45_v3  ;;  %v120_v23 = vrot.slane %v116_v12, 1  ;;  %v774_v28 = vld [vmem:[%s1050_s1 + $0x1f0] ss:$8 sps:$4 sm:$0xff]   ;;  %v539_v35 = vld [vmem:[%s1051_s2] sm:$0x3] }
  0x31   :  { %522 = vmatprep.subr.bf16.mxu1 %v754_v59  ;;  %v775_v29 = vld [vmem:[%s1050_s1 + $0xf0] ss:$8 sps:$4 sm:$0xff]   ;;  %v547_v36 = vsub.s32 1, %v948_v46  ;;  %v544_v37 = vrot.slane %v539_v35, %v543_v34  ;;  %vm564_vm1 = vcmask 1041408   ;;  %vm565_vm2 = vcmask 388098   ;;  %s801_s1 = smov [#allocation2]  }
  0x32   :  { %v119_v11 = vunpack.c.l.b16 %v46_v7  ;;  %v123_v16 = vrot.slane %v117_v8, 1  ;;  %v330_v24 = vrot.slane %v118_v13, 7  ;;  %v122_v30 = vsel %vm121_vm0, %v118_v13, %v120_v23  ;;  %s574_s2 = sshll.u32 %s801_s1, 4  ;;  %vm566_vm3 = vmor %vm565_vm2, %vm564_vm1  ;;  %s575_s2 = int_to_ptr.vmem [resolvable:$true] %s574_s2 }
  0x33   :  { %314 = vmatpush1.bf16.msra.mxu0 %v756_v63  ;;  %v125_v32 = vpack.c.b16 %v122_v30, %v122_v30  ;;  %v548_v40 = vrot.slane %v539_v35, %v547_v36  ;;  %s776_s9 = scalar_lea.vmem %s575_s2, 64  ;;  %p781_p1 = scmp.lt.s32.totalorder %s575_s2, %s575_s2 }
  0x34   :  { %523 = vmatpush1.bf16.msra.mxu1 %v757_v0  ;;  %315 = vmatprep.subr.bf16.mxu0 %v758_v4  ;;  %v332_v17 = vrot.slane %v119_v11, 7  ;;  %v124_v18 = vsel %vm121_vm0, %v119_v11, %v123_v16  ;;  %v331_v31 = vsel %vm121_vm0, %v330_v24, %v116_v12  ;;  %p777_p0 = scmp.ne.s32.totalorder %s575_s2, %s776_s9  ;;  %p782_p2 = scmp.lt.s32.totalorder %s776_s9, %s776_s9 }
  0x35   :  { %524 = vmatprep.subr.bf16.mxu1 %v760_v5  ;;  %v126_v21 = vpack.c.b16 %v124_v18, %v124_v18  ;;  %v334_v33 = vpack.c.b16 %v331_v31, %v331_v31 }
  0x36   :  { %v333_v22 = vsel %vm121_vm0, %v332_v17, %v117_v8  ;;  %p783_p3 = por %p782_p2, %p781_p1 }
  0x37   :  { %316 = vmatpush1.bf16.msra.mxu0 %v762_v9  ;;  %v335_v27 = vpack.c.b16 %v333_v22, %v333_v22  ;;  %321 = vmatprep.mubr.bf16.mxu0 %v126_v21 }
  0x38   :  { %525 = vmatpush1.bf16.msra.mxu1 %v763_v10  ;;  %317 = vmatprep.subr.bf16.mxu0 %v764_v14  ;;  %p784_p4 = pnand %p783_p3, %p777_p0 }
  0x39   :  { %526 = vmatprep.subr.bf16.mxu1 %v766_v15  ;;  %530 = vmatprep.mubr.bf16.mxu1 %v335_v27 }
  0x3b   :  { %318 = vmatpush1.bf16.msra.mxu0 %v768_v19 }
  0x3c   :  { %527 = vmatpush1.bf16.msra.mxu1 %v769_v20  ;;  %319 = vmatprep.subr.bf16.mxu0 %v770_v25 }
  0x3d   :  { %528 = vmatprep.subr.bf16.mxu1 %v772_v26 }
  0x3f   :  { %320 = vmatpush1.bf16.msra.mxu0 %v774_v28 }
  0x40   :  { %529 = vmatpush1.bf16.msra.mxu1 %v775_v29 }
  0x42   :  { %322 = vmatmul.mubr.bf16.vlgmr.msra.gmra.mrb[0].mxu0 %v125_v32 }
  0x43   :  { %531 = vmatmul.mubr.bf16.vlgmr.msra.gmra.mrb[0].mxu1 %v334_v33 }
 0x115   :  { %v323_v38 = vpop.f32.mrb[0].mxu0 }
 0x116   :  { %v532_v39 = vpop.f32.mrb[0].mxu1  ;;  %v325_v42 = vpop.f32.mrb[1].mxu0 }
 0x117   :  { %v533_v41 = vadd.f32 %v532_v39, %v323_v38  ;;  %v534_v43 = vpop.f32.mrb[1].mxu1  ;;  %v327_v45 = vpop.f32.mrb[2].mxu0 }
 0x118   :  { %v535_v44 = vadd.f32 %v534_v43, %v325_v42  ;;  %v536_v47 = vpop.f32.mrb[2].mxu1  ;;  %v328_v49 = vpop.f32.mrb[3].mxu0 }
 0x119   :  { %v551_v48 = vadd.f32 %v544_v37, %v533_v41  ;;  %v537_v50 = vpop.f32.mrb[3].mxu1 }
 0x11a   :  { %v552_v52 = vadd.f32 %v548_v40, %v535_v44 }
 0x11c   :  { %v555_v53 = vcombine.low %v551_v48, %v552_v52 }
 0x11e   :  { %v562_v46 = vrot.slane %v555_v53, %v963_v51 }
 0x120   :  { %567 = vst.msk [vmem:[#allocation2] sm:$0xf] %vm566_vm3, %v562_v46 }
 0x121   :  { %787 = shalt.err (!%p784_p4)
}
 0x122   :  { %s788_s12 = scalar_lea.hbm %s1052_s3, 64 }
 0x123   :  { %p789_p5 = scmp.ne.s32.totalorder %s1052_s3, %s788_s12  ;;  %p792_p6 = scmp.lt.u32.totalorder %s788_s12, %s1052_s3 }
 0x125   :  { %p794_p7 = pnand %p792_p6, %p789_p5 }
 0x127   :  { %797 = shalt.err (!%p794_p7)
}
 0x128   :  { %577 = dma.vmem_to_hbm [thread:$0]  %s575_s2, 64, %s1052_s3, [#allocation3]  }
 0x129   :  { %798 = dma.done.wait [#allocation3], 64  }
 0x12a   :  { %799 = vsyncadd [#allocation3], 4294967232 }
 0x12b   :  { %581 = vsyncpa [#allocation3], 1 }

</bundles_post_ra>
